<compile_context>
chip_gen: v7x
topology: tpu7x:2x2x1
jax: 0.10.0
libtpu: 0.0.40
codegen_flags: <defaults>
</compile_context>

<pallas_src>
import functools

import numpy as np
import jax
import jax.numpy as jnp
from jax import lax
from jax.experimental import pallas as pl
from jax.experimental.pallas import tpu as pltpu

LRELU_SLOPE = 0.2
BN_EPS = 1e-5          # PyTorch BatchNorm1d default eps
K = 10                 # kernel_size
STRIDE = 2

# (l_in, l_out, c_in, c_out, pad) for conv layers l1, l2, l3, l5 (module defaults:
# input_shape=(60, 6), n_layers=4, kernel_size=10, strides=2, g_units_base=32).
L1 = (60, 32, 6, 32, 6)
L2 = (32, 16, 32, 64, 4)
L3 = (16, 8, 64, 128, 4)
L5 = (8, 4, 128, 256, 4)


# ---------------------------------------------------------------------------
# The single fused Pallas kernel (all activations stay VMEM / vreg resident)
# ---------------------------------------------------------------------------
def _fused_kernel(B,
                  p1_ref, w1_ref, w2_ref, w3_ref, pk_ref, w5_hbm,
                  o_ref,
                  w5_buf, w5_sem, pad2_ref, pad3_ref, pad5_ref, tmp_ref):
    f32 = jnp.float32

    # Kick off the layer-5 weight DMA (1.3 MB, the single largest input) right away;
    # it overlaps with the layer 1-3 compute and is waited on just before layer 5.
    w5_copy = pltpu.make_async_copy(w5_hbm, w5_buf, w5_sem)
    w5_copy.start()

    def lrelu(z):
        return jnp.maximum(z, LRELU_SLOPE * z)

    def bn(y, gamma, beta):
        # Training-mode BatchNorm1d: biased batch stats over all (n, l) rows per
        # channel, folded into a single affine pass.
        mu = jnp.mean(y, axis=0, keepdims=True)
        var = jnp.mean(jnp.square(y - mu), axis=0, keepdims=True)
        scale = gamma * lax.rsqrt(var + BN_EPS)
        return y * scale + (beta - mu * scale)

    def stage_padded(dst_ref, act, l_act, pad):
        # Scatter `act` ((B*l_act, C) rows ordered (b, l)) into a zero-padded
        # per-batch layout so the conv below can take strided tap slices.
        lp = l_act + 2 * pad
        dst_ref[...] = jnp.zeros_like(dst_ref)
        for b in range(B):
            dst_ref[b * lp + pad:b * lp + pad + l_act, :] = \
                act[b * l_act:(b + 1) * l_act, :]

    def conv(src_ref, w_ref, bias, cfg):
        # Conv1d(kernel=10, stride=2) over the zero-padded activation in `src_ref`,
        # expressed as K per-tap matmuls on statically strided slices (no selection
        # constants, no gather matmuls).  Tap operands are assembled batch-stacked
        # through a small double-buffered staging tile (lane offset always 0),
        # and two accumulators break the dependence chain across taps.
        l_in, l_out, c_in, c_out, pad = cfg
        lp = l_in + 2 * pad
        rows = B * l_out
        acc0 = jnp.zeros((rows, c_out), f32)
        acc1 = jnp.zeros((rows, c_out), f32)
        for k in range(K):
            slot = k % 2
            for b in range(B):
                tmp_ref[slot, b * l_out:(b + 1) * l_out, 0:c_in] = (
                    src_ref[pl.ds(b * lp + k, l_out, stride=STRIDE), :])
            a_k = tmp_ref[slot, 0:rows, 0:c_in]
            d = jnp.dot(a_k, w_ref[k], preferred_element_type=f32)
            if slot == 0:
                acc0 = acc0 + d
            else:
                acc1 = acc1 + d
        return acc0 + acc1 + bias

    # --- l1: Conv1d(6->32) on the host-im2col'd input: one dense matmul ---------
    b1 = pk_ref[0:1, 0:32]
    a1 = lrelu(jnp.dot(p1_ref[...], w1_ref[...], preferred_element_type=f32) + b1)

    # --- l2: Conv1d(32->64) ------------------------------------------------------
    stage_padded(pad2_ref, a1, L2[0], L2[4])
    b2 = pk_ref[1:2, 0:64]
    a2 = lrelu(conv(pad2_ref, w2_ref, b2, L2))

    # --- l3 + l4: Conv1d(64->128) + BatchNorm + LeakyReLU ------------------------
    stage_padded(pad3_ref, a2, L3[0], L3[4])
    b3 = pk_ref[2:3, 0:128]
    g4 = pk_ref[3:4, 0:128]
    be4 = pk_ref[4:5, 0:128]
    a3 = lrelu(bn(conv(pad3_ref, w3_ref, b3, L3), g4, be4))

    # --- l5 + l6: Conv1d(128->256) + BatchNorm + LeakyReLU -----------------------
    stage_padded(pad5_ref, a3, L5[0], L5[4])
    w5_copy.wait()                              # layer-5 weights must be resident now
    b5 = pk_ref[5:6, 0:256]
    g6 = pk_ref[6:7, 0:256]
    be6 = pk_ref[7:8, 0:256]
    a5 = lrelu(bn(conv(pad5_ref, w5_buf, b5, L5), g6, be6))          # (B*4, 256)

    # --- l7: Linear(4*256 -> 1) after transpose(1,2) + flatten -------------------
    # Rows of a5 are (b, l) ordered with channels on lanes, which already matches
    # the flattened (l, c) feature order, so the head is a per-batch elementwise dot.
    w7r = pk_ref[8:12, 0:256]                   # (4, 256): torch w7[0, l*256+c] -> [l, c]
    b7 = pk_ref[12:13, 0:1]
    for b in range(B):
        prod = a5[b * L5[1]:(b + 1) * L5[1], :] * w7r
        o_ref[b:b + 1, :] = jnp.sum(prod, keepdims=True) + b7

    # NOTE: at training batch sizes, add a batch-tiled grid axis (parallel) and a
    # two-pass / cross-core BN-stats exchange to use v7x's second TensorCore.


# ---------------------------------------------------------------------------
# Parameters (PyTorch layouts) and kernel-ready packing
# ---------------------------------------------------------------------------
def _trunc_normal(key, shape, std=0.02):
    # nn.init.trunc_normal_(mean=0, std=0.02, a=-0.04, b=0.04) == 0.02 * TN(-2, 2)
    return (std * jax.random.truncated_normal(key, -2.0, 2.0, shape)).astype(jnp.float32)


def init_params(key):
    """Parameters in PyTorch layouts (Conv1d: (Cout, Cin, K); Linear: (out, in)).
    The module's initweights() explicitly trunc_normal's the BatchNorm weights too
    (overriding PyTorch's default gamma = 1), so g4/g6 deliberately follow that."""
    ks = jax.random.split(key, 7)
    z = lambda *s: jnp.zeros(s, jnp.float32)
    return {
        "w1": _trunc_normal(ks[0], (L1[3], L1[2], K)), "b1": z(L1[3]),
        "w2": _trunc_normal(ks[1], (L2[3], L2[2], K)), "b2": z(L2[3]),
        "w3": _trunc_normal(ks[2], (L3[3], L3[2], K)), "b3": z(L3[3]),
        "g4": _trunc_normal(ks[3], (L3[3],)),          "be4": z(L3[3]),
        "w5": _trunc_normal(ks[4], (L5[3], L5[2], K)), "b5": z(L5[3]),
        "g6": _trunc_normal(ks[5], (L5[3],)),          "be6": z(L5[3]),
        "w7": _trunc_normal(ks[6], (1, L5[1] * L5[3])), "b7": z(1),
    }


def pack_params(p):
    """Kernel-ready layouts: conv weights per tap (K, Cin, Cout) (layer-1 flattened
    to (K*Cin, Cout) to match the host im2col column order), and all tiny per-channel
    params packed into ONE (16, 256) VMEM tile (one DMA instead of ten)."""
    per_tap = lambda w: jnp.transpose(w, (2, 1, 0))          # (Cout, Cin, K) -> (K, Cin, Cout)
    pk = jnp.zeros((16, 256), jnp.float32)
    pk = pk.at[0, :32].set(p["b1"])
    pk = pk.at[1, :64].set(p["b2"])
    pk = pk.at[2, :128].set(p["b3"])
    pk = pk.at[3, :128].set(p["g4"])
    pk = pk.at[4, :128].set(p["be4"])
    pk = pk.at[5, :256].set(p["b5"])
    pk = pk.at[6, :256].set(p["g6"])
    pk = pk.at[7, :256].set(p["be6"])
    pk = pk.at[8:12, :].set(p["w7"].reshape(L5[1], L5[3]))
    pk = pk.at[12, 0].set(p["b7"][0])
    return {
        "w1f": per_tap(p["w1"]).reshape(K * L1[2], L1[3]),
        "w2": per_tap(p["w2"]),
        "w3": per_tap(p["w3"]),
        "w5": per_tap(p["w5"]),
        "pk": pk,
    }


# ---------------------------------------------------------------------------
# Forward pass (one fused pallas_call)
# ---------------------------------------------------------------------------
def _im2col_input(x):
    """Host-side im2col of the raw (B, 6, 60) input for conv layer 1 -> (B*32, K*6).
    ~30 KB, a single fused XLA gather; every other layer's im2col is in-kernel."""
    B = x.shape[0]
    l_in, l_out, c_in, _, pad = L1
    xp = jnp.pad(x, ((0, 0), (0, 0), (pad, pad)))                       # (B, 6, 72)
    idx = STRIDE * np.arange(l_out)[:, None] + np.arange(K)[None, :]    # (32, 10)
    win = xp[:, :, idx]                                                 # (B, 6, 32, 10)
    return jnp.transpose(win, (0, 2, 3, 1)).reshape(B * l_out, K * c_in)


@jax.jit
def tcgan_discriminator_forward(x, kp):
    """x: (B, 6, 60) float32, NCL exactly like the PyTorch module.  Returns (B, 1)."""
    B = x.shape[0]
    p1 = _im2col_input(x)
    inputs = (p1, kp["w1f"], kp["w2"], kp["w3"], kp["pk"], kp["w5"])

    # Advisory cost estimate (gather matmuls are gone; only the real conv flops).
    flops = 2 * B * sum(l_out * (K * c_in) * c_out
                        for (_, l_out, c_in, c_out, _) in (L1, L2, L3, L5))
    flops += 2 * B * (L5[1] * L5[3])                        # Linear head
    bytes_accessed = sum(int(np.prod(a.shape)) * 4 for a in inputs) + B * 4

    vmem_spec = pl.BlockSpec(memory_space=pltpu.MemorySpace.VMEM)
    return pl.pallas_call(
        functools.partial(_fused_kernel, B),
        out_shape=jax.ShapeDtypeStruct((B, 1), jnp.float32),
        in_specs=[vmem_spec] * 5 + [pl.BlockSpec(memory_space=pl.ANY)],  # w5 stays in HBM
        out_specs=vmem_spec,
        scratch_shapes=[
            pltpu.VMEM((K, L5[2], L5[3]), jnp.float32),                        # w5 landing buffer
            pltpu.SemaphoreType.DMA,                                           # its completion sem
            pltpu.VMEM((B * (L2[0] + 2 * L2[4]), L2[2]), jnp.float32),         # zero-padded a1
            pltpu.VMEM((B * (L3[0] + 2 * L3[4]), L3[2]), jnp.float32),         # zero-padded a2
            pltpu.VMEM((B * (L5[0] + 2 * L5[4]), L5[2]), jnp.float32),         # zero-padded a3
            pltpu.VMEM((2, B * L2[1], 128), jnp.float32),                      # tap staging (x2)
        ],
        compiler_params=pltpu.CompilerParams(vmem_limit_bytes=16 * 1024 * 1024),
        cost_estimate=pl.CostEstimate(flops=int(flops),
                                      transcendentals=L3[3] + L5[3],
                                      bytes_accessed=int(bytes_accessed)),
    )(*inputs)


# ---------------------------------------------------------------------------
# Pure-JAX reference (wiring / layout / numerics check)
# ---------------------------------------------------------------------------
def _reference_forward(x, p):
    prec = lax.Precision.HIGHEST

    def conv(h, w, b, pad):
        y = lax.conv_general_dilated(h, w, window_strides=(STRIDE,), padding=[(pad, pad)],
                                     dimension_numbers=("NCH", "OIH", "NCH"),
                                     precision=prec)
        return y + b.reshape(1, -1, 1)

    def lrelu(z):
        return jnp.where(z >= 0, z, LRELU_SLOPE * z)

    def bn(y, g, be):
        mu = jnp.mean(y, axis=(0, 2), keepdims=True)
        var = jnp.mean(jnp.square(y - mu), axis=(0, 2), keepdims=True)
        return (y - mu) * lax.rsqrt(var + BN_EPS) * g.reshape(1, -1, 1) + be.reshape(1, -1, 1)

    h = lrelu(conv(x, p["w1"], p["b1"], L1[4]))
    h = lrelu(conv(h, p["w2"], p["b2"], L2[4]))
    h = lrelu(bn(conv(h, p["w3"], p["b3"], L3[4]), p["g4"], p["be4"]))
    h = lrelu(bn(conv(h, p["w5"], p["b5"], L5[4]), p["g6"], p["be6"]))
    h = jnp.transpose(h, (0, 2, 1)).reshape(h.shape[0], -1)   # transpose(1,2) + flatten
    return jnp.dot(h, p["w7"].T, precision=prec) + p["b7"]


if __name__ == "__main__":
    key = jax.random.PRNGKey(0)
    pkey, xkey = jax.random.split(key)
    params = init_params(pkey)
    kparams = pack_params(params)

    # batch=4, channels=6, seq_len=60 (module default input_shape=(60, 6))
    x = jax.random.normal(xkey, (4, 6, 60), dtype=jnp.float32)

    out = tcgan_discriminator_forward(x, kparams)
    jax.block_until_ready(out)
    assert out.shape == (4, 1) and out.dtype == jnp.float32

    ref = jax.jit(_reference_forward)(x, params)
    np.testing.assert_allclose(np.asarray(out), np.asarray(ref), rtol=1e-3, atol=2e-5)

    print("KERNEL_OK")
</pallas_src>

<mosaic_0001>
module attributes {stable_mosaic.version = 11 : i64} {
  func.func @_fused_kernel(%arg0: memref<128x60xf32, #tpu.memory_space<vmem>>, %arg1: memref<60x32xf32, #tpu.memory_space<vmem>>, %arg2: memref<10x32x64xf32, #tpu.memory_space<vmem>>, %arg3: memref<10x64x128xf32, #tpu.memory_space<vmem>>, %arg4: memref<16x256xf32, #tpu.memory_space<vmem>>, %arg5: memref<10x128x256xf32, #tpu.memory_space<any>>, %arg6: memref<4x1xf32, #tpu.memory_space<vmem>>, %arg7: memref<10x128x256xf32, #tpu.memory_space<vmem>>, %arg8: memref<!tpu.dma_semaphore, #tpu.memory_space<semaphore_mem>>, %arg9: memref<160x32xf32, #tpu.memory_space<vmem>>, %arg10: memref<96x64xf32, #tpu.memory_space<vmem>>, %arg11: memref<64x128xf32, #tpu.memory_space<vmem>>, %arg12: memref<2x64x128xf32, #tpu.memory_space<vmem>>) attributes {dimension_semantics = [], scalar_prefetch = 0 : i64, scratch_operands = 6 : i64, tpu.core_type = #tpu.core_type<tc>} {
    tpu.enqueue_dma source(%arg5 : memref<10x128x256xf32, #tpu.memory_space<any>>) target(%arg7 : memref<10x128x256xf32, #tpu.memory_space<vmem>>) target_semaphore(%arg8 : memref<!tpu.dma_semaphore, #tpu.memory_space<semaphore_mem>>)
    %c0 = arith.constant 0 : index
    %c0_0 = arith.constant 0 : index
    %0 = vector.load %arg4[%c0, %c0_0] : memref<16x256xf32, #tpu.memory_space<vmem>>, vector<1x32xf32>
    %c0_1 = arith.constant 0 : index
    %c0_2 = arith.constant 0 : index
    %1 = vector.load %arg0[%c0_1, %c0_2] : memref<128x60xf32, #tpu.memory_space<vmem>>, vector<128x60xf32>
    %c0_3 = arith.constant 0 : index
    %c0_4 = arith.constant 0 : index
    %2 = vector.load %arg1[%c0_3, %c0_4] : memref<60x32xf32, #tpu.memory_space<vmem>>, vector<60x32xf32>
    %cst = arith.constant dense<0.000000e+00> : vector<128x32xf32>
    %3 = tpu.matmul %1, %2, %cst {dimension_numbers = #tpu.dot_dimension_numbers<[1], [0], [0], [1], [0, 0, 1, 1], [], []>} : vector<128x60xf32>, vector<60x32xf32>, vector<128x32xf32> -> vector<128x32xf32>
    %4 = vector.broadcast %0 : vector<1x32xf32> to vector<128x32xf32>
    %5 = arith.addf %3, %4 : vector<128x32xf32>
    %cst_5 = arith.constant 2.000000e-01 : f32
    %6 = vector.broadcast %cst_5 : f32 to vector<128x32xf32>
    %7 = arith.mulf %6, %5 : vector<128x32xf32>
    %8 = arith.maximumf %5, %7 : vector<128x32xf32>
    %cst_6 = arith.constant 0.000000e+00 : f32
    %9 = vector.broadcast %cst_6 : f32 to vector<160x32xf32>
    %c0_7 = arith.constant 0 : index
    %c0_8 = arith.constant 0 : index
    %10 = vector.load %arg9[%c0_7, %c0_8] : memref<160x32xf32, #tpu.memory_space<vmem>>, vector<160x32xf32>
    tpu.vector_store %arg9[%c0_7, %c0_8], %9 {strides = array<i32>} : memref<160x32xf32, #tpu.memory_space<vmem>>, vector<160x32xf32>,
    %11 = vector.extract_strided_slice %8 {offsets = [0, 0], sizes = [32, 32], strides = [1, 1]} : vector<128x32xf32> to vector<32x32xf32>
    %c4 = arith.constant 4 : index
    %c0_9 = arith.constant 0 : index
    %12 = vector.load %arg9[%c4, %c0_9] : memref<160x32xf32, #tpu.memory_space<vmem>>, vector<32x32xf32>
    tpu.vector_store %arg9[%c4, %c0_9], %11 {strides = array<i32>} : memref<160x32xf32, #tpu.memory_space<vmem>>, vector<32x32xf32>,
    %13 = vector.extract_strided_slice %8 {offsets = [32, 0], sizes = [32, 32], strides = [1, 1]} : vector<128x32xf32> to vector<32x32xf32>
    %c44 = arith.constant 44 : index
    %c0_10 = arith.constant 0 : index
    %14 = vector.load %arg9[%c44, %c0_10] : memref<160x32xf32, #tpu.memory_space<vmem>>, vector<32x32xf32>
    tpu.vector_store %arg9[%c44, %c0_10], %13 {strides = array<i32>} : memref<160x32xf32, #tpu.memory_space<vmem>>, vector<32x32xf32>,
    %15 = vector.extract_strided_slice %8 {offsets = [64, 0], sizes = [32, 32], strides = [1, 1]} : vector<128x32xf32> to vector<32x32xf32>
    %c84 = arith.constant 84 : index
    %c0_11 = arith.constant 0 : index
    %16 = vector.load %arg9[%c84, %c0_11] : memref<160x32xf32, #tpu.memory_space<vmem>>, vector<32x32xf32>
    tpu.vector_store %arg9[%c84, %c0_11], %15 {strides = array<i32>} : memref<160x32xf32, #tpu.memory_space<vmem>>, vector<32x32xf32>,
    %17 = vector.extract_strided_slice %8 {offsets = [96, 0], sizes = [32, 32], strides = [1, 1]} : vector<128x32xf32> to vector<32x32xf32>
    %c124 = arith.constant 124 : index
    %c0_12 = arith.constant 0 : index
    %18 = vector.load %arg9[%c124, %c0_12] : memref<160x32xf32, #tpu.memory_space<vmem>>, vector<32x32xf32>
    tpu.vector_store %arg9[%c124, %c0_12], %17 {strides = array<i32>} : memref<160x32xf32, #tpu.memory_space<vmem>>, vector<32x32xf32>,
    %c1 = arith.constant 1 : index
    %c0_13 = arith.constant 0 : index
    %19 = vector.load %arg4[%c1, %c0_13] : memref<16x256xf32, #tpu.memory_space<vmem>>, vector<1x64xf32>
    %cst_14 = arith.constant 0.000000e+00 : f32
    %20 = vector.broadcast %cst_14 : f32 to vector<64x64xf32>
    %cst_15 = arith.constant 0.000000e+00 : f32
    %21 = vector.broadcast %cst_15 : f32 to vector<64x64xf32>
    %c0_16 = arith.constant 0 : index
    %c0_17 = arith.constant 0 : index
    %22 = tpu.strided_load %arg9[%c0_16, %c0_17] {strides = array<i32: 2, 1>} : memref<160x32xf32, #tpu.memory_space<vmem>>, vector<16x32xf32>
    %c0_18 = arith.constant 0 : index
    %c0_19 = arith.constant 0 : index
    %c0_20 = arith.constant 0 : index
    %23 = vector.load %arg12[%c0_18, %c0_19, %c0_20] : memref<2x64x128xf32, #tpu.memory_space<vmem>>, vector<1x16x32xf32>
    %24 = vector.shape_cast %23 : vector<1x16x32xf32> to vector<16x32xf32>
    %25 = vector.shape_cast %22 : vector<16x32xf32> to vector<1x16x32xf32>
    tpu.vector_store %arg12[%c0_18, %c0_19, %c0_20], %25 {strides = array<i32>} : memref<2x64x128xf32, #tpu.memory_space<vmem>>, vector<1x16x32xf32>,
    %c40 = arith.constant 40 : index
    %c0_21 = arith.constant 0 : index
    %26 = tpu.strided_load %arg9[%c40, %c0_21] {strides = array<i32: 2, 1>} : memref<160x32xf32, #tpu.memory_space<vmem>>, vector<16x32xf32>
    %c0_22 = arith.constant 0 : index
    %c16 = arith.constant 16 : index
    %c0_23 = arith.constant 0 : index
    %27 = vector.load %arg12[%c0_22, %c16, %c0_23] : memref<2x64x128xf32, #tpu.memory_space<vmem>>, vector<1x16x32xf32>
    %28 = vector.shape_cast %27 : vector<1x16x32xf32> to vector<16x32xf32>
    %29 = vector.shape_cast %26 : vector<16x32xf32> to vector<1x16x32xf32>
    tpu.vector_store %arg12[%c0_22, %c16, %c0_23], %29 {strides = array<i32>} : memref<2x64x128xf32, #tpu.memory_space<vmem>>, vector<1x16x32xf32>,
    %c80 = arith.constant 80 : index
    %c0_24 = arith.constant 0 : index
    %30 = tpu.strided_load %arg9[%c80, %c0_24] {strides = array<i32: 2, 1>} : memref<160x32xf32, #tpu.memory_space<vmem>>, vector<16x32xf32>
    %c0_25 = arith.constant 0 : index
    %c32 = arith.constant 32 : index
    %c0_26 = arith.constant 0 : index
    %31 = vector.load %arg12[%c0_25, %c32, %c0_26] : memref<2x64x128xf32, #tpu.memory_space<vmem>>, vector<1x16x32xf32>
    %32 = vector.shape_cast %31 : vector<1x16x32xf32> to vector<16x32xf32>
    %33 = vector.shape_cast %30 : vector<16x32xf32> to vector<1x16x32xf32>
    tpu.vector_store %arg12[%c0_25, %c32, %c0_26], %33 {strides = array<i32>} : memref<2x64x128xf32, #tpu.memory_space<vmem>>, vector<1x16x32xf32>,
    %c120 = arith.constant 120 : index
    %c0_27 = arith.constant 0 : index
    %34 = tpu.strided_load %arg9[%c120, %c0_27] {strides = array<i32: 2, 1>} : memref<160x32xf32, #tpu.memory_space<vmem>>, vector<16x32xf32>
    %c0_28 = arith.constant 0 : index
    %c48 = arith.constant 48 : index
    %c0_29 = arith.constant 0 : index
    %35 = vector.load %arg12[%c0_28, %c48, %c0_29] : memref<2x64x128xf32, #tpu.memory_space<vmem>>, vector<1x16x32xf32>
    %36 = vector.shape_cast %35 : vector<1x16x32xf32> to vector<16x32xf32>
    %37 = vector.shape_cast %34 : vector<16x32xf32> to vector<1x16x32xf32>
    tpu.vector_store %arg12[%c0_28, %c48, %c0_29], %37 {strides = array<i32>} : memref<2x64x128xf32, #tpu.memory_space<vmem>>, vector<1x16x32xf32>,
    %c0_30 = arith.constant 0 : index
    %c0_31 = arith.constant 0 : index
    %c0_32 = arith.constant 0 : index
    %38 = vector.load %arg12[%c0_30, %c0_31, %c0_32] : memref<2x64x128xf32, #tpu.memory_space<vmem>>, vector<1x64x32xf32>
    %39 = vector.shape_cast %38 : vector<1x64x32xf32> to vector<64x32xf32>
    %c0_33 = arith.constant 0 : index
    %c0_34 = arith.constant 0 : index
    %c0_35 = arith.constant 0 : index
    %40 = vector.load %arg2[%c0_33, %c0_34, %c0_35] : memref<10x32x64xf32, #tpu.memory_space<vmem>>, vector<1x32x64xf32>
    %41 = vector.shape_cast %40 : vector<1x32x64xf32> to vector<32x64xf32>
    %cst_36 = arith.constant dense<0.000000e+00> : vector<64x64xf32>
    %42 = tpu.matmul %39, %41, %cst_36 {dimension_numbers = #tpu.dot_dimension_numbers<[1], [0], [0], [1], [0, 0, 1, 1], [], []>} : vector<64x32xf32>, vector<32x64xf32>, vector<64x64xf32> -> vector<64x64xf32>
    %43 = arith.addf %20, %42 : vector<64x64xf32>
    %c1_37 = arith.constant 1 : index
    %c0_38 = arith.constant 0 : index
    %44 = tpu.strided_load %arg9[%c1_37, %c0_38] {strides = array<i32: 2, 1>} : memref<160x32xf32, #tpu.memory_space<vmem>>, vector<16x32xf32>
    %c1_39 = arith.constant 1 : index
    %c0_40 = arith.constant 0 : index
    %c0_41 = arith.constant 0 : index
    %45 = vector.load %arg12[%c1_39, %c0_40, %c0_41] : memref<2x64x128xf32, #tpu.memory_space<vmem>>, vector<1x16x32xf32>
    %46 = vector.shape_cast %45 : vector<1x16x32xf32> to vector<16x32xf32>
    %47 = vector.shape_cast %44 : vector<16x32xf32> to vector<1x16x32xf32>
    tpu.vector_store %arg12[%c1_39, %c0_40, %c0_41], %47 {strides = array<i32>} : memref<2x64x128xf32, #tpu.memory_space<vmem>>, vector<1x16x32xf32>,
    %c41 = arith.constant 41 : index
    %c0_42 = arith.constant 0 : index
    %48 = tpu.strided_load %arg9[%c41, %c0_42] {strides = array<i32: 2, 1>} : memref<160x32xf32, #tpu.memory_space<vmem>>, vector<16x32xf32>
    %c1_43 = arith.constant 1 : index
    %c16_44 = arith.constant 16 : index
    %c0_45 = arith.constant 0 : index
    %49 = vector.load %arg12[%c1_43, %c16_44, %c0_45] : memref<2x64x128xf32, #tpu.memory_space<vmem>>, vector<1x16x32xf32>
    %50 = vector.shape_cast %49 : vector<1x16x32xf32> to vector<16x32xf32>
    %51 = vector.shape_cast %48 : vector<16x32xf32> to vector<1x16x32xf32>
    tpu.vector_store %arg12[%c1_43, %c16_44, %c0_45], %51 {strides = array<i32>} : memref<2x64x128xf32, #tpu.memory_space<vmem>>, vector<1x16x32xf32>,
    %c81 = arith.constant 81 : index
    %c0_46 = arith.constant 0 : index
    %52 = tpu.strided_load %arg9[%c81, %c0_46] {strides = array<i32: 2, 1>} : memref<160x32xf32, #tpu.memory_space<vmem>>, vector<16x32xf32>
    %c1_47 = arith.constant 1 : index
    %c32_48 = arith.constant 32 : index
    %c0_49 = arith.constant 0 : index
    %53 = vector.load %arg12[%c1_47, %c32_48, %c0_49] : memref<2x64x128xf32, #tpu.memory_space<vmem>>, vector<1x16x32xf32>
    %54 = vector.shape_cast %53 : vector<1x16x32xf32> to vector<16x32xf32>
    %55 = vector.shape_cast %52 : vector<16x32xf32> to vector<1x16x32xf32>
    tpu.vector_store %arg12[%c1_47, %c32_48, %c0_49], %55 {strides = array<i32>} : memref<2x64x128xf32, #tpu.memory_space<vmem>>, vector<1x16x32xf32>,
    %c121 = arith.constant 121 : index
    %c0_50 = arith.constant 0 : index
    %56 = tpu.strided_load %arg9[%c121, %c0_50] {strides = array<i32: 2, 1>} : memref<160x32xf32, #tpu.memory_space<vmem>>, vector<16x32xf32>
    %c1_51 = arith.constant 1 : index
    %c48_52 = arith.constant 48 : index
    %c0_53 = arith.constant 0 : index
    %57 = vector.load %arg12[%c1_51, %c48_52, %c0_53] : memref<2x64x128xf32, #tpu.memory_space<vmem>>, vector<1x16x32xf32>
    %58 = vector.shape_cast %57 : vector<1x16x32xf32> to vector<16x32xf32>
    %59 = vector.shape_cast %56 : vector<16x32xf32> to vector<1x16x32xf32>
    tpu.vector_store %arg12[%c1_51, %c48_52, %c0_53], %59 {strides = array<i32>} : memref<2x64x128xf32, #tpu.memory_space<vmem>>, vector<1x16x32xf32>,
    %c1_54 = arith.constant 1 : index
    %c0_55 = arith.constant 0 : index
    %c0_56 = arith.constant 0 : index
    %60 = vector.load %arg12[%c1_54, %c0_55, %c0_56] : memref<2x64x128xf32, #tpu.memory_space<vmem>>, vector<1x64x32xf32>
    %61 = vector.shape_cast %60 : vector<1x64x32xf32> to vector<64x32xf32>
    %c1_57 = arith.constant 1 : index
    %c0_58 = arith.constant 0 : index
    %c0_59 = arith.constant 0 : index
    %62 = vector.load %arg2[%c1_57, %c0_58, %c0_59] : memref<10x32x64xf32, #tpu.memory_space<vmem>>, vector<1x32x64xf32>
    %63 = vector.shape_cast %62 : vector<1x32x64xf32> to vector<32x64xf32>
    %cst_60 = arith.constant dense<0.000000e+00> : vector<64x64xf32>
    %64 = tpu.matmul %61, %63, %cst_60 {dimension_numbers = #tpu.dot_dimension_numbers<[1], [0], [0], [1], [0, 0, 1, 1], [], []>} : vector<64x32xf32>, vector<32x64xf32>, vector<64x64xf32> -> vector<64x64xf32>
    %65 = arith.addf %21, %64 : vector<64x64xf32>
    %c2 = arith.constant 2 : index
    %c0_61 = arith.constant 0 : index
    %66 = tpu.strided_load %arg9[%c2, %c0_61] {strides = array<i32: 2, 1>} : memref<160x32xf32, #tpu.memory_space<vmem>>, vector<16x32xf32>
    %c0_62 = arith.constant 0 : index
    %c0_63 = arith.constant 0 : index
    %c0_64 = arith.constant 0 : index
    %67 = vector.load %arg12[%c0_62, %c0_63, %c0_64] : memref<2x64x128xf32, #tpu.memory_space<vmem>>, vector<1x16x32xf32>
    %68 = vector.shape_cast %67 : vector<1x16x32xf32> to vector<16x32xf32>
    %69 = vector.shape_cast %66 : vector<16x32xf32> to vector<1x16x32xf32>
    tpu.vector_store %arg12[%c0_62, %c0_63, %c0_64], %69 {strides = array<i32>} : memref<2x64x128xf32, #tpu.memory_space<vmem>>, vector<1x16x32xf32>,
    %c42 = arith.constant 42 : index
    %c0_65 = arith.constant 0 : index
    %70 = tpu.strided_load %arg9[%c42, %c0_65] {strides = array<i32: 2, 1>} : memref<160x32xf32, #tpu.memory_space<vmem>>, vector<16x32xf32>
    %c0_66 = arith.constant 0 : index
    %c16_67 = arith.constant 16 : index
    %c0_68 = arith.constant 0 : index
    %71 = vector.load %arg12[%c0_66, %c16_67, %c0_68] : memref<2x64x128xf32, #tpu.memory_space<vmem>>, vector<1x16x32xf32>
    %72 = vector.shape_cast %71 : vector<1x16x32xf32> to vector<16x32xf32>
    %73 = vector.shape_cast %70 : vector<16x32xf32> to vector<1x16x32xf32>
    tpu.vector_store %arg12[%c0_66, %c16_67, %c0_68], %73 {strides = array<i32>} : memref<2x64x128xf32, #tpu.memory_space<vmem>>, vector<1x16x32xf32>,
    %c82 = arith.constant 82 : index
    %c0_69 = arith.constant 0 : index
    %74 = tpu.strided_load %arg9[%c82, %c0_69] {strides = array<i32: 2, 1>} : memref<160x32xf32, #tpu.memory_space<vmem>>, vector<16x32xf32>
    %c0_70 = arith.constant 0 : index
    %c32_71 = arith.constant 32 : index
    %c0_72 = arith.constant 0 : index
    %75 = vector.load %arg12[%c0_70, %c32_71, %c0_72] : memref<2x64x128xf32, #tpu.memory_space<vmem>>, vector<1x16x32xf32>
    %76 = vector.shape_cast %75 : vector<1x16x32xf32> to vector<16x32xf32>
    %77 = vector.shape_cast %74 : vector<16x32xf32> to vector<1x16x32xf32>
    tpu.vector_store %arg12[%c0_70, %c32_71, %c0_72], %77 {strides = array<i32>} : memref<2x64x128xf32, #tpu.memory_space<vmem>>, vector<1x16x32xf32>,
    %c122 = arith.constant 122 : index
    %c0_73 = arith.constant 0 : index
    %78 = tpu.strided_load %arg9[%c122, %c0_73] {strides = array<i32: 2, 1>} : memref<160x32xf32, #tpu.memory_space<vmem>>, vector<16x32xf32>
    %c0_74 = arith.constant 0 : index
    %c48_75 = arith.constant 48 : index
    %c0_76 = arith.constant 0 : index
    %79 = vector.load %arg12[%c0_74, %c48_75, %c0_76] : memref<2x64x128xf32, #tpu.memory_space<vmem>>, vector<1x16x32xf32>
    %80 = vector.shape_cast %79 : vector<1x16x32xf32> to vector<16x32xf32>
    %81 = vector.shape_cast %78 : vector<16x32xf32> to vector<1x16x32xf32>
    tpu.vector_store %arg12[%c0_74, %c48_75, %c0_76], %81 {strides = array<i32>} : memref<2x64x128xf32, #tpu.memory_space<vmem>>, vector<1x16x32xf32>,
    %c0_77 = arith.constant 0 : index
    %c0_78 = arith.constant 0 : index
    %c0_79 = arith.constant 0 : index
    %82 = vector.load %arg12[%c0_77, %c0_78, %c0_79] : memref<2x64x128xf32, #tpu.memory_space<vmem>>, vector<1x64x32xf32>
    %83 = vector.shape_cast %82 : vector<1x64x32xf32> to vector<64x32xf32>
    %c2_80 = arith.constant 2 : index
    %c0_81 = arith.constant 0 : index
    %c0_82 = arith.constant 0 : index
    %84 = vector.load %arg2[%c2_80, %c0_81, %c0_82] : memref<10x32x64xf32, #tpu.memory_space<vmem>>, vector<1x32x64xf32>
    %85 = vector.shape_cast %84 : vector<1x32x64xf32> to vector<32x64xf32>
    %cst_83 = arith.constant dense<0.000000e+00> : vector<64x64xf32>
    %86 = tpu.matmul %83, %85, %cst_83 {dimension_numbers = #tpu.dot_dimension_numbers<[1], [0], [0], [1], [0, 0, 1, 1], [], []>} : vector<64x32xf32>, vector<32x64xf32>, vector<64x64xf32> -> vector<64x64xf32>
    %87 = arith.addf %43, %86 : vector<64x64xf32>
    %c3 = arith.constant 3 : index
    %c0_84 = arith.constant 0 : index
    %88 = tpu.strided_load %arg9[%c3, %c0_84] {strides = array<i32: 2, 1>} : memref<160x32xf32, #tpu.memory_space<vmem>>, vector<16x32xf32>
    %c1_85 = arith.constant 1 : index
    %c0_86 = arith.constant 0 : index
    %c0_87 = arith.constant 0 : index
    %89 = vector.load %arg12[%c1_85, %c0_86, %c0_87] : memref<2x64x128xf32, #tpu.memory_space<vmem>>, vector<1x16x32xf32>
    %90 = vector.shape_cast %89 : vector<1x16x32xf32> to vector<16x32xf32>
    %91 = vector.shape_cast %88 : vector<16x32xf32> to vector<1x16x32xf32>
    tpu.vector_store %arg12[%c1_85, %c0_86, %c0_87], %91 {strides = array<i32>} : memref<2x64x128xf32, #tpu.memory_space<vmem>>, vector<1x16x32xf32>,
    %c43 = arith.constant 43 : index
    %c0_88 = arith.constant 0 : index
    %92 = tpu.strided_load %arg9[%c43, %c0_88] {strides = array<i32: 2, 1>} : memref<160x32xf32, #tpu.memory_space<vmem>>, vector<16x32xf32>
    %c1_89 = arith.constant 1 : index
    %c16_90 = arith.constant 16 : index
    %c0_91 = arith.constant 0 : index
    %93 = vector.load %arg12[%c1_89, %c16_90, %c0_91] : memref<2x64x128xf32, #tpu.memory_space<vmem>>, vector<1x16x32xf32>
    %94 = vector.shape_cast %93 : vector<1x16x32xf32> to vector<16x32xf32>
    %95 = vector.shape_cast %92 : vector<16x32xf32> to vector<1x16x32xf32>
    tpu.vector_store %arg12[%c1_89, %c16_90, %c0_91], %95 {strides = array<i32>} : memref<2x64x128xf32, #tpu.memory_space<vmem>>, vector<1x16x32xf32>,
    %c83 = arith.constant 83 : index
    %c0_92 = arith.constant 0 : index
    %96 = tpu.strided_load %arg9[%c83, %c0_92] {strides = array<i32: 2, 1>} : memref<160x32xf32, #tpu.memory_space<vmem>>, vector<16x32xf32>
    %c1_93 = arith.constant 1 : index
    %c32_94 = arith.constant 32 : index
    %c0_95 = arith.constant 0 : index
    %97 = vector.load %arg12[%c1_93, %c32_94, %c0_95] : memref<2x64x128xf32, #tpu.memory_space<vmem>>, vector<1x16x32xf32>
    %98 = vector.shape_cast %97 : vector<1x16x32xf32> to vector<16x32xf32>
    %99 = vector.shape_cast %96 : vector<16x32xf32> to vector<1x16x32xf32>
    tpu.vector_store %arg12[%c1_93, %c32_94, %c0_95], %99 {strides = array<i32>} : memref<2x64x128xf32, #tpu.memory_space<vmem>>, vector<1x16x32xf32>,
    %c123 = arith.constant 123 : index
    %c0_96 = arith.constant 0 : index
    %100 = tpu.strided_load %arg9[%c123, %c0_96] {strides = array<i32: 2, 1>} : memref<160x32xf32, #tpu.memory_space<vmem>>, vector<16x32xf32>
    %c1_97 = arith.constant 1 : index
    %c48_98 = arith.constant 48 : index
    %c0_99 = arith.constant 0 : index
    %101 = vector.load %arg12[%c1_97, %c48_98, %c0_99] : memref<2x64x128xf32, #tpu.memory_space<vmem>>, vector<1x16x32xf32>
    %102 = vector.shape_cast %101 : vector<1x16x32xf32> to vector<16x32xf32>
    %103 = vector.shape_cast %100 : vector<16x32xf32> to vector<1x16x32xf32>
    tpu.vector_store %arg12[%c1_97, %c48_98, %c0_99], %103 {strides = array<i32>} : memref<2x64x128xf32, #tpu.memory_space<vmem>>, vector<1x16x32xf32>,
    %c1_100 = arith.constant 1 : index
    %c0_101 = arith.constant 0 : index
    %c0_102 = arith.constant 0 : index
    %104 = vector.load %arg12[%c1_100, %c0_101, %c0_102] : memref<2x64x128xf32, #tpu.memory_space<vmem>>, vector<1x64x32xf32>
    %105 = vector.shape_cast %104 : vector<1x64x32xf32> to vector<64x32xf32>
    %c3_103 = arith.constant 3 : index
    %c0_104 = arith.constant 0 : index
    %c0_105 = arith.constant 0 : index
    %106 = vector.load %arg2[%c3_103, %c0_104, %c0_105] : memref<10x32x64xf32, #tpu.memory_space<vmem>>, vector<1x32x64xf32>
    %107 = vector.shape_cast %106 : vector<1x32x64xf32> to vector<32x64xf32>
    %cst_106 = arith.constant dense<0.000000e+00> : vector<64x64xf32>
    %108 = tpu.matmul %105, %107, %cst_106 {dimension_numbers = #tpu.dot_dimension_numbers<[1], [0], [0], [1], [0, 0, 1, 1], [], []>} : vector<64x32xf32>, vector<32x64xf32>, vector<64x64xf32> -> vector<64x64xf32>
    %109 = arith.addf %65, %108 : vector<64x64xf32>
    %c4_107 = arith.constant 4 : index
    %c0_108 = arith.constant 0 : index
    %110 = tpu.strided_load %arg9[%c4_107, %c0_108] {strides = array<i32: 2, 1>} : memref<160x32xf32, #tpu.memory_space<vmem>>, vector<16x32xf32>
    %c0_109 = arith.constant 0 : index
    %c0_110 = arith.constant 0 : index
    %c0_111 = arith.constant 0 : index
    %111 = vector.load %arg12[%c0_109, %c0_110, %c0_111] : memref<2x64x128xf32, #tpu.memory_space<vmem>>, vector<1x16x32xf32>
    %112 = vector.shape_cast %111 : vector<1x16x32xf32> to vector<16x32xf32>
    %113 = vector.shape_cast %110 : vector<16x32xf32> to vector<1x16x32xf32>
    tpu.vector_store %arg12[%c0_109, %c0_110, %c0_111], %113 {strides = array<i32>} : memref<2x64x128xf32, #tpu.memory_space<vmem>>, vector<1x16x32xf32>,
    %c44_112 = arith.constant 44 : index
    %c0_113 = arith.constant 0 : index
    %114 = tpu.strided_load %arg9[%c44_112, %c0_113] {strides = array<i32: 2, 1>} : memref<160x32xf32, #tpu.memory_space<vmem>>, vector<16x32xf32>
    %c0_114 = arith.constant 0 : index
    %c16_115 = arith.constant 16 : index
    %c0_116 = arith.constant 0 : index
    %115 = vector.load %arg12[%c0_114, %c16_115, %c0_116] : memref<2x64x128xf32, #tpu.memory_space<vmem>>, vector<1x16x32xf32>
    %116 = vector.shape_cast %115 : vector<1x16x32xf32> to vector<16x32xf32>
    %117 = vector.shape_cast %114 : vector<16x32xf32> to vector<1x16x32xf32>
    tpu.vector_store %arg12[%c0_114, %c16_115, %c0_116], %117 {strides = array<i32>} : memref<2x64x128xf32, #tpu.memory_space<vmem>>, vector<1x16x32xf32>,
    %c84_117 = arith.constant 84 : index
    %c0_118 = arith.constant 0 : index
    %118 = tpu.strided_load %arg9[%c84_117, %c0_118] {strides = array<i32: 2, 1>} : memref<160x32xf32, #tpu.memory_space<vmem>>, vector<16x32xf32>
    %c0_119 = arith.constant 0 : index
    %c32_120 = arith.constant 32 : index
    %c0_121 = arith.constant 0 : index
    %119 = vector.load %arg12[%c0_119, %c32_120, %c0_121] : memref<2x64x128xf32, #tpu.memory_space<vmem>>, vector<1x16x32xf32>
    %120 = vector.shape_cast %119 : vector<1x16x32xf32> to vector<16x32xf32>
    %121 = vector.shape_cast %118 : vector<16x32xf32> to vector<1x16x32xf32>
    tpu.vector_store %arg12[%c0_119, %c32_120, %c0_121], %121 {strides = array<i32>} : memref<2x64x128xf32, #tpu.memory_space<vmem>>, vector<1x16x32xf32>,
    %c124_122 = arith.constant 124 : index
    %c0_123 = arith.constant 0 : index
    %122 = tpu.strided_load %arg9[%c124_122, %c0_123] {strides = array<i32: 2, 1>} : memref<160x32xf32, #tpu.memory_space<vmem>>, vector<16x32xf32>
    %c0_124 = arith.constant 0 : index
    %c48_125 = arith.constant 48 : index
    %c0_126 = arith.constant 0 : index
    %123 = vector.load %arg12[%c0_124, %c48_125, %c0_126] : memref<2x64x128xf32, #tpu.memory_space<vmem>>, vector<1x16x32xf32>
    %124 = vector.shape_cast %123 : vector<1x16x32xf32> to vector<16x32xf32>
    %125 = vector.shape_cast %122 : vector<16x32xf32> to vector<1x16x32xf32>
    tpu.vector_store %arg12[%c0_124, %c48_125, %c0_126], %125 {strides = array<i32>} : memref<2x64x128xf32, #tpu.memory_space<vmem>>, vector<1x16x32xf32>,
    %c0_127 = arith.constant 0 : index
    %c0_128 = arith.constant 0 : index
    %c0_129 = arith.constant 0 : index
    %126 = vector.load %arg12[%c0_127, %c0_128, %c0_129] : memref<2x64x128xf32, #tpu.memory_space<vmem>>, vector<1x64x32xf32>
    %127 = vector.shape_cast %126 : vector<1x64x32xf32> to vector<64x32xf32>
    %c4_130 = arith.constant 4 : index
    %c0_131 = arith.constant 0 : index
    %c0_132 = arith.constant 0 : index
    %128 = vector.load %arg2[%c4_130, %c0_131, %c0_132] : memref<10x32x64xf32, #tpu.memory_space<vmem>>, vector<1x32x64xf32>
    %129 = vector.shape_cast %128 : vector<1x32x64xf32> to vector<32x64xf32>
    %cst_133 = arith.constant dense<0.000000e+00> : vector<64x64xf32>
    %130 = tpu.matmul %127, %129, %cst_133 {dimension_numbers = #tpu.dot_dimension_numbers<[1], [0], [0], [1], [0, 0, 1, 1], [], []>} : vector<64x32xf32>, vector<32x64xf32>, vector<64x64xf32> -> vector<64x64xf32>
    %131 = arith.addf %87, %130 : vector<64x64xf32>
    %c5 = arith.constant 5 : index
    %c0_134 = arith.constant 0 : index
    %132 = tpu.strided_load %arg9[%c5, %c0_134] {strides = array<i32: 2, 1>} : memref<160x32xf32, #tpu.memory_space<vmem>>, vector<16x32xf32>
    %c1_135 = arith.constant 1 : index
    %c0_136 = arith.constant 0 : index
    %c0_137 = arith.constant 0 : index
    %133 = vector.load %arg12[%c1_135, %c0_136, %c0_137] : memref<2x64x128xf32, #tpu.memory_space<vmem>>, vector<1x16x32xf32>
    %134 = vector.shape_cast %133 : vector<1x16x32xf32> to vector<16x32xf32>
    %135 = vector.shape_cast %132 : vector<16x32xf32> to vector<1x16x32xf32>
    tpu.vector_store %arg12[%c1_135, %c0_136, %c0_137], %135 {strides = array<i32>} : memref<2x64x128xf32, #tpu.memory_space<vmem>>, vector<1x16x32xf32>,
    %c45 = arith.constant 45 : index
    %c0_138 = arith.constant 0 : index
    %136 = tpu.strided_load %arg9[%c45, %c0_138] {strides = array<i32: 2, 1>} : memref<160x32xf32, #tpu.memory_space<vmem>>, vector<16x32xf32>
    %c1_139 = arith.constant 1 : index
    %c16_140 = arith.constant 16 : index
    %c0_141 = arith.constant 0 : index
    %137 = vector.load %arg12[%c1_139, %c16_140, %c0_141] : memref<2x64x128xf32, #tpu.memory_space<vmem>>, vector<1x16x32xf32>
    %138 = vector.shape_cast %137 : vector<1x16x32xf32> to vector<16x32xf32>
    %139 = vector.shape_cast %136 : vector<16x32xf32> to vector<1x16x32xf32>
    tpu.vector_store %arg12[%c1_139, %c16_140, %c0_141], %139 {strides = array<i32>} : memref<2x64x128xf32, #tpu.memory_space<vmem>>, vector<1x16x32xf32>,
    %c85 = arith.constant 85 : index
    %c0_142 = arith.constant 0 : index
    %140 = tpu.strided_load %arg9[%c85, %c0_142] {strides = array<i32: 2, 1>} : memref<160x32xf32, #tpu.memory_space<vmem>>, vector<16x32xf32>
    %c1_143 = arith.constant 1 : index
    %c32_144 = arith.constant 32 : index
    %c0_145 = arith.constant 0 : index
    %141 = vector.load %arg12[%c1_143, %c32_144, %c0_145] : memref<2x64x128xf32, #tpu.memory_space<vmem>>, vector<1x16x32xf32>
    %142 = vector.shape_cast %141 : vector<1x16x32xf32> to vector<16x32xf32>
    %143 = vector.shape_cast %140 : vector<16x32xf32> to vector<1x16x32xf32>
    tpu.vector_store %arg12[%c1_143, %c32_144, %c0_145], %143 {strides = array<i32>} : memref<2x64x128xf32, #tpu.memory_space<vmem>>, vector<1x16x32xf32>,
    %c125 = arith.constant 125 : index
    %c0_146 = arith.constant 0 : index
    %144 = tpu.strided_load %arg9[%c125, %c0_146] {strides = array<i32: 2, 1>} : memref<160x32xf32, #tpu.memory_space<vmem>>, vector<16x32xf32>
    %c1_147 = arith.constant 1 : index
    %c48_148 = arith.constant 48 : index
    %c0_149 = arith.constant 0 : index
    %145 = vector.load %arg12[%c1_147, %c48_148, %c0_149] : memref<2x64x128xf32, #tpu.memory_space<vmem>>, vector<1x16x32xf32>
    %146 = vector.shape_cast %145 : vector<1x16x32xf32> to vector<16x32xf32>
    %147 = vector.shape_cast %144 : vector<16x32xf32> to vector<1x16x32xf32>
    tpu.vector_store %arg12[%c1_147, %c48_148, %c0_149], %147 {strides = array<i32>} : memref<2x64x128xf32, #tpu.memory_space<vmem>>, vector<1x16x32xf32>,
    %c1_150 = arith.constant 1 : index
    %c0_151 = arith.constant 0 : index
    %c0_152 = arith.constant 0 : index
    %148 = vector.load %arg12[%c1_150, %c0_151, %c0_152] : memref<2x64x128xf32, #tpu.memory_space<vmem>>, vector<1x64x32xf32>
    %149 = vector.shape_cast %148 : vector<1x64x32xf32> to vector<64x32xf32>
    %c5_153 = arith.constant 5 : index
    %c0_154 = arith.constant 0 : index
    %c0_155 = arith.constant 0 : index
    %150 = vector.load %arg2[%c5_153, %c0_154, %c0_155] : memref<10x32x64xf32, #tpu.memory_space<vmem>>, vector<1x32x64xf32>
    %151 = vector.shape_cast %150 : vector<1x32x64xf32> to vector<32x64xf32>
    %cst_156 = arith.constant dense<0.000000e+00> : vector<64x64xf32>
    %152 = tpu.matmul %149, %151, %cst_156 {dimension_numbers = #tpu.dot_dimension_numbers<[1], [0], [0], [1], [0, 0, 1, 1], [], []>} : vector<64x32xf32>, vector<32x64xf32>, vector<64x64xf32> -> vector<64x64xf32>
    %153 = arith.addf %109, %152 : vector<64x64xf32>
    %c6 = arith.constant 6 : index
    %c0_157 = arith.constant 0 : index
    %154 = tpu.strided_load %arg9[%c6, %c0_157] {strides = array<i32: 2, 1>} : memref<160x32xf32, #tpu.memory_space<vmem>>, vector<16x32xf32>
    %c0_158 = arith.constant 0 : index
    %c0_159 = arith.constant 0 : index
    %c0_160 = arith.constant 0 : index
    %155 = vector.load %arg12[%c0_158, %c0_159, %c0_160] : memref<2x64x128xf32, #tpu.memory_space<vmem>>, vector<1x16x32xf32>
    %156 = vector.shape_cast %155 : vector<1x16x32xf32> to vector<16x32xf32>
    %157 = vector.shape_cast %154 : vector<16x32xf32> to vector<1x16x32xf32>
    tpu.vector_store %arg12[%c0_158, %c0_159, %c0_160], %157 {strides = array<i32>} : memref<2x64x128xf32, #tpu.memory_space<vmem>>, vector<1x16x32xf32>,
    %c46 = arith.constant 46 : index
    %c0_161 = arith.constant 0 : index
    %158 = tpu.strided_load %arg9[%c46, %c0_161] {strides = array<i32: 2, 1>} : memref<160x32xf32, #tpu.memory_space<vmem>>, vector<16x32xf32>
    %c0_162 = arith.constant 0 : index
    %c16_163 = arith.constant 16 : index
    %c0_164 = arith.constant 0 : index
    %159 = vector.load %arg12[%c0_162, %c16_163, %c0_164] : memref<2x64x128xf32, #tpu.memory_space<vmem>>, vector<1x16x32xf32>
    %160 = vector.shape_cast %159 : vector<1x16x32xf32> to vector<16x32xf32>
    %161 = vector.shape_cast %158 : vector<16x32xf32> to vector<1x16x32xf32>
    tpu.vector_store %arg12[%c0_162, %c16_163, %c0_164], %161 {strides = array<i32>} : memref<2x64x128xf32, #tpu.memory_space<vmem>>, vector<1x16x32xf32>,
    %c86 = arith.constant 86 : index
    %c0_165 = arith.constant 0 : index
    %162 = tpu.strided_load %arg9[%c86, %c0_165] {strides = array<i32: 2, 1>} : memref<160x32xf32, #tpu.memory_space<vmem>>, vector<16x32xf32>
    %c0_166 = arith.constant 0 : index
    %c32_167 = arith.constant 32 : index
    %c0_168 = arith.constant 0 : index
    %163 = vector.load %arg12[%c0_166, %c32_167, %c0_168] : memref<2x64x128xf32, #tpu.memory_space<vmem>>, vector<1x16x32xf32>
    %164 = vector.shape_cast %163 : vector<1x16x32xf32> to vector<16x32xf32>
    %165 = vector.shape_cast %162 : vector<16x32xf32> to vector<1x16x32xf32>
    tpu.vector_store %arg12[%c0_166, %c32_167, %c0_168], %165 {strides = array<i32>} : memref<2x64x128xf32, #tpu.memory_space<vmem>>, vector<1x16x32xf32>,
    %c126 = arith.constant 126 : index
    %c0_169 = arith.constant 0 : index
    %166 = tpu.strided_load %arg9[%c126, %c0_169] {strides = array<i32: 2, 1>} : memref<160x32xf32, #tpu.memory_space<vmem>>, vector<16x32xf32>
    %c0_170 = arith.constant 0 : index
    %c48_171 = arith.constant 48 : index
    %c0_172 = arith.constant 0 : index
    %167 = vector.load %arg12[%c0_170, %c48_171, %c0_172] : memref<2x64x128xf32, #tpu.memory_space<vmem>>, vector<1x16x32xf32>
    %168 = vector.shape_cast %167 : vector<1x16x32xf32> to vector<16x32xf32>
    %169 = vector.shape_cast %166 : vector<16x32xf32> to vector<1x16x32xf32>
    tpu.vector_store %arg12[%c0_170, %c48_171, %c0_172], %169 {strides = array<i32>} : memref<2x64x128xf32, #tpu.memory_space<vmem>>, vector<1x16x32xf32>,
    %c0_173 = arith.constant 0 : index
    %c0_174 = arith.constant 0 : index
    %c0_175 = arith.constant 0 : index
    %170 = vector.load %arg12[%c0_173, %c0_174, %c0_175] : memref<2x64x128xf32, #tpu.memory_space<vmem>>, vector<1x64x32xf32>
    %171 = vector.shape_cast %170 : vector<1x64x32xf32> to vector<64x32xf32>
    %c6_176 = arith.constant 6 : index
    %c0_177 = arith.constant 0 : index
    %c0_178 = arith.constant 0 : index
    %172 = vector.load %arg2[%c6_176, %c0_177, %c0_178] : memref<10x32x64xf32, #tpu.memory_space<vmem>>, vector<1x32x64xf32>
    %173 = vector.shape_cast %172 : vector<1x32x64xf32> to vector<32x64xf32>
    %cst_179 = arith.constant dense<0.000000e+00> : vector<64x64xf32>
    %174 = tpu.matmul %171, %173, %cst_179 {dimension_numbers = #tpu.dot_dimension_numbers<[1], [0], [0], [1], [0, 0, 1, 1], [], []>} : vector<64x32xf32>, vector<32x64xf32>, vector<64x64xf32> -> vector<64x64xf32>
    %175 = arith.addf %131, %174 : vector<64x64xf32>
    %c7 = arith.constant 7 : index
    %c0_180 = arith.constant 0 : index
    %176 = tpu.strided_load %arg9[%c7, %c0_180] {strides = array<i32: 2, 1>} : memref<160x32xf32, #tpu.memory_space<vmem>>, vector<16x32xf32>
    %c1_181 = arith.constant 1 : index
    %c0_182 = arith.constant 0 : index
    %c0_183 = arith.constant 0 : index
    %177 = vector.load %arg12[%c1_181, %c0_182, %c0_183] : memref<2x64x128xf32, #tpu.memory_space<vmem>>, vector<1x16x32xf32>
    %178 = vector.shape_cast %177 : vector<1x16x32xf32> to vector<16x32xf32>
    %179 = vector.shape_cast %176 : vector<16x32xf32> to vector<1x16x32xf32>
    tpu.vector_store %arg12[%c1_181, %c0_182, %c0_183], %179 {strides = array<i32>} : memref<2x64x128xf32, #tpu.memory_space<vmem>>, vector<1x16x32xf32>,
    %c47 = arith.constant 47 : index
    %c0_184 = arith.constant 0 : index
    %180 = tpu.strided_load %arg9[%c47, %c0_184] {strides = array<i32: 2, 1>} : memref<160x32xf32, #tpu.memory_space<vmem>>, vector<16x32xf32>
    %c1_185 = arith.constant 1 : index
    %c16_186 = arith.constant 16 : index
    %c0_187 = arith.constant 0 : index
    %181 = vector.load %arg12[%c1_185, %c16_186, %c0_187] : memref<2x64x128xf32, #tpu.memory_space<vmem>>, vector<1x16x32xf32>
    %182 = vector.shape_cast %181 : vector<1x16x32xf32> to vector<16x32xf32>
    %183 = vector.shape_cast %180 : vector<16x32xf32> to vector<1x16x32xf32>
    tpu.vector_store %arg12[%c1_185, %c16_186, %c0_187], %183 {strides = array<i32>} : memref<2x64x128xf32, #tpu.memory_space<vmem>>, vector<1x16x32xf32>,
    %c87 = arith.constant 87 : index
    %c0_188 = arith.constant 0 : index
    %184 = tpu.strided_load %arg9[%c87, %c0_188] {strides = array<i32: 2, 1>} : memref<160x32xf32, #tpu.memory_space<vmem>>, vector<16x32xf32>
    %c1_189 = arith.constant 1 : index
    %c32_190 = arith.constant 32 : index
    %c0_191 = arith.constant 0 : index
    %185 = vector.load %arg12[%c1_189, %c32_190, %c0_191] : memref<2x64x128xf32, #tpu.memory_space<vmem>>, vector<1x16x32xf32>
    %186 = vector.shape_cast %185 : vector<1x16x32xf32> to vector<16x32xf32>
    %187 = vector.shape_cast %184 : vector<16x32xf32> to vector<1x16x32xf32>
    tpu.vector_store %arg12[%c1_189, %c32_190, %c0_191], %187 {strides = array<i32>} : memref<2x64x128xf32, #tpu.memory_space<vmem>>, vector<1x16x32xf32>,
    %c127 = arith.constant 127 : index
    %c0_192 = arith.constant 0 : index
    %188 = tpu.strided_load %arg9[%c127, %c0_192] {strides = array<i32: 2, 1>} : memref<160x32xf32, #tpu.memory_space<vmem>>, vector<16x32xf32>
    %c1_193 = arith.constant 1 : index
    %c48_194 = arith.constant 48 : index
    %c0_195 = arith.constant 0 : index
    %189 = vector.load %arg12[%c1_193, %c48_194, %c0_195] : memref<2x64x128xf32, #tpu.memory_space<vmem>>, vector<1x16x32xf32>
    %190 = vector.shape_cast %189 : vector<1x16x32xf32> to vector<16x32xf32>
    %191 = vector.shape_cast %188 : vector<16x32xf32> to vector<1x16x32xf32>
    tpu.vector_store %arg12[%c1_193, %c48_194, %c0_195], %191 {strides = array<i32>} : memref<2x64x128xf32, #tpu.memory_space<vmem>>, vector<1x16x32xf32>,
    %c1_196 = arith.constant 1 : index
    %c0_197 = arith.constant 0 : index
    %c0_198 = arith.constant 0 : index
    %192 = vector.load %arg12[%c1_196, %c0_197, %c0_198] : memref<2x64x128xf32, #tpu.memory_space<vmem>>, vector<1x64x32xf32>
    %193 = vector.shape_cast %192 : vector<1x64x32xf32> to vector<64x32xf32>
    %c7_199 = arith.constant 7 : index
    %c0_200 = arith.constant 0 : index
    %c0_201 = arith.constant 0 : index
    %194 = vector.load %arg2[%c7_199, %c0_200, %c0_201] : memref<10x32x64xf32, #tpu.memory_space<vmem>>, vector<1x32x64xf32>
    %195 = vector.shape_cast %194 : vector<1x32x64xf32> to vector<32x64xf32>
    %cst_202 = arith.constant dense<0.000000e+00> : vector<64x64xf32>
    %196 = tpu.matmul %193, %195, %cst_202 {dimension_numbers = #tpu.dot_dimension_numbers<[1], [0], [0], [1], [0, 0, 1, 1], [], []>} : vector<64x32xf32>, vector<32x64xf32>, vector<64x64xf32> -> vector<64x64xf32>
    %197 = arith.addf %153, %196 : vector<64x64xf32>
    %c8 = arith.constant 8 : index
    %c0_203 = arith.constant 0 : index
    %198 = tpu.strided_load %arg9[%c8, %c0_203] {strides = array<i32: 2, 1>} : memref<160x32xf32, #tpu.memory_space<vmem>>, vector<16x32xf32>
    %c0_204 = arith.constant 0 : index
    %c0_205 = arith.constant 0 : index
    %c0_206 = arith.constant 0 : index
    %199 = vector.load %arg12[%c0_204, %c0_205, %c0_206] : memref<2x64x128xf32, #tpu.memory_space<vmem>>, vector<1x16x32xf32>
    %200 = vector.shape_cast %199 : vector<1x16x32xf32> to vector<16x32xf32>
    %201 = vector.shape_cast %198 : vector<16x32xf32> to vector<1x16x32xf32>
    tpu.vector_store %arg12[%c0_204, %c0_205, %c0_206], %201 {strides = array<i32>} : memref<2x64x128xf32, #tpu.memory_space<vmem>>, vector<1x16x32xf32>,
    %c48_207 = arith.constant 48 : index
    %c0_208 = arith.constant 0 : index
    %202 = tpu.strided_load %arg9[%c48_207, %c0_208] {strides = array<i32: 2, 1>} : memref<160x32xf32, #tpu.memory_space<vmem>>, vector<16x32xf32>
    %c0_209 = arith.constant 0 : index
    %c16_210 = arith.constant 16 : index
    %c0_211 = arith.constant 0 : index
    %203 = vector.load %arg12[%c0_209, %c16_210, %c0_211] : memref<2x64x128xf32, #tpu.memory_space<vmem>>, vector<1x16x32xf32>
    %204 = vector.shape_cast %203 : vector<1x16x32xf32> to vector<16x32xf32>
    %205 = vector.shape_cast %202 : vector<16x32xf32> to vector<1x16x32xf32>
    tpu.vector_store %arg12[%c0_209, %c16_210, %c0_211], %205 {strides = array<i32>} : memref<2x64x128xf32, #tpu.memory_space<vmem>>, vector<1x16x32xf32>,
    %c88 = arith.constant 88 : index
    %c0_212 = arith.constant 0 : index
    %206 = tpu.strided_load %arg9[%c88, %c0_212] {strides = array<i32: 2, 1>} : memref<160x32xf32, #tpu.memory_space<vmem>>, vector<16x32xf32>
    %c0_213 = arith.constant 0 : index
    %c32_214 = arith.constant 32 : index
    %c0_215 = arith.constant 0 : index
    %207 = vector.load %arg12[%c0_213, %c32_214, %c0_215] : memref<2x64x128xf32, #tpu.memory_space<vmem>>, vector<1x16x32xf32>
    %208 = vector.shape_cast %207 : vector<1x16x32xf32> to vector<16x32xf32>
    %209 = vector.shape_cast %206 : vector<16x32xf32> to vector<1x16x32xf32>
    tpu.vector_store %arg12[%c0_213, %c32_214, %c0_215], %209 {strides = array<i32>} : memref<2x64x128xf32, #tpu.memory_space<vmem>>, vector<1x16x32xf32>,
    %c128 = arith.constant 128 : index
    %c0_216 = arith.constant 0 : index
    %210 = tpu.strided_load %arg9[%c128, %c0_216] {strides = array<i32: 2, 1>} : memref<160x32xf32, #tpu.memory_space<vmem>>, vector<16x32xf32>
    %c0_217 = arith.constant 0 : index
    %c48_218 = arith.constant 48 : index
    %c0_219 = arith.constant 0 : index
    %211 = vector.load %arg12[%c0_217, %c48_218, %c0_219] : memref<2x64x128xf32, #tpu.memory_space<vmem>>, vector<1x16x32xf32>
    %212 = vector.shape_cast %211 : vector<1x16x32xf32> to vector<16x32xf32>
    %213 = vector.shape_cast %210 : vector<16x32xf32> to vector<1x16x32xf32>
    tpu.vector_store %arg12[%c0_217, %c48_218, %c0_219], %213 {strides = array<i32>} : memref<2x64x128xf32, #tpu.memory_space<vmem>>, vector<1x16x32xf32>,
    %c0_220 = arith.constant 0 : index
    %c0_221 = arith.constant 0 : index
    %c0_222 = arith.constant 0 : index
    %214 = vector.load %arg12[%c0_220, %c0_221, %c0_222] : memref<2x64x128xf32, #tpu.memory_space<vmem>>, vector<1x64x32xf32>
    %215 = vector.shape_cast %214 : vector<1x64x32xf32> to vector<64x32xf32>
    %c8_223 = arith.constant 8 : index
    %c0_224 = arith.constant 0 : index
    %c0_225 = arith.constant 0 : index
    %216 = vector.load %arg2[%c8_223, %c0_224, %c0_225] : memref<10x32x64xf32, #tpu.memory_space<vmem>>, vector<1x32x64xf32>
    %217 = vector.shape_cast %216 : vector<1x32x64xf32> to vector<32x64xf32>
    %cst_226 = arith.constant dense<0.000000e+00> : vector<64x64xf32>
    %218 = tpu.matmul %215, %217, %cst_226 {dimension_numbers = #tpu.dot_dimension_numbers<[1], [0], [0], [1], [0, 0, 1, 1], [], []>} : vector<64x32xf32>, vector<32x64xf32>, vector<64x64xf32> -> vector<64x64xf32>
    %219 = arith.addf %175, %218 : vector<64x64xf32>
    %c9 = arith.constant 9 : index
    %c0_227 = arith.constant 0 : index
    %220 = tpu.strided_load %arg9[%c9, %c0_227] {strides = array<i32: 2, 1>} : memref<160x32xf32, #tpu.memory_space<vmem>>, vector<16x32xf32>
    %c1_228 = arith.constant 1 : index
    %c0_229 = arith.constant 0 : index
    %c0_230 = arith.constant 0 : index
    %221 = vector.load %arg12[%c1_228, %c0_229, %c0_230] : memref<2x64x128xf32, #tpu.memory_space<vmem>>, vector<1x16x32xf32>
    %222 = vector.shape_cast %221 : vector<1x16x32xf32> to vector<16x32xf32>
    %223 = vector.shape_cast %220 : vector<16x32xf32> to vector<1x16x32xf32>
    tpu.vector_store %arg12[%c1_228, %c0_229, %c0_230], %223 {strides = array<i32>} : memref<2x64x128xf32, #tpu.memory_space<vmem>>, vector<1x16x32xf32>,
    %c49 = arith.constant 49 : index
    %c0_231 = arith.constant 0 : index
    %224 = tpu.strided_load %arg9[%c49, %c0_231] {strides = array<i32: 2, 1>} : memref<160x32xf32, #tpu.memory_space<vmem>>, vector<16x32xf32>
    %c1_232 = arith.constant 1 : index
    %c16_233 = arith.constant 16 : index
    %c0_234 = arith.constant 0 : index
    %225 = vector.load %arg12[%c1_232, %c16_233, %c0_234] : memref<2x64x128xf32, #tpu.memory_space<vmem>>, vector<1x16x32xf32>
    %226 = vector.shape_cast %225 : vector<1x16x32xf32> to vector<16x32xf32>
    %227 = vector.shape_cast %224 : vector<16x32xf32> to vector<1x16x32xf32>
    tpu.vector_store %arg12[%c1_232, %c16_233, %c0_234], %227 {strides = array<i32>} : memref<2x64x128xf32, #tpu.memory_space<vmem>>, vector<1x16x32xf32>,
    %c89 = arith.constant 89 : index
    %c0_235 = arith.constant 0 : index
    %228 = tpu.strided_load %arg9[%c89, %c0_235] {strides = array<i32: 2, 1>} : memref<160x32xf32, #tpu.memory_space<vmem>>, vector<16x32xf32>
    %c1_236 = arith.constant 1 : index
    %c32_237 = arith.constant 32 : index
    %c0_238 = arith.constant 0 : index
    %229 = vector.load %arg12[%c1_236, %c32_237, %c0_238] : memref<2x64x128xf32, #tpu.memory_space<vmem>>, vector<1x16x32xf32>
    %230 = vector.shape_cast %229 : vector<1x16x32xf32> to vector<16x32xf32>
    %231 = vector.shape_cast %228 : vector<16x32xf32> to vector<1x16x32xf32>
    tpu.vector_store %arg12[%c1_236, %c32_237, %c0_238], %231 {strides = array<i32>} : memref<2x64x128xf32, #tpu.memory_space<vmem>>, vector<1x16x32xf32>,
    %c129 = arith.constant 129 : index
    %c0_239 = arith.constant 0 : index
    %232 = tpu.strided_load %arg9[%c129, %c0_239] {strides = array<i32: 2, 1>} : memref<160x32xf32, #tpu.memory_space<vmem>>, vector<16x32xf32>
    %c1_240 = arith.constant 1 : index
    %c48_241 = arith.constant 48 : index
    %c0_242 = arith.constant 0 : index
    %233 = vector.load %arg12[%c1_240, %c48_241, %c0_242] : memref<2x64x128xf32, #tpu.memory_space<vmem>>, vector<1x16x32xf32>
    %234 = vector.shape_cast %233 : vector<1x16x32xf32> to vector<16x32xf32>
    %235 = vector.shape_cast %232 : vector<16x32xf32> to vector<1x16x32xf32>
    tpu.vector_store %arg12[%c1_240, %c48_241, %c0_242], %235 {strides = array<i32>} : memref<2x64x128xf32, #tpu.memory_space<vmem>>, vector<1x16x32xf32>,
    %c1_243 = arith.constant 1 : index
    %c0_244 = arith.constant 0 : index
    %c0_245 = arith.constant 0 : index
    %236 = vector.load %arg12[%c1_243, %c0_244, %c0_245] : memref<2x64x128xf32, #tpu.memory_space<vmem>>, vector<1x64x32xf32>
    %237 = vector.shape_cast %236 : vector<1x64x32xf32> to vector<64x32xf32>
    %c9_246 = arith.constant 9 : index
    %c0_247 = arith.constant 0 : index
    %c0_248 = arith.constant 0 : index
    %238 = vector.load %arg2[%c9_246, %c0_247, %c0_248] : memref<10x32x64xf32, #tpu.memory_space<vmem>>, vector<1x32x64xf32>
    %239 = vector.shape_cast %238 : vector<1x32x64xf32> to vector<32x64xf32>
    %cst_249 = arith.constant dense<0.000000e+00> : vector<64x64xf32>
    %240 = tpu.matmul %237, %239, %cst_249 {dimension_numbers = #tpu.dot_dimension_numbers<[1], [0], [0], [1], [0, 0, 1, 1], [], []>} : vector<64x32xf32>, vector<32x64xf32>, vector<64x64xf32> -> vector<64x64xf32>
    %241 = arith.addf %197, %240 : vector<64x64xf32>
    %242 = arith.addf %219, %241 : vector<64x64xf32>
    %243 = vector.broadcast %19 : vector<1x64xf32> to vector<64x64xf32>
    %244 = arith.addf %242, %243 : vector<64x64xf32>
    %cst_250 = arith.constant 2.000000e-01 : f32
    %245 = vector.broadcast %cst_250 : f32 to vector<64x64xf32>
    %246 = arith.mulf %245, %244 : vector<64x64xf32>
    %247 = arith.maximumf %244, %246 : vector<64x64xf32>
    %cst_251 = arith.constant 0.000000e+00 : f32
    %248 = vector.broadcast %cst_251 : f32 to vector<96x64xf32>
    %c0_252 = arith.constant 0 : index
    %c0_253 = arith.constant 0 : index
    %249 = vector.load %arg10[%c0_252, %c0_253] : memref<96x64xf32, #tpu.memory_space<vmem>>, vector<96x64xf32>
    tpu.vector_store %arg10[%c0_252, %c0_253], %248 {strides = array<i32>} : memref<96x64xf32, #tpu.memory_space<vmem>>, vector<96x64xf32>,
    %250 = vector.extract_strided_slice %247 {offsets = [0, 0], sizes = [16, 64], strides = [1, 1]} : vector<64x64xf32> to vector<16x64xf32>
    %c4_254 = arith.constant 4 : index
    %c0_255 = arith.constant 0 : index
    %251 = vector.load %arg10[%c4_254, %c0_255] : memref<96x64xf32, #tpu.memory_space<vmem>>, vector<16x64xf32>
    tpu.vector_store %arg10[%c4_254, %c0_255], %250 {strides = array<i32>} : memref<96x64xf32, #tpu.memory_space<vmem>>, vector<16x64xf32>,
    %252 = vector.extract_strided_slice %247 {offsets = [16, 0], sizes = [16, 64], strides = [1, 1]} : vector<64x64xf32> to vector<16x64xf32>
    %c28 = arith.constant 28 : index
    %c0_256 = arith.constant 0 : index
    %253 = vector.load %arg10[%c28, %c0_256] : memref<96x64xf32, #tpu.memory_space<vmem>>, vector<16x64xf32>
    tpu.vector_store %arg10[%c28, %c0_256], %252 {strides = array<i32>} : memref<96x64xf32, #tpu.memory_space<vmem>>, vector<16x64xf32>,
    %254 = vector.extract_strided_slice %247 {offsets = [32, 0], sizes = [16, 64], strides = [1, 1]} : vector<64x64xf32> to vector<16x64xf32>
    %c52 = arith.constant 52 : index
    %c0_257 = arith.constant 0 : index
    %255 = vector.load %arg10[%c52, %c0_257] : memref<96x64xf32, #tpu.memory_space<vmem>>, vector<16x64xf32>
    tpu.vector_store %arg10[%c52, %c0_257], %254 {strides = array<i32>} : memref<96x64xf32, #tpu.memory_space<vmem>>, vector<16x64xf32>,
    %256 = vector.extract_strided_slice %247 {offsets = [48, 0], sizes = [16, 64], strides = [1, 1]} : vector<64x64xf32> to vector<16x64xf32>
    %c76 = arith.constant 76 : index
    %c0_258 = arith.constant 0 : index
    %257 = vector.load %arg10[%c76, %c0_258] : memref<96x64xf32, #tpu.memory_space<vmem>>, vector<16x64xf32>
    tpu.vector_store %arg10[%c76, %c0_258], %256 {strides = array<i32>} : memref<96x64xf32, #tpu.memory_space<vmem>>, vector<16x64xf32>,
    %c2_259 = arith.constant 2 : index
    %c0_260 = arith.constant 0 : index
    %258 = vector.load %arg4[%c2_259, %c0_260] : memref<16x256xf32, #tpu.memory_space<vmem>>, vector<1x128xf32>
    %c3_261 = arith.constant 3 : index
    %c0_262 = arith.constant 0 : index
    %259 = vector.load %arg4[%c3_261, %c0_262] : memref<16x256xf32, #tpu.memory_space<vmem>>, vector<1x128xf32>
    %c4_263 = arith.constant 4 : index
    %c0_264 = arith.constant 0 : index
    %260 = vector.load %arg4[%c4_263, %c0_264] : memref<16x256xf32, #tpu.memory_space<vmem>>, vector<1x128xf32>
    %cst_265 = arith.constant 0.000000e+00 : f32
    %261 = vector.broadcast %cst_265 : f32 to vector<32x128xf32>
    %cst_266 = arith.constant 0.000000e+00 : f32
    %262 = vector.broadcast %cst_266 : f32 to vector<32x128xf32>
    %c0_267 = arith.constant 0 : index
    %c0_268 = arith.constant 0 : index
    %263 = tpu.strided_load %arg10[%c0_267, %c0_268] {strides = array<i32: 2, 1>} : memref<96x64xf32, #tpu.memory_space<vmem>>, vector<8x64xf32>
    %c0_269 = arith.constant 0 : index
    %c0_270 = arith.constant 0 : index
    %c0_271 = arith.constant 0 : index
    %264 = vector.load %arg12[%c0_269, %c0_270, %c0_271] : memref<2x64x128xf32, #tpu.memory_space<vmem>>, vector<1x8x64xf32>
    %265 = vector.shape_cast %264 : vector<1x8x64xf32> to vector<8x64xf32>
    %266 = vector.shape_cast %263 : vector<8x64xf32> to vector<1x8x64xf32>
    tpu.vector_store %arg12[%c0_269, %c0_270, %c0_271], %266 {strides = array<i32>} : memref<2x64x128xf32, #tpu.memory_space<vmem>>, vector<1x8x64xf32>,
    %c24 = arith.constant 24 : index
    %c0_272 = arith.constant 0 : index
    %267 = tpu.strided_load %arg10[%c24, %c0_272] {strides = array<i32: 2, 1>} : memref<96x64xf32, #tpu.memory_space<vmem>>, vector<8x64xf32>
    %c0_273 = arith.constant 0 : index
    %c8_274 = arith.constant 8 : index
    %c0_275 = arith.constant 0 : index
    %268 = vector.load %arg12[%c0_273, %c8_274, %c0_275] : memref<2x64x128xf32, #tpu.memory_space<vmem>>, vector<1x8x64xf32>
    %269 = vector.shape_cast %268 : vector<1x8x64xf32> to vector<8x64xf32>
    %270 = vector.shape_cast %267 : vector<8x64xf32> to vector<1x8x64xf32>
    tpu.vector_store %arg12[%c0_273, %c8_274, %c0_275], %270 {strides = array<i32>} : memref<2x64x128xf32, #tpu.memory_space<vmem>>, vector<1x8x64xf32>,
    %c48_276 = arith.constant 48 : index
    %c0_277 = arith.constant 0 : index
    %271 = tpu.strided_load %arg10[%c48_276, %c0_277] {strides = array<i32: 2, 1>} : memref<96x64xf32, #tpu.memory_space<vmem>>, vector<8x64xf32>
    %c0_278 = arith.constant 0 : index
    %c16_279 = arith.constant 16 : index
    %c0_280 = arith.constant 0 : index
    %272 = vector.load %arg12[%c0_278, %c16_279, %c0_280] : memref<2x64x128xf32, #tpu.memory_space<vmem>>, vector<1x8x64xf32>
    %273 = vector.shape_cast %272 : vector<1x8x64xf32> to vector<8x64xf32>
    %274 = vector.shape_cast %271 : vector<8x64xf32> to vector<1x8x64xf32>
    tpu.vector_store %arg12[%c0_278, %c16_279, %c0_280], %274 {strides = array<i32>} : memref<2x64x128xf32, #tpu.memory_space<vmem>>, vector<1x8x64xf32>,
    %c72 = arith.constant 72 : index
    %c0_281 = arith.constant 0 : index
    %275 = tpu.strided_load %arg10[%c72, %c0_281] {strides = array<i32: 2, 1>} : memref<96x64xf32, #tpu.memory_space<vmem>>, vector<8x64xf32>
    %c0_282 = arith.constant 0 : index
    %c24_283 = arith.constant 24 : index
    %c0_284 = arith.constant 0 : index
    %276 = vector.load %arg12[%c0_282, %c24_283, %c0_284] : memref<2x64x128xf32, #tpu.memory_space<vmem>>, vector<1x8x64xf32>
    %277 = vector.shape_cast %276 : vector<1x8x64xf32> to vector<8x64xf32>
    %278 = vector.shape_cast %275 : vector<8x64xf32> to vector<1x8x64xf32>
    tpu.vector_store %arg12[%c0_282, %c24_283, %c0_284], %278 {strides = array<i32>} : memref<2x64x128xf32, #tpu.memory_space<vmem>>, vector<1x8x64xf32>,
    %c0_285 = arith.constant 0 : index
    %c0_286 = arith.constant 0 : index
    %c0_287 = arith.constant 0 : index
    %279 = vector.load %arg12[%c0_285, %c0_286, %c0_287] : memref<2x64x128xf32, #tpu.memory_space<vmem>>, vector<1x32x64xf32>
    %280 = vector.shape_cast %279 : vector<1x32x64xf32> to vector<32x64xf32>
    %c0_288 = arith.constant 0 : index
    %c0_289 = arith.constant 0 : index
    %c0_290 = arith.constant 0 : index
    %281 = vector.load %arg3[%c0_288, %c0_289, %c0_290] : memref<10x64x128xf32, #tpu.memory_space<vmem>>, vector<1x64x128xf32>
    %282 = vector.shape_cast %281 : vector<1x64x128xf32> to vector<64x128xf32>
    %cst_291 = arith.constant dense<0.000000e+00> : vector<32x128xf32>
    %283 = tpu.matmul %280, %282, %cst_291 {dimension_numbers = #tpu.dot_dimension_numbers<[1], [0], [0], [1], [0, 0, 1, 1], [], []>} : vector<32x64xf32>, vector<64x128xf32>, vector<32x128xf32> -> vector<32x128xf32>
    %284 = arith.addf %261, %283 : vector<32x128xf32>
    %c1_292 = arith.constant 1 : index
    %c0_293 = arith.constant 0 : index
    %285 = tpu.strided_load %arg10[%c1_292, %c0_293] {strides = array<i32: 2, 1>} : memref<96x64xf32, #tpu.memory_space<vmem>>, vector<8x64xf32>
    %c1_294 = arith.constant 1 : index
    %c0_295 = arith.constant 0 : index
    %c0_296 = arith.constant 0 : index
    %286 = vector.load %arg12[%c1_294, %c0_295, %c0_296] : memref<2x64x128xf32, #tpu.memory_space<vmem>>, vector<1x8x64xf32>
    %287 = vector.shape_cast %286 : vector<1x8x64xf32> to vector<8x64xf32>
    %288 = vector.shape_cast %285 : vector<8x64xf32> to vector<1x8x64xf32>
    tpu.vector_store %arg12[%c1_294, %c0_295, %c0_296], %288 {strides = array<i32>} : memref<2x64x128xf32, #tpu.memory_space<vmem>>, vector<1x8x64xf32>,
    %c25 = arith.constant 25 : index
    %c0_297 = arith.constant 0 : index
    %289 = tpu.strided_load %arg10[%c25, %c0_297] {strides = array<i32: 2, 1>} : memref<96x64xf32, #tpu.memory_space<vmem>>, vector<8x64xf32>
    %c1_298 = arith.constant 1 : index
    %c8_299 = arith.constant 8 : index
    %c0_300 = arith.constant 0 : index
    %290 = vector.load %arg12[%c1_298, %c8_299, %c0_300] : memref<2x64x128xf32, #tpu.memory_space<vmem>>, vector<1x8x64xf32>
    %291 = vector.shape_cast %290 : vector<1x8x64xf32> to vector<8x64xf32>
    %292 = vector.shape_cast %289 : vector<8x64xf32> to vector<1x8x64xf32>
    tpu.vector_store %arg12[%c1_298, %c8_299, %c0_300], %292 {strides = array<i32>} : memref<2x64x128xf32, #tpu.memory_space<vmem>>, vector<1x8x64xf32>,
    %c49_301 = arith.constant 49 : index
    %c0_302 = arith.constant 0 : index
    %293 = tpu.strided_load %arg10[%c49_301, %c0_302] {strides = array<i32: 2, 1>} : memref<96x64xf32, #tpu.memory_space<vmem>>, vector<8x64xf32>
    %c1_303 = arith.constant 1 : index
    %c16_304 = arith.constant 16 : index
    %c0_305 = arith.constant 0 : index
    %294 = vector.load %arg12[%c1_303, %c16_304, %c0_305] : memref<2x64x128xf32, #tpu.memory_space<vmem>>, vector<1x8x64xf32>
    %295 = vector.shape_cast %294 : vector<1x8x64xf32> to vector<8x64xf32>
    %296 = vector.shape_cast %293 : vector<8x64xf32> to vector<1x8x64xf32>
    tpu.vector_store %arg12[%c1_303, %c16_304, %c0_305], %296 {strides = array<i32>} : memref<2x64x128xf32, #tpu.memory_space<vmem>>, vector<1x8x64xf32>,
    %c73 = arith.constant 73 : index
    %c0_306 = arith.constant 0 : index
    %297 = tpu.strided_load %arg10[%c73, %c0_306] {strides = array<i32: 2, 1>} : memref<96x64xf32, #tpu.memory_space<vmem>>, vector<8x64xf32>
    %c1_307 = arith.constant 1 : index
    %c24_308 = arith.constant 24 : index
    %c0_309 = arith.constant 0 : index
    %298 = vector.load %arg12[%c1_307, %c24_308, %c0_309] : memref<2x64x128xf32, #tpu.memory_space<vmem>>, vector<1x8x64xf32>
    %299 = vector.shape_cast %298 : vector<1x8x64xf32> to vector<8x64xf32>
    %300 = vector.shape_cast %297 : vector<8x64xf32> to vector<1x8x64xf32>
    tpu.vector_store %arg12[%c1_307, %c24_308, %c0_309], %300 {strides = array<i32>} : memref<2x64x128xf32, #tpu.memory_space<vmem>>, vector<1x8x64xf32>,
    %c1_310 = arith.constant 1 : index
    %c0_311 = arith.constant 0 : index
    %c0_312 = arith.constant 0 : index
    %301 = vector.load %arg12[%c1_310, %c0_311, %c0_312] : memref<2x64x128xf32, #tpu.memory_space<vmem>>, vector<1x32x64xf32>
    %302 = vector.shape_cast %301 : vector<1x32x64xf32> to vector<32x64xf32>
    %c1_313 = arith.constant 1 : index
    %c0_314 = arith.constant 0 : index
    %c0_315 = arith.constant 0 : index
    %303 = vector.load %arg3[%c1_313, %c0_314, %c0_315] : memref<10x64x128xf32, #tpu.memory_space<vmem>>, vector<1x64x128xf32>
    %304 = vector.shape_cast %303 : vector<1x64x128xf32> to vector<64x128xf32>
    %cst_316 = arith.constant dense<0.000000e+00> : vector<32x128xf32>
    %305 = tpu.matmul %302, %304, %cst_316 {dimension_numbers = #tpu.dot_dimension_numbers<[1], [0], [0], [1], [0, 0, 1, 1], [], []>} : vector<32x64xf32>, vector<64x128xf32>, vector<32x128xf32> -> vector<32x128xf32>
    %306 = arith.addf %262, %305 : vector<32x128xf32>
    %c2_317 = arith.constant 2 : index
    %c0_318 = arith.constant 0 : index
    %307 = tpu.strided_load %arg10[%c2_317, %c0_318] {strides = array<i32: 2, 1>} : memref<96x64xf32, #tpu.memory_space<vmem>>, vector<8x64xf32>
    %c0_319 = arith.constant 0 : index
    %c0_320 = arith.constant 0 : index
    %c0_321 = arith.constant 0 : index
    %308 = vector.load %arg12[%c0_319, %c0_320, %c0_321] : memref<2x64x128xf32, #tpu.memory_space<vmem>>, vector<1x8x64xf32>
    %309 = vector.shape_cast %308 : vector<1x8x64xf32> to vector<8x64xf32>
    %310 = vector.shape_cast %307 : vector<8x64xf32> to vector<1x8x64xf32>
    tpu.vector_store %arg12[%c0_319, %c0_320, %c0_321], %310 {strides = array<i32>} : memref<2x64x128xf32, #tpu.memory_space<vmem>>, vector<1x8x64xf32>,
    %c26 = arith.constant 26 : index
    %c0_322 = arith.constant 0 : index
    %311 = tpu.strided_load %arg10[%c26, %c0_322] {strides = array<i32: 2, 1>} : memref<96x64xf32, #tpu.memory_space<vmem>>, vector<8x64xf32>
    %c0_323 = arith.constant 0 : index
    %c8_324 = arith.constant 8 : index
    %c0_325 = arith.constant 0 : index
    %312 = vector.load %arg12[%c0_323, %c8_324, %c0_325] : memref<2x64x128xf32, #tpu.memory_space<vmem>>, vector<1x8x64xf32>
    %313 = vector.shape_cast %312 : vector<1x8x64xf32> to vector<8x64xf32>
    %314 = vector.shape_cast %311 : vector<8x64xf32> to vector<1x8x64xf32>
    tpu.vector_store %arg12[%c0_323, %c8_324, %c0_325], %314 {strides = array<i32>} : memref<2x64x128xf32, #tpu.memory_space<vmem>>, vector<1x8x64xf32>,
    %c50 = arith.constant 50 : index
    %c0_326 = arith.constant 0 : index
    %315 = tpu.strided_load %arg10[%c50, %c0_326] {strides = array<i32: 2, 1>} : memref<96x64xf32, #tpu.memory_space<vmem>>, vector<8x64xf32>
    %c0_327 = arith.constant 0 : index
    %c16_328 = arith.constant 16 : index
    %c0_329 = arith.constant 0 : index
    %316 = vector.load %arg12[%c0_327, %c16_328, %c0_329] : memref<2x64x128xf32, #tpu.memory_space<vmem>>, vector<1x8x64xf32>
    %317 = vector.shape_cast %316 : vector<1x8x64xf32> to vector<8x64xf32>
    %318 = vector.shape_cast %315 : vector<8x64xf32> to vector<1x8x64xf32>
    tpu.vector_store %arg12[%c0_327, %c16_328, %c0_329], %318 {strides = array<i32>} : memref<2x64x128xf32, #tpu.memory_space<vmem>>, vector<1x8x64xf32>,
    %c74 = arith.constant 74 : index
    %c0_330 = arith.constant 0 : index
    %319 = tpu.strided_load %arg10[%c74, %c0_330] {strides = array<i32: 2, 1>} : memref<96x64xf32, #tpu.memory_space<vmem>>, vector<8x64xf32>
    %c0_331 = arith.constant 0 : index
    %c24_332 = arith.constant 24 : index
    %c0_333 = arith.constant 0 : index
    %320 = vector.load %arg12[%c0_331, %c24_332, %c0_333] : memref<2x64x128xf32, #tpu.memory_space<vmem>>, vector<1x8x64xf32>
    %321 = vector.shape_cast %320 : vector<1x8x64xf32> to vector<8x64xf32>
    %322 = vector.shape_cast %319 : vector<8x64xf32> to vector<1x8x64xf32>
    tpu.vector_store %arg12[%c0_331, %c24_332, %c0_333], %322 {strides = array<i32>} : memref<2x64x128xf32, #tpu.memory_space<vmem>>, vector<1x8x64xf32>,
    %c0_334 = arith.constant 0 : index
    %c0_335 = arith.constant 0 : index
    %c0_336 = arith.constant 0 : index
    %323 = vector.load %arg12[%c0_334, %c0_335, %c0_336] : memref<2x64x128xf32, #tpu.memory_space<vmem>>, vector<1x32x64xf32>
    %324 = vector.shape_cast %323 : vector<1x32x64xf32> to vector<32x64xf32>
    %c2_337 = arith.constant 2 : index
    %c0_338 = arith.constant 0 : index
    %c0_339 = arith.constant 0 : index
    %325 = vector.load %arg3[%c2_337, %c0_338, %c0_339] : memref<10x64x128xf32, #tpu.memory_space<vmem>>, vector<1x64x128xf32>
    %326 = vector.shape_cast %325 : vector<1x64x128xf32> to vector<64x128xf32>
    %cst_340 = arith.constant dense<0.000000e+00> : vector<32x128xf32>
    %327 = tpu.matmul %324, %326, %cst_340 {dimension_numbers = #tpu.dot_dimension_numbers<[1], [0], [0], [1], [0, 0, 1, 1], [], []>} : vector<32x64xf32>, vector<64x128xf32>, vector<32x128xf32> -> vector<32x128xf32>
    %328 = arith.addf %284, %327 : vector<32x128xf32>
    %c3_341 = arith.constant 3 : index
    %c0_342 = arith.constant 0 : index
    %329 = tpu.strided_load %arg10[%c3_341, %c0_342] {strides = array<i32: 2, 1>} : memref<96x64xf32, #tpu.memory_space<vmem>>, vector<8x64xf32>
    %c1_343 = arith.constant 1 : index
    %c0_344 = arith.constant 0 : index
    %c0_345 = arith.constant 0 : index
    %330 = vector.load %arg12[%c1_343, %c0_344, %c0_345] : memref<2x64x128xf32, #tpu.memory_space<vmem>>, vector<1x8x64xf32>
    %331 = vector.shape_cast %330 : vector<1x8x64xf32> to vector<8x64xf32>
    %332 = vector.shape_cast %329 : vector<8x64xf32> to vector<1x8x64xf32>
    tpu.vector_store %arg12[%c1_343, %c0_344, %c0_345], %332 {strides = array<i32>} : memref<2x64x128xf32, #tpu.memory_space<vmem>>, vector<1x8x64xf32>,
    %c27 = arith.constant 27 : index
    %c0_346 = arith.constant 0 : index
    %333 = tpu.strided_load %arg10[%c27, %c0_346] {strides = array<i32: 2, 1>} : memref<96x64xf32, #tpu.memory_space<vmem>>, vector<8x64xf32>
    %c1_347 = arith.constant 1 : index
    %c8_348 = arith.constant 8 : index
    %c0_349 = arith.constant 0 : index
    %334 = vector.load %arg12[%c1_347, %c8_348, %c0_349] : memref<2x64x128xf32, #tpu.memory_space<vmem>>, vector<1x8x64xf32>
    %335 = vector.shape_cast %334 : vector<1x8x64xf32> to vector<8x64xf32>
    %336 = vector.shape_cast %333 : vector<8x64xf32> to vector<1x8x64xf32>
    tpu.vector_store %arg12[%c1_347, %c8_348, %c0_349], %336 {strides = array<i32>} : memref<2x64x128xf32, #tpu.memory_space<vmem>>, vector<1x8x64xf32>,
    %c51 = arith.constant 51 : index
    %c0_350 = arith.constant 0 : index
    %337 = tpu.strided_load %arg10[%c51, %c0_350] {strides = array<i32: 2, 1>} : memref<96x64xf32, #tpu.memory_space<vmem>>, vector<8x64xf32>
    %c1_351 = arith.constant 1 : index
    %c16_352 = arith.constant 16 : index
    %c0_353 = arith.constant 0 : index
    %338 = vector.load %arg12[%c1_351, %c16_352, %c0_353] : memref<2x64x128xf32, #tpu.memory_space<vmem>>, vector<1x8x64xf32>
    %339 = vector.shape_cast %338 : vector<1x8x64xf32> to vector<8x64xf32>
    %340 = vector.shape_cast %337 : vector<8x64xf32> to vector<1x8x64xf32>
    tpu.vector_store %arg12[%c1_351, %c16_352, %c0_353], %340 {strides = array<i32>} : memref<2x64x128xf32, #tpu.memory_space<vmem>>, vector<1x8x64xf32>,
    %c75 = arith.constant 75 : index
    %c0_354 = arith.constant 0 : index
    %341 = tpu.strided_load %arg10[%c75, %c0_354] {strides = array<i32: 2, 1>} : memref<96x64xf32, #tpu.memory_space<vmem>>, vector<8x64xf32>
    %c1_355 = arith.constant 1 : index
    %c24_356 = arith.constant 24 : index
    %c0_357 = arith.constant 0 : index
    %342 = vector.load %arg12[%c1_355, %c24_356, %c0_357] : memref<2x64x128xf32, #tpu.memory_space<vmem>>, vector<1x8x64xf32>
    %343 = vector.shape_cast %342 : vector<1x8x64xf32> to vector<8x64xf32>
    %344 = vector.shape_cast %341 : vector<8x64xf32> to vector<1x8x64xf32>
    tpu.vector_store %arg12[%c1_355, %c24_356, %c0_357], %344 {strides = array<i32>} : memref<2x64x128xf32, #tpu.memory_space<vmem>>, vector<1x8x64xf32>,
    %c1_358 = arith.constant 1 : index
    %c0_359 = arith.constant 0 : index
    %c0_360 = arith.constant 0 : index
    %345 = vector.load %arg12[%c1_358, %c0_359, %c0_360] : memref<2x64x128xf32, #tpu.memory_space<vmem>>, vector<1x32x64xf32>
    %346 = vector.shape_cast %345 : vector<1x32x64xf32> to vector<32x64xf32>
    %c3_361 = arith.constant 3 : index
    %c0_362 = arith.constant 0 : index
    %c0_363 = arith.constant 0 : index
    %347 = vector.load %arg3[%c3_361, %c0_362, %c0_363] : memref<10x64x128xf32, #tpu.memory_space<vmem>>, vector<1x64x128xf32>
    %348 = vector.shape_cast %347 : vector<1x64x128xf32> to vector<64x128xf32>
    %cst_364 = arith.constant dense<0.000000e+00> : vector<32x128xf32>
    %349 = tpu.matmul %346, %348, %cst_364 {dimension_numbers = #tpu.dot_dimension_numbers<[1], [0], [0], [1], [0, 0, 1, 1], [], []>} : vector<32x64xf32>, vector<64x128xf32>, vector<32x128xf32> -> vector<32x128xf32>
    %350 = arith.addf %306, %349 : vector<32x128xf32>
    %c4_365 = arith.constant 4 : index
    %c0_366 = arith.constant 0 : index
    %351 = tpu.strided_load %arg10[%c4_365, %c0_366] {strides = array<i32: 2, 1>} : memref<96x64xf32, #tpu.memory_space<vmem>>, vector<8x64xf32>
    %c0_367 = arith.constant 0 : index
    %c0_368 = arith.constant 0 : index
    %c0_369 = arith.constant 0 : index
    %352 = vector.load %arg12[%c0_367, %c0_368, %c0_369] : memref<2x64x128xf32, #tpu.memory_space<vmem>>, vector<1x8x64xf32>
    %353 = vector.shape_cast %352 : vector<1x8x64xf32> to vector<8x64xf32>
    %354 = vector.shape_cast %351 : vector<8x64xf32> to vector<1x8x64xf32>
    tpu.vector_store %arg12[%c0_367, %c0_368, %c0_369], %354 {strides = array<i32>} : memref<2x64x128xf32, #tpu.memory_space<vmem>>, vector<1x8x64xf32>,
    %c28_370 = arith.constant 28 : index
    %c0_371 = arith.constant 0 : index
    %355 = tpu.strided_load %arg10[%c28_370, %c0_371] {strides = array<i32: 2, 1>} : memref<96x64xf32, #tpu.memory_space<vmem>>, vector<8x64xf32>
    %c0_372 = arith.constant 0 : index
    %c8_373 = arith.constant 8 : index
    %c0_374 = arith.constant 0 : index
    %356 = vector.load %arg12[%c0_372, %c8_373, %c0_374] : memref<2x64x128xf32, #tpu.memory_space<vmem>>, vector<1x8x64xf32>
    %357 = vector.shape_cast %356 : vector<1x8x64xf32> to vector<8x64xf32>
    %358 = vector.shape_cast %355 : vector<8x64xf32> to vector<1x8x64xf32>
    tpu.vector_store %arg12[%c0_372, %c8_373, %c0_374], %358 {strides = array<i32>} : memref<2x64x128xf32, #tpu.memory_space<vmem>>, vector<1x8x64xf32>,
    %c52_375 = arith.constant 52 : index
    %c0_376 = arith.constant 0 : index
    %359 = tpu.strided_load %arg10[%c52_375, %c0_376] {strides = array<i32: 2, 1>} : memref<96x64xf32, #tpu.memory_space<vmem>>, vector<8x64xf32>
    %c0_377 = arith.constant 0 : index
    %c16_378 = arith.constant 16 : index
    %c0_379 = arith.constant 0 : index
    %360 = vector.load %arg12[%c0_377, %c16_378, %c0_379] : memref<2x64x128xf32, #tpu.memory_space<vmem>>, vector<1x8x64xf32>
    %361 = vector.shape_cast %360 : vector<1x8x64xf32> to vector<8x64xf32>
    %362 = vector.shape_cast %359 : vector<8x64xf32> to vector<1x8x64xf32>
    tpu.vector_store %arg12[%c0_377, %c16_378, %c0_379], %362 {strides = array<i32>} : memref<2x64x128xf32, #tpu.memory_space<vmem>>, vector<1x8x64xf32>,
    %c76_380 = arith.constant 76 : index
    %c0_381 = arith.constant 0 : index
    %363 = tpu.strided_load %arg10[%c76_380, %c0_381] {strides = array<i32: 2, 1>} : memref<96x64xf32, #tpu.memory_space<vmem>>, vector<8x64xf32>
    %c0_382 = arith.constant 0 : index
    %c24_383 = arith.constant 24 : index
    %c0_384 = arith.constant 0 : index
    %364 = vector.load %arg12[%c0_382, %c24_383, %c0_384] : memref<2x64x128xf32, #tpu.memory_space<vmem>>, vector<1x8x64xf32>
    %365 = vector.shape_cast %364 : vector<1x8x64xf32> to vector<8x64xf32>
    %366 = vector.shape_cast %363 : vector<8x64xf32> to vector<1x8x64xf32>
    tpu.vector_store %arg12[%c0_382, %c24_383, %c0_384], %366 {strides = array<i32>} : memref<2x64x128xf32, #tpu.memory_space<vmem>>, vector<1x8x64xf32>,
    %c0_385 = arith.constant 0 : index
    %c0_386 = arith.constant 0 : index
    %c0_387 = arith.constant 0 : index
    %367 = vector.load %arg12[%c0_385, %c0_386, %c0_387] : memref<2x64x128xf32, #tpu.memory_space<vmem>>, vector<1x32x64xf32>
    %368 = vector.shape_cast %367 : vector<1x32x64xf32> to vector<32x64xf32>
    %c4_388 = arith.constant 4 : index
    %c0_389 = arith.constant 0 : index
    %c0_390 = arith.constant 0 : index
    %369 = vector.load %arg3[%c4_388, %c0_389, %c0_390] : memref<10x64x128xf32, #tpu.memory_space<vmem>>, vector<1x64x128xf32>
    %370 = vector.shape_cast %369 : vector<1x64x128xf32> to vector<64x128xf32>
    %cst_391 = arith.constant dense<0.000000e+00> : vector<32x128xf32>
    %371 = tpu.matmul %368, %370, %cst_391 {dimension_numbers = #tpu.dot_dimension_numbers<[1], [0], [0], [1], [0, 0, 1, 1], [], []>} : vector<32x64xf32>, vector<64x128xf32>, vector<32x128xf32> -> vector<32x128xf32>
    %372 = arith.addf %328, %371 : vector<32x128xf32>
    %c5_392 = arith.constant 5 : index
    %c0_393 = arith.constant 0 : index
    %373 = tpu.strided_load %arg10[%c5_392, %c0_393] {strides = array<i32: 2, 1>} : memref<96x64xf32, #tpu.memory_space<vmem>>, vector<8x64xf32>
    %c1_394 = arith.constant 1 : index
    %c0_395 = arith.constant 0 : index
    %c0_396 = arith.constant 0 : index
    %374 = vector.load %arg12[%c1_394, %c0_395, %c0_396] : memref<2x64x128xf32, #tpu.memory_space<vmem>>, vector<1x8x64xf32>
    %375 = vector.shape_cast %374 : vector<1x8x64xf32> to vector<8x64xf32>
    %376 = vector.shape_cast %373 : vector<8x64xf32> to vector<1x8x64xf32>
    tpu.vector_store %arg12[%c1_394, %c0_395, %c0_396], %376 {strides = array<i32>} : memref<2x64x128xf32, #tpu.memory_space<vmem>>, vector<1x8x64xf32>,
    %c29 = arith.constant 29 : index
    %c0_397 = arith.constant 0 : index
    %377 = tpu.strided_load %arg10[%c29, %c0_397] {strides = array<i32: 2, 1>} : memref<96x64xf32, #tpu.memory_space<vmem>>, vector<8x64xf32>
    %c1_398 = arith.constant 1 : index
    %c8_399 = arith.constant 8 : index
    %c0_400 = arith.constant 0 : index
    %378 = vector.load %arg12[%c1_398, %c8_399, %c0_400] : memref<2x64x128xf32, #tpu.memory_space<vmem>>, vector<1x8x64xf32>
    %379 = vector.shape_cast %378 : vector<1x8x64xf32> to vector<8x64xf32>
    %380 = vector.shape_cast %377 : vector<8x64xf32> to vector<1x8x64xf32>
    tpu.vector_store %arg12[%c1_398, %c8_399, %c0_400], %380 {strides = array<i32>} : memref<2x64x128xf32, #tpu.memory_space<vmem>>, vector<1x8x64xf32>,
    %c53 = arith.constant 53 : index
    %c0_401 = arith.constant 0 : index
    %381 = tpu.strided_load %arg10[%c53, %c0_401] {strides = array<i32: 2, 1>} : memref<96x64xf32, #tpu.memory_space<vmem>>, vector<8x64xf32>
    %c1_402 = arith.constant 1 : index
    %c16_403 = arith.constant 16 : index
    %c0_404 = arith.constant 0 : index
    %382 = vector.load %arg12[%c1_402, %c16_403, %c0_404] : memref<2x64x128xf32, #tpu.memory_space<vmem>>, vector<1x8x64xf32>
    %383 = vector.shape_cast %382 : vector<1x8x64xf32> to vector<8x64xf32>
    %384 = vector.shape_cast %381 : vector<8x64xf32> to vector<1x8x64xf32>
    tpu.vector_store %arg12[%c1_402, %c16_403, %c0_404], %384 {strides = array<i32>} : memref<2x64x128xf32, #tpu.memory_space<vmem>>, vector<1x8x64xf32>,
    %c77 = arith.constant 77 : index
    %c0_405 = arith.constant 0 : index
    %385 = tpu.strided_load %arg10[%c77, %c0_405] {strides = array<i32: 2, 1>} : memref<96x64xf32, #tpu.memory_space<vmem>>, vector<8x64xf32>
    %c1_406 = arith.constant 1 : index
    %c24_407 = arith.constant 24 : index
    %c0_408 = arith.constant 0 : index
    %386 = vector.load %arg12[%c1_406, %c24_407, %c0_408] : memref<2x64x128xf32, #tpu.memory_space<vmem>>, vector<1x8x64xf32>
    %387 = vector.shape_cast %386 : vector<1x8x64xf32> to vector<8x64xf32>
    %388 = vector.shape_cast %385 : vector<8x64xf32> to vector<1x8x64xf32>
    tpu.vector_store %arg12[%c1_406, %c24_407, %c0_408], %388 {strides = array<i32>} : memref<2x64x128xf32, #tpu.memory_space<vmem>>, vector<1x8x64xf32>,
    %c1_409 = arith.constant 1 : index
    %c0_410 = arith.constant 0 : index
    %c0_411 = arith.constant 0 : index
    %389 = vector.load %arg12[%c1_409, %c0_410, %c0_411] : memref<2x64x128xf32, #tpu.memory_space<vmem>>, vector<1x32x64xf32>
    %390 = vector.shape_cast %389 : vector<1x32x64xf32> to vector<32x64xf32>
    %c5_412 = arith.constant 5 : index
    %c0_413 = arith.constant 0 : index
    %c0_414 = arith.constant 0 : index
    %391 = vector.load %arg3[%c5_412, %c0_413, %c0_414] : memref<10x64x128xf32, #tpu.memory_space<vmem>>, vector<1x64x128xf32>
    %392 = vector.shape_cast %391 : vector<1x64x128xf32> to vector<64x128xf32>
    %cst_415 = arith.constant dense<0.000000e+00> : vector<32x128xf32>
    %393 = tpu.matmul %390, %392, %cst_415 {dimension_numbers = #tpu.dot_dimension_numbers<[1], [0], [0], [1], [0, 0, 1, 1], [], []>} : vector<32x64xf32>, vector<64x128xf32>, vector<32x128xf32> -> vector<32x128xf32>
    %394 = arith.addf %350, %393 : vector<32x128xf32>
    %c6_416 = arith.constant 6 : index
    %c0_417 = arith.constant 0 : index
    %395 = tpu.strided_load %arg10[%c6_416, %c0_417] {strides = array<i32: 2, 1>} : memref<96x64xf32, #tpu.memory_space<vmem>>, vector<8x64xf32>
    %c0_418 = arith.constant 0 : index
    %c0_419 = arith.constant 0 : index
    %c0_420 = arith.constant 0 : index
    %396 = vector.load %arg12[%c0_418, %c0_419, %c0_420] : memref<2x64x128xf32, #tpu.memory_space<vmem>>, vector<1x8x64xf32>
    %397 = vector.shape_cast %396 : vector<1x8x64xf32> to vector<8x64xf32>
    %398 = vector.shape_cast %395 : vector<8x64xf32> to vector<1x8x64xf32>
    tpu.vector_store %arg12[%c0_418, %c0_419, %c0_420], %398 {strides = array<i32>} : memref<2x64x128xf32, #tpu.memory_space<vmem>>, vector<1x8x64xf32>,
    %c30 = arith.constant 30 : index
    %c0_421 = arith.constant 0 : index
    %399 = tpu.strided_load %arg10[%c30, %c0_421] {strides = array<i32: 2, 1>} : memref<96x64xf32, #tpu.memory_space<vmem>>, vector<8x64xf32>
    %c0_422 = arith.constant 0 : index
    %c8_423 = arith.constant 8 : index
    %c0_424 = arith.constant 0 : index
    %400 = vector.load %arg12[%c0_422, %c8_423, %c0_424] : memref<2x64x128xf32, #tpu.memory_space<vmem>>, vector<1x8x64xf32>
    %401 = vector.shape_cast %400 : vector<1x8x64xf32> to vector<8x64xf32>
    %402 = vector.shape_cast %399 : vector<8x64xf32> to vector<1x8x64xf32>
    tpu.vector_store %arg12[%c0_422, %c8_423, %c0_424], %402 {strides = array<i32>} : memref<2x64x128xf32, #tpu.memory_space<vmem>>, vector<1x8x64xf32>,
    %c54 = arith.constant 54 : index
    %c0_425 = arith.constant 0 : index
    %403 = tpu.strided_load %arg10[%c54, %c0_425] {strides = array<i32: 2, 1>} : memref<96x64xf32, #tpu.memory_space<vmem>>, vector<8x64xf32>
    %c0_426 = arith.constant 0 : index
    %c16_427 = arith.constant 16 : index
    %c0_428 = arith.constant 0 : index
    %404 = vector.load %arg12[%c0_426, %c16_427, %c0_428] : memref<2x64x128xf32, #tpu.memory_space<vmem>>, vector<1x8x64xf32>
    %405 = vector.shape_cast %404 : vector<1x8x64xf32> to vector<8x64xf32>
    %406 = vector.shape_cast %403 : vector<8x64xf32> to vector<1x8x64xf32>
    tpu.vector_store %arg12[%c0_426, %c16_427, %c0_428], %406 {strides = array<i32>} : memref<2x64x128xf32, #tpu.memory_space<vmem>>, vector<1x8x64xf32>,
    %c78 = arith.constant 78 : index
    %c0_429 = arith.constant 0 : index
    %407 = tpu.strided_load %arg10[%c78, %c0_429] {strides = array<i32: 2, 1>} : memref<96x64xf32, #tpu.memory_space<vmem>>, vector<8x64xf32>
    %c0_430 = arith.constant 0 : index
    %c24_431 = arith.constant 24 : index
    %c0_432 = arith.constant 0 : index
    %408 = vector.load %arg12[%c0_430, %c24_431, %c0_432] : memref<2x64x128xf32, #tpu.memory_space<vmem>>, vector<1x8x64xf32>
    %409 = vector.shape_cast %408 : vector<1x8x64xf32> to vector<8x64xf32>
    %410 = vector.shape_cast %407 : vector<8x64xf32> to vector<1x8x64xf32>
    tpu.vector_store %arg12[%c0_430, %c24_431, %c0_432], %410 {strides = array<i32>} : memref<2x64x128xf32, #tpu.memory_space<vmem>>, vector<1x8x64xf32>,
    %c0_433 = arith.constant 0 : index
    %c0_434 = arith.constant 0 : index
    %c0_435 = arith.constant 0 : index
    %411 = vector.load %arg12[%c0_433, %c0_434, %c0_435] : memref<2x64x128xf32, #tpu.memory_space<vmem>>, vector<1x32x64xf32>
    %412 = vector.shape_cast %411 : vector<1x32x64xf32> to vector<32x64xf32>
    %c6_436 = arith.constant 6 : index
    %c0_437 = arith.constant 0 : index
    %c0_438 = arith.constant 0 : index
    %413 = vector.load %arg3[%c6_436, %c0_437, %c0_438] : memref<10x64x128xf32, #tpu.memory_space<vmem>>, vector<1x64x128xf32>
    %414 = vector.shape_cast %413 : vector<1x64x128xf32> to vector<64x128xf32>
    %cst_439 = arith.constant dense<0.000000e+00> : vector<32x128xf32>
    %415 = tpu.matmul %412, %414, %cst_439 {dimension_numbers = #tpu.dot_dimension_numbers<[1], [0], [0], [1], [0, 0, 1, 1], [], []>} : vector<32x64xf32>, vector<64x128xf32>, vector<32x128xf32> -> vector<32x128xf32>
    %416 = arith.addf %372, %415 : vector<32x128xf32>
    %c7_440 = arith.constant 7 : index
    %c0_441 = arith.constant 0 : index
    %417 = tpu.strided_load %arg10[%c7_440, %c0_441] {strides = array<i32: 2, 1>} : memref<96x64xf32, #tpu.memory_space<vmem>>, vector<8x64xf32>
    %c1_442 = arith.constant 1 : index
    %c0_443 = arith.constant 0 : index
    %c0_444 = arith.constant 0 : index
    %418 = vector.load %arg12[%c1_442, %c0_443, %c0_444] : memref<2x64x128xf32, #tpu.memory_space<vmem>>, vector<1x8x64xf32>
    %419 = vector.shape_cast %418 : vector<1x8x64xf32> to vector<8x64xf32>
    %420 = vector.shape_cast %417 : vector<8x64xf32> to vector<1x8x64xf32>
    tpu.vector_store %arg12[%c1_442, %c0_443, %c0_444], %420 {strides = array<i32>} : memref<2x64x128xf32, #tpu.memory_space<vmem>>, vector<1x8x64xf32>,
    %c31 = arith.constant 31 : index
    %c0_445 = arith.constant 0 : index
    %421 = tpu.strided_load %arg10[%c31, %c0_445] {strides = array<i32: 2, 1>} : memref<96x64xf32, #tpu.memory_space<vmem>>, vector<8x64xf32>
    %c1_446 = arith.constant 1 : index
    %c8_447 = arith.constant 8 : index
    %c0_448 = arith.constant 0 : index
    %422 = vector.load %arg12[%c1_446, %c8_447, %c0_448] : memref<2x64x128xf32, #tpu.memory_space<vmem>>, vector<1x8x64xf32>
    %423 = vector.shape_cast %422 : vector<1x8x64xf32> to vector<8x64xf32>
    %424 = vector.shape_cast %421 : vector<8x64xf32> to vector<1x8x64xf32>
    tpu.vector_store %arg12[%c1_446, %c8_447, %c0_448], %424 {strides = array<i32>} : memref<2x64x128xf32, #tpu.memory_space<vmem>>, vector<1x8x64xf32>,
    %c55 = arith.constant 55 : index
    %c0_449 = arith.constant 0 : index
    %425 = tpu.strided_load %arg10[%c55, %c0_449] {strides = array<i32: 2, 1>} : memref<96x64xf32, #tpu.memory_space<vmem>>, vector<8x64xf32>
    %c1_450 = arith.constant 1 : index
    %c16_451 = arith.constant 16 : index
    %c0_452 = arith.constant 0 : index
    %426 = vector.load %arg12[%c1_450, %c16_451, %c0_452] : memref<2x64x128xf32, #tpu.memory_space<vmem>>, vector<1x8x64xf32>
    %427 = vector.shape_cast %426 : vector<1x8x64xf32> to vector<8x64xf32>
    %428 = vector.shape_cast %425 : vector<8x64xf32> to vector<1x8x64xf32>
    tpu.vector_store %arg12[%c1_450, %c16_451, %c0_452], %428 {strides = array<i32>} : memref<2x64x128xf32, #tpu.memory_space<vmem>>, vector<1x8x64xf32>,
    %c79 = arith.constant 79 : index
    %c0_453 = arith.constant 0 : index
    %429 = tpu.strided_load %arg10[%c79, %c0_453] {strides = array<i32: 2, 1>} : memref<96x64xf32, #tpu.memory_space<vmem>>, vector<8x64xf32>
    %c1_454 = arith.constant 1 : index
    %c24_455 = arith.constant 24 : index
    %c0_456 = arith.constant 0 : index
    %430 = vector.load %arg12[%c1_454, %c24_455, %c0_456] : memref<2x64x128xf32, #tpu.memory_space<vmem>>, vector<1x8x64xf32>
    %431 = vector.shape_cast %430 : vector<1x8x64xf32> to vector<8x64xf32>
    %432 = vector.shape_cast %429 : vector<8x64xf32> to vector<1x8x64xf32>
    tpu.vector_store %arg12[%c1_454, %c24_455, %c0_456], %432 {strides = array<i32>} : memref<2x64x128xf32, #tpu.memory_space<vmem>>, vector<1x8x64xf32>,
    %c1_457 = arith.constant 1 : index
    %c0_458 = arith.constant 0 : index
    %c0_459 = arith.constant 0 : index
    %433 = vector.load %arg12[%c1_457, %c0_458, %c0_459] : memref<2x64x128xf32, #tpu.memory_space<vmem>>, vector<1x32x64xf32>
    %434 = vector.shape_cast %433 : vector<1x32x64xf32> to vector<32x64xf32>
    %c7_460 = arith.constant 7 : index
    %c0_461 = arith.constant 0 : index
    %c0_462 = arith.constant 0 : index
    %435 = vector.load %arg3[%c7_460, %c0_461, %c0_462] : memref<10x64x128xf32, #tpu.memory_space<vmem>>, vector<1x64x128xf32>
    %436 = vector.shape_cast %435 : vector<1x64x128xf32> to vector<64x128xf32>
    %cst_463 = arith.constant dense<0.000000e+00> : vector<32x128xf32>
    %437 = tpu.matmul %434, %436, %cst_463 {dimension_numbers = #tpu.dot_dimension_numbers<[1], [0], [0], [1], [0, 0, 1, 1], [], []>} : vector<32x64xf32>, vector<64x128xf32>, vector<32x128xf32> -> vector<32x128xf32>
    %438 = arith.addf %394, %437 : vector<32x128xf32>
    %c8_464 = arith.constant 8 : index
    %c0_465 = arith.constant 0 : index
    %439 = tpu.strided_load %arg10[%c8_464, %c0_465] {strides = array<i32: 2, 1>} : memref<96x64xf32, #tpu.memory_space<vmem>>, vector<8x64xf32>
    %c0_466 = arith.constant 0 : index
    %c0_467 = arith.constant 0 : index
    %c0_468 = arith.constant 0 : index
    %440 = vector.load %arg12[%c0_466, %c0_467, %c0_468] : memref<2x64x128xf32, #tpu.memory_space<vmem>>, vector<1x8x64xf32>
    %441 = vector.shape_cast %440 : vector<1x8x64xf32> to vector<8x64xf32>
    %442 = vector.shape_cast %439 : vector<8x64xf32> to vector<1x8x64xf32>
    tpu.vector_store %arg12[%c0_466, %c0_467, %c0_468], %442 {strides = array<i32>} : memref<2x64x128xf32, #tpu.memory_space<vmem>>, vector<1x8x64xf32>,
    %c32_469 = arith.constant 32 : index
    %c0_470 = arith.constant 0 : index
    %443 = tpu.strided_load %arg10[%c32_469, %c0_470] {strides = array<i32: 2, 1>} : memref<96x64xf32, #tpu.memory_space<vmem>>, vector<8x64xf32>
    %c0_471 = arith.constant 0 : index
    %c8_472 = arith.constant 8 : index
    %c0_473 = arith.constant 0 : index
    %444 = vector.load %arg12[%c0_471, %c8_472, %c0_473] : memref<2x64x128xf32, #tpu.memory_space<vmem>>, vector<1x8x64xf32>
    %445 = vector.shape_cast %444 : vector<1x8x64xf32> to vector<8x64xf32>
    %446 = vector.shape_cast %443 : vector<8x64xf32> to vector<1x8x64xf32>
    tpu.vector_store %arg12[%c0_471, %c8_472, %c0_473], %446 {strides = array<i32>} : memref<2x64x128xf32, #tpu.memory_space<vmem>>, vector<1x8x64xf32>,
    %c56 = arith.constant 56 : index
    %c0_474 = arith.constant 0 : index
    %447 = tpu.strided_load %arg10[%c56, %c0_474] {strides = array<i32: 2, 1>} : memref<96x64xf32, #tpu.memory_space<vmem>>, vector<8x64xf32>
    %c0_475 = arith.constant 0 : index
    %c16_476 = arith.constant 16 : index
    %c0_477 = arith.constant 0 : index
    %448 = vector.load %arg12[%c0_475, %c16_476, %c0_477] : memref<2x64x128xf32, #tpu.memory_space<vmem>>, vector<1x8x64xf32>
    %449 = vector.shape_cast %448 : vector<1x8x64xf32> to vector<8x64xf32>
    %450 = vector.shape_cast %447 : vector<8x64xf32> to vector<1x8x64xf32>
    tpu.vector_store %arg12[%c0_475, %c16_476, %c0_477], %450 {strides = array<i32>} : memref<2x64x128xf32, #tpu.memory_space<vmem>>, vector<1x8x64xf32>,
    %c80_478 = arith.constant 80 : index
    %c0_479 = arith.constant 0 : index
    %451 = tpu.strided_load %arg10[%c80_478, %c0_479] {strides = array<i32: 2, 1>} : memref<96x64xf32, #tpu.memory_space<vmem>>, vector<8x64xf32>
    %c0_480 = arith.constant 0 : index
    %c24_481 = arith.constant 24 : index
    %c0_482 = arith.constant 0 : index
    %452 = vector.load %arg12[%c0_480, %c24_481, %c0_482] : memref<2x64x128xf32, #tpu.memory_space<vmem>>, vector<1x8x64xf32>
    %453 = vector.shape_cast %452 : vector<1x8x64xf32> to vector<8x64xf32>
    %454 = vector.shape_cast %451 : vector<8x64xf32> to vector<1x8x64xf32>
    tpu.vector_store %arg12[%c0_480, %c24_481, %c0_482], %454 {strides = array<i32>} : memref<2x64x128xf32, #tpu.memory_space<vmem>>, vector<1x8x64xf32>,
    %c0_483 = arith.constant 0 : index
    %c0_484 = arith.constant 0 : index
    %c0_485 = arith.constant 0 : index
    %455 = vector.load %arg12[%c0_483, %c0_484, %c0_485] : memref<2x64x128xf32, #tpu.memory_space<vmem>>, vector<1x32x64xf32>
    %456 = vector.shape_cast %455 : vector<1x32x64xf32> to vector<32x64xf32>
    %c8_486 = arith.constant 8 : index
    %c0_487 = arith.constant 0 : index
    %c0_488 = arith.constant 0 : index
    %457 = vector.load %arg3[%c8_486, %c0_487, %c0_488] : memref<10x64x128xf32, #tpu.memory_space<vmem>>, vector<1x64x128xf32>
    %458 = vector.shape_cast %457 : vector<1x64x128xf32> to vector<64x128xf32>
    %cst_489 = arith.constant dense<0.000000e+00> : vector<32x128xf32>
    %459 = tpu.matmul %456, %458, %cst_489 {dimension_numbers = #tpu.dot_dimension_numbers<[1], [0], [0], [1], [0, 0, 1, 1], [], []>} : vector<32x64xf32>, vector<64x128xf32>, vector<32x128xf32> -> vector<32x128xf32>
    %460 = arith.addf %416, %459 : vector<32x128xf32>
    %c9_490 = arith.constant 9 : index
    %c0_491 = arith.constant 0 : index
    %461 = tpu.strided_load %arg10[%c9_490, %c0_491] {strides = array<i32: 2, 1>} : memref<96x64xf32, #tpu.memory_space<vmem>>, vector<8x64xf32>
    %c1_492 = arith.constant 1 : index
    %c0_493 = arith.constant 0 : index
    %c0_494 = arith.constant 0 : index
    %462 = vector.load %arg12[%c1_492, %c0_493, %c0_494] : memref<2x64x128xf32, #tpu.memory_space<vmem>>, vector<1x8x64xf32>
    %463 = vector.shape_cast %462 : vector<1x8x64xf32> to vector<8x64xf32>
    %464 = vector.shape_cast %461 : vector<8x64xf32> to vector<1x8x64xf32>
    tpu.vector_store %arg12[%c1_492, %c0_493, %c0_494], %464 {strides = array<i32>} : memref<2x64x128xf32, #tpu.memory_space<vmem>>, vector<1x8x64xf32>,
    %c33 = arith.constant 33 : index
    %c0_495 = arith.constant 0 : index
    %465 = tpu.strided_load %arg10[%c33, %c0_495] {strides = array<i32: 2, 1>} : memref<96x64xf32, #tpu.memory_space<vmem>>, vector<8x64xf32>
    %c1_496 = arith.constant 1 : index
    %c8_497 = arith.constant 8 : index
    %c0_498 = arith.constant 0 : index
    %466 = vector.load %arg12[%c1_496, %c8_497, %c0_498] : memref<2x64x128xf32, #tpu.memory_space<vmem>>, vector<1x8x64xf32>
    %467 = vector.shape_cast %466 : vector<1x8x64xf32> to vector<8x64xf32>
    %468 = vector.shape_cast %465 : vector<8x64xf32> to vector<1x8x64xf32>
    tpu.vector_store %arg12[%c1_496, %c8_497, %c0_498], %468 {strides = array<i32>} : memref<2x64x128xf32, #tpu.memory_space<vmem>>, vector<1x8x64xf32>,
    %c57 = arith.constant 57 : index
    %c0_499 = arith.constant 0 : index
    %469 = tpu.strided_load %arg10[%c57, %c0_499] {strides = array<i32: 2, 1>} : memref<96x64xf32, #tpu.memory_space<vmem>>, vector<8x64xf32>
    %c1_500 = arith.constant 1 : index
    %c16_501 = arith.constant 16 : index
    %c0_502 = arith.constant 0 : index
    %470 = vector.load %arg12[%c1_500, %c16_501, %c0_502] : memref<2x64x128xf32, #tpu.memory_space<vmem>>, vector<1x8x64xf32>
    %471 = vector.shape_cast %470 : vector<1x8x64xf32> to vector<8x64xf32>
    %472 = vector.shape_cast %469 : vector<8x64xf32> to vector<1x8x64xf32>
    tpu.vector_store %arg12[%c1_500, %c16_501, %c0_502], %472 {strides = array<i32>} : memref<2x64x128xf32, #tpu.memory_space<vmem>>, vector<1x8x64xf32>,
    %c81_503 = arith.constant 81 : index
    %c0_504 = arith.constant 0 : index
    %473 = tpu.strided_load %arg10[%c81_503, %c0_504] {strides = array<i32: 2, 1>} : memref<96x64xf32, #tpu.memory_space<vmem>>, vector<8x64xf32>
    %c1_505 = arith.constant 1 : index
    %c24_506 = arith.constant 24 : index
    %c0_507 = arith.constant 0 : index
    %474 = vector.load %arg12[%c1_505, %c24_506, %c0_507] : memref<2x64x128xf32, #tpu.memory_space<vmem>>, vector<1x8x64xf32>
    %475 = vector.shape_cast %474 : vector<1x8x64xf32> to vector<8x64xf32>
    %476 = vector.shape_cast %473 : vector<8x64xf32> to vector<1x8x64xf32>
    tpu.vector_store %arg12[%c1_505, %c24_506, %c0_507], %476 {strides = array<i32>} : memref<2x64x128xf32, #tpu.memory_space<vmem>>, vector<1x8x64xf32>,
    %c1_508 = arith.constant 1 : index
    %c0_509 = arith.constant 0 : index
    %c0_510 = arith.constant 0 : index
    %477 = vector.load %arg12[%c1_508, %c0_509, %c0_510] : memref<2x64x128xf32, #tpu.memory_space<vmem>>, vector<1x32x64xf32>
    %478 = vector.shape_cast %477 : vector<1x32x64xf32> to vector<32x64xf32>
    %c9_511 = arith.constant 9 : index
    %c0_512 = arith.constant 0 : index
    %c0_513 = arith.constant 0 : index
    %479 = vector.load %arg3[%c9_511, %c0_512, %c0_513] : memref<10x64x128xf32, #tpu.memory_space<vmem>>, vector<1x64x128xf32>
    %480 = vector.shape_cast %479 : vector<1x64x128xf32> to vector<64x128xf32>
    %cst_514 = arith.constant dense<0.000000e+00> : vector<32x128xf32>
    %481 = tpu.matmul %478, %480, %cst_514 {dimension_numbers = #tpu.dot_dimension_numbers<[1], [0], [0], [1], [0, 0, 1, 1], [], []>} : vector<32x64xf32>, vector<64x128xf32>, vector<32x128xf32> -> vector<32x128xf32>
    %482 = arith.addf %438, %481 : vector<32x128xf32>
    %483 = arith.addf %460, %482 : vector<32x128xf32>
    %484 = vector.broadcast %258 : vector<1x128xf32> to vector<32x128xf32>
    %485 = arith.addf %483, %484 : vector<32x128xf32>
    %cst_515 = arith.constant dense<0.000000e+00> : vector<128xf32>
    %486 = vector.multi_reduction <add>, %485, %cst_515 [0] : vector<32x128xf32> to vector<128xf32>
    %487 = vector.shape_cast %486 : vector<128xf32> to vector<1x128xf32>
    %cst_516 = arith.constant 3.200000e+01 : f32
    %488 = vector.broadcast %cst_516 : f32 to vector<1x128xf32>
    %489 = arith.divf %487, %488 : vector<1x128xf32>
    %490 = vector.broadcast %489 : vector<1x128xf32> to vector<32x128xf32>
    %491 = arith.subf %485, %490 : vector<32x128xf32>
    %492 = arith.mulf %491, %491 : vector<32x128xf32>
    %cst_517 = arith.constant dense<0.000000e+00> : vector<128xf32>
    %493 = vector.multi_reduction <add>, %492, %cst_517 [0] : vector<32x128xf32> to vector<128xf32>
    %494 = vector.shape_cast %493 : vector<128xf32> to vector<1x128xf32>
    %cst_518 = arith.constant 3.200000e+01 : f32
    %495 = vector.broadcast %cst_518 : f32 to vector<1x128xf32>
    %496 = arith.divf %494, %495 : vector<1x128xf32>
    %cst_519 = arith.constant 9.99999974E-6 : f32
    %497 = vector.broadcast %cst_519 : f32 to vector<1x128xf32>
    %498 = arith.addf %496, %497 : vector<1x128xf32>
    %499 = math.rsqrt %498 : vector<1x128xf32>
    %500 = arith.mulf %259, %499 : vector<1x128xf32>
    %501 = vector.broadcast %500 : vector<1x128xf32> to vector<32x128xf32>
    %502 = arith.mulf %485, %501 : vector<32x128xf32>
    %503 = arith.mulf %489, %500 : vector<1x128xf32>
    %504 = arith.subf %260, %503 : vector<1x128xf32>
    %505 = vector.broadcast %504 : vector<1x128xf32> to vector<32x128xf32>
    %506 = arith.addf %502, %505 : vector<32x128xf32>
    %cst_520 = arith.constant 2.000000e-01 : f32
    %507 = vector.broadcast %cst_520 : f32 to vector<32x128xf32>
    %508 = arith.mulf %507, %506 : vector<32x128xf32>
    %509 = arith.maximumf %506, %508 : vector<32x128xf32>
    %cst_521 = arith.constant 0.000000e+00 : f32
    %510 = vector.broadcast %cst_521 : f32 to vector<64x128xf32>
    %c0_522 = arith.constant 0 : index
    %c0_523 = arith.constant 0 : index
    %511 = vector.load %arg11[%c0_522, %c0_523] : memref<64x128xf32, #tpu.memory_space<vmem>>, vector<64x128xf32>
    tpu.vector_store %arg11[%c0_522, %c0_523], %510 {strides = array<i32>} : memref<64x128xf32, #tpu.memory_space<vmem>>, vector<64x128xf32>,
    %512 = vector.extract_strided_slice %509 {offsets = [0, 0], sizes = [8, 128], strides = [1, 1]} : vector<32x128xf32> to vector<8x128xf32>
    %c4_524 = arith.constant 4 : index
    %c0_525 = arith.constant 0 : index
    %513 = vector.load %arg11[%c4_524, %c0_525] : memref<64x128xf32, #tpu.memory_space<vmem>>, vector<8x128xf32>
    tpu.vector_store %arg11[%c4_524, %c0_525], %512 {strides = array<i32>} : memref<64x128xf32, #tpu.memory_space<vmem>>, vector<8x128xf32>,
    %514 = vector.extract_strided_slice %509 {offsets = [8, 0], sizes = [8, 128], strides = [1, 1]} : vector<32x128xf32> to vector<8x128xf32>
    %c20 = arith.constant 20 : index
    %c0_526 = arith.constant 0 : index
    %515 = vector.load %arg11[%c20, %c0_526] : memref<64x128xf32, #tpu.memory_space<vmem>>, vector<8x128xf32>
    tpu.vector_store %arg11[%c20, %c0_526], %514 {strides = array<i32>} : memref<64x128xf32, #tpu.memory_space<vmem>>, vector<8x128xf32>,
    %516 = vector.extract_strided_slice %509 {offsets = [16, 0], sizes = [8, 128], strides = [1, 1]} : vector<32x128xf32> to vector<8x128xf32>
    %c36 = arith.constant 36 : index
    %c0_527 = arith.constant 0 : index
    %517 = vector.load %arg11[%c36, %c0_527] : memref<64x128xf32, #tpu.memory_space<vmem>>, vector<8x128xf32>
    tpu.vector_store %arg11[%c36, %c0_527], %516 {strides = array<i32>} : memref<64x128xf32, #tpu.memory_space<vmem>>, vector<8x128xf32>,
    %518 = vector.extract_strided_slice %509 {offsets = [24, 0], sizes = [8, 128], strides = [1, 1]} : vector<32x128xf32> to vector<8x128xf32>
    %c52_528 = arith.constant 52 : index
    %c0_529 = arith.constant 0 : index
    %519 = vector.load %arg11[%c52_528, %c0_529] : memref<64x128xf32, #tpu.memory_space<vmem>>, vector<8x128xf32>
    tpu.vector_store %arg11[%c52_528, %c0_529], %518 {strides = array<i32>} : memref<64x128xf32, #tpu.memory_space<vmem>>, vector<8x128xf32>,
    tpu.wait_dma2 semaphore(%arg8 : memref<!tpu.dma_semaphore, #tpu.memory_space<semaphore_mem>>) src(%arg5 : memref<10x128x256xf32, #tpu.memory_space<any>>) dst(%arg7 : memref<10x128x256xf32, #tpu.memory_space<vmem>>)
    %c5_530 = arith.constant 5 : index
    %c0_531 = arith.constant 0 : index
    %520 = vector.load %arg4[%c5_530, %c0_531] : memref<16x256xf32, #tpu.memory_space<vmem>>, vector<1x256xf32>
    %c6_532 = arith.constant 6 : index
    %c0_533 = arith.constant 0 : index
    %521 = vector.load %arg4[%c6_532, %c0_533] : memref<16x256xf32, #tpu.memory_space<vmem>>, vector<1x256xf32>
    %c7_534 = arith.constant 7 : index
    %c0_535 = arith.constant 0 : index
    %522 = vector.load %arg4[%c7_534, %c0_535] : memref<16x256xf32, #tpu.memory_space<vmem>>, vector<1x256xf32>
    %cst_536 = arith.constant 0.000000e+00 : f32
    %523 = vector.broadcast %cst_536 : f32 to vector<16x256xf32>
    %cst_537 = arith.constant 0.000000e+00 : f32
    %524 = vector.broadcast %cst_537 : f32 to vector<16x256xf32>
    %c0_538 = arith.constant 0 : index
    %c0_539 = arith.constant 0 : index
    %525 = tpu.strided_load %arg11[%c0_538, %c0_539] {strides = array<i32: 2, 1>} : memref<64x128xf32, #tpu.memory_space<vmem>>, vector<4x128xf32>
    %c0_540 = arith.constant 0 : index
    %c0_541 = arith.constant 0 : index
    %c0_542 = arith.constant 0 : index
    %526 = vector.load %arg12[%c0_540, %c0_541, %c0_542] : memref<2x64x128xf32, #tpu.memory_space<vmem>>, vector<1x4x128xf32>
    %527 = vector.shape_cast %526 : vector<1x4x128xf32> to vector<4x128xf32>
    %528 = vector.shape_cast %525 : vector<4x128xf32> to vector<1x4x128xf32>
    tpu.vector_store %arg12[%c0_540, %c0_541, %c0_542], %528 {strides = array<i32>} : memref<2x64x128xf32, #tpu.memory_space<vmem>>, vector<1x4x128xf32>,
    %c16_543 = arith.constant 16 : index
    %c0_544 = arith.constant 0 : index
    %529 = tpu.strided_load %arg11[%c16_543, %c0_544] {strides = array<i32: 2, 1>} : memref<64x128xf32, #tpu.memory_space<vmem>>, vector<4x128xf32>
    %c0_545 = arith.constant 0 : index
    %c4_546 = arith.constant 4 : index
    %c0_547 = arith.constant 0 : index
    %530 = vector.load %arg12[%c0_545, %c4_546, %c0_547] : memref<2x64x128xf32, #tpu.memory_space<vmem>>, vector<1x4x128xf32>
    %531 = vector.shape_cast %530 : vector<1x4x128xf32> to vector<4x128xf32>
    %532 = vector.shape_cast %529 : vector<4x128xf32> to vector<1x4x128xf32>
    tpu.vector_store %arg12[%c0_545, %c4_546, %c0_547], %532 {strides = array<i32>} : memref<2x64x128xf32, #tpu.memory_space<vmem>>, vector<1x4x128xf32>,
    %c32_548 = arith.constant 32 : index
    %c0_549 = arith.constant 0 : index
    %533 = tpu.strided_load %arg11[%c32_548, %c0_549] {strides = array<i32: 2, 1>} : memref<64x128xf32, #tpu.memory_space<vmem>>, vector<4x128xf32>
    %c0_550 = arith.constant 0 : index
    %c8_551 = arith.constant 8 : index
    %c0_552 = arith.constant 0 : index
    %534 = vector.load %arg12[%c0_550, %c8_551, %c0_552] : memref<2x64x128xf32, #tpu.memory_space<vmem>>, vector<1x4x128xf32>
    %535 = vector.shape_cast %534 : vector<1x4x128xf32> to vector<4x128xf32>
    %536 = vector.shape_cast %533 : vector<4x128xf32> to vector<1x4x128xf32>
    tpu.vector_store %arg12[%c0_550, %c8_551, %c0_552], %536 {strides = array<i32>} : memref<2x64x128xf32, #tpu.memory_space<vmem>>, vector<1x4x128xf32>,
    %c48_553 = arith.constant 48 : index
    %c0_554 = arith.constant 0 : index
    %537 = tpu.strided_load %arg11[%c48_553, %c0_554] {strides = array<i32: 2, 1>} : memref<64x128xf32, #tpu.memory_space<vmem>>, vector<4x128xf32>
    %c0_555 = arith.constant 0 : index
    %c12 = arith.constant 12 : index
    %c0_556 = arith.constant 0 : index
    %538 = vector.load %arg12[%c0_555, %c12, %c0_556] : memref<2x64x128xf32, #tpu.memory_space<vmem>>, vector<1x4x128xf32>
    %539 = vector.shape_cast %538 : vector<1x4x128xf32> to vector<4x128xf32>
    %540 = vector.shape_cast %537 : vector<4x128xf32> to vector<1x4x128xf32>
    tpu.vector_store %arg12[%c0_555, %c12, %c0_556], %540 {strides = array<i32>} : memref<2x64x128xf32, #tpu.memory_space<vmem>>, vector<1x4x128xf32>,
    %c0_557 = arith.constant 0 : index
    %c0_558 = arith.constant 0 : index
    %c0_559 = arith.constant 0 : index
    %541 = vector.load %arg12[%c0_557, %c0_558, %c0_559] : memref<2x64x128xf32, #tpu.memory_space<vmem>>, vector<1x16x128xf32>
    %542 = vector.shape_cast %541 : vector<1x16x128xf32> to vector<16x128xf32>
    %c0_560 = arith.constant 0 : index
    %c0_561 = arith.constant 0 : index
    %c0_562 = arith.constant 0 : index
    %543 = vector.load %arg7[%c0_560, %c0_561, %c0_562] : memref<10x128x256xf32, #tpu.memory_space<vmem>>, vector<1x128x256xf32>
    %544 = vector.shape_cast %543 : vector<1x128x256xf32> to vector<128x256xf32>
    %cst_563 = arith.constant dense<0.000000e+00> : vector<16x256xf32>
    %545 = tpu.matmul %542, %544, %cst_563 {dimension_numbers = #tpu.dot_dimension_numbers<[1], [0], [0], [1], [0, 0, 1, 1], [], []>} : vector<16x128xf32>, vector<128x256xf32>, vector<16x256xf32> -> vector<16x256xf32>
    %546 = arith.addf %523, %545 : vector<16x256xf32>
    %c1_564 = arith.constant 1 : index
    %c0_565 = arith.constant 0 : index
    %547 = tpu.strided_load %arg11[%c1_564, %c0_565] {strides = array<i32: 2, 1>} : memref<64x128xf32, #tpu.memory_space<vmem>>, vector<4x128xf32>
    %c1_566 = arith.constant 1 : index
    %c0_567 = arith.constant 0 : index
    %c0_568 = arith.constant 0 : index
    %548 = vector.load %arg12[%c1_566, %c0_567, %c0_568] : memref<2x64x128xf32, #tpu.memory_space<vmem>>, vector<1x4x128xf32>
    %549 = vector.shape_cast %548 : vector<1x4x128xf32> to vector<4x128xf32>
    %550 = vector.shape_cast %547 : vector<4x128xf32> to vector<1x4x128xf32>
    tpu.vector_store %arg12[%c1_566, %c0_567, %c0_568], %550 {strides = array<i32>} : memref<2x64x128xf32, #tpu.memory_space<vmem>>, vector<1x4x128xf32>,
    %c17 = arith.constant 17 : index
    %c0_569 = arith.constant 0 : index
    %551 = tpu.strided_load %arg11[%c17, %c0_569] {strides = array<i32: 2, 1>} : memref<64x128xf32, #tpu.memory_space<vmem>>, vector<4x128xf32>
    %c1_570 = arith.constant 1 : index
    %c4_571 = arith.constant 4 : index
    %c0_572 = arith.constant 0 : index
    %552 = vector.load %arg12[%c1_570, %c4_571, %c0_572] : memref<2x64x128xf32, #tpu.memory_space<vmem>>, vector<1x4x128xf32>
    %553 = vector.shape_cast %552 : vector<1x4x128xf32> to vector<4x128xf32>
    %554 = vector.shape_cast %551 : vector<4x128xf32> to vector<1x4x128xf32>
    tpu.vector_store %arg12[%c1_570, %c4_571, %c0_572], %554 {strides = array<i32>} : memref<2x64x128xf32, #tpu.memory_space<vmem>>, vector<1x4x128xf32>,
    %c33_573 = arith.constant 33 : index
    %c0_574 = arith.constant 0 : index
    %555 = tpu.strided_load %arg11[%c33_573, %c0_574] {strides = array<i32: 2, 1>} : memref<64x128xf32, #tpu.memory_space<vmem>>, vector<4x128xf32>
    %c1_575 = arith.constant 1 : index
    %c8_576 = arith.constant 8 : index
    %c0_577 = arith.constant 0 : index
    %556 = vector.load %arg12[%c1_575, %c8_576, %c0_577] : memref<2x64x128xf32, #tpu.memory_space<vmem>>, vector<1x4x128xf32>
    %557 = vector.shape_cast %556 : vector<1x4x128xf32> to vector<4x128xf32>
    %558 = vector.shape_cast %555 : vector<4x128xf32> to vector<1x4x128xf32>
    tpu.vector_store %arg12[%c1_575, %c8_576, %c0_577], %558 {strides = array<i32>} : memref<2x64x128xf32, #tpu.memory_space<vmem>>, vector<1x4x128xf32>,
    %c49_578 = arith.constant 49 : index
    %c0_579 = arith.constant 0 : index
    %559 = tpu.strided_load %arg11[%c49_578, %c0_579] {strides = array<i32: 2, 1>} : memref<64x128xf32, #tpu.memory_space<vmem>>, vector<4x128xf32>
    %c1_580 = arith.constant 1 : index
    %c12_581 = arith.constant 12 : index
    %c0_582 = arith.constant 0 : index
    %560 = vector.load %arg12[%c1_580, %c12_581, %c0_582] : memref<2x64x128xf32, #tpu.memory_space<vmem>>, vector<1x4x128xf32>
    %561 = vector.shape_cast %560 : vector<1x4x128xf32> to vector<4x128xf32>
    %562 = vector.shape_cast %559 : vector<4x128xf32> to vector<1x4x128xf32>
    tpu.vector_store %arg12[%c1_580, %c12_581, %c0_582], %562 {strides = array<i32>} : memref<2x64x128xf32, #tpu.memory_space<vmem>>, vector<1x4x128xf32>,
    %c1_583 = arith.constant 1 : index
    %c0_584 = arith.constant 0 : index
    %c0_585 = arith.constant 0 : index
    %563 = vector.load %arg12[%c1_583, %c0_584, %c0_585] : memref<2x64x128xf32, #tpu.memory_space<vmem>>, vector<1x16x128xf32>
    %564 = vector.shape_cast %563 : vector<1x16x128xf32> to vector<16x128xf32>
    %c1_586 = arith.constant 1 : index
    %c0_587 = arith.constant 0 : index
    %c0_588 = arith.constant 0 : index
    %565 = vector.load %arg7[%c1_586, %c0_587, %c0_588] : memref<10x128x256xf32, #tpu.memory_space<vmem>>, vector<1x128x256xf32>
    %566 = vector.shape_cast %565 : vector<1x128x256xf32> to vector<128x256xf32>
    %cst_589 = arith.constant dense<0.000000e+00> : vector<16x256xf32>
    %567 = tpu.matmul %564, %566, %cst_589 {dimension_numbers = #tpu.dot_dimension_numbers<[1], [0], [0], [1], [0, 0, 1, 1], [], []>} : vector<16x128xf32>, vector<128x256xf32>, vector<16x256xf32> -> vector<16x256xf32>
    %568 = arith.addf %524, %567 : vector<16x256xf32>
    %c2_590 = arith.constant 2 : index
    %c0_591 = arith.constant 0 : index
    %569 = tpu.strided_load %arg11[%c2_590, %c0_591] {strides = array<i32: 2, 1>} : memref<64x128xf32, #tpu.memory_space<vmem>>, vector<4x128xf32>
    %c0_592 = arith.constant 0 : index
    %c0_593 = arith.constant 0 : index
    %c0_594 = arith.constant 0 : index
    %570 = vector.load %arg12[%c0_592, %c0_593, %c0_594] : memref<2x64x128xf32, #tpu.memory_space<vmem>>, vector<1x4x128xf32>
    %571 = vector.shape_cast %570 : vector<1x4x128xf32> to vector<4x128xf32>
    %572 = vector.shape_cast %569 : vector<4x128xf32> to vector<1x4x128xf32>
    tpu.vector_store %arg12[%c0_592, %c0_593, %c0_594], %572 {strides = array<i32>} : memref<2x64x128xf32, #tpu.memory_space<vmem>>, vector<1x4x128xf32>,
    %c18 = arith.constant 18 : index
    %c0_595 = arith.constant 0 : index
    %573 = tpu.strided_load %arg11[%c18, %c0_595] {strides = array<i32: 2, 1>} : memref<64x128xf32, #tpu.memory_space<vmem>>, vector<4x128xf32>
    %c0_596 = arith.constant 0 : index
    %c4_597 = arith.constant 4 : index
    %c0_598 = arith.constant 0 : index
    %574 = vector.load %arg12[%c0_596, %c4_597, %c0_598] : memref<2x64x128xf32, #tpu.memory_space<vmem>>, vector<1x4x128xf32>
    %575 = vector.shape_cast %574 : vector<1x4x128xf32> to vector<4x128xf32>
    %576 = vector.shape_cast %573 : vector<4x128xf32> to vector<1x4x128xf32>
    tpu.vector_store %arg12[%c0_596, %c4_597, %c0_598], %576 {strides = array<i32>} : memref<2x64x128xf32, #tpu.memory_space<vmem>>, vector<1x4x128xf32>,
    %c34 = arith.constant 34 : index
    %c0_599 = arith.constant 0 : index
    %577 = tpu.strided_load %arg11[%c34, %c0_599] {strides = array<i32: 2, 1>} : memref<64x128xf32, #tpu.memory_space<vmem>>, vector<4x128xf32>
    %c0_600 = arith.constant 0 : index
    %c8_601 = arith.constant 8 : index
    %c0_602 = arith.constant 0 : index
    %578 = vector.load %arg12[%c0_600, %c8_601, %c0_602] : memref<2x64x128xf32, #tpu.memory_space<vmem>>, vector<1x4x128xf32>
    %579 = vector.shape_cast %578 : vector<1x4x128xf32> to vector<4x128xf32>
    %580 = vector.shape_cast %577 : vector<4x128xf32> to vector<1x4x128xf32>
    tpu.vector_store %arg12[%c0_600, %c8_601, %c0_602], %580 {strides = array<i32>} : memref<2x64x128xf32, #tpu.memory_space<vmem>>, vector<1x4x128xf32>,
    %c50_603 = arith.constant 50 : index
    %c0_604 = arith.constant 0 : index
    %581 = tpu.strided_load %arg11[%c50_603, %c0_604] {strides = array<i32: 2, 1>} : memref<64x128xf32, #tpu.memory_space<vmem>>, vector<4x128xf32>
    %c0_605 = arith.constant 0 : index
    %c12_606 = arith.constant 12 : index
    %c0_607 = arith.constant 0 : index
    %582 = vector.load %arg12[%c0_605, %c12_606, %c0_607] : memref<2x64x128xf32, #tpu.memory_space<vmem>>, vector<1x4x128xf32>
    %583 = vector.shape_cast %582 : vector<1x4x128xf32> to vector<4x128xf32>
    %584 = vector.shape_cast %581 : vector<4x128xf32> to vector<1x4x128xf32>
    tpu.vector_store %arg12[%c0_605, %c12_606, %c0_607], %584 {strides = array<i32>} : memref<2x64x128xf32, #tpu.memory_space<vmem>>, vector<1x4x128xf32>,
    %c0_608 = arith.constant 0 : index
    %c0_609 = arith.constant 0 : index
    %c0_610 = arith.constant 0 : index
    %585 = vector.load %arg12[%c0_608, %c0_609, %c0_610] : memref<2x64x128xf32, #tpu.memory_space<vmem>>, vector<1x16x128xf32>
    %586 = vector.shape_cast %585 : vector<1x16x128xf32> to vector<16x128xf32>
    %c2_611 = arith.constant 2 : index
    %c0_612 = arith.constant 0 : index
    %c0_613 = arith.constant 0 : index
    %587 = vector.load %arg7[%c2_611, %c0_612, %c0_613] : memref<10x128x256xf32, #tpu.memory_space<vmem>>, vector<1x128x256xf32>
    %588 = vector.shape_cast %587 : vector<1x128x256xf32> to vector<128x256xf32>
    %cst_614 = arith.constant dense<0.000000e+00> : vector<16x256xf32>
    %589 = tpu.matmul %586, %588, %cst_614 {dimension_numbers = #tpu.dot_dimension_numbers<[1], [0], [0], [1], [0, 0, 1, 1], [], []>} : vector<16x128xf32>, vector<128x256xf32>, vector<16x256xf32> -> vector<16x256xf32>
    %590 = arith.addf %546, %589 : vector<16x256xf32>
    %c3_615 = arith.constant 3 : index
    %c0_616 = arith.constant 0 : index
    %591 = tpu.strided_load %arg11[%c3_615, %c0_616] {strides = array<i32: 2, 1>} : memref<64x128xf32, #tpu.memory_space<vmem>>, vector<4x128xf32>
    %c1_617 = arith.constant 1 : index
    %c0_618 = arith.constant 0 : index
    %c0_619 = arith.constant 0 : index
    %592 = vector.load %arg12[%c1_617, %c0_618, %c0_619] : memref<2x64x128xf32, #tpu.memory_space<vmem>>, vector<1x4x128xf32>
    %593 = vector.shape_cast %592 : vector<1x4x128xf32> to vector<4x128xf32>
    %594 = vector.shape_cast %591 : vector<4x128xf32> to vector<1x4x128xf32>
    tpu.vector_store %arg12[%c1_617, %c0_618, %c0_619], %594 {strides = array<i32>} : memref<2x64x128xf32, #tpu.memory_space<vmem>>, vector<1x4x128xf32>,
    %c19 = arith.constant 19 : index
    %c0_620 = arith.constant 0 : index
    %595 = tpu.strided_load %arg11[%c19, %c0_620] {strides = array<i32: 2, 1>} : memref<64x128xf32, #tpu.memory_space<vmem>>, vector<4x128xf32>
    %c1_621 = arith.constant 1 : index
    %c4_622 = arith.constant 4 : index
    %c0_623 = arith.constant 0 : index
    %596 = vector.load %arg12[%c1_621, %c4_622, %c0_623] : memref<2x64x128xf32, #tpu.memory_space<vmem>>, vector<1x4x128xf32>
    %597 = vector.shape_cast %596 : vector<1x4x128xf32> to vector<4x128xf32>
    %598 = vector.shape_cast %595 : vector<4x128xf32> to vector<1x4x128xf32>
    tpu.vector_store %arg12[%c1_621, %c4_622, %c0_623], %598 {strides = array<i32>} : memref<2x64x128xf32, #tpu.memory_space<vmem>>, vector<1x4x128xf32>,
    %c35 = arith.constant 35 : index
    %c0_624 = arith.constant 0 : index
    %599 = tpu.strided_load %arg11[%c35, %c0_624] {strides = array<i32: 2, 1>} : memref<64x128xf32, #tpu.memory_space<vmem>>, vector<4x128xf32>
    %c1_625 = arith.constant 1 : index
    %c8_626 = arith.constant 8 : index
    %c0_627 = arith.constant 0 : index
    %600 = vector.load %arg12[%c1_625, %c8_626, %c0_627] : memref<2x64x128xf32, #tpu.memory_space<vmem>>, vector<1x4x128xf32>
    %601 = vector.shape_cast %600 : vector<1x4x128xf32> to vector<4x128xf32>
    %602 = vector.shape_cast %599 : vector<4x128xf32> to vector<1x4x128xf32>
    tpu.vector_store %arg12[%c1_625, %c8_626, %c0_627], %602 {strides = array<i32>} : memref<2x64x128xf32, #tpu.memory_space<vmem>>, vector<1x4x128xf32>,
    %c51_628 = arith.constant 51 : index
    %c0_629 = arith.constant 0 : index
    %603 = tpu.strided_load %arg11[%c51_628, %c0_629] {strides = array<i32: 2, 1>} : memref<64x128xf32, #tpu.memory_space<vmem>>, vector<4x128xf32>
    %c1_630 = arith.constant 1 : index
    %c12_631 = arith.constant 12 : index
    %c0_632 = arith.constant 0 : index
    %604 = vector.load %arg12[%c1_630, %c12_631, %c0_632] : memref<2x64x128xf32, #tpu.memory_space<vmem>>, vector<1x4x128xf32>
    %605 = vector.shape_cast %604 : vector<1x4x128xf32> to vector<4x128xf32>
    %606 = vector.shape_cast %603 : vector<4x128xf32> to vector<1x4x128xf32>
    tpu.vector_store %arg12[%c1_630, %c12_631, %c0_632], %606 {strides = array<i32>} : memref<2x64x128xf32, #tpu.memory_space<vmem>>, vector<1x4x128xf32>,
    %c1_633 = arith.constant 1 : index
    %c0_634 = arith.constant 0 : index
    %c0_635 = arith.constant 0 : index
    %607 = vector.load %arg12[%c1_633, %c0_634, %c0_635] : memref<2x64x128xf32, #tpu.memory_space<vmem>>, vector<1x16x128xf32>
    %608 = vector.shape_cast %607 : vector<1x16x128xf32> to vector<16x128xf32>
    %c3_636 = arith.constant 3 : index
    %c0_637 = arith.constant 0 : index
    %c0_638 = arith.constant 0 : index
    %609 = vector.load %arg7[%c3_636, %c0_637, %c0_638] : memref<10x128x256xf32, #tpu.memory_space<vmem>>, vector<1x128x256xf32>
    %610 = vector.shape_cast %609 : vector<1x128x256xf32> to vector<128x256xf32>
    %cst_639 = arith.constant dense<0.000000e+00> : vector<16x256xf32>
    %611 = tpu.matmul %608, %610, %cst_639 {dimension_numbers = #tpu.dot_dimension_numbers<[1], [0], [0], [1], [0, 0, 1, 1], [], []>} : vector<16x128xf32>, vector<128x256xf32>, vector<16x256xf32> -> vector<16x256xf32>
    %612 = arith.addf %568, %611 : vector<16x256xf32>
    %c4_640 = arith.constant 4 : index
    %c0_641 = arith.constant 0 : index
    %613 = tpu.strided_load %arg11[%c4_640, %c0_641] {strides = array<i32: 2, 1>} : memref<64x128xf32, #tpu.memory_space<vmem>>, vector<4x128xf32>
    %c0_642 = arith.constant 0 : index
    %c0_643 = arith.constant 0 : index
    %c0_644 = arith.constant 0 : index
    %614 = vector.load %arg12[%c0_642, %c0_643, %c0_644] : memref<2x64x128xf32, #tpu.memory_space<vmem>>, vector<1x4x128xf32>
    %615 = vector.shape_cast %614 : vector<1x4x128xf32> to vector<4x128xf32>
    %616 = vector.shape_cast %613 : vector<4x128xf32> to vector<1x4x128xf32>
    tpu.vector_store %arg12[%c0_642, %c0_643, %c0_644], %616 {strides = array<i32>} : memref<2x64x128xf32, #tpu.memory_space<vmem>>, vector<1x4x128xf32>,
    %c20_645 = arith.constant 20 : index
    %c0_646 = arith.constant 0 : index
    %617 = tpu.strided_load %arg11[%c20_645, %c0_646] {strides = array<i32: 2, 1>} : memref<64x128xf32, #tpu.memory_space<vmem>>, vector<4x128xf32>
    %c0_647 = arith.constant 0 : index
    %c4_648 = arith.constant 4 : index
    %c0_649 = arith.constant 0 : index
    %618 = vector.load %arg12[%c0_647, %c4_648, %c0_649] : memref<2x64x128xf32, #tpu.memory_space<vmem>>, vector<1x4x128xf32>
    %619 = vector.shape_cast %618 : vector<1x4x128xf32> to vector<4x128xf32>
    %620 = vector.shape_cast %617 : vector<4x128xf32> to vector<1x4x128xf32>
    tpu.vector_store %arg12[%c0_647, %c4_648, %c0_649], %620 {strides = array<i32>} : memref<2x64x128xf32, #tpu.memory_space<vmem>>, vector<1x4x128xf32>,
    %c36_650 = arith.constant 36 : index
    %c0_651 = arith.constant 0 : index
    %621 = tpu.strided_load %arg11[%c36_650, %c0_651] {strides = array<i32: 2, 1>} : memref<64x128xf32, #tpu.memory_space<vmem>>, vector<4x128xf32>
    %c0_652 = arith.constant 0 : index
    %c8_653 = arith.constant 8 : index
    %c0_654 = arith.constant 0 : index
    %622 = vector.load %arg12[%c0_652, %c8_653, %c0_654] : memref<2x64x128xf32, #tpu.memory_space<vmem>>, vector<1x4x128xf32>
    %623 = vector.shape_cast %622 : vector<1x4x128xf32> to vector<4x128xf32>
    %624 = vector.shape_cast %621 : vector<4x128xf32> to vector<1x4x128xf32>
    tpu.vector_store %arg12[%c0_652, %c8_653, %c0_654], %624 {strides = array<i32>} : memref<2x64x128xf32, #tpu.memory_space<vmem>>, vector<1x4x128xf32>,
    %c52_655 = arith.constant 52 : index
    %c0_656 = arith.constant 0 : index
    %625 = tpu.strided_load %arg11[%c52_655, %c0_656] {strides = array<i32: 2, 1>} : memref<64x128xf32, #tpu.memory_space<vmem>>, vector<4x128xf32>
    %c0_657 = arith.constant 0 : index
    %c12_658 = arith.constant 12 : index
    %c0_659 = arith.constant 0 : index
    %626 = vector.load %arg12[%c0_657, %c12_658, %c0_659] : memref<2x64x128xf32, #tpu.memory_space<vmem>>, vector<1x4x128xf32>
    %627 = vector.shape_cast %626 : vector<1x4x128xf32> to vector<4x128xf32>
    %628 = vector.shape_cast %625 : vector<4x128xf32> to vector<1x4x128xf32>
    tpu.vector_store %arg12[%c0_657, %c12_658, %c0_659], %628 {strides = array<i32>} : memref<2x64x128xf32, #tpu.memory_space<vmem>>, vector<1x4x128xf32>,
    %c0_660 = arith.constant 0 : index
    %c0_661 = arith.constant 0 : index
    %c0_662 = arith.constant 0 : index
    %629 = vector.load %arg12[%c0_660, %c0_661, %c0_662] : memref<2x64x128xf32, #tpu.memory_space<vmem>>, vector<1x16x128xf32>
    %630 = vector.shape_cast %629 : vector<1x16x128xf32> to vector<16x128xf32>
    %c4_663 = arith.constant 4 : index
    %c0_664 = arith.constant 0 : index
    %c0_665 = arith.constant 0 : index
    %631 = vector.load %arg7[%c4_663, %c0_664, %c0_665] : memref<10x128x256xf32, #tpu.memory_space<vmem>>, vector<1x128x256xf32>
    %632 = vector.shape_cast %631 : vector<1x128x256xf32> to vector<128x256xf32>
    %cst_666 = arith.constant dense<0.000000e+00> : vector<16x256xf32>
    %633 = tpu.matmul %630, %632, %cst_666 {dimension_numbers = #tpu.dot_dimension_numbers<[1], [0], [0], [1], [0, 0, 1, 1], [], []>} : vector<16x128xf32>, vector<128x256xf32>, vector<16x256xf32> -> vector<16x256xf32>
    %634 = arith.addf %590, %633 : vector<16x256xf32>
    %c5_667 = arith.constant 5 : index
    %c0_668 = arith.constant 0 : index
    %635 = tpu.strided_load %arg11[%c5_667, %c0_668] {strides = array<i32: 2, 1>} : memref<64x128xf32, #tpu.memory_space<vmem>>, vector<4x128xf32>
    %c1_669 = arith.constant 1 : index
    %c0_670 = arith.constant 0 : index
    %c0_671 = arith.constant 0 : index
    %636 = vector.load %arg12[%c1_669, %c0_670, %c0_671] : memref<2x64x128xf32, #tpu.memory_space<vmem>>, vector<1x4x128xf32>
    %637 = vector.shape_cast %636 : vector<1x4x128xf32> to vector<4x128xf32>
    %638 = vector.shape_cast %635 : vector<4x128xf32> to vector<1x4x128xf32>
    tpu.vector_store %arg12[%c1_669, %c0_670, %c0_671], %638 {strides = array<i32>} : memref<2x64x128xf32, #tpu.memory_space<vmem>>, vector<1x4x128xf32>,
    %c21 = arith.constant 21 : index
    %c0_672 = arith.constant 0 : index
    %639 = tpu.strided_load %arg11[%c21, %c0_672] {strides = array<i32: 2, 1>} : memref<64x128xf32, #tpu.memory_space<vmem>>, vector<4x128xf32>
    %c1_673 = arith.constant 1 : index
    %c4_674 = arith.constant 4 : index
    %c0_675 = arith.constant 0 : index
    %640 = vector.load %arg12[%c1_673, %c4_674, %c0_675] : memref<2x64x128xf32, #tpu.memory_space<vmem>>, vector<1x4x128xf32>
    %641 = vector.shape_cast %640 : vector<1x4x128xf32> to vector<4x128xf32>
    %642 = vector.shape_cast %639 : vector<4x128xf32> to vector<1x4x128xf32>
    tpu.vector_store %arg12[%c1_673, %c4_674, %c0_675], %642 {strides = array<i32>} : memref<2x64x128xf32, #tpu.memory_space<vmem>>, vector<1x4x128xf32>,
    %c37 = arith.constant 37 : index
    %c0_676 = arith.constant 0 : index
    %643 = tpu.strided_load %arg11[%c37, %c0_676] {strides = array<i32: 2, 1>} : memref<64x128xf32, #tpu.memory_space<vmem>>, vector<4x128xf32>
    %c1_677 = arith.constant 1 : index
    %c8_678 = arith.constant 8 : index
    %c0_679 = arith.constant 0 : index
    %644 = vector.load %arg12[%c1_677, %c8_678, %c0_679] : memref<2x64x128xf32, #tpu.memory_space<vmem>>, vector<1x4x128xf32>
    %645 = vector.shape_cast %644 : vector<1x4x128xf32> to vector<4x128xf32>
    %646 = vector.shape_cast %643 : vector<4x128xf32> to vector<1x4x128xf32>
    tpu.vector_store %arg12[%c1_677, %c8_678, %c0_679], %646 {strides = array<i32>} : memref<2x64x128xf32, #tpu.memory_space<vmem>>, vector<1x4x128xf32>,
    %c53_680 = arith.constant 53 : index
    %c0_681 = arith.constant 0 : index
    %647 = tpu.strided_load %arg11[%c53_680, %c0_681] {strides = array<i32: 2, 1>} : memref<64x128xf32, #tpu.memory_space<vmem>>, vector<4x128xf32>
    %c1_682 = arith.constant 1 : index
    %c12_683 = arith.constant 12 : index
    %c0_684 = arith.constant 0 : index
    %648 = vector.load %arg12[%c1_682, %c12_683, %c0_684] : memref<2x64x128xf32, #tpu.memory_space<vmem>>, vector<1x4x128xf32>
    %649 = vector.shape_cast %648 : vector<1x4x128xf32> to vector<4x128xf32>
    %650 = vector.shape_cast %647 : vector<4x128xf32> to vector<1x4x128xf32>
    tpu.vector_store %arg12[%c1_682, %c12_683, %c0_684], %650 {strides = array<i32>} : memref<2x64x128xf32, #tpu.memory_space<vmem>>, vector<1x4x128xf32>,
    %c1_685 = arith.constant 1 : index
    %c0_686 = arith.constant 0 : index
    %c0_687 = arith.constant 0 : index
    %651 = vector.load %arg12[%c1_685, %c0_686, %c0_687] : memref<2x64x128xf32, #tpu.memory_space<vmem>>, vector<1x16x128xf32>
    %652 = vector.shape_cast %651 : vector<1x16x128xf32> to vector<16x128xf32>
    %c5_688 = arith.constant 5 : index
    %c0_689 = arith.constant 0 : index
    %c0_690 = arith.constant 0 : index
    %653 = vector.load %arg7[%c5_688, %c0_689, %c0_690] : memref<10x128x256xf32, #tpu.memory_space<vmem>>, vector<1x128x256xf32>
    %654 = vector.shape_cast %653 : vector<1x128x256xf32> to vector<128x256xf32>
    %cst_691 = arith.constant dense<0.000000e+00> : vector<16x256xf32>
    %655 = tpu.matmul %652, %654, %cst_691 {dimension_numbers = #tpu.dot_dimension_numbers<[1], [0], [0], [1], [0, 0, 1, 1], [], []>} : vector<16x128xf32>, vector<128x256xf32>, vector<16x256xf32> -> vector<16x256xf32>
    %656 = arith.addf %612, %655 : vector<16x256xf32>
    %c6_692 = arith.constant 6 : index
    %c0_693 = arith.constant 0 : index
    %657 = tpu.strided_load %arg11[%c6_692, %c0_693] {strides = array<i32: 2, 1>} : memref<64x128xf32, #tpu.memory_space<vmem>>, vector<4x128xf32>
    %c0_694 = arith.constant 0 : index
    %c0_695 = arith.constant 0 : index
    %c0_696 = arith.constant 0 : index
    %658 = vector.load %arg12[%c0_694, %c0_695, %c0_696] : memref<2x64x128xf32, #tpu.memory_space<vmem>>, vector<1x4x128xf32>
    %659 = vector.shape_cast %658 : vector<1x4x128xf32> to vector<4x128xf32>
    %660 = vector.shape_cast %657 : vector<4x128xf32> to vector<1x4x128xf32>
    tpu.vector_store %arg12[%c0_694, %c0_695, %c0_696], %660 {strides = array<i32>} : memref<2x64x128xf32, #tpu.memory_space<vmem>>, vector<1x4x128xf32>,
    %c22 = arith.constant 22 : index
    %c0_697 = arith.constant 0 : index
    %661 = tpu.strided_load %arg11[%c22, %c0_697] {strides = array<i32: 2, 1>} : memref<64x128xf32, #tpu.memory_space<vmem>>, vector<4x128xf32>
    %c0_698 = arith.constant 0 : index
    %c4_699 = arith.constant 4 : index
    %c0_700 = arith.constant 0 : index
    %662 = vector.load %arg12[%c0_698, %c4_699, %c0_700] : memref<2x64x128xf32, #tpu.memory_space<vmem>>, vector<1x4x128xf32>
    %663 = vector.shape_cast %662 : vector<1x4x128xf32> to vector<4x128xf32>
    %664 = vector.shape_cast %661 : vector<4x128xf32> to vector<1x4x128xf32>
    tpu.vector_store %arg12[%c0_698, %c4_699, %c0_700], %664 {strides = array<i32>} : memref<2x64x128xf32, #tpu.memory_space<vmem>>, vector<1x4x128xf32>,
    %c38 = arith.constant 38 : index
    %c0_701 = arith.constant 0 : index
    %665 = tpu.strided_load %arg11[%c38, %c0_701] {strides = array<i32: 2, 1>} : memref<64x128xf32, #tpu.memory_space<vmem>>, vector<4x128xf32>
    %c0_702 = arith.constant 0 : index
    %c8_703 = arith.constant 8 : index
    %c0_704 = arith.constant 0 : index
    %666 = vector.load %arg12[%c0_702, %c8_703, %c0_704] : memref<2x64x128xf32, #tpu.memory_space<vmem>>, vector<1x4x128xf32>
    %667 = vector.shape_cast %666 : vector<1x4x128xf32> to vector<4x128xf32>
    %668 = vector.shape_cast %665 : vector<4x128xf32> to vector<1x4x128xf32>
    tpu.vector_store %arg12[%c0_702, %c8_703, %c0_704], %668 {strides = array<i32>} : memref<2x64x128xf32, #tpu.memory_space<vmem>>, vector<1x4x128xf32>,
    %c54_705 = arith.constant 54 : index
    %c0_706 = arith.constant 0 : index
    %669 = tpu.strided_load %arg11[%c54_705, %c0_706] {strides = array<i32: 2, 1>} : memref<64x128xf32, #tpu.memory_space<vmem>>, vector<4x128xf32>
    %c0_707 = arith.constant 0 : index
    %c12_708 = arith.constant 12 : index
    %c0_709 = arith.constant 0 : index
    %670 = vector.load %arg12[%c0_707, %c12_708, %c0_709] : memref<2x64x128xf32, #tpu.memory_space<vmem>>, vector<1x4x128xf32>
    %671 = vector.shape_cast %670 : vector<1x4x128xf32> to vector<4x128xf32>
    %672 = vector.shape_cast %669 : vector<4x128xf32> to vector<1x4x128xf32>
    tpu.vector_store %arg12[%c0_707, %c12_708, %c0_709], %672 {strides = array<i32>} : memref<2x64x128xf32, #tpu.memory_space<vmem>>, vector<1x4x128xf32>,
    %c0_710 = arith.constant 0 : index
    %c0_711 = arith.constant 0 : index
    %c0_712 = arith.constant 0 : index
    %673 = vector.load %arg12[%c0_710, %c0_711, %c0_712] : memref<2x64x128xf32, #tpu.memory_space<vmem>>, vector<1x16x128xf32>
    %674 = vector.shape_cast %673 : vector<1x16x128xf32> to vector<16x128xf32>
    %c6_713 = arith.constant 6 : index
    %c0_714 = arith.constant 0 : index
    %c0_715 = arith.constant 0 : index
    %675 = vector.load %arg7[%c6_713, %c0_714, %c0_715] : memref<10x128x256xf32, #tpu.memory_space<vmem>>, vector<1x128x256xf32>
    %676 = vector.shape_cast %675 : vector<1x128x256xf32> to vector<128x256xf32>
    %cst_716 = arith.constant dense<0.000000e+00> : vector<16x256xf32>
    %677 = tpu.matmul %674, %676, %cst_716 {dimension_numbers = #tpu.dot_dimension_numbers<[1], [0], [0], [1], [0, 0, 1, 1], [], []>} : vector<16x128xf32>, vector<128x256xf32>, vector<16x256xf32> -> vector<16x256xf32>
    %678 = arith.addf %634, %677 : vector<16x256xf32>
    %c7_717 = arith.constant 7 : index
    %c0_718 = arith.constant 0 : index
    %679 = tpu.strided_load %arg11[%c7_717, %c0_718] {strides = array<i32: 2, 1>} : memref<64x128xf32, #tpu.memory_space<vmem>>, vector<4x128xf32>
    %c1_719 = arith.constant 1 : index
    %c0_720 = arith.constant 0 : index
    %c0_721 = arith.constant 0 : index
    %680 = vector.load %arg12[%c1_719, %c0_720, %c0_721] : memref<2x64x128xf32, #tpu.memory_space<vmem>>, vector<1x4x128xf32>
    %681 = vector.shape_cast %680 : vector<1x4x128xf32> to vector<4x128xf32>
    %682 = vector.shape_cast %679 : vector<4x128xf32> to vector<1x4x128xf32>
    tpu.vector_store %arg12[%c1_719, %c0_720, %c0_721], %682 {strides = array<i32>} : memref<2x64x128xf32, #tpu.memory_space<vmem>>, vector<1x4x128xf32>,
    %c23 = arith.constant 23 : index
    %c0_722 = arith.constant 0 : index
    %683 = tpu.strided_load %arg11[%c23, %c0_722] {strides = array<i32: 2, 1>} : memref<64x128xf32, #tpu.memory_space<vmem>>, vector<4x128xf32>
    %c1_723 = arith.constant 1 : index
    %c4_724 = arith.constant 4 : index
    %c0_725 = arith.constant 0 : index
    %684 = vector.load %arg12[%c1_723, %c4_724, %c0_725] : memref<2x64x128xf32, #tpu.memory_space<vmem>>, vector<1x4x128xf32>
    %685 = vector.shape_cast %684 : vector<1x4x128xf32> to vector<4x128xf32>
    %686 = vector.shape_cast %683 : vector<4x128xf32> to vector<1x4x128xf32>
    tpu.vector_store %arg12[%c1_723, %c4_724, %c0_725], %686 {strides = array<i32>} : memref<2x64x128xf32, #tpu.memory_space<vmem>>, vector<1x4x128xf32>,
    %c39 = arith.constant 39 : index
    %c0_726 = arith.constant 0 : index
    %687 = tpu.strided_load %arg11[%c39, %c0_726] {strides = array<i32: 2, 1>} : memref<64x128xf32, #tpu.memory_space<vmem>>, vector<4x128xf32>
    %c1_727 = arith.constant 1 : index
    %c8_728 = arith.constant 8 : index
    %c0_729 = arith.constant 0 : index
    %688 = vector.load %arg12[%c1_727, %c8_728, %c0_729] : memref<2x64x128xf32, #tpu.memory_space<vmem>>, vector<1x4x128xf32>
    %689 = vector.shape_cast %688 : vector<1x4x128xf32> to vector<4x128xf32>
    %690 = vector.shape_cast %687 : vector<4x128xf32> to vector<1x4x128xf32>
    tpu.vector_store %arg12[%c1_727, %c8_728, %c0_729], %690 {strides = array<i32>} : memref<2x64x128xf32, #tpu.memory_space<vmem>>, vector<1x4x128xf32>,
    %c55_730 = arith.constant 55 : index
    %c0_731 = arith.constant 0 : index
    %691 = tpu.strided_load %arg11[%c55_730, %c0_731] {strides = array<i32: 2, 1>} : memref<64x128xf32, #tpu.memory_space<vmem>>, vector<4x128xf32>
    %c1_732 = arith.constant 1 : index
    %c12_733 = arith.constant 12 : index
    %c0_734 = arith.constant 0 : index
    %692 = vector.load %arg12[%c1_732, %c12_733, %c0_734] : memref<2x64x128xf32, #tpu.memory_space<vmem>>, vector<1x4x128xf32>
    %693 = vector.shape_cast %692 : vector<1x4x128xf32> to vector<4x128xf32>
    %694 = vector.shape_cast %691 : vector<4x128xf32> to vector<1x4x128xf32>
    tpu.vector_store %arg12[%c1_732, %c12_733, %c0_734], %694 {strides = array<i32>} : memref<2x64x128xf32, #tpu.memory_space<vmem>>, vector<1x4x128xf32>,
    %c1_735 = arith.constant 1 : index
    %c0_736 = arith.constant 0 : index
    %c0_737 = arith.constant 0 : index
    %695 = vector.load %arg12[%c1_735, %c0_736, %c0_737] : memref<2x64x128xf32, #tpu.memory_space<vmem>>, vector<1x16x128xf32>
    %696 = vector.shape_cast %695 : vector<1x16x128xf32> to vector<16x128xf32>
    %c7_738 = arith.constant 7 : index
    %c0_739 = arith.constant 0 : index
    %c0_740 = arith.constant 0 : index
    %697 = vector.load %arg7[%c7_738, %c0_739, %c0_740] : memref<10x128x256xf32, #tpu.memory_space<vmem>>, vector<1x128x256xf32>
    %698 = vector.shape_cast %697 : vector<1x128x256xf32> to vector<128x256xf32>
    %cst_741 = arith.constant dense<0.000000e+00> : vector<16x256xf32>
    %699 = tpu.matmul %696, %698, %cst_741 {dimension_numbers = #tpu.dot_dimension_numbers<[1], [0], [0], [1], [0, 0, 1, 1], [], []>} : vector<16x128xf32>, vector<128x256xf32>, vector<16x256xf32> -> vector<16x256xf32>
    %700 = arith.addf %656, %699 : vector<16x256xf32>
    %c8_742 = arith.constant 8 : index
    %c0_743 = arith.constant 0 : index
    %701 = tpu.strided_load %arg11[%c8_742, %c0_743] {strides = array<i32: 2, 1>} : memref<64x128xf32, #tpu.memory_space<vmem>>, vector<4x128xf32>
    %c0_744 = arith.constant 0 : index
    %c0_745 = arith.constant 0 : index
    %c0_746 = arith.constant 0 : index
    %702 = vector.load %arg12[%c0_744, %c0_745, %c0_746] : memref<2x64x128xf32, #tpu.memory_space<vmem>>, vector<1x4x128xf32>
    %703 = vector.shape_cast %702 : vector<1x4x128xf32> to vector<4x128xf32>
    %704 = vector.shape_cast %701 : vector<4x128xf32> to vector<1x4x128xf32>
    tpu.vector_store %arg12[%c0_744, %c0_745, %c0_746], %704 {strides = array<i32>} : memref<2x64x128xf32, #tpu.memory_space<vmem>>, vector<1x4x128xf32>,
    %c24_747 = arith.constant 24 : index
    %c0_748 = arith.constant 0 : index
    %705 = tpu.strided_load %arg11[%c24_747, %c0_748] {strides = array<i32: 2, 1>} : memref<64x128xf32, #tpu.memory_space<vmem>>, vector<4x128xf32>
    %c0_749 = arith.constant 0 : index
    %c4_750 = arith.constant 4 : index
    %c0_751 = arith.constant 0 : index
    %706 = vector.load %arg12[%c0_749, %c4_750, %c0_751] : memref<2x64x128xf32, #tpu.memory_space<vmem>>, vector<1x4x128xf32>
    %707 = vector.shape_cast %706 : vector<1x4x128xf32> to vector<4x128xf32>
    %708 = vector.shape_cast %705 : vector<4x128xf32> to vector<1x4x128xf32>
    tpu.vector_store %arg12[%c0_749, %c4_750, %c0_751], %708 {strides = array<i32>} : memref<2x64x128xf32, #tpu.memory_space<vmem>>, vector<1x4x128xf32>,
    %c40_752 = arith.constant 40 : index
    %c0_753 = arith.constant 0 : index
    %709 = tpu.strided_load %arg11[%c40_752, %c0_753] {strides = array<i32: 2, 1>} : memref<64x128xf32, #tpu.memory_space<vmem>>, vector<4x128xf32>
    %c0_754 = arith.constant 0 : index
    %c8_755 = arith.constant 8 : index
    %c0_756 = arith.constant 0 : index
    %710 = vector.load %arg12[%c0_754, %c8_755, %c0_756] : memref<2x64x128xf32, #tpu.memory_space<vmem>>, vector<1x4x128xf32>
    %711 = vector.shape_cast %710 : vector<1x4x128xf32> to vector<4x128xf32>
    %712 = vector.shape_cast %709 : vector<4x128xf32> to vector<1x4x128xf32>
    tpu.vector_store %arg12[%c0_754, %c8_755, %c0_756], %712 {strides = array<i32>} : memref<2x64x128xf32, #tpu.memory_space<vmem>>, vector<1x4x128xf32>,
    %c56_757 = arith.constant 56 : index
    %c0_758 = arith.constant 0 : index
    %713 = tpu.strided_load %arg11[%c56_757, %c0_758] {strides = array<i32: 2, 1>} : memref<64x128xf32, #tpu.memory_space<vmem>>, vector<4x128xf32>
    %c0_759 = arith.constant 0 : index
    %c12_760 = arith.constant 12 : index
    %c0_761 = arith.constant 0 : index
    %714 = vector.load %arg12[%c0_759, %c12_760, %c0_761] : memref<2x64x128xf32, #tpu.memory_space<vmem>>, vector<1x4x128xf32>
    %715 = vector.shape_cast %714 : vector<1x4x128xf32> to vector<4x128xf32>
    %716 = vector.shape_cast %713 : vector<4x128xf32> to vector<1x4x128xf32>
    tpu.vector_store %arg12[%c0_759, %c12_760, %c0_761], %716 {strides = array<i32>} : memref<2x64x128xf32, #tpu.memory_space<vmem>>, vector<1x4x128xf32>,
    %c0_762 = arith.constant 0 : index
    %c0_763 = arith.constant 0 : index
    %c0_764 = arith.constant 0 : index
    %717 = vector.load %arg12[%c0_762, %c0_763, %c0_764] : memref<2x64x128xf32, #tpu.memory_space<vmem>>, vector<1x16x128xf32>
    %718 = vector.shape_cast %717 : vector<1x16x128xf32> to vector<16x128xf32>
    %c8_765 = arith.constant 8 : index
    %c0_766 = arith.constant 0 : index
    %c0_767 = arith.constant 0 : index
    %719 = vector.load %arg7[%c8_765, %c0_766, %c0_767] : memref<10x128x256xf32, #tpu.memory_space<vmem>>, vector<1x128x256xf32>
    %720 = vector.shape_cast %719 : vector<1x128x256xf32> to vector<128x256xf32>
    %cst_768 = arith.constant dense<0.000000e+00> : vector<16x256xf32>
    %721 = tpu.matmul %718, %720, %cst_768 {dimension_numbers = #tpu.dot_dimension_numbers<[1], [0], [0], [1], [0, 0, 1, 1], [], []>} : vector<16x128xf32>, vector<128x256xf32>, vector<16x256xf32> -> vector<16x256xf32>
    %722 = arith.addf %678, %721 : vector<16x256xf32>
    %c9_769 = arith.constant 9 : index
    %c0_770 = arith.constant 0 : index
    %723 = tpu.strided_load %arg11[%c9_769, %c0_770] {strides = array<i32: 2, 1>} : memref<64x128xf32, #tpu.memory_space<vmem>>, vector<4x128xf32>
    %c1_771 = arith.constant 1 : index
    %c0_772 = arith.constant 0 : index
    %c0_773 = arith.constant 0 : index
    %724 = vector.load %arg12[%c1_771, %c0_772, %c0_773] : memref<2x64x128xf32, #tpu.memory_space<vmem>>, vector<1x4x128xf32>
    %725 = vector.shape_cast %724 : vector<1x4x128xf32> to vector<4x128xf32>
    %726 = vector.shape_cast %723 : vector<4x128xf32> to vector<1x4x128xf32>
    tpu.vector_store %arg12[%c1_771, %c0_772, %c0_773], %726 {strides = array<i32>} : memref<2x64x128xf32, #tpu.memory_space<vmem>>, vector<1x4x128xf32>,
    %c25_774 = arith.constant 25 : index
    %c0_775 = arith.constant 0 : index
    %727 = tpu.strided_load %arg11[%c25_774, %c0_775] {strides = array<i32: 2, 1>} : memref<64x128xf32, #tpu.memory_space<vmem>>, vector<4x128xf32>
    %c1_776 = arith.constant 1 : index
    %c4_777 = arith.constant 4 : index
    %c0_778 = arith.constant 0 : index
    %728 = vector.load %arg12[%c1_776, %c4_777, %c0_778] : memref<2x64x128xf32, #tpu.memory_space<vmem>>, vector<1x4x128xf32>
    %729 = vector.shape_cast %728 : vector<1x4x128xf32> to vector<4x128xf32>
    %730 = vector.shape_cast %727 : vector<4x128xf32> to vector<1x4x128xf32>
    tpu.vector_store %arg12[%c1_776, %c4_777, %c0_778], %730 {strides = array<i32>} : memref<2x64x128xf32, #tpu.memory_space<vmem>>, vector<1x4x128xf32>,
    %c41_779 = arith.constant 41 : index
    %c0_780 = arith.constant 0 : index
    %731 = tpu.strided_load %arg11[%c41_779, %c0_780] {strides = array<i32: 2, 1>} : memref<64x128xf32, #tpu.memory_space<vmem>>, vector<4x128xf32>
    %c1_781 = arith.constant 1 : index
    %c8_782 = arith.constant 8 : index
    %c0_783 = arith.constant 0 : index
    %732 = vector.load %arg12[%c1_781, %c8_782, %c0_783] : memref<2x64x128xf32, #tpu.memory_space<vmem>>, vector<1x4x128xf32>
    %733 = vector.shape_cast %732 : vector<1x4x128xf32> to vector<4x128xf32>
    %734 = vector.shape_cast %731 : vector<4x128xf32> to vector<1x4x128xf32>
    tpu.vector_store %arg12[%c1_781, %c8_782, %c0_783], %734 {strides = array<i32>} : memref<2x64x128xf32, #tpu.memory_space<vmem>>, vector<1x4x128xf32>,
    %c57_784 = arith.constant 57 : index
    %c0_785 = arith.constant 0 : index
    %735 = tpu.strided_load %arg11[%c57_784, %c0_785] {strides = array<i32: 2, 1>} : memref<64x128xf32, #tpu.memory_space<vmem>>, vector<4x128xf32>
    %c1_786 = arith.constant 1 : index
    %c12_787 = arith.constant 12 : index
    %c0_788 = arith.constant 0 : index
    %736 = vector.load %arg12[%c1_786, %c12_787, %c0_788] : memref<2x64x128xf32, #tpu.memory_space<vmem>>, vector<1x4x128xf32>
    %737 = vector.shape_cast %736 : vector<1x4x128xf32> to vector<4x128xf32>
    %738 = vector.shape_cast %735 : vector<4x128xf32> to vector<1x4x128xf32>
    tpu.vector_store %arg12[%c1_786, %c12_787, %c0_788], %738 {strides = array<i32>} : memref<2x64x128xf32, #tpu.memory_space<vmem>>, vector<1x4x128xf32>,
    %c1_789 = arith.constant 1 : index
    %c0_790 = arith.constant 0 : index
    %c0_791 = arith.constant 0 : index
    %739 = vector.load %arg12[%c1_789, %c0_790, %c0_791] : memref<2x64x128xf32, #tpu.memory_space<vmem>>, vector<1x16x128xf32>
    %740 = vector.shape_cast %739 : vector<1x16x128xf32> to vector<16x128xf32>
    %c9_792 = arith.constant 9 : index
    %c0_793 = arith.constant 0 : index
    %c0_794 = arith.constant 0 : index
    %741 = vector.load %arg7[%c9_792, %c0_793, %c0_794] : memref<10x128x256xf32, #tpu.memory_space<vmem>>, vector<1x128x256xf32>
    %742 = vector.shape_cast %741 : vector<1x128x256xf32> to vector<128x256xf32>
    %cst_795 = arith.constant dense<0.000000e+00> : vector<16x256xf32>
    %743 = tpu.matmul %740, %742, %cst_795 {dimension_numbers = #tpu.dot_dimension_numbers<[1], [0], [0], [1], [0, 0, 1, 1], [], []>} : vector<16x128xf32>, vector<128x256xf32>, vector<16x256xf32> -> vector<16x256xf32>
    %744 = arith.addf %700, %743 : vector<16x256xf32>
    %745 = arith.addf %722, %744 : vector<16x256xf32>
    %746 = vector.broadcast %520 : vector<1x256xf32> to vector<16x256xf32>
    %747 = arith.addf %745, %746 : vector<16x256xf32>
    %cst_796 = arith.constant dense<0.000000e+00> : vector<256xf32>
    %748 = vector.multi_reduction <add>, %747, %cst_796 [0] : vector<16x256xf32> to vector<256xf32>
    %749 = vector.shape_cast %748 : vector<256xf32> to vector<1x256xf32>
    %cst_797 = arith.constant 1.600000e+01 : f32
    %750 = vector.broadcast %cst_797 : f32 to vector<1x256xf32>
    %751 = arith.divf %749, %750 : vector<1x256xf32>
    %752 = vector.broadcast %751 : vector<1x256xf32> to vector<16x256xf32>
    %753 = arith.subf %747, %752 : vector<16x256xf32>
    %754 = arith.mulf %753, %753 : vector<16x256xf32>
    %cst_798 = arith.constant dense<0.000000e+00> : vector<256xf32>
    %755 = vector.multi_reduction <add>, %754, %cst_798 [0] : vector<16x256xf32> to vector<256xf32>
    %756 = vector.shape_cast %755 : vector<256xf32> to vector<1x256xf32>
    %cst_799 = arith.constant 1.600000e+01 : f32
    %757 = vector.broadcast %cst_799 : f32 to vector<1x256xf32>
    %758 = arith.divf %756, %757 : vector<1x256xf32>
    %cst_800 = arith.constant 9.99999974E-6 : f32
    %759 = vector.broadcast %cst_800 : f32 to vector<1x256xf32>
    %760 = arith.addf %758, %759 : vector<1x256xf32>
    %761 = math.rsqrt %760 : vector<1x256xf32>
    %762 = arith.mulf %521, %761 : vector<1x256xf32>
    %763 = vector.broadcast %762 : vector<1x256xf32> to vector<16x256xf32>
    %764 = arith.mulf %747, %763 : vector<16x256xf32>
    %765 = arith.mulf %751, %762 : vector<1x256xf32>
    %766 = arith.subf %522, %765 : vector<1x256xf32>
    %767 = vector.broadcast %766 : vector<1x256xf32> to vector<16x256xf32>
    %768 = arith.addf %764, %767 : vector<16x256xf32>
    %cst_801 = arith.constant 2.000000e-01 : f32
    %769 = vector.broadcast %cst_801 : f32 to vector<16x256xf32>
    %770 = arith.mulf %769, %768 : vector<16x256xf32>
    %771 = arith.maximumf %768, %770 : vector<16x256xf32>
    %c8_802 = arith.constant 8 : index
    %c0_803 = arith.constant 0 : index
    %772 = vector.load %arg4[%c8_802, %c0_803] : memref<16x256xf32, #tpu.memory_space<vmem>>, vector<4x256xf32>
    %c12_804 = arith.constant 12 : index
    %c0_805 = arith.constant 0 : index
    %773 = vector.load %arg4[%c12_804, %c0_805] : memref<16x256xf32, #tpu.memory_space<vmem>>, vector<1x1xf32>
    %774 = vector.extract_strided_slice %771 {offsets = [0, 0], sizes = [4, 256], strides = [1, 1]} : vector<16x256xf32> to vector<4x256xf32>
    %775 = arith.mulf %774, %772 : vector<4x256xf32>
    %776 = vector.shape_cast %775 : vector<4x256xf32> to vector<1x4x256xf32>
    %cst_806 = arith.constant dense<0.000000e+00> : vector<1xf32>
    %777 = vector.multi_reduction <add>, %776, %cst_806 [1, 2] : vector<1x4x256xf32> to vector<1xf32>
    %778 = vector.shape_cast %777 : vector<1xf32> to vector<1x1x1xf32>
    %779 = vector.extract %778[0, 0, 0] : f32 from vector<1x1x1xf32>
    %780 = vector.broadcast %779 : f32 to vector<1x1xf32>
    %781 = arith.addf %780, %773 : vector<1x1xf32>
    %c0_807 = arith.constant 0 : index
    %c0_808 = arith.constant 0 : index
    %782 = vector.load %arg6[%c0_807, %c0_808] : memref<4x1xf32, #tpu.memory_space<vmem>>, vector<1x1xf32>
    tpu.vector_store %arg6[%c0_807, %c0_808], %781 {strides = array<i32>} : memref<4x1xf32, #tpu.memory_space<vmem>>, vector<1x1xf32>,
    %783 = vector.extract_strided_slice %771 {offsets = [4, 0], sizes = [4, 256], strides = [1, 1]} : vector<16x256xf32> to vector<4x256xf32>
    %784 = arith.mulf %783, %772 : vector<4x256xf32>
    %785 = vector.shape_cast %784 : vector<4x256xf32> to vector<1x4x256xf32>
    %cst_809 = arith.constant dense<0.000000e+00> : vector<1xf32>
    %786 = vector.multi_reduction <add>, %785, %cst_809 [1, 2] : vector<1x4x256xf32> to vector<1xf32>
    %787 = vector.shape_cast %786 : vector<1xf32> to vector<1x1x1xf32>
    %788 = vector.extract %787[0, 0, 0] : f32 from vector<1x1x1xf32>
    %789 = vector.broadcast %788 : f32 to vector<1x1xf32>
    %790 = arith.addf %789, %773 : vector<1x1xf32>
    %c1_810 = arith.constant 1 : index
    %c0_811 = arith.constant 0 : index
    %791 = vector.load %arg6[%c1_810, %c0_811] : memref<4x1xf32, #tpu.memory_space<vmem>>, vector<1x1xf32>
    tpu.vector_store %arg6[%c1_810, %c0_811], %790 {strides = array<i32>} : memref<4x1xf32, #tpu.memory_space<vmem>>, vector<1x1xf32>,
    %792 = vector.extract_strided_slice %771 {offsets = [8, 0], sizes = [4, 256], strides = [1, 1]} : vector<16x256xf32> to vector<4x256xf32>
    %793 = arith.mulf %792, %772 : vector<4x256xf32>
    %794 = vector.shape_cast %793 : vector<4x256xf32> to vector<1x4x256xf32>
    %cst_812 = arith.constant dense<0.000000e+00> : vector<1xf32>
    %795 = vector.multi_reduction <add>, %794, %cst_812 [1, 2] : vector<1x4x256xf32> to vector<1xf32>
    %796 = vector.shape_cast %795 : vector<1xf32> to vector<1x1x1xf32>
    %797 = vector.extract %796[0, 0, 0] : f32 from vector<1x1x1xf32>
    %798 = vector.broadcast %797 : f32 to vector<1x1xf32>
    %799 = arith.addf %798, %773 : vector<1x1xf32>
    %c2_813 = arith.constant 2 : index
    %c0_814 = arith.constant 0 : index
    %800 = vector.load %arg6[%c2_813, %c0_814] : memref<4x1xf32, #tpu.memory_space<vmem>>, vector<1x1xf32>
    tpu.vector_store %arg6[%c2_813, %c0_814], %799 {strides = array<i32>} : memref<4x1xf32, #tpu.memory_space<vmem>>, vector<1x1xf32>,
    %801 = vector.extract_strided_slice %771 {offsets = [12, 0], sizes = [4, 256], strides = [1, 1]} : vector<16x256xf32> to vector<4x256xf32>
    %802 = arith.mulf %801, %772 : vector<4x256xf32>
    %803 = vector.shape_cast %802 : vector<4x256xf32> to vector<1x4x256xf32>
    %cst_815 = arith.constant dense<0.000000e+00> : vector<1xf32>
    %804 = vector.multi_reduction <add>, %803, %cst_815 [1, 2] : vector<1x4x256xf32> to vector<1xf32>
    %805 = vector.shape_cast %804 : vector<1xf32> to vector<1x1x1xf32>
    %806 = vector.extract %805[0, 0, 0] : f32 from vector<1x1x1xf32>
    %807 = vector.broadcast %806 : f32 to vector<1x1xf32>
    %808 = arith.addf %807, %773 : vector<1x1xf32>
    %c3_816 = arith.constant 3 : index
    %c0_817 = arith.constant 0 : index
    %809 = vector.load %arg6[%c3_816, %c0_817] : memref<4x1xf32, #tpu.memory_space<vmem>>, vector<1x1xf32>
    tpu.vector_store %arg6[%c3_816, %c0_817], %808 {strides = array<i32>} : memref<4x1xf32, #tpu.memory_space<vmem>>, vector<1x1xf32>,
    return
  }
}

</mosaic_0001>

<bundles_post_ra>
// kernel: tcgan_discriminator_forward.1
= control target key start
LH: loop header
LB: loop body
LE: loop exit
PB: predicated region body
PF: predicated region fallthrough
CT: control target
= control target key end

     0   :  { %s10425_s0 = inlined_call_operand.vmem [shape: f32[128,60], index: 0, kind: input, shape index: {}]   ;;  %s10426_s1 = inlined_call_operand.vmem [shape: f32[60,32], index: 1, kind: input, shape index: {}]   ;;  %s10427_s2 = inlined_call_operand.vmem [shape: f32[10,32,64], index: 2, kind: input, shape index: {}]   ;;  %s10428_s3 = inlined_call_operand.vmem [shape: f32[10,64,128], index: 3, kind: input, shape index: {}]   ;;  %s10429_s4 = inlined_call_operand.vmem [shape: f32[16,256], index: 4, kind: input, shape index: {}]   ;;  %s10430_s5 = inlined_call_operand.vmem [shape: f32[10,128,256], index: 5, kind: input, shape index: {}]   ;;  %s10431_s6 = inlined_call_operand.vmem [shape: f32[4,1], index: 6, kind: output, shape index: {}]  }
   0x1   :  { %v7348_v0 = vld [vmem:[%s10430_s5] sm:$0xff]  ;;  %v7353_v1 = vld [vmem:[%s10430_s5 + $0x8] sm:$0xff]  ;;  %v7358_v2 = vld [vmem:[%s10430_s5 + $0x10] sm:$0xff] }
   0x2   :  { %10434 = vst [vmem:[#allocation10_spill] sm:$0xff] %v7348_v0  ;;  %10435 = vst [vmem:[#allocation11_spill] sm:$0xff] %v7353_v1  ;;  %v7363_v3 = vld [vmem:[%s10430_s5 + $0x18] sm:$0xff]  ;;  %v7368_v4 = vld [vmem:[%s10430_s5 + $0x20] sm:$0xff] }
   0x3   :  { %10436 = vst [vmem:[#allocation12_spill] sm:$0xff] %v7358_v2  ;;  %10437 = vst [vmem:[#allocation13_spill] sm:$0xff] %v7363_v3  ;;  %v7373_v5 = vld [vmem:[%s10430_s5 + $0x28] sm:$0xff]  ;;  %v7378_v6 = vld [vmem:[%s10430_s5 + $0x30] sm:$0xff] }
   0x4   :  { %10438 = vst [vmem:[#allocation14_spill] sm:$0xff] %v7368_v4  ;;  %10439 = vst [vmem:[#allocation15_spill] sm:$0xff] %v7373_v5  ;;  %v7383_v7 = vld [vmem:[%s10430_s5 + $0x38] sm:$0xff]  ;;  %v7388_v8 = vld [vmem:[%s10430_s5 + $0x40] sm:$0xff] }
   0x5   :  { %10440 = vst [vmem:[#allocation16_spill] sm:$0xff] %v7378_v6  ;;  %10441 = vst [vmem:[#allocation17_spill] sm:$0xff] %v7383_v7  ;;  %v7393_v9 = vld [vmem:[%s10430_s5 + $0x48] sm:$0xff]  ;;  %v7398_v10 = vld [vmem:[%s10430_s5 + $0x50] sm:$0xff] }
   0x6   :  { %10442 = vst [vmem:[#allocation18_spill] sm:$0xff] %v7388_v8  ;;  %10443 = vst [vmem:[#allocation19_spill] sm:$0xff] %v7393_v9  ;;  %v7403_v11 = vld [vmem:[%s10430_s5 + $0x58] sm:$0xff]  ;;  %v7408_v12 = vld [vmem:[%s10430_s5 + $0x60] sm:$0xff] }
   0x7   :  { %10444 = vst [vmem:[#allocation20_spill] sm:$0xff] %v7398_v10  ;;  %10445 = vst [vmem:[#allocation21_spill] sm:$0xff] %v7403_v11  ;;  %v7413_v13 = vld [vmem:[%s10430_s5 + $0x68] sm:$0xff]  ;;  %v7418_v14 = vld [vmem:[%s10430_s5 + $0x70] sm:$0xff] }
   0x8   :  { %10446 = vst [vmem:[#allocation22_spill] sm:$0xff] %v7408_v12  ;;  %10447 = vst [vmem:[#allocation23_spill] sm:$0xff] %v7413_v13  ;;  %v7423_v15 = vld [vmem:[%s10430_s5 + $0x78] sm:$0xff]  ;;  %v7428_v16 = vld [vmem:[%s10430_s5 + $0x80] sm:$0xff] }
   0x9   :  { %10448 = vst [vmem:[#allocation24_spill] sm:$0xff] %v7418_v14  ;;  %10449 = vst [vmem:[#allocation25_spill] sm:$0xff] %v7423_v15  ;;  %v7433_v17 = vld [vmem:[%s10430_s5 + $0x88] sm:$0xff]  ;;  %v7438_v18 = vld [vmem:[%s10430_s5 + $0x90] sm:$0xff] }
   0xa   :  { %10450 = vst [vmem:[#allocation26_spill] sm:$0xff] %v7428_v16  ;;  %10451 = vst [vmem:[#allocation27_spill] sm:$0xff] %v7433_v17  ;;  %v7443_v19 = vld [vmem:[%s10430_s5 + $0x98] sm:$0xff]  ;;  %v7448_v20 = vld [vmem:[%s10430_s5 + $0xa0] sm:$0xff] }
   0xb   :  { %10452 = vst [vmem:[#allocation28_spill] sm:$0xff] %v7438_v18  ;;  %10453 = vst [vmem:[#allocation29_spill] sm:$0xff] %v7443_v19  ;;  %v7453_v21 = vld [vmem:[%s10430_s5 + $0xa8] sm:$0xff]  ;;  %v7458_v22 = vld [vmem:[%s10430_s5 + $0xb0] sm:$0xff] }
   0xc   :  { %10454 = vst [vmem:[#allocation30_spill] sm:$0xff] %v7448_v20  ;;  %10455 = vst [vmem:[#allocation31_spill] sm:$0xff] %v7453_v21  ;;  %v7463_v23 = vld [vmem:[%s10430_s5 + $0xb8] sm:$0xff]  ;;  %v7468_v24 = vld [vmem:[%s10430_s5 + $0xc0] sm:$0xff] }
   0xd   :  { %10456 = vst [vmem:[#allocation32_spill] sm:$0xff] %v7458_v22  ;;  %10457 = vst [vmem:[#allocation33_spill] sm:$0xff] %v7463_v23  ;;  %v7473_v25 = vld [vmem:[%s10430_s5 + $0xc8] sm:$0xff]  ;;  %v7478_v26 = vld [vmem:[%s10430_s5 + $0xd0] sm:$0xff] }
   0xe   :  { %10458 = vst [vmem:[#allocation34_spill] sm:$0xff] %v7468_v24  ;;  %10459 = vst [vmem:[#allocation35_spill] sm:$0xff] %v7473_v25  ;;  %v7483_v27 = vld [vmem:[%s10430_s5 + $0xd8] sm:$0xff]  ;;  %v7488_v28 = vld [vmem:[%s10430_s5 + $0xe0] sm:$0xff] }
   0xf   :  { %10460 = vst [vmem:[#allocation36_spill] sm:$0xff] %v7478_v26  ;;  %10461 = vst [vmem:[#allocation37_spill] sm:$0xff] %v7483_v27  ;;  %v7493_v29 = vld [vmem:[%s10430_s5 + $0xe8] sm:$0xff]  ;;  %v7498_v30 = vld [vmem:[%s10430_s5 + $0xf0] sm:$0xff] }
  0x10   :  { %10462 = vst [vmem:[#allocation38_spill] sm:$0xff] %v7488_v28  ;;  %10463 = vst [vmem:[#allocation39_spill] sm:$0xff] %v7493_v29  ;;  %v7503_v31 = vld [vmem:[%s10430_s5 + $0xf8] sm:$0xff]  ;;  %v7508_v32 = vld [vmem:[%s10430_s5 + $0x100] sm:$0xff] }
  0x11   :  { %10464 = vst [vmem:[#allocation40_spill] sm:$0xff] %v7498_v30  ;;  %10465 = vst [vmem:[#allocation41_spill] sm:$0xff] %v7503_v31  ;;  %v7513_v33 = vld [vmem:[%s10430_s5 + $0x108] sm:$0xff]  ;;  %v7518_v34 = vld [vmem:[%s10430_s5 + $0x110] sm:$0xff] }
  0x12   :  { %10466 = vst [vmem:[#allocation42_spill] sm:$0xff] %v7508_v32  ;;  %10467 = vst [vmem:[#allocation43_spill] sm:$0xff] %v7513_v33  ;;  %v7523_v35 = vld [vmem:[%s10430_s5 + $0x118] sm:$0xff]  ;;  %v7528_v36 = vld [vmem:[%s10430_s5 + $0x120] sm:$0xff] }
  0x13   :  { %10468 = vst [vmem:[#allocation44_spill] sm:$0xff] %v7518_v34  ;;  %10469 = vst [vmem:[#allocation45_spill] sm:$0xff] %v7523_v35  ;;  %v7533_v37 = vld [vmem:[%s10430_s5 + $0x128] sm:$0xff]  ;;  %v7538_v38 = vld [vmem:[%s10430_s5 + $0x130] sm:$0xff] }
  0x14   :  { %10470 = vst [vmem:[#allocation46_spill] sm:$0xff] %v7528_v36  ;;  %10471 = vst [vmem:[#allocation47_spill] sm:$0xff] %v7533_v37  ;;  %v7543_v39 = vld [vmem:[%s10430_s5 + $0x138] sm:$0xff]  ;;  %v7548_v40 = vld [vmem:[%s10430_s5 + $0x140] sm:$0xff] }
  0x15   :  { %10472 = vst [vmem:[#allocation48_spill] sm:$0xff] %v7538_v38  ;;  %10473 = vst [vmem:[#allocation49_spill] sm:$0xff] %v7543_v39  ;;  %v7553_v41 = vld [vmem:[%s10430_s5 + $0x148] sm:$0xff]  ;;  %v7558_v42 = vld [vmem:[%s10430_s5 + $0x150] sm:$0xff] }
  0x16   :  { %10474 = vst [vmem:[#allocation50_spill] sm:$0xff] %v7548_v40  ;;  %10475 = vst [vmem:[#allocation51_spill] sm:$0xff] %v7553_v41  ;;  %v7563_v43 = vld [vmem:[%s10430_s5 + $0x158] sm:$0xff]  ;;  %v7568_v44 = vld [vmem:[%s10430_s5 + $0x160] sm:$0xff] }
  0x17   :  { %10476 = vst [vmem:[#allocation52_spill] sm:$0xff] %v7558_v42  ;;  %10477 = vst [vmem:[#allocation53_spill] sm:$0xff] %v7563_v43  ;;  %v7573_v45 = vld [vmem:[%s10430_s5 + $0x168] sm:$0xff]  ;;  %v7578_v46 = vld [vmem:[%s10430_s5 + $0x170] sm:$0xff] }
  0x18   :  { %10478 = vst [vmem:[#allocation54_spill] sm:$0xff] %v7568_v44  ;;  %10479 = vst [vmem:[#allocation55_spill] sm:$0xff] %v7573_v45  ;;  %v7583_v47 = vld [vmem:[%s10430_s5 + $0x178] sm:$0xff]  ;;  %v7588_v48 = vld [vmem:[%s10430_s5 + $0x180] sm:$0xff] }
  0x19   :  { %10480 = vst [vmem:[#allocation56_spill] sm:$0xff] %v7578_v46  ;;  %10481 = vst [vmem:[#allocation57_spill] sm:$0xff] %v7583_v47  ;;  %v7593_v49 = vld [vmem:[%s10430_s5 + $0x188] sm:$0xff]  ;;  %v7598_v50 = vld [vmem:[%s10430_s5 + $0x190] sm:$0xff] }
  0x1a   :  { %10482 = vst [vmem:[#allocation58_spill] sm:$0xff] %v7588_v48  ;;  %10483 = vst [vmem:[#allocation59_spill] sm:$0xff] %v7593_v49  ;;  %v7603_v51 = vld [vmem:[%s10430_s5 + $0x198] sm:$0xff]  ;;  %v7608_v52 = vld [vmem:[%s10430_s5 + $0x1a0] sm:$0xff] }
  0x1b   :  { %10484 = vst [vmem:[#allocation60_spill] sm:$0xff] %v7598_v50  ;;  %10485 = vst [vmem:[#allocation61_spill] sm:$0xff] %v7603_v51  ;;  %v7613_v53 = vld [vmem:[%s10430_s5 + $0x1a8] sm:$0xff]  ;;  %v7618_v54 = vld [vmem:[%s10430_s5 + $0x1b0] sm:$0xff] }
  0x1c   :  { %10486 = vst [vmem:[#allocation62_spill] sm:$0xff] %v7608_v52  ;;  %10487 = vst [vmem:[#allocation63_spill] sm:$0xff] %v7613_v53  ;;  %v7623_v55 = vld [vmem:[%s10430_s5 + $0x1b8] sm:$0xff]  ;;  %v7628_v56 = vld [vmem:[%s10430_s5 + $0x1c0] sm:$0xff] }
  0x1d   :  { %10488 = vst [vmem:[#allocation64_spill] sm:$0xff] %v7618_v54  ;;  %10489 = vst [vmem:[#allocation65_spill] sm:$0xff] %v7623_v55  ;;  %v7633_v57 = vld [vmem:[%s10430_s5 + $0x1c8] sm:$0xff]  ;;  %v7638_v58 = vld [vmem:[%s10430_s5 + $0x1d0] sm:$0xff] }
  0x1e   :  { %10490 = vst [vmem:[#allocation66_spill] sm:$0xff] %v7628_v56  ;;  %10491 = vst [vmem:[#allocation67_spill] sm:$0xff] %v7633_v57  ;;  %v7643_v59 = vld [vmem:[%s10430_s5 + $0x1d8] sm:$0xff]  ;;  %v7648_v60 = vld [vmem:[%s10430_s5 + $0x1e0] sm:$0xff] }
  0x1f   :  { %10492 = vst [vmem:[#allocation68_spill] sm:$0xff] %v7638_v58  ;;  %10493 = vst [vmem:[#allocation69_spill] sm:$0xff] %v7643_v59  ;;  %v7653_v61 = vld [vmem:[%s10430_s5 + $0x1e8] sm:$0xff]  ;;  %v7658_v62 = vld [vmem:[%s10430_s5 + $0x1f0] sm:$0xff] }
  0x20   :  { %10494 = vst [vmem:[#allocation70_spill] sm:$0xff] %v7648_v60  ;;  %10495 = vst [vmem:[#allocation71_spill] sm:$0xff] %v7653_v61  ;;  %v7663_v63 = vld [vmem:[%s10430_s5 + $0x1f8] sm:$0xff]  ;;  %v7668_v58 = vld [vmem:[%s10430_s5 + $0x200] sm:$0xff] }
  0x21   :  { %10496 = vst [vmem:[#allocation72_spill] sm:$0xff] %v7658_v62  ;;  %10497 = vst [vmem:[#allocation73_spill] sm:$0xff] %v7663_v63  ;;  %v7673_v60 = vld [vmem:[%s10430_s5 + $0x208] sm:$0xff]  ;;  %v7678_v61 = vld [vmem:[%s10430_s5 + $0x210] sm:$0xff] }
  0x22   :  { %v7683_v62 = vld [vmem:[%s10430_s5 + $0x218] sm:$0xff]  ;;  %v7688_v63 = vld [vmem:[%s10430_s5 + $0x220] sm:$0xff]  ;;  %v7693_v56 = vld [vmem:[%s10430_s5 + $0x228] sm:$0xff] }
  0x23   :  { %v7698_v59 = vld [vmem:[%s10430_s5 + $0x230] sm:$0xff]  ;;  %v7703_v57 = vld [vmem:[%s10430_s5 + $0x238] sm:$0xff]  ;;  %v7708_v54 = vld [vmem:[%s10430_s5 + $0x240] sm:$0xff] }
  0x24   :  { %10498 = vst [vmem:[#allocation74_spill] sm:$0xff] %v7708_v54  ;;  %v7713_v52 = vld [vmem:[%s10430_s5 + $0x248] sm:$0xff]  ;;  %v7718_v55 = vld [vmem:[%s10430_s5 + $0x250] sm:$0xff]  ;;  %v7723_v53 = vld [vmem:[%s10430_s5 + $0x258] sm:$0xff] }
  0x25   :  { %10499 = vst [vmem:[#allocation75_spill] sm:$0xff] %v7718_v55  ;;  %v7728_v50 = vld [vmem:[%s10430_s5 + $0x260] sm:$0xff]  ;;  %v7733_v48 = vld [vmem:[%s10430_s5 + $0x268] sm:$0xff]  ;;  %v7738_v51 = vld [vmem:[%s10430_s5 + $0x270] sm:$0xff] }
  0x26   :  { %10500 = vst [vmem:[#allocation76_spill] sm:$0xff] %v7728_v50  ;;  %10501 = vst [vmem:[#allocation77_spill] sm:$0xff] %v7733_v48  ;;  %v7743_v49 = vld [vmem:[%s10430_s5 + $0x278] sm:$0xff]  ;;  %v7748_v46 = vld [vmem:[%s10430_s5 + $0x280] sm:$0xff] }
  0x27   :  { %10502 = vst [vmem:[#allocation78_spill] sm:$0xff] %v7738_v51  ;;  %10503 = vst [vmem:[#allocation79_spill] sm:$0xff] %v7743_v49  ;;  %v7753_v44 = vld [vmem:[%s10430_s5 + $0x288] sm:$0xff]  ;;  %v7758_v47 = vld [vmem:[%s10430_s5 + $0x290] sm:$0xff] }
  0x28   :  { %10504 = vst [vmem:[#allocation80_spill] sm:$0xff] %v7748_v46  ;;  %10505 = vst [vmem:[#allocation81_spill] sm:$0xff] %v7753_v44  ;;  %v7763_v45 = vld [vmem:[%s10430_s5 + $0x298] sm:$0xff]  ;;  %v7768_v42 = vld [vmem:[%s10430_s5 + $0x2a0] sm:$0xff] }
  0x29   :  { %10506 = vst [vmem:[#allocation82_spill] sm:$0xff] %v7758_v47  ;;  %10507 = vst [vmem:[#allocation83_spill] sm:$0xff] %v7763_v45  ;;  %v7773_v40 = vld [vmem:[%s10430_s5 + $0x2a8] sm:$0xff]  ;;  %v7778_v43 = vld [vmem:[%s10430_s5 + $0x2b0] sm:$0xff] }
  0x2a   :  { %10508 = vst [vmem:[#allocation84_spill] sm:$0xff] %v7768_v42  ;;  %10509 = vst [vmem:[#allocation85_spill] sm:$0xff] %v7773_v40  ;;  %v7783_v41 = vld [vmem:[%s10430_s5 + $0x2b8] sm:$0xff]  ;;  %v7788_v38 = vld [vmem:[%s10430_s5 + $0x2c0] sm:$0xff] }
  0x2b   :  { %10510 = vst [vmem:[#allocation86_spill] sm:$0xff] %v7778_v43  ;;  %10511 = vst [vmem:[#allocation87_spill] sm:$0xff] %v7783_v41  ;;  %v7793_v36 = vld [vmem:[%s10430_s5 + $0x2c8] sm:$0xff]  ;;  %v7798_v39 = vld [vmem:[%s10430_s5 + $0x2d0] sm:$0xff] }
  0x2c   :  { %10512 = vst [vmem:[#allocation88_spill] sm:$0xff] %v7788_v38  ;;  %10513 = vst [vmem:[#allocation89_spill] sm:$0xff] %v7793_v36  ;;  %v7803_v37 = vld [vmem:[%s10430_s5 + $0x2d8] sm:$0xff]  ;;  %v7808_v34 = vld [vmem:[%s10430_s5 + $0x2e0] sm:$0xff] }
  0x2d   :  { %10514 = vst [vmem:[#allocation90_spill] sm:$0xff] %v7798_v39  ;;  %10515 = vst [vmem:[#allocation91_spill] sm:$0xff] %v7803_v37  ;;  %v7813_v32 = vld [vmem:[%s10430_s5 + $0x2e8] sm:$0xff]  ;;  %v7818_v35 = vld [vmem:[%s10430_s5 + $0x2f0] sm:$0xff] }
  0x2e   :  { %10516 = vst [vmem:[#allocation92_spill] sm:$0xff] %v7808_v34  ;;  %10517 = vst [vmem:[#allocation93_spill] sm:$0xff] %v7813_v32  ;;  %v7823_v33 = vld [vmem:[%s10430_s5 + $0x2f8] sm:$0xff]  ;;  %v7828_v30 = vld [vmem:[%s10430_s5 + $0x300] sm:$0xff] }
  0x2f   :  { %10518 = vst [vmem:[#allocation94_spill] sm:$0xff] %v7818_v35  ;;  %10519 = vst [vmem:[#allocation95_spill] sm:$0xff] %v7823_v33  ;;  %v7833_v28 = vld [vmem:[%s10430_s5 + $0x308] sm:$0xff]  ;;  %v7838_v31 = vld [vmem:[%s10430_s5 + $0x310] sm:$0xff] }
  0x30   :  { %10520 = vst [vmem:[#allocation96_spill] sm:$0xff] %v7828_v30  ;;  %10521 = vst [vmem:[#allocation97_spill] sm:$0xff] %v7833_v28  ;;  %v7843_v29 = vld [vmem:[%s10430_s5 + $0x318] sm:$0xff]  ;;  %v7848_v26 = vld [vmem:[%s10430_s5 + $0x320] sm:$0xff] }
  0x31   :  { %10522 = vst [vmem:[#allocation98_spill] sm:$0xff] %v7838_v31  ;;  %10523 = vst [vmem:[#allocation99_spill] sm:$0xff] %v7843_v29  ;;  %v7853_v30 = vld [vmem:[%s10430_s5 + $0x328] sm:$0xff]  ;;  %v7858_v28 = vld [vmem:[%s10430_s5 + $0x330] sm:$0xff] }
  0x32   :  { %10524 = vst [vmem:[#allocation100_spill] sm:$0xff] %v7848_v26  ;;  %10525 = vst [vmem:[#allocation101_spill] sm:$0xff] %v7853_v30  ;;  %v7863_v31 = vld [vmem:[%s10430_s5 + $0x338] sm:$0xff]  ;;  %v7868_v29 = vld [vmem:[%s10430_s5 + $0x340] sm:$0xff] }
  0x33   :  { %10526 = vst [vmem:[#allocation102_spill] sm:$0xff] %v7858_v28  ;;  %10527 = vst [vmem:[#allocation103_spill] sm:$0xff] %v7863_v31  ;;  %v7873_v26 = vld [vmem:[%s10430_s5 + $0x348] sm:$0xff]  ;;  %v7878_v30 = vld [vmem:[%s10430_s5 + $0x350] sm:$0xff] }
  0x34   :  { %10528 = vst [vmem:[#allocation104_spill] sm:$0xff] %v7868_v29  ;;  %10529 = vst [vmem:[#allocation105_spill] sm:$0xff] %v7873_v26  ;;  %v7883_v28 = vld [vmem:[%s10430_s5 + $0x358] sm:$0xff]  ;;  %v7888_v31 = vld [vmem:[%s10430_s5 + $0x360] sm:$0xff] }
  0x35   :  { %10530 = vst [vmem:[#allocation106_spill] sm:$0xff] %v7878_v30  ;;  %10531 = vst [vmem:[#allocation107_spill] sm:$0xff] %v7883_v28  ;;  %v7893_v29 = vld [vmem:[%s10430_s5 + $0x368] sm:$0xff]  ;;  %v7898_v26 = vld [vmem:[%s10430_s5 + $0x370] sm:$0xff] }
  0x36   :  { %10532 = vst [vmem:[#allocation108_spill] sm:$0xff] %v7888_v31  ;;  %10533 = vst [vmem:[#allocation109_spill] sm:$0xff] %v7893_v29  ;;  %v7903_v30 = vld [vmem:[%s10430_s5 + $0x378] sm:$0xff]  ;;  %v7908_v28 = vld [vmem:[%s10430_s5 + $0x380] sm:$0xff] }
  0x37   :  { %10534 = vst [vmem:[#allocation110_spill] sm:$0xff] %v7898_v26  ;;  %10535 = vst [vmem:[#allocation111_spill] sm:$0xff] %v7903_v30  ;;  %v7913_v31 = vld [vmem:[%s10430_s5 + $0x388] sm:$0xff]  ;;  %v7918_v29 = vld [vmem:[%s10430_s5 + $0x390] sm:$0xff] }
  0x38   :  { %10536 = vst [vmem:[#allocation112_spill] sm:$0xff] %v7908_v28  ;;  %10537 = vst [vmem:[#allocation113_spill] sm:$0xff] %v7913_v31  ;;  %v7923_v26 = vld [vmem:[%s10430_s5 + $0x398] sm:$0xff]  ;;  %v7928_v30 = vld [vmem:[%s10430_s5 + $0x3a0] sm:$0xff] }
  0x39   :  { %10538 = vst [vmem:[#allocation114_spill] sm:$0xff] %v7918_v29  ;;  %10539 = vst [vmem:[#allocation115_spill] sm:$0xff] %v7923_v26  ;;  %v7933_v28 = vld [vmem:[%s10430_s5 + $0x3a8] sm:$0xff]  ;;  %v7938_v31 = vld [vmem:[%s10430_s5 + $0x3b0] sm:$0xff] }
  0x3a   :  { %10540 = vst [vmem:[#allocation116_spill] sm:$0xff] %v7928_v30  ;;  %10541 = vst [vmem:[#allocation117_spill] sm:$0xff] %v7933_v28  ;;  %v7943_v29 = vld [vmem:[%s10430_s5 + $0x3b8] sm:$0xff]  ;;  %v7948_v26 = vld [vmem:[%s10430_s5 + $0x3c0] sm:$0xff] }
  0x3b   :  { %10542 = vst [vmem:[#allocation118_spill] sm:$0xff] %v7938_v31  ;;  %10543 = vst [vmem:[#allocation119_spill] sm:$0xff] %v7943_v29  ;;  %v7953_v30 = vld [vmem:[%s10430_s5 + $0x3c8] sm:$0xff]  ;;  %v7958_v28 = vld [vmem:[%s10430_s5 + $0x3d0] sm:$0xff] }
  0x3c   :  { %10544 = vst [vmem:[#allocation120_spill] sm:$0xff] %v7948_v26  ;;  %10545 = vst [vmem:[#allocation121_spill] sm:$0xff] %v7953_v30  ;;  %v7963_v31 = vld [vmem:[%s10430_s5 + $0x3d8] sm:$0xff]  ;;  %v7968_v29 = vld [vmem:[%s10430_s5 + $0x3e0] sm:$0xff] }
  0x3d   :  { %10546 = vst [vmem:[#allocation122_spill] sm:$0xff] %v7958_v28  ;;  %10547 = vst [vmem:[#allocation123_spill] sm:$0xff] %v7963_v31  ;;  %v7973_v26 = vld [vmem:[%s10430_s5 + $0x3e8] sm:$0xff]  ;;  %v7978_v30 = vld [vmem:[%s10430_s5 + $0x3f0] sm:$0xff] }
  0x3e   :  { %10548 = vst [vmem:[#allocation124_spill] sm:$0xff] %v7968_v29  ;;  %10549 = vst [vmem:[#allocation125_spill] sm:$0xff] %v7973_v26  ;;  %v7983_v28 = vld [vmem:[%s10430_s5 + $0x3f8] sm:$0xff]  ;;  %v7988_v31 = vld [vmem:[%s10430_s5 + $0x400] sm:$0xff] }
  0x3f   :  { %10550 = vst [vmem:[#allocation126_spill] sm:$0xff] %v7978_v30  ;;  %10551 = vst [vmem:[#allocation127_spill] sm:$0xff] %v7983_v28  ;;  %v7993_v29 = vld [vmem:[%s10430_s5 + $0x408] sm:$0xff]  ;;  %v7998_v26 = vld [vmem:[%s10430_s5 + $0x410] sm:$0xff] }
  0x40   :  { %v8003_v30 = vld [vmem:[%s10430_s5 + $0x418] sm:$0xff]  ;;  %v8008_v28 = vld [vmem:[%s10430_s5 + $0x420] sm:$0xff]  ;;  %v8013_v24 = vld [vmem:[%s10430_s5 + $0x428] sm:$0xff] }
  0x41   :  { %v8018_v27 = vld [vmem:[%s10430_s5 + $0x430] sm:$0xff]  ;;  %v8023_v25 = vld [vmem:[%s10430_s5 + $0x438] sm:$0xff]  ;;  %v8028_v22 = vld [vmem:[%s10430_s5 + $0x440] sm:$0xff] }
  0x42   :  { %10552 = vst [vmem:[#allocation128_spill] sm:$0xff] %v8028_v22  ;;  %v8033_v20 = vld [vmem:[%s10430_s5 + $0x448] sm:$0xff]  ;;  %v8038_v23 = vld [vmem:[%s10430_s5 + $0x450] sm:$0xff]  ;;  %v8043_v21 = vld [vmem:[%s10430_s5 + $0x458] sm:$0xff] }
  0x43   :  { %10553 = vst [vmem:[#allocation129_spill] sm:$0xff] %v8033_v20  ;;  %10554 = vst [vmem:[#allocation130_spill] sm:$0xff] %v8038_v23  ;;  %v8048_v18 = vld [vmem:[%s10430_s5 + $0x460] sm:$0xff]  ;;  %v8053_v16 = vld [vmem:[%s10430_s5 + $0x468] sm:$0xff] }
  0x44   :  { %10555 = vst [vmem:[#allocation131_spill] sm:$0xff] %v8043_v21  ;;  %10556 = vst [vmem:[#allocation132_spill] sm:$0xff] %v8048_v18  ;;  %v8058_v19 = vld [vmem:[%s10430_s5 + $0x470] sm:$0xff]  ;;  %v8063_v17 = vld [vmem:[%s10430_s5 + $0x478] sm:$0xff] }
  0x45   :  { %10557 = vst [vmem:[#allocation133_spill] sm:$0xff] %v8053_v16  ;;  %10558 = vst [vmem:[#allocation134_spill] sm:$0xff] %v8058_v19  ;;  %v8068_v14 = vld [vmem:[%s10430_s5 + $0x480] sm:$0xff]  ;;  %v8073_v12 = vld [vmem:[%s10430_s5 + $0x488] sm:$0xff] }
  0x46   :  { %10559 = vst [vmem:[#allocation135_spill] sm:$0xff] %v8063_v17  ;;  %10560 = vst [vmem:[#allocation136_spill] sm:$0xff] %v8068_v14  ;;  %v8078_v15 = vld [vmem:[%s10430_s5 + $0x490] sm:$0xff]  ;;  %v8083_v13 = vld [vmem:[%s10430_s5 + $0x498] sm:$0xff] }
  0x47   :  { %10561 = vst [vmem:[#allocation137_spill] sm:$0xff] %v8073_v12  ;;  %10562 = vst [vmem:[#allocation138_spill] sm:$0xff] %v8078_v15  ;;  %v8088_v10 = vld [vmem:[%s10430_s5 + $0x4a0] sm:$0xff]  ;;  %v8093_v8 = vld [vmem:[%s10430_s5 + $0x4a8] sm:$0xff] }
  0x48   :  { %10563 = vst [vmem:[#allocation139_spill] sm:$0xff] %v8083_v13  ;;  %10564 = vst [vmem:[#allocation140_spill] sm:$0xff] %v8088_v10  ;;  %v8098_v11 = vld [vmem:[%s10430_s5 + $0x4b0] sm:$0xff]  ;;  %v8103_v9 = vld [vmem:[%s10430_s5 + $0x4b8] sm:$0xff] }
  0x49   :  { %10565 = vst [vmem:[#allocation141_spill] sm:$0xff] %v8093_v8  ;;  %10566 = vst [vmem:[#allocation142_spill] sm:$0xff] %v8098_v11  ;;  %v8108_v6 = vld [vmem:[%s10430_s5 + $0x4c0] sm:$0xff]  ;;  %v8113_v4 = vld [vmem:[%s10430_s5 + $0x4c8] sm:$0xff] }
  0x4a   :  { %10567 = vst [vmem:[#allocation143_spill] sm:$0xff] %v8103_v9  ;;  %10568 = vst [vmem:[#allocation144_spill] sm:$0xff] %v8108_v6  ;;  %v8118_v7 = vld [vmem:[%s10430_s5 + $0x4d0] sm:$0xff]  ;;  %v8123_v5 = vld [vmem:[%s10430_s5 + $0x4d8] sm:$0xff] }
  0x4b   :  { %10569 = vst [vmem:[#allocation145_spill] sm:$0xff] %v8113_v4  ;;  %10570 = vst [vmem:[#allocation146_spill] sm:$0xff] %v8118_v7  ;;  %v8128_v2 = vld [vmem:[%s10430_s5 + $0x4e0] sm:$0xff]  ;;  %v8133_v0 = vld [vmem:[%s10430_s5 + $0x4e8] sm:$0xff] }
  0x4c   :  { %10571 = vst [vmem:[#allocation147_spill] sm:$0xff] %v8123_v5  ;;  %10572 = vst [vmem:[#allocation148_spill] sm:$0xff] %v8128_v2  ;;  %v8138_v3 = vld [vmem:[%s10430_s5 + $0x4f0] sm:$0xff]  ;;  %v8143_v1 = vld [vmem:[%s10430_s5 + $0x4f8] sm:$0xff] }
  0x4d   :  { %10573 = vst [vmem:[#allocation149_spill] sm:$0xff] %v8133_v0  ;;  %10574 = vst [vmem:[#allocation150_spill] sm:$0xff] %v8138_v3  ;;  %v8148_v35 = vld [vmem:[%s10430_s5 + $0x500] sm:$0xff]  ;;  %v8153_v2 = vld [vmem:[%s10430_s5 + $0x508] sm:$0xff] }
  0x4e   :  { %10575 = vst [vmem:[#allocation151_spill] sm:$0xff] %v8143_v1  ;;  %10576 = vst [vmem:[#allocation152_spill] sm:$0xff] %v8148_v35  ;;  %v8158_v34 = vld [vmem:[%s10430_s5 + $0x510] sm:$0xff]  ;;  %v8163_v3 = vld [vmem:[%s10430_s5 + $0x518] sm:$0xff] }
  0x4f   :  { %10577 = vst [vmem:[#allocation153_spill] sm:$0xff] %v8153_v2  ;;  %10578 = vst [vmem:[#allocation154_spill] sm:$0xff] %v8158_v34  ;;  %v8168_v1 = vld [vmem:[%s10430_s5 + $0x520] sm:$0xff]  ;;  %v8173_v35 = vld [vmem:[%s10430_s5 + $0x528] sm:$0xff] }
  0x50   :  { %10579 = vst [vmem:[#allocation155_spill] sm:$0xff] %v8163_v3  ;;  %10580 = vst [vmem:[#allocation156_spill] sm:$0xff] %v8168_v1  ;;  %v8178_v2 = vld [vmem:[%s10430_s5 + $0x530] sm:$0xff]  ;;  %v8183_v34 = vld [vmem:[%s10430_s5 + $0x538] sm:$0xff] }
  0x51   :  { %10581 = vst [vmem:[#allocation157_spill] sm:$0xff] %v8173_v35  ;;  %10582 = vst [vmem:[#allocation158_spill] sm:$0xff] %v8178_v2  ;;  %v8188_v3 = vld [vmem:[%s10430_s5 + $0x540] sm:$0xff]  ;;  %v8193_v1 = vld [vmem:[%s10430_s5 + $0x548] sm:$0xff] }
  0x52   :  { %10583 = vst [vmem:[#allocation159_spill] sm:$0xff] %v8183_v34  ;;  %10584 = vst [vmem:[#allocation160_spill] sm:$0xff] %v8188_v3  ;;  %v8198_v35 = vld [vmem:[%s10430_s5 + $0x550] sm:$0xff]  ;;  %v8203_v2 = vld [vmem:[%s10430_s5 + $0x558] sm:$0xff] }
  0x53   :  { %10585 = vst [vmem:[#allocation161_spill] sm:$0xff] %v8193_v1  ;;  %10586 = vst [vmem:[#allocation162_spill] sm:$0xff] %v8198_v35  ;;  %v8208_v34 = vld [vmem:[%s10430_s5 + $0x560] sm:$0xff]  ;;  %v8213_v3 = vld [vmem:[%s10430_s5 + $0x568] sm:$0xff] }
  0x54   :  { %10587 = vst [vmem:[#allocation163_spill] sm:$0xff] %v8203_v2  ;;  %10588 = vst [vmem:[#allocation164_spill] sm:$0xff] %v8208_v34  ;;  %v8218_v1 = vld [vmem:[%s10430_s5 + $0x570] sm:$0xff]  ;;  %v8223_v35 = vld [vmem:[%s10430_s5 + $0x578] sm:$0xff] }
  0x55   :  { %10589 = vst [vmem:[#allocation165_spill] sm:$0xff] %v8213_v3  ;;  %10590 = vst [vmem:[#allocation166_spill] sm:$0xff] %v8218_v1  ;;  %v8228_v2 = vld [vmem:[%s10430_s5 + $0x580] sm:$0xff]  ;;  %v8233_v34 = vld [vmem:[%s10430_s5 + $0x588] sm:$0xff] }
  0x56   :  { %10591 = vst [vmem:[#allocation167_spill] sm:$0xff] %v8223_v35  ;;  %10592 = vst [vmem:[#allocation168_spill] sm:$0xff] %v8228_v2  ;;  %v8238_v3 = vld [vmem:[%s10430_s5 + $0x590] sm:$0xff]  ;;  %v8243_v1 = vld [vmem:[%s10430_s5 + $0x598] sm:$0xff] }
  0x57   :  { %10593 = vst [vmem:[#allocation169_spill] sm:$0xff] %v8233_v34  ;;  %10594 = vst [vmem:[#allocation170_spill] sm:$0xff] %v8238_v3  ;;  %v8248_v35 = vld [vmem:[%s10430_s5 + $0x5a0] sm:$0xff]  ;;  %v8253_v2 = vld [vmem:[%s10430_s5 + $0x5a8] sm:$0xff] }
  0x58   :  { %10595 = vst [vmem:[#allocation171_spill] sm:$0xff] %v8243_v1  ;;  %10596 = vst [vmem:[#allocation172_spill] sm:$0xff] %v8248_v35  ;;  %v8258_v34 = vld [vmem:[%s10430_s5 + $0x5b0] sm:$0xff]  ;;  %v8263_v3 = vld [vmem:[%s10430_s5 + $0x5b8] sm:$0xff] }
  0x59   :  { %10597 = vst [vmem:[#allocation173_spill] sm:$0xff] %v8253_v2  ;;  %10598 = vst [vmem:[#allocation174_spill] sm:$0xff] %v8258_v34  ;;  %v8268_v1 = vld [vmem:[%s10430_s5 + $0x5c0] sm:$0xff]  ;;  %v8273_v35 = vld [vmem:[%s10430_s5 + $0x5c8] sm:$0xff] }
  0x5a   :  { %10599 = vst [vmem:[#allocation175_spill] sm:$0xff] %v8263_v3  ;;  %10600 = vst [vmem:[#allocation176_spill] sm:$0xff] %v8268_v1  ;;  %v8278_v2 = vld [vmem:[%s10430_s5 + $0x5d0] sm:$0xff]  ;;  %v8283_v34 = vld [vmem:[%s10430_s5 + $0x5d8] sm:$0xff] }
  0x5b   :  { %10601 = vst [vmem:[#allocation177_spill] sm:$0xff] %v8273_v35  ;;  %10602 = vst [vmem:[#allocation178_spill] sm:$0xff] %v8278_v2  ;;  %v8288_v3 = vld [vmem:[%s10430_s5 + $0x5e0] sm:$0xff]  ;;  %v8293_v1 = vld [vmem:[%s10430_s5 + $0x5e8] sm:$0xff] }
  0x5c   :  { %10603 = vst [vmem:[#allocation179_spill] sm:$0xff] %v8283_v34  ;;  %10604 = vst [vmem:[#allocation180_spill] sm:$0xff] %v8288_v3  ;;  %v8298_v35 = vld [vmem:[%s10430_s5 + $0x5f0] sm:$0xff]  ;;  %v8303_v2 = vld [vmem:[%s10430_s5 + $0x5f8] sm:$0xff] }
  0x5d   :  { %10605 = vst [vmem:[#allocation181_spill] sm:$0xff] %v8293_v1  ;;  %10606 = vst [vmem:[#allocation182_spill] sm:$0xff] %v8298_v35  ;;  %v8308_v34 = vld [vmem:[%s10430_s5 + $0x600] sm:$0xff]  ;;  %v8313_v3 = vld [vmem:[%s10430_s5 + $0x608] sm:$0xff] }
  0x5e   :  { %10607 = vst [vmem:[#allocation183_spill] sm:$0xff] %v8303_v2  ;;  %10608 = vst [vmem:[#allocation184_spill] sm:$0xff] %v8308_v34  ;;  %v8318_v1 = vld [vmem:[%s10430_s5 + $0x610] sm:$0xff]  ;;  %v8323_v35 = vld [vmem:[%s10430_s5 + $0x618] sm:$0xff] }
  0x5f   :  { %10609 = vst [vmem:[#allocation185_spill] sm:$0xff] %v8313_v3  ;;  %10610 = vst [vmem:[#allocation186_spill] sm:$0xff] %v8318_v1  ;;  %v8328_v2 = vld [vmem:[%s10430_s5 + $0x620] sm:$0xff]  ;;  %v8333_v34 = vld [vmem:[%s10430_s5 + $0x628] sm:$0xff] }
  0x60   :  { %10611 = vst [vmem:[#allocation187_spill] sm:$0xff] %v8323_v35  ;;  %10612 = vst [vmem:[#allocation188_spill] sm:$0xff] %v8328_v2  ;;  %v8338_v3 = vld [vmem:[%s10430_s5 + $0x630] sm:$0xff]  ;;  %v8343_v1 = vld [vmem:[%s10430_s5 + $0x638] sm:$0xff] }
  0x61   :  { %10613 = vst [vmem:[#allocation189_spill] sm:$0xff] %v8333_v34  ;;  %10614 = vst [vmem:[#allocation190_spill] sm:$0xff] %v8338_v3  ;;  %v8348_v35 = vld [vmem:[%s10430_s5 + $0x640] sm:$0xff]  ;;  %v8353_v2 = vld [vmem:[%s10430_s5 + $0x648] sm:$0xff] }
  0x62   :  { %10615 = vst [vmem:[#allocation191_spill] sm:$0xff] %v8343_v1  ;;  %10616 = vst [vmem:[#allocation192_spill] sm:$0xff] %v8348_v35  ;;  %v8358_v34 = vld [vmem:[%s10430_s5 + $0x650] sm:$0xff]  ;;  %v8363_v3 = vld [vmem:[%s10430_s5 + $0x658] sm:$0xff] }
  0x63   :  { %10617 = vst [vmem:[#allocation193_spill] sm:$0xff] %v8353_v2  ;;  %10618 = vst [vmem:[#allocation194_spill] sm:$0xff] %v8358_v34  ;;  %v8368_v1 = vld [vmem:[%s10430_s5 + $0x660] sm:$0xff]  ;;  %v8373_v35 = vld [vmem:[%s10430_s5 + $0x668] sm:$0xff] }
  0x64   :  { %10619 = vst [vmem:[#allocation195_spill] sm:$0xff] %v8363_v3  ;;  %10620 = vst [vmem:[#allocation196_spill] sm:$0xff] %v8368_v1  ;;  %v8378_v2 = vld [vmem:[%s10430_s5 + $0x670] sm:$0xff]  ;;  %v8383_v34 = vld [vmem:[%s10430_s5 + $0x678] sm:$0xff] }
  0x65   :  { %10621 = vst [vmem:[#allocation197_spill] sm:$0xff] %v8373_v35  ;;  %10622 = vst [vmem:[#allocation198_spill] sm:$0xff] %v8378_v2  ;;  %v8388_v3 = vld [vmem:[%s10430_s5 + $0x680] sm:$0xff]  ;;  %v8393_v1 = vld [vmem:[%s10430_s5 + $0x688] sm:$0xff] }
  0x66   :  { %10623 = vst [vmem:[#allocation199_spill] sm:$0xff] %v8383_v34  ;;  %10624 = vst [vmem:[#allocation200_spill] sm:$0xff] %v8388_v3  ;;  %v8398_v35 = vld [vmem:[%s10430_s5 + $0x690] sm:$0xff]  ;;  %v8403_v2 = vld [vmem:[%s10430_s5 + $0x698] sm:$0xff] }
  0x67   :  { %10625 = vst [vmem:[#allocation201_spill] sm:$0xff] %v8393_v1  ;;  %10626 = vst [vmem:[#allocation202_spill] sm:$0xff] %v8398_v35  ;;  %v8408_v34 = vld [vmem:[%s10430_s5 + $0x6a0] sm:$0xff]  ;;  %v8413_v3 = vld [vmem:[%s10430_s5 + $0x6a8] sm:$0xff] }
  0x68   :  { %10627 = vst [vmem:[#allocation203_spill] sm:$0xff] %v8403_v2  ;;  %10628 = vst [vmem:[#allocation204_spill] sm:$0xff] %v8408_v34  ;;  %v8418_v1 = vld [vmem:[%s10430_s5 + $0x6b0] sm:$0xff]  ;;  %v8423_v35 = vld [vmem:[%s10430_s5 + $0x6b8] sm:$0xff] }
  0x69   :  { %10629 = vst [vmem:[#allocation205_spill] sm:$0xff] %v8413_v3  ;;  %10630 = vst [vmem:[#allocation206_spill] sm:$0xff] %v8418_v1  ;;  %v8428_v2 = vld [vmem:[%s10430_s5 + $0x6c0] sm:$0xff]  ;;  %v8433_v34 = vld [vmem:[%s10430_s5 + $0x6c8] sm:$0xff] }
  0x6a   :  { %10631 = vst [vmem:[#allocation207_spill] sm:$0xff] %v8423_v35  ;;  %10632 = vst [vmem:[#allocation208_spill] sm:$0xff] %v8428_v2  ;;  %v8438_v3 = vld [vmem:[%s10430_s5 + $0x6d0] sm:$0xff]  ;;  %v8443_v1 = vld [vmem:[%s10430_s5 + $0x6d8] sm:$0xff] }
  0x6b   :  { %10633 = vst [vmem:[#allocation209_spill] sm:$0xff] %v8433_v34  ;;  %10634 = vst [vmem:[#allocation210_spill] sm:$0xff] %v8438_v3  ;;  %v8448_v35 = vld [vmem:[%s10430_s5 + $0x6e0] sm:$0xff]  ;;  %v8453_v2 = vld [vmem:[%s10430_s5 + $0x6e8] sm:$0xff] }
  0x6c   :  { %10635 = vst [vmem:[#allocation211_spill] sm:$0xff] %v8443_v1  ;;  %10636 = vst [vmem:[#allocation212_spill] sm:$0xff] %v8448_v35  ;;  %v8458_v34 = vld [vmem:[%s10430_s5 + $0x6f0] sm:$0xff]  ;;  %v8463_v3 = vld [vmem:[%s10430_s5 + $0x6f8] sm:$0xff] }
  0x6d   :  { %10637 = vst [vmem:[#allocation213_spill] sm:$0xff] %v8453_v2  ;;  %10638 = vst [vmem:[#allocation214_spill] sm:$0xff] %v8458_v34  ;;  %v8468_v1 = vld [vmem:[%s10430_s5 + $0x700] sm:$0xff]  ;;  %v8473_v35 = vld [vmem:[%s10430_s5 + $0x708] sm:$0xff] }
  0x6e   :  { %10639 = vst [vmem:[#allocation215_spill] sm:$0xff] %v8463_v3  ;;  %10640 = vst [vmem:[#allocation216_spill] sm:$0xff] %v8468_v1  ;;  %v8478_v2 = vld [vmem:[%s10430_s5 + $0x710] sm:$0xff]  ;;  %v8483_v34 = vld [vmem:[%s10430_s5 + $0x718] sm:$0xff] }
  0x6f   :  { %10641 = vst [vmem:[#allocation217_spill] sm:$0xff] %v8473_v35  ;;  %10642 = vst [vmem:[#allocation218_spill] sm:$0xff] %v8478_v2  ;;  %v8488_v3 = vld [vmem:[%s10430_s5 + $0x720] sm:$0xff]  ;;  %v8493_v1 = vld [vmem:[%s10430_s5 + $0x728] sm:$0xff] }
  0x70   :  { %10643 = vst [vmem:[#allocation219_spill] sm:$0xff] %v8483_v34  ;;  %10644 = vst [vmem:[#allocation220_spill] sm:$0xff] %v8488_v3  ;;  %v8498_v35 = vld [vmem:[%s10430_s5 + $0x730] sm:$0xff]  ;;  %v8503_v2 = vld [vmem:[%s10430_s5 + $0x738] sm:$0xff] }
  0x71   :  { %10645 = vst [vmem:[#allocation221_spill] sm:$0xff] %v8493_v1  ;;  %10646 = vst [vmem:[#allocation222_spill] sm:$0xff] %v8498_v35  ;;  %v8508_v34 = vld [vmem:[%s10430_s5 + $0x740] sm:$0xff]  ;;  %v8513_v3 = vld [vmem:[%s10430_s5 + $0x748] sm:$0xff] }
  0x72   :  { %10647 = vst [vmem:[#allocation223_spill] sm:$0xff] %v8503_v2  ;;  %10648 = vst [vmem:[#allocation224_spill] sm:$0xff] %v8508_v34  ;;  %v8518_v1 = vld [vmem:[%s10430_s5 + $0x750] sm:$0xff]  ;;  %v8523_v35 = vld [vmem:[%s10430_s5 + $0x758] sm:$0xff] }
  0x73   :  { %10649 = vst [vmem:[#allocation225_spill] sm:$0xff] %v8513_v3  ;;  %10650 = vst [vmem:[#allocation226_spill] sm:$0xff] %v8518_v1  ;;  %v8528_v2 = vld [vmem:[%s10430_s5 + $0x760] sm:$0xff]  ;;  %v8533_v34 = vld [vmem:[%s10430_s5 + $0x768] sm:$0xff] }
  0x74   :  { %10651 = vst [vmem:[#allocation227_spill] sm:$0xff] %v8523_v35  ;;  %10652 = vst [vmem:[#allocation228_spill] sm:$0xff] %v8528_v2  ;;  %v8538_v3 = vld [vmem:[%s10430_s5 + $0x770] sm:$0xff]  ;;  %v8543_v1 = vld [vmem:[%s10430_s5 + $0x778] sm:$0xff] }
  0x75   :  { %10653 = vst [vmem:[#allocation229_spill] sm:$0xff] %v8533_v34  ;;  %10654 = vst [vmem:[#allocation230_spill] sm:$0xff] %v8538_v3  ;;  %v8548_v35 = vld [vmem:[%s10430_s5 + $0x780] sm:$0xff]  ;;  %v8553_v2 = vld [vmem:[%s10430_s5 + $0x788] sm:$0xff] }
  0x76   :  { %10655 = vst [vmem:[#allocation231_spill] sm:$0xff] %v8543_v1  ;;  %10656 = vst [vmem:[#allocation232_spill] sm:$0xff] %v8548_v35  ;;  %v8558_v34 = vld [vmem:[%s10430_s5 + $0x790] sm:$0xff]  ;;  %v8563_v3 = vld [vmem:[%s10430_s5 + $0x798] sm:$0xff] }
  0x77   :  { %10657 = vst [vmem:[#allocation233_spill] sm:$0xff] %v8553_v2  ;;  %10658 = vst [vmem:[#allocation234_spill] sm:$0xff] %v8558_v34  ;;  %v8568_v1 = vld [vmem:[%s10430_s5 + $0x7a0] sm:$0xff]  ;;  %v8573_v35 = vld [vmem:[%s10430_s5 + $0x7a8] sm:$0xff] }
  0x78   :  { %10659 = vst [vmem:[#allocation235_spill] sm:$0xff] %v8563_v3  ;;  %10660 = vst [vmem:[#allocation236_spill] sm:$0xff] %v8568_v1  ;;  %v8578_v2 = vld [vmem:[%s10430_s5 + $0x7b0] sm:$0xff]  ;;  %v8583_v34 = vld [vmem:[%s10430_s5 + $0x7b8] sm:$0xff] }
  0x79   :  { %10661 = vst [vmem:[#allocation237_spill] sm:$0xff] %v8573_v35  ;;  %10662 = vst [vmem:[#allocation238_spill] sm:$0xff] %v8578_v2  ;;  %v8588_v3 = vld [vmem:[%s10430_s5 + $0x7c0] sm:$0xff]  ;;  %v8593_v1 = vld [vmem:[%s10430_s5 + $0x7c8] sm:$0xff] }
  0x7a   :  { %10663 = vst [vmem:[#allocation239_spill] sm:$0xff] %v8583_v34  ;;  %10664 = vst [vmem:[#allocation240_spill] sm:$0xff] %v8588_v3  ;;  %v8598_v35 = vld [vmem:[%s10430_s5 + $0x7d0] sm:$0xff]  ;;  %v8603_v2 = vld [vmem:[%s10430_s5 + $0x7d8] sm:$0xff] }
  0x7b   :  { %10665 = vst [vmem:[#allocation241_spill] sm:$0xff] %v8593_v1  ;;  %10666 = vst [vmem:[#allocation242_spill] sm:$0xff] %v8598_v35  ;;  %v8608_v34 = vld [vmem:[%s10430_s5 + $0x7e0] sm:$0xff]  ;;  %v8613_v3 = vld [vmem:[%s10430_s5 + $0x7e8] sm:$0xff] }
  0x7c   :  { %10667 = vst [vmem:[#allocation243_spill] sm:$0xff] %v8603_v2  ;;  %10668 = vst [vmem:[#allocation244_spill] sm:$0xff] %v8608_v34  ;;  %v8618_v1 = vld [vmem:[%s10430_s5 + $0x7f0] sm:$0xff]  ;;  %v8623_v35 = vld [vmem:[%s10430_s5 + $0x7f8] sm:$0xff] }
  0x7d   :  { %10669 = vst [vmem:[#allocation245_spill] sm:$0xff] %v8613_v3  ;;  %10670 = vst [vmem:[#allocation246_spill] sm:$0xff] %v8618_v1  ;;  %v8628_v2 = vld [vmem:[%s10430_s5 + $0x800] sm:$0xff]  ;;  %v8633_v34 = vld [vmem:[%s10430_s5 + $0x808] sm:$0xff] }
  0x7e   :  { %10671 = vst [vmem:[#allocation247_spill] sm:$0xff] %v8623_v35  ;;  %10672 = vst [vmem:[#allocation248_spill] sm:$0xff] %v8628_v2  ;;  %v8638_v3 = vld [vmem:[%s10430_s5 + $0x810] sm:$0xff]  ;;  %v8643_v1 = vld [vmem:[%s10430_s5 + $0x818] sm:$0xff] }
  0x7f   :  { %10673 = vst [vmem:[#allocation249_spill] sm:$0xff] %v8633_v34  ;;  %10674 = vst [vmem:[#allocation250_spill] sm:$0xff] %v8638_v3  ;;  %v8648_v35 = vld [vmem:[%s10430_s5 + $0x820] sm:$0xff]  ;;  %v8653_v2 = vld [vmem:[%s10430_s5 + $0x828] sm:$0xff] }
  0x80   :  { %10675 = vst [vmem:[#allocation251_spill] sm:$0xff] %v8643_v1  ;;  %10676 = vst [vmem:[#allocation252_spill] sm:$0xff] %v8648_v35  ;;  %v8658_v34 = vld [vmem:[%s10430_s5 + $0x830] sm:$0xff]  ;;  %v8663_v3 = vld [vmem:[%s10430_s5 + $0x838] sm:$0xff] }
  0x81   :  { %10677 = vst [vmem:[#allocation253_spill] sm:$0xff] %v8653_v2  ;;  %10678 = vst [vmem:[#allocation254_spill] sm:$0xff] %v8658_v34  ;;  %v8668_v1 = vld [vmem:[%s10430_s5 + $0x840] sm:$0xff]  ;;  %v8673_v35 = vld [vmem:[%s10430_s5 + $0x848] sm:$0xff] }
  0x82   :  { %10679 = vst [vmem:[#allocation255_spill] sm:$0xff] %v8663_v3  ;;  %10680 = vst [vmem:[#allocation256_spill] sm:$0xff] %v8668_v1  ;;  %v8678_v2 = vld [vmem:[%s10430_s5 + $0x850] sm:$0xff]  ;;  %v8683_v34 = vld [vmem:[%s10430_s5 + $0x858] sm:$0xff] }
  0x83   :  { %10681 = vst [vmem:[#allocation257_spill] sm:$0xff] %v8673_v35  ;;  %10682 = vst [vmem:[#allocation258_spill] sm:$0xff] %v8678_v2  ;;  %v8688_v3 = vld [vmem:[%s10430_s5 + $0x860] sm:$0xff]  ;;  %v8693_v1 = vld [vmem:[%s10430_s5 + $0x868] sm:$0xff] }
  0x84   :  { %10683 = vst [vmem:[#allocation259_spill] sm:$0xff] %v8683_v34  ;;  %10684 = vst [vmem:[#allocation260_spill] sm:$0xff] %v8688_v3  ;;  %v8698_v35 = vld [vmem:[%s10430_s5 + $0x870] sm:$0xff]  ;;  %v8703_v2 = vld [vmem:[%s10430_s5 + $0x878] sm:$0xff] }
  0x85   :  { %10685 = vst [vmem:[#allocation261_spill] sm:$0xff] %v8693_v1  ;;  %10686 = vst [vmem:[#allocation262_spill] sm:$0xff] %v8698_v35  ;;  %v8708_v34 = vld [vmem:[%s10430_s5 + $0x880] sm:$0xff]  ;;  %v8713_v3 = vld [vmem:[%s10430_s5 + $0x888] sm:$0xff] }
  0x86   :  { %10687 = vst [vmem:[#allocation263_spill] sm:$0xff] %v8703_v2  ;;  %10688 = vst [vmem:[#allocation264_spill] sm:$0xff] %v8708_v34  ;;  %v8718_v1 = vld [vmem:[%s10430_s5 + $0x890] sm:$0xff]  ;;  %v8723_v35 = vld [vmem:[%s10430_s5 + $0x898] sm:$0xff] }
  0x87   :  { %10689 = vst [vmem:[#allocation265_spill] sm:$0xff] %v8713_v3  ;;  %10690 = vst [vmem:[#allocation266_spill] sm:$0xff] %v8718_v1  ;;  %v8728_v2 = vld [vmem:[%s10430_s5 + $0x8a0] sm:$0xff]  ;;  %v8733_v34 = vld [vmem:[%s10430_s5 + $0x8a8] sm:$0xff] }
  0x88   :  { %10691 = vst [vmem:[#allocation267_spill] sm:$0xff] %v8723_v35  ;;  %10692 = vst [vmem:[#allocation268_spill] sm:$0xff] %v8728_v2  ;;  %v8738_v3 = vld [vmem:[%s10430_s5 + $0x8b0] sm:$0xff]  ;;  %v8743_v1 = vld [vmem:[%s10430_s5 + $0x8b8] sm:$0xff] }
  0x89   :  { %10693 = vst [vmem:[#allocation269_spill] sm:$0xff] %v8733_v34  ;;  %10694 = vst [vmem:[#allocation270_spill] sm:$0xff] %v8738_v3  ;;  %v8748_v35 = vld [vmem:[%s10430_s5 + $0x8c0] sm:$0xff]  ;;  %v8753_v2 = vld [vmem:[%s10430_s5 + $0x8c8] sm:$0xff] }
  0x8a   :  { %10695 = vst [vmem:[#allocation271_spill] sm:$0xff] %v8743_v1  ;;  %10696 = vst [vmem:[#allocation272_spill] sm:$0xff] %v8748_v35  ;;  %v8758_v34 = vld [vmem:[%s10430_s5 + $0x8d0] sm:$0xff]  ;;  %v8763_v3 = vld [vmem:[%s10430_s5 + $0x8d8] sm:$0xff] }
  0x8b   :  { %10697 = vst [vmem:[#allocation273_spill] sm:$0xff] %v8753_v2  ;;  %10698 = vst [vmem:[#allocation274_spill] sm:$0xff] %v8758_v34  ;;  %v8768_v1 = vld [vmem:[%s10430_s5 + $0x8e0] sm:$0xff]  ;;  %v8773_v35 = vld [vmem:[%s10430_s5 + $0x8e8] sm:$0xff] }
  0x8c   :  { %10699 = vst [vmem:[#allocation275_spill] sm:$0xff] %v8763_v3  ;;  %10700 = vst [vmem:[#allocation276_spill] sm:$0xff] %v8768_v1  ;;  %v8778_v2 = vld [vmem:[%s10430_s5 + $0x8f0] sm:$0xff]  ;;  %v8783_v34 = vld [vmem:[%s10430_s5 + $0x8f8] sm:$0xff] }
  0x8d   :  { %10701 = vst [vmem:[#allocation277_spill] sm:$0xff] %v8773_v35  ;;  %10702 = vst [vmem:[#allocation278_spill] sm:$0xff] %v8778_v2  ;;  %v8788_v3 = vld [vmem:[%s10430_s5 + $0x900] sm:$0xff]  ;;  %v8793_v1 = vld [vmem:[%s10430_s5 + $0x908] sm:$0xff] }
  0x8e   :  { %10703 = vst [vmem:[#allocation279_spill] sm:$0xff] %v8783_v34  ;;  %10704 = vst [vmem:[#allocation280_spill] sm:$0xff] %v8788_v3  ;;  %v8798_v35 = vld [vmem:[%s10430_s5 + $0x910] sm:$0xff]  ;;  %v8803_v2 = vld [vmem:[%s10430_s5 + $0x918] sm:$0xff] }
  0x8f   :  { %10705 = vst [vmem:[#allocation281_spill] sm:$0xff] %v8793_v1  ;;  %10706 = vst [vmem:[#allocation282_spill] sm:$0xff] %v8798_v35  ;;  %v8808_v34 = vld [vmem:[%s10430_s5 + $0x920] sm:$0xff]  ;;  %v8813_v3 = vld [vmem:[%s10430_s5 + $0x928] sm:$0xff] }
  0x90   :  { %10707 = vst [vmem:[#allocation283_spill] sm:$0xff] %v8803_v2  ;;  %10708 = vst [vmem:[#allocation284_spill] sm:$0xff] %v8808_v34  ;;  %v8818_v1 = vld [vmem:[%s10430_s5 + $0x930] sm:$0xff]  ;;  %v8823_v35 = vld [vmem:[%s10430_s5 + $0x938] sm:$0xff] }
  0x91   :  { %10709 = vst [vmem:[#allocation285_spill] sm:$0xff] %v8813_v3  ;;  %10710 = vst [vmem:[#allocation286_spill] sm:$0xff] %v8818_v1  ;;  %v8828_v2 = vld [vmem:[%s10430_s5 + $0x940] sm:$0xff]  ;;  %v8833_v34 = vld [vmem:[%s10430_s5 + $0x948] sm:$0xff] }
  0x92   :  { %10711 = vst [vmem:[#allocation287_spill] sm:$0xff] %v8823_v35  ;;  %10712 = vst [vmem:[#allocation288_spill] sm:$0xff] %v8828_v2  ;;  %v8838_v3 = vld [vmem:[%s10430_s5 + $0x950] sm:$0xff]  ;;  %v8843_v1 = vld [vmem:[%s10430_s5 + $0x958] sm:$0xff] }
  0x93   :  { %10713 = vst [vmem:[#allocation289_spill] sm:$0xff] %v8833_v34  ;;  %10714 = vst [vmem:[#allocation290_spill] sm:$0xff] %v8838_v3  ;;  %v8848_v35 = vld [vmem:[%s10430_s5 + $0x960] sm:$0xff]  ;;  %v8853_v2 = vld [vmem:[%s10430_s5 + $0x968] sm:$0xff] }
  0x94   :  { %10715 = vst [vmem:[#allocation291_spill] sm:$0xff] %v8843_v1  ;;  %10716 = vst [vmem:[#allocation292_spill] sm:$0xff] %v8848_v35  ;;  %v8858_v34 = vld [vmem:[%s10430_s5 + $0x970] sm:$0xff]  ;;  %v8863_v3 = vld [vmem:[%s10430_s5 + $0x978] sm:$0xff] }
  0x95   :  { %10717 = vst [vmem:[#allocation293_spill] sm:$0xff] %v8853_v2  ;;  %10718 = vst [vmem:[#allocation294_spill] sm:$0xff] %v8858_v34  ;;  %v8868_v1 = vld [vmem:[%s10430_s5 + $0x980] sm:$0xff]  ;;  %v8873_v35 = vld [vmem:[%s10430_s5 + $0x988] sm:$0xff] }
  0x96   :  { %10719 = vst [vmem:[#allocation295_spill] sm:$0xff] %v8863_v3  ;;  %10720 = vst [vmem:[#allocation296_spill] sm:$0xff] %v8868_v1  ;;  %v8878_v2 = vld [vmem:[%s10430_s5 + $0x990] sm:$0xff]  ;;  %v8883_v34 = vld [vmem:[%s10430_s5 + $0x998] sm:$0xff] }
  0x97   :  { %10721 = vst [vmem:[#allocation297_spill] sm:$0xff] %v8873_v35  ;;  %10722 = vst [vmem:[#allocation298_spill] sm:$0xff] %v8878_v2  ;;  %v8888_v3 = vld [vmem:[%s10430_s5 + $0x9a0] sm:$0xff]  ;;  %v8893_v1 = vld [vmem:[%s10430_s5 + $0x9a8] sm:$0xff] }
  0x98   :  { %10723 = vst [vmem:[#allocation299_spill] sm:$0xff] %v8883_v34  ;;  %10724 = vst [vmem:[#allocation300_spill] sm:$0xff] %v8888_v3  ;;  %v8898_v35 = vld [vmem:[%s10430_s5 + $0x9b0] sm:$0xff]  ;;  %v8903_v2 = vld [vmem:[%s10430_s5 + $0x9b8] sm:$0xff] }
  0x99   :  { %10725 = vst [vmem:[#allocation301_spill] sm:$0xff] %v8893_v1  ;;  %10726 = vst [vmem:[#allocation302_spill] sm:$0xff] %v8898_v35  ;;  %v8908_v34 = vld [vmem:[%s10430_s5 + $0x9c0] sm:$0xff]  ;;  %v8913_v3 = vld [vmem:[%s10430_s5 + $0x9c8] sm:$0xff] }
  0x9a   :  { %10727 = vst [vmem:[#allocation303_spill] sm:$0xff] %v8903_v2  ;;  %10728 = vst [vmem:[#allocation304_spill] sm:$0xff] %v8908_v34  ;;  %v8918_v1 = vld [vmem:[%s10430_s5 + $0x9d0] sm:$0xff]  ;;  %v8923_v35 = vld [vmem:[%s10430_s5 + $0x9d8] sm:$0xff] }
  0x9b   :  { %10729 = vst [vmem:[#allocation305_spill] sm:$0xff] %v8913_v3  ;;  %10730 = vst [vmem:[#allocation306_spill] sm:$0xff] %v8918_v1  ;;  %v8928_v2 = vld [vmem:[%s10430_s5 + $0x9e0] sm:$0xff]  ;;  %v8933_v34 = vld [vmem:[%s10430_s5 + $0x9e8] sm:$0xff] }
  0x9c   :  { %10731 = vst [vmem:[#allocation307_spill] sm:$0xff] %v8923_v35  ;;  %10732 = vst [vmem:[#allocation308_spill] sm:$0xff] %v8928_v2  ;;  %v8938_v3 = vld [vmem:[%s10430_s5 + $0x9f0] sm:$0xff]  ;;  %v8943_v1 = vld [vmem:[%s10430_s5 + $0x9f8] sm:$0xff] }
  0x9d   :  { %10733 = vst [vmem:[#allocation309_spill] sm:$0xff] %v8933_v34  ;;  %10734 = vst [vmem:[#allocation310_spill] sm:$0xff] %v8938_v3 }
  0x9e   :  { %10735 = vst [vmem:[#allocation311_spill] sm:$0xff] %v8943_v1 }
  0x9f   :  { %700 = vsyncadd [#allocation3], 40960  ;;  %v718_v2 = vld [vmem:[%s10426_s1] sm:$0xff]  ;;  %v719_v35 = vld [vmem:[%s10426_s1 + $0x8] sm:$0xff]  ;;  %vm726_vm0 = vcmask 490496   ;;  %vm775_vm1 = vcmask 1043456  }
  0xa0   :  { %v6565_v34 = vpack.c.bf16 %v719_v35, %v718_v2  ;;  %v720_v0 = vld [vmem:[%s10426_s1 + $0x10] sm:$0xff]  ;;  %v721_v3 = vld [vmem:[%s10426_s1 + $0x18] sm:$0xff]  ;;  %v722_v33 = vld [vmem:[%s10426_s1 + $0x20] sm:$0xff]  ;;  %vm7307_vm2 = vmmov 1   ;;  %vm956_vm4 = vcmask 261120   ;;  %vm2733_vm5 = vcmask 523264  }
  0xa1   :  { %v6569_v1 = vpack.c.bf16 %v721_v3, %v720_v0  ;;  %v723_v32 = vld [vmem:[%s10426_s1 + $0x28] sm:$0xff]  ;;  %v702_v2 = vld [vmem:[%s10425_s0] sm:$0xff]  ;;  %v724_v0 = vld [vmem:[%s10426_s1 + $0x30] sm:$0xff] }
  0xa2   :  { %6566 = vmatprep.subr.bf16.mxu0 %v6565_v34  ;;  %6121 = vmatprep.mubr.msk.f32.mxu0 %vm726_vm0, %v702_v2  ;;  %v6573_v35 = vpack.c.bf16 %v723_v32, %v722_v33  ;;  %v725_v3 = vld [vmem:[%s10426_s1 + $0x38] sm:$0xf]  ;;  %vm6578_vm3 = vmpackc.low %vm775_vm1, %vm7307_vm2  ;;  %v703_v32 = vld [vmem:[%s10425_s0 + $0x8] sm:$0xff] }
  0xa3   :  { %6568 = vmatpush3.bf16.msra.mxu0 %v6565_v34  ;;  %v6577_v7 = vpack.c.bf16 %v725_v3, %v724_v0  ;;  %v704_v33 = vld [vmem:[%s10425_s0 + $0x10] sm:$0xff]  ;;  %v707_v34 = vld [vmem:[%s10425_s0 + $0x28] sm:$0xff]  ;;  %v710_v0 = vld [vmem:[%s10425_s0 + $0x40] sm:$0xff] }
  0xa4   :  { %6570 = vmatprep.subr.bf16.mxu0 %v6569_v1  ;;  %v708_v2 = vld [vmem:[%s10425_s0 + $0x30] sm:$0xff]  ;;  %v711_v3 = vld [vmem:[%s10425_s0 + $0x48] sm:$0xff] }
  0xa7   :  { %6572 = vmatpush3.bf16.msra.mxu0 %v6569_v1  ;;  %v705_v1 = vld [vmem:[%s10425_s0 + $0x18] sm:$0xff] }
  0xa8   :  { %6574 = vmatprep.subr.bf16.mxu0 %v6573_v35 }
  0xab   :  { %6576 = vmatpush3.bf16.msra.mxu0 %v6573_v35  ;;  %v709_v35 = vld [vmem:[%s10425_s0 + $0x38] sm:$0xff] }
  0xac   :  { %6579 = vmatprep.subr.msk.bf16.mxu0 %vm6578_vm3, %v6577_v7 }
  0xaf   :  { %6582 = vmatpush3.bf16.msk.msra.mxu0 %vm6578_vm3, %v6577_v7  ;;  %v706_v7 = vld [vmem:[%s10425_s0 + $0x20] sm:$0xff] }
  0xb2   :  { %6122 = vmatmul.mubr.msk.f32.vlgmr.msra.gmra.mrb[0].mxu0 %vm726_vm0, %v703_v32  ;;  %v712_v32 = vld [vmem:[%s10425_s0 + $0x50] sm:$0xff] }
  0xb3   :  { %6124 = vmatprep.mubr.msk.f32.mxu0 %vm726_vm0, %v704_v33  ;;  %v713_v33 = vld [vmem:[%s10425_s0 + $0x58] sm:$0xff] }
  0xb6   :  { %6125 = vmatmul.mubr.msk.f32.gmra.mrb[2].mxu0 %vm726_vm0, %v705_v1  ;;  %v714_v1 = vld [vmem:[%s10425_s0 + $0x60] sm:$0xff] }
  0xb7   :  { %6127 = vmatprep.mubr.msk.f32.mxu0 %vm726_vm0, %v706_v7  ;;  %v715_v7 = vld [vmem:[%s10425_s0 + $0x68] sm:$0xff] }
  0xba   :  { %6128 = vmatmul.mubr.msk.f32.gmra.mrb[4].mxu0 %vm726_vm0, %v707_v34  ;;  %v716_v34 = vld [vmem:[%s10425_s0 + $0x70] sm:$0xff] }
  0xbb   :  { %6130 = vmatprep.mubr.msk.f32.mxu0 %vm726_vm0, %v708_v2  ;;  %v717_v2 = vld [vmem:[%s10425_s0 + $0x78] sm:$0xff] }
  0xbe   :  { %6131 = vmatmul.mubr.msk.f32.gmra.mrb[6].mxu0 %vm726_vm0, %v709_v35  ;;  %v10432_v35 = vmov 0.0  }
  0xbf   :  { %6133 = vmatprep.mubr.msk.f32.mxu0 %vm726_vm0, %v710_v0  ;;  %958 = vst.msk [vmem:[#allocation4 + $0x8] sm:$0xff] %vm956_vm4, %v10432_v35  ;;  %959 = vst.msk [vmem:[#allocation4 + $0x10] sm:$0xff] %vm956_vm4, %v10432_v35  ;;  %v1025_v0 = vld [vmem:[%s10427_s2] sm:$0xff] }
  0xc0   :  { %957 = vst.msk [vmem:[#allocation4] sm:$0xff] %vm956_vm4, %v10432_v35  ;;  %960 = vst.msk [vmem:[#allocation4 + $0x18] sm:$0xff] %vm956_vm4, %v10432_v35 }
  0xc1   :  { %961 = vst.msk [vmem:[#allocation4 + $0x20] sm:$0xff] %vm956_vm4, %v10432_v35  ;;  %962 = vst.msk [vmem:[#allocation4 + $0x28] sm:$0xff] %vm956_vm4, %v10432_v35 }
  0xc2   :  { %6134 = vmatmul.mubr.msk.f32.gmra.mrb[8].mxu0 %vm726_vm0, %v711_v3  ;;  %963 = vst.msk [vmem:[#allocation4 + $0x30] sm:$0xff] %vm956_vm4, %v10432_v35  ;;  %964 = vst.msk [vmem:[#allocation4 + $0x38] sm:$0xff] %vm956_vm4, %v10432_v35  ;;  %v1026_v3 = vld [vmem:[%s10427_s2 + $0x8] sm:$0xff] }
  0xc3   :  { %6136 = vmatprep.mubr.msk.f32.mxu0 %vm726_vm0, %v712_v32  ;;  %965 = vst.msk [vmem:[#allocation4 + $0x40] sm:$0xff] %vm956_vm4, %v10432_v35  ;;  %966 = vst.msk [vmem:[#allocation4 + $0x48] sm:$0xff] %vm956_vm4, %v10432_v35  ;;  %v6591_v32 = vpack.c.bf16 %v1026_v3, %v1025_v0  ;;  %v5615_v3 = vld [vmem:[%s10427_s2 + $0x50] sm:$0xff] }
  0xc4   :  { %967 = vst.msk [vmem:[#allocation4 + $0x50] sm:$0xff] %vm956_vm4, %v10432_v35  ;;  %968 = vst.msk [vmem:[#allocation4 + $0x58] sm:$0xff] %vm956_vm4, %v10432_v35 }
  0xc5   :  { %969 = vst.msk [vmem:[#allocation4 + $0x60] sm:$0xff] %vm956_vm4, %v10432_v35  ;;  %970 = vst.msk [vmem:[#allocation4 + $0x68] sm:$0xff] %vm956_vm4, %v10432_v35  ;;  %6592 = vmatprep.subr.bf16.mxu1 %v6591_v32 }
  0xc6   :  { %6137 = vmatmul.mubr.msk.f32.gmra.mrb[10].mxu0 %vm726_vm0, %v713_v33  ;;  %971 = vst.msk [vmem:[#allocation4 + $0x70] sm:$0xff] %vm956_vm4, %v10432_v35  ;;  %972 = vst.msk [vmem:[#allocation4 + $0x78] sm:$0xff] %vm956_vm4, %v10432_v35  ;;  %6594 = vmatpush3.bf16.msra.mxu1 %v6591_v32  ;;  %v1027_v33 = vld [vmem:[%s10427_s2 + $0x10] sm:$0xff]  ;;  %v5616_v32 = vld [vmem:[%s10427_s2 + $0x58] sm:$0xff] }
  0xc7   :  { %6139 = vmatprep.mubr.msk.f32.mxu0 %vm726_vm0, %v714_v1  ;;  %973 = vst.msk [vmem:[#allocation4 + $0x80] sm:$0xff] %vm956_vm4, %v10432_v35  ;;  %974 = vst.msk [vmem:[#allocation4 + $0x88] sm:$0xff] %vm956_vm4, %v10432_v35  ;;  %v1028_v1 = vld [vmem:[%s10427_s2 + $0x18] sm:$0xff] }
  0xc8   :  { %975 = vst.msk [vmem:[#allocation4 + $0x90] sm:$0xff] %vm956_vm4, %v10432_v35  ;;  %976 = vst.msk [vmem:[#allocation4 + $0x98] sm:$0xff] %vm956_vm4, %v10432_v35 }
  0xc9   :  { %4057 = vst [vmem:[#allocation6] sm:$0xff] %v10432_v35  ;;  %4058 = vst [vmem:[#allocation6 + $0x8] sm:$0xff] %v10432_v35 }
  0xca   :  { %6140 = vmatmul.mubr.msk.f32.gmra.mrb[12].mxu0 %vm726_vm0, %v715_v7  ;;  %4059 = vst [vmem:[#allocation6 + $0x10] sm:$0xff] %v10432_v35  ;;  %4060 = vst [vmem:[#allocation6 + $0x18] sm:$0xff] %v10432_v35  ;;  %v6595_v7 = vpack.c.bf16 %v1028_v1, %v1027_v33  ;;  %v6587_v33 = vpack.c.bf16 %v5616_v32, %v5615_v3  ;;  %v5633_v1 = vld [vmem:[%s10427_s2 + $0x60] sm:$0xff] }
  0xcb   :  { %6142 = vmatprep.mubr.msk.f32.mxu0 %vm726_vm0, %v716_v34  ;;  %4061 = vst [vmem:[#allocation6 + $0x20] sm:$0xff] %v10432_v35  ;;  %4062 = vst [vmem:[#allocation6 + $0x28] sm:$0xff] %v10432_v35  ;;  %v5613_v34 = vld [vmem:[%s10427_s2 + $0x40] sm:$0xff] }
  0xcc   :  { %4063 = vst [vmem:[#allocation6 + $0x30] sm:$0xff] %v10432_v35  ;;  %4064 = vst [vmem:[#allocation6 + $0x38] sm:$0xff] %v10432_v35  ;;  %6596 = vmatprep.subr.bf16.mxu1 %v6595_v7 }
  0xcd   :  { %6598 = vmatpush3.bf16.msra.mxu1 %v6595_v7  ;;  %v5634_v7 = vld [vmem:[%s10427_s2 + $0x68] sm:$0xff] }
  0xce   :  { %6143 = vmatmul.mubr.msk.f32.gmra.mrb[14].mxu0 %vm726_vm0, %v717_v2  ;;  %v5614_v2 = vld [vmem:[%s10427_s2 + $0x48] sm:$0xff] }
  0xcf   :  { %v6583_v0 = vpack.c.bf16 %v5614_v2, %v5613_v34  ;;  %v9112_v34 = vpack.c.bf16 %v5634_v7, %v5633_v1  ;;  %v9118_v2 = vld [vmem:[%s10429_s4] ss:$0 sm:$0xff] }
  0xd1   :  { %6584 = vmatprep.subr.bf16.mxu0 %v6583_v0  ;;  %6600 = vmatprep.subr.bf16.mxu1 %v9112_v34 }
  0xd2   :  { %6586 = vmatpush3.bf16.msra.mxu0 %v6583_v0 }
  0xd3   :  { %6588 = vmatprep.subr.bf16.mxu0 %v6587_v33 }
  0xd6   :  { %6590 = vmatpush3.bf16.msra.mxu0 %v6587_v33 }
 0x185   :  { %v6123_v0 = vpop.f32.mrb[0].mxu0 }
 0x186   :  { %v851_v3 = vadd.f32 %v6123_v0, %v9118_v2  ;;  %v845_v32 = vpop.f32.mrb[1].mxu0 }
 0x187   :  { %v846_v33 = vadd.f32 %v845_v32, %v9118_v2 }
 0x188   :  { %v925_v35 = vmul.f32 0.2, %v851_v3 }
 0x189   :  { %v924_v6 = vmul.f32 0.2, %v846_v33  ;;  %v6126_v39 = vpop.f32.mrb[2].mxu0 }
 0x18a   :  { %v941_v38 = vmax.f32 %v851_v3, %v925_v35  ;;  %v861_v1 = vadd.f32 %v6126_v39, %v9118_v2  ;;  %v855_v7 = vpop.f32.mrb[3].mxu0 }
 0x18b   :  { %v940_v5 = vmax.f32 %v846_v33, %v924_v6  ;;  %v856_v4 = vadd.f32 %v855_v7, %v9118_v2 }
 0x18c   :  { %978 = vst.msk [vmem:[#allocation4 + $0xc] sm:$0xff] %vm956_vm4, %v941_v38  ;;  %v927_v37 = vmul.f32 0.2, %v861_v1 }
 0x18d   :  { %977 = vst.msk [vmem:[#allocation4 + $0x4] sm:$0xff] %vm956_vm4, %v940_v5  ;;  %v926_v36 = vmul.f32 0.2, %v856_v4  ;;  %v6129_v0 = vpop.f32.mrb[4].mxu0 }
 0x18e   :  { %v943_v11 = vmax.f32 %v861_v1, %v927_v37  ;;  %v871_v32 = vadd.f32 %v6129_v0, %v9118_v2  ;;  %v865_v10 = vpop.f32.mrb[5].mxu0 }
 0x18f   :  { %v942_v43 = vmax.f32 %v856_v4, %v926_v36  ;;  %v866_v35 = vadd.f32 %v865_v10, %v9118_v2 }
 0x190   :  { %980 = vst.msk [vmem:[#allocation4 + $0x1c] sm:$0xff] %vm956_vm4, %v943_v11  ;;  %v929_v39 = vmul.f32 0.2, %v871_v32 }
 0x191   :  { %979 = vst.msk [vmem:[#allocation4 + $0x14] sm:$0xff] %vm956_vm4, %v942_v43  ;;  %v928_v6 = vmul.f32 0.2, %v866_v35  ;;  %v6132_v3 = vpop.f32.mrb[6].mxu0 }
 0x192   :  { %v945_v38 = vmax.f32 %v871_v32, %v929_v39  ;;  %v881_v33 = vadd.f32 %v6132_v3, %v9118_v2  ;;  %v875_v5 = vpop.f32.mrb[7].mxu0 }
 0x193   :  { %v944_v7 = vmax.f32 %v866_v35, %v928_v6  ;;  %v876_v37 = vadd.f32 %v875_v5, %v9118_v2 }
 0x194   :  { %982 = vst.msk [vmem:[#allocation4 + $0x34] sm:$0xff] %vm956_vm4, %v945_v38  ;;  %v931_v1 = vmul.f32 0.2, %v881_v33  ;;  %v994_v4 = vld [vmem:[#allocation4] ss:$2 sm:$0xff] }
 0x195   :  { %981 = vst.msk [vmem:[#allocation4 + $0x2c] sm:$0xff] %vm956_vm4, %v944_v7  ;;  %v930_v10 = vmul.f32 0.2, %v876_v37  ;;  %v6135_v11 = vpop.f32.mrb[8].mxu0  ;;  %997 = vst.msk [vmem:[#allocation7] sm:$0xff] %vm956_vm4, %v994_v4 }
 0x196   :  { %v947_v36 = vmax.f32 %v881_v33, %v931_v1  ;;  %v891_v43 = vadd.f32 %v6135_v11, %v9118_v2  ;;  %v885_v0 = vpop.f32.mrb[9].mxu0  ;;  %v1030_v32 = vld [vmem:[#allocation4 + $0x1] ss:$2 sm:$0xff]  ;;  %v1068_v11 = vld [vmem:[#allocation4 + $0x2] ss:$2 sm:$0xff] }
 0x197   :  { %v946_v39 = vmax.f32 %v876_v37, %v930_v10  ;;  %v886_v35 = vadd.f32 %v885_v0, %v9118_v2  ;;  %1034 = vst.msk [vmem:[#allocation7 + $0x40] sm:$0xff] %vm956_vm4, %v1030_v32  ;;  %v1658_v41 = vld [vmem:[#allocation4 + $0x4] ss:$2 sm:$0xff] }
 0x198   :  { %984 = vst.msk [vmem:[#allocation4 + $0x44] sm:$0xff] %vm956_vm4, %v947_v36  ;;  %v933_v6 = vmul.f32 0.2, %v891_v43  ;;  %v996_v3 = vld [vmem:[#allocation4 + $0x10] ss:$2 sm:$0xff] }
 0x199   :  { %983 = vst.msk [vmem:[#allocation4 + $0x3c] sm:$0xff] %vm956_vm4, %v946_v39  ;;  %v932_v38 = vmul.f32 0.2, %v886_v35  ;;  %v6138_v5 = vpop.f32.mrb[10].mxu0  ;;  %998 = vst.msk [vmem:[#allocation7 + $0x8] sm:$0xff] %vm956_vm4, %v996_v3  ;;  %v5635_v36 = vld [vmem:[%s10427_s2 + $0x70] sm:$0xff] }
 0x19a   :  { %v949_v33 = vmax.f32 %v891_v43, %v933_v6  ;;  %v901_v7 = vadd.f32 %v6138_v5, %v9118_v2  ;;  %v895_v1 = vpop.f32.mrb[11].mxu0  ;;  %v1032_v4 = vld [vmem:[#allocation4 + $0x11] ss:$2 sm:$0xff]  ;;  %v2356_v16 = vld [vmem:[#allocation4 + $0x18] ss:$2 sm:$0xff] }
 0x19b   :  { %v948_v37 = vmax.f32 %v886_v35, %v932_v38  ;;  %v896_v10 = vadd.f32 %v895_v1, %v9118_v2  ;;  %1035 = vst.msk [vmem:[#allocation7 + $0x48] sm:$0xff] %vm956_vm4, %v1032_v4  ;;  %v5636_v43 = vld [vmem:[%s10427_s2 + $0x78] sm:$0xff]  ;;  %v1363_v1 = vld [vmem:[#allocation4 + $0x3] ss:$2 sm:$0xff] }
 0x19c   :  { %986 = vst.msk [vmem:[#allocation4 + $0x5c] sm:$0xff] %vm956_vm4, %v949_v33  ;;  %v935_v0 = vmul.f32 0.2, %v901_v7  ;;  %v1017_v32 = vld [vmem:[#allocation7] sm:$0xff]  ;;  %v1000_v39 = vld [vmem:[#allocation4 + $0x28] ss:$2 sm:$0xff]  ;;  %v6603_v8 = vpack.c.bf16 %v5636_v43, %v5635_v36 }
 0x19d   :  { %985 = vst.msk [vmem:[#allocation4 + $0x54] sm:$0xff] %vm956_vm4, %v948_v37  ;;  %v934_v35 = vmul.f32 0.2, %v896_v10  ;;  %v6141_v6 = vpop.f32.mrb[12].mxu0  ;;  %1071 = vst.msk [vmem:[#allocation7] sm:$0xff] %vm956_vm4, %v1068_v11  ;;  %6173 = vmatprep.mubr.msk.f32.mxu1 %vm956_vm4, %v1017_v32  ;;  %v5609_v11 = vld [vmem:[%s10427_s2 + $0x20] sm:$0xff] }
 0x19e   :  { %1003 = vst.msk [vmem:[#allocation7 + $0x10] sm:$0xff] %vm956_vm4, %v1000_v39  ;;  %v951_v3 = vmax.f32 %v901_v7, %v935_v0  ;;  %v911_v38 = vadd.f32 %v6141_v6, %v9118_v2  ;;  %v905_v5 = vpop.f32.mrb[13].mxu0  ;;  %v9156_v33 = vld [vmem:[#allocation7 + $0x40] sm:$0xff]  ;;  %v1037_v4 = vld [vmem:[#allocation4 + $0x29] ss:$2 sm:$0xff] }
 0x19f   :  { %v950_v42 = vmax.f32 %v896_v10, %v934_v35  ;;  %v906_v9 = vadd.f32 %v905_v5, %v9118_v2  ;;  %v1070_v37 = vld [vmem:[#allocation4 + $0x12] ss:$2 sm:$0xff]  ;;  %1366 = vst.msk [vmem:[#allocation7 + $0x40] sm:$0xff] %vm956_vm4, %v1363_v1  ;;  %1040 = vst.msk [vmem:[#allocation7 + $0x50] sm:$0xff] %vm956_vm4, %v1037_v4  ;;  %v5610_v10 = vld [vmem:[%s10427_s2 + $0x28] sm:$0xff] }
 0x1a0   :  { %988 = vst.msk [vmem:[#allocation4 + $0x6c] sm:$0xff] %vm956_vm4, %v951_v3  ;;  %v937_v7 = vmul.f32 0.2, %v911_v38  ;;  %v1018_v0 = vld [vmem:[#allocation7 + $0x8] sm:$0xff]  ;;  %v1002_v32 = vld [vmem:[#allocation4 + $0x38] ss:$2 sm:$0xff] }
 0x1a1   :  { %987 = vst.msk [vmem:[#allocation4 + $0x64] sm:$0xff] %vm956_vm4, %v950_v42  ;;  %v936_v36 = vmul.f32 0.2, %v906_v9  ;;  %v6144_v39 = vpop.f32.mrb[14].mxu0  ;;  %1072 = vst.msk [vmem:[#allocation7 + $0x8] sm:$0xff] %vm956_vm4, %v1070_v37  ;;  %6174 = vmatmul.mubr.msk.f32.vlgmr.msra.gmra.mrb[0].mxu1 %vm956_vm4, %v1018_v0  ;;  %v9177_v37 = vpack.c.bf16 %v5610_v10, %v5609_v11 }
 0x1a2   :  { %1004 = vst.msk [vmem:[#allocation7 + $0x18] sm:$0xff] %vm956_vm4, %v1002_v32  ;;  %v953_v43 = vmax.f32 %v911_v38, %v937_v7  ;;  %v921_v35 = vadd.f32 %v6144_v39, %v9118_v2  ;;  %v915_v6 = vpop.f32.mrb[15].mxu0  ;;  %6602 = vmatpush3.bf16.msra.mxu1 %v9112_v34  ;;  %v9174_v3 = vld [vmem:[#allocation7 + $0x48] sm:$0xff]  ;;  %v1365_v5 = vld [vmem:[#allocation4 + $0x13] ss:$2 sm:$0xff] }
 0x1a3   :  { %v1039_v1 = vld [vmem:[#allocation4 + $0x39] ss:$2 sm:$0xff]  ;;  %v952_v4 = vmax.f32 %v906_v9, %v936_v36  ;;  %v916_v42 = vadd.f32 %v915_v6, %v9118_v2  ;;  %v1074_v40 = vld [vmem:[#allocation4 + $0x2a] ss:$2 sm:$0xff]  ;;  %6604 = vmatprep.subr.bf16.mxu1 %v6603_v8  ;;  %1367 = vst.msk [vmem:[#allocation7 + $0x48] sm:$0xff] %vm956_vm4, %v1365_v5 }
 0x1a4   :  { %1041 = vst.msk [vmem:[#allocation7 + $0x58] sm:$0xff] %vm956_vm4, %v1039_v1  ;;  %990 = vst.msk [vmem:[#allocation4 + $0x84] sm:$0xff] %vm956_vm4, %v953_v43  ;;  %v939_v38 = vmul.f32 0.2, %v921_v35  ;;  %v1091_v34 = vld [vmem:[#allocation7] sm:$0xff] }
 0x1a5   :  { %v1019_v7 = vld [vmem:[#allocation7 + $0x10] sm:$0xff]  ;;  %989 = vst.msk [vmem:[#allocation4 + $0x7c] sm:$0xff] %vm956_vm4, %v952_v4  ;;  %v938_v9 = vmul.f32 0.2, %v916_v42  ;;  %6153 = vmatprep.mubr.msk.f32.mxu0 %vm956_vm4, %v1091_v34  ;;  %1661 = vst.msk [vmem:[#allocation7] sm:$0xff] %vm956_vm4, %v1658_v41 }
 0x1a6   :  { %v1006_v0 = vld [vmem:[#allocation4 + $0x50] ss:$2 sm:$0xff]  ;;  %1077 = vst.msk [vmem:[#allocation7 + $0x10] sm:$0xff] %vm956_vm4, %v1074_v40  ;;  %6176 = vmatprep.mubr.msk.f32.mxu1 %vm956_vm4, %v1019_v7  ;;  %v1832_v2 = vld [vmem:[#allocation4 + $0x5] ss:$2 sm:$0xff]  ;;  %v955_v32 = vmax.f32 %v921_v35, %v939_v38  ;;  %6606 = vmatpush3.bf16.msra.mxu1 %v6603_v8 }
 0x1a7   :  { %1009 = vst.msk [vmem:[#allocation7 + $0x20] sm:$0xff] %vm956_vm4, %v1006_v0  ;;  %v1369_v11 = vld [vmem:[#allocation4 + $0x2b] ss:$2 sm:$0xff]  ;;  %v9188_v10 = vld [vmem:[#allocation7 + $0x40] sm:$0xff]  ;;  %v954_v43 = vmax.f32 %v916_v42, %v938_v9  ;;  %6608 = vmatprep.subr.bf16.mxu1 %v9177_v37  ;;  %v1664_v34 = vld [vmem:[#allocation4 + $0x2c] ss:$2 sm:$0xff] }
 0x1a8   :  { %v9190_v36 = vld [vmem:[#allocation7 + $0x50] sm:$0xff]  ;;  %v1076_v5 = vld [vmem:[#allocation4 + $0x3a] ss:$2 sm:$0xff]  ;;  %1835 = vst.msk [vmem:[#allocation7 + $0x40] sm:$0xff] %vm956_vm4, %v1832_v2  ;;  %992 = vst.msk [vmem:[#allocation4 + $0x94] sm:$0xff] %vm956_vm4, %v955_v32 }
 0x1a9   :  { %v1043_v39 = vld [vmem:[#allocation4 + $0x51] ss:$2 sm:$0xff]  ;;  %v1660_v6 = vld [vmem:[#allocation4 + $0x14] ss:$2 sm:$0xff]  ;;  %1372 = vst.msk [vmem:[#allocation7 + $0x50] sm:$0xff] %vm956_vm4, %v1369_v11  ;;  %v1092_v40 = vld [vmem:[#allocation7 + $0x8] sm:$0xff] }
 0x1aa   :  { %1046 = vst.msk [vmem:[#allocation7 + $0x60] sm:$0xff] %vm956_vm4, %v1043_v39  ;;  %v1020_v8 = vld [vmem:[#allocation7 + $0x18] sm:$0xff]  ;;  %v1008_v41 = vld [vmem:[#allocation4 + $0x60] ss:$2 sm:$0xff]  ;;  %991 = vst.msk [vmem:[#allocation4 + $0x8c] sm:$0xff] %vm956_vm4, %v954_v43  ;;  %6154 = vmatmul.mubr.msk.f32.vlgmr.msra.gmra.mrb[16].mxu0 %vm956_vm4, %v1092_v40 }
 0x1ab   :  { %1662 = vst.msk [vmem:[#allocation7 + $0x8] sm:$0xff] %vm956_vm4, %v1660_v6  ;;  %1078 = vst.msk [vmem:[#allocation7 + $0x18] sm:$0xff] %vm956_vm4, %v1076_v5  ;;  %6177 = vmatmul.mubr.msk.f32.gmra.mrb[2].mxu1 %vm956_vm4, %v1020_v8  ;;  %v1834_v35 = vld [vmem:[#allocation4 + $0x15] ss:$2 sm:$0xff]  ;;  %v9203_v4 = vld [vmem:[#allocation7 + $0x48] sm:$0xff] }
 0x1ac   :  { %1010 = vst.msk [vmem:[#allocation7 + $0x28] sm:$0xff] %vm956_vm4, %v1008_v41  ;;  %v1045_v1 = vld [vmem:[#allocation4 + $0x61] ss:$2 sm:$0xff]  ;;  %v9205_v42 = vld [vmem:[#allocation7 + $0x58] sm:$0xff]  ;;  %1836 = vst.msk [vmem:[#allocation7 + $0x48] sm:$0xff] %vm956_vm4, %v1834_v35 }
 0x1ad   :  { %v1371_v38 = vld [vmem:[#allocation4 + $0x3b] ss:$2 sm:$0xff]  ;;  %1047 = vst.msk [vmem:[#allocation7 + $0x68] sm:$0xff] %vm956_vm4, %v1045_v1  ;;  %v1080_v7 = vld [vmem:[#allocation4 + $0x52] ss:$2 sm:$0xff] }
 0x1ae   :  { %1373 = vst.msk [vmem:[#allocation7 + $0x58] sm:$0xff] %vm956_vm4, %v1371_v38  ;;  %v1093_v0 = vld [vmem:[#allocation7 + $0x10] sm:$0xff]  ;;  %v1021_v9 = vld [vmem:[#allocation7 + $0x20] sm:$0xff] }
 0x1af   :  { %v1012_v2 = vld [vmem:[#allocation4 + $0x78] ss:$2 sm:$0xff]  ;;  %6156 = vmatprep.mubr.msk.f32.mxu0 %vm956_vm4, %v1093_v0  ;;  %1667 = vst.msk [vmem:[#allocation7 + $0x10] sm:$0xff] %vm956_vm4, %v1664_v34  ;;  %1083 = vst.msk [vmem:[#allocation7 + $0x20] sm:$0xff] %vm956_vm4, %v1080_v7  ;;  %6179 = vmatprep.mubr.msk.f32.mxu1 %vm956_vm4, %v1021_v9  ;;  %v1838_v11 = vld [vmem:[#allocation4 + $0x2d] ss:$2 sm:$0xff] }
 0x1b0   :  { %1015 = vst.msk [vmem:[#allocation7 + $0x30] sm:$0xff] %vm956_vm4, %v1012_v2  ;;  %v1049_v32 = vld [vmem:[#allocation4 + $0x79] ss:$2 sm:$0xff]  ;;  %v2006_v39 = vld [vmem:[#allocation4 + $0x6] ss:$2 sm:$0xff] }
 0x1b1   :  { %v2180_v43 = vld [vmem:[#allocation4 + $0x7] ss:$2 sm:$0xff]  ;;  %v1666_v6 = vld [vmem:[#allocation4 + $0x3c] ss:$2 sm:$0xff]  ;;  %1052 = vst.msk [vmem:[#allocation7 + $0x70] sm:$0xff] %vm956_vm4, %v1049_v32 }
 0x1b2   :  { %v9215_v5 = vld [vmem:[#allocation7 + $0x50] sm:$0xff]  ;;  %v9217_v40 = vld [vmem:[#allocation7 + $0x60] sm:$0xff]  ;;  %v1094_v38 = vld [vmem:[#allocation7 + $0x18] sm:$0xff] }
 0x1b3   :  { %v1375_v8 = vld [vmem:[#allocation4 + $0x53] ss:$2 sm:$0xff]  ;;  %v1082_v41 = vld [vmem:[#allocation4 + $0x62] ss:$2 sm:$0xff]  ;;  %1841 = vst.msk [vmem:[#allocation7 + $0x50] sm:$0xff] %vm956_vm4, %v1838_v11  ;;  %6157 = vmatmul.mubr.msk.f32.gmra.mrb[18].mxu0 %vm956_vm4, %v1094_v38  ;;  %1668 = vst.msk [vmem:[#allocation7 + $0x18] sm:$0xff] %vm956_vm4, %v1666_v6 }
 0x1b4   :  { %1378 = vst.msk [vmem:[#allocation7 + $0x60] sm:$0xff] %vm956_vm4, %v1375_v8  ;;  %v9222_v35 = vld [vmem:[#allocation7] sm:$0xff]  ;;  %v1022_v34 = vld [vmem:[#allocation7 + $0x28] sm:$0xff] }
 0x1b5   :  { %v9224_v1 = vld [vmem:[#allocation7 + $0x40] sm:$0xff]  ;;  %v1014_v7 = vld [vmem:[#allocation4 + $0x88] ss:$2 sm:$0xff]  ;;  %2009 = vst.msk [vmem:[#allocation7] sm:$0xff] %vm956_vm4, %v2006_v39  ;;  %1084 = vst.msk [vmem:[#allocation7 + $0x28] sm:$0xff] %vm956_vm4, %v1082_v41  ;;  %6180 = vmatmul.mubr.msk.f32.gmra.mrb[4].mxu1 %vm956_vm4, %v1022_v34 }
 0x1b6   :  { %2183 = vst.msk [vmem:[#allocation7 + $0x40] sm:$0xff] %vm956_vm4, %v2180_v43  ;;  %1016 = vst.msk [vmem:[#allocation7 + $0x38] sm:$0xff] %vm956_vm4, %v1014_v7  ;;  %v1840_v0 = vld [vmem:[#allocation4 + $0x3d] ss:$2 sm:$0xff]  ;;  %v2008_v11 = vld [vmem:[#allocation4 + $0x16] ss:$2 sm:$0xff] }
 0x1b7   :  { %v9233_v9 = vld [vmem:[#allocation7 + $0x68] sm:$0xff]  ;;  %v9235_v32 = vld [vmem:[#allocation7 + $0x58] sm:$0xff]  ;;  %v1095_v41 = vld [vmem:[#allocation7 + $0x20] sm:$0xff] }
 0x1b8   :  { %v1377_v2 = vld [vmem:[#allocation4 + $0x63] ss:$2 sm:$0xff]  ;;  %v2012_v43 = vld [vmem:[#allocation4 + $0x2e] ss:$2 sm:$0xff]  ;;  %1842 = vst.msk [vmem:[#allocation7 + $0x58] sm:$0xff] %vm956_vm4, %v1840_v0  ;;  %6159 = vmatprep.mubr.msk.f32.mxu0 %vm956_vm4, %v1095_v41 }
 0x1b9   :  { %1379 = vst.msk [vmem:[#allocation7 + $0x68] sm:$0xff] %vm956_vm4, %v1377_v2  ;;  %v1051_v39 = vld [vmem:[#allocation4 + $0x89] ss:$2 sm:$0xff]  ;;  %v1670_v8 = vld [vmem:[#allocation4 + $0x54] ss:$2 sm:$0xff] }
 0x1ba   :  { %v1086_v38 = vld [vmem:[#allocation4 + $0x7a] ss:$2 sm:$0xff]  ;;  %1053 = vst.msk [vmem:[#allocation7 + $0x78] sm:$0xff] %vm956_vm4, %v1051_v39  ;;  %v1023_v34 = vld [vmem:[#allocation7 + $0x30] sm:$0xff]  ;;  %1673 = vst.msk [vmem:[#allocation7 + $0x20] sm:$0xff] %vm956_vm4, %v1670_v8 }
 0x1bb   :  { %v9240_v6 = vld [vmem:[#allocation7 + $0x8] sm:$0xff]  ;;  %v1844_v7 = vld [vmem:[#allocation4 + $0x55] ss:$2 sm:$0xff]  ;;  %1089 = vst.msk [vmem:[#allocation7 + $0x30] sm:$0xff] %vm956_vm4, %v1086_v38  ;;  %6182 = vmatprep.mubr.msk.f32.mxu1 %vm956_vm4, %v1023_v34 }
 0x1bc   :  { %2010 = vst.msk [vmem:[#allocation7 + $0x8] sm:$0xff] %vm956_vm4, %v2008_v11  ;;  %v9243_v15 = vld [vmem:[#allocation7 + $0x10] sm:$0xff]  ;;  %v1381_v2 = vld [vmem:[#allocation4 + $0x7b] ss:$2 sm:$0xff]  ;;  %v2014_v38 = vld [vmem:[#allocation4 + $0x3e] ss:$2 sm:$0xff] }
 0x1bd   :  { %v9249_v0 = vld [vmem:[#allocation7 + $0x70] sm:$0xff]  ;;  %2015 = vst.msk [vmem:[#allocation7 + $0x10] sm:$0xff] %vm956_vm4, %v2012_v43  ;;  %v9252_v39 = vld [vmem:[#allocation7 + $0x48] sm:$0xff]  ;;  %v9254_v14 = vld [vmem:[#allocation7 + $0x60] sm:$0xff] }
 0x1be   :  { %v5611_v11 = vld [vmem:[%s10427_s2 + $0x30] sm:$0xff]  ;;  %v5612_v8 = vld [vmem:[%s10427_s2 + $0x38] sm:$0xff]  ;;  %1384 = vst.msk [vmem:[#allocation7 + $0x70] sm:$0xff] %vm956_vm4, %v1381_v2  ;;  %1847 = vst.msk [vmem:[#allocation7 + $0x60] sm:$0xff] %vm956_vm4, %v1844_v7 }
 0x1bf   :  { %v2182_v41 = vld [vmem:[#allocation4 + $0x17] ss:$2 sm:$0xff]  ;;  %v1672_v47 = vld [vmem:[#allocation4 + $0x64] ss:$2 sm:$0xff]  ;;  %v6611_v19 = vpack.c.bf16 %v5612_v8, %v5611_v11 }
 0x1c0   :  { %v9263_v34 = vld [vmem:[#allocation7 + $0x50] sm:$0xff]  ;;  %2184 = vst.msk [vmem:[#allocation7 + $0x48] sm:$0xff] %vm956_vm4, %v2182_v41  ;;  %v1096_v13 = vld [vmem:[#allocation7 + $0x28] sm:$0xff]  ;;  %v1024_v12 = vld [vmem:[#allocation7 + $0x38] sm:$0xff] }
 0x1c1   :  { %v1088_v43 = vld [vmem:[#allocation4 + $0x8a] ss:$2 sm:$0xff]  ;;  %v2186_v46 = vld [vmem:[#allocation4 + $0x2f] ss:$2 sm:$0xff]  ;;  %6160 = vmatmul.mubr.msk.f32.gmra.mrb[20].mxu0 %vm956_vm4, %v1096_v13  ;;  %1674 = vst.msk [vmem:[#allocation7 + $0x28] sm:$0xff] %vm956_vm4, %v1672_v47  ;;  %6183 = vmatmul.mubr.msk.f32.gmra.mrb[6].mxu1 %vm956_vm4, %v1024_v12  ;;  %v5653_v13 = vld [vmem:[%s10427_s2 + $0x80] sm:$0xff] }
 0x1c2   :  { %v9267_v45 = vld [vmem:[#allocation7 + $0x18] sm:$0xff]  ;;  %2189 = vst.msk [vmem:[#allocation7 + $0x50] sm:$0xff] %vm956_vm4, %v2186_v46  ;;  %1090 = vst.msk [vmem:[#allocation7 + $0x38] sm:$0xff] %vm956_vm4, %v1088_v43  ;;  %v9274_v2 = vld [vmem:[#allocation7 + $0x68] sm:$0xff]  ;;  %6193 = vmatprep.mubr.msk.f32.mxu1 %vm956_vm4, %v9188_v10 }
 0x1c3   :  { %v1846_v7 = vld [vmem:[#allocation4 + $0x65] ss:$2 sm:$0xff]  ;;  %2016 = vst.msk [vmem:[#allocation7 + $0x18] sm:$0xff] %vm956_vm4, %v2014_v38  ;;  %v1676_v41 = vld [vmem:[#allocation4 + $0x7c] ss:$2 sm:$0xff] }
 0x1c4   :  { %v1383_v44 = vld [vmem:[#allocation4 + $0x8b] ss:$2 sm:$0xff]  ;;  %1848 = vst.msk [vmem:[#allocation7 + $0x68] sm:$0xff] %vm956_vm4, %v1846_v7  ;;  %v2018_v47 = vld [vmem:[#allocation4 + $0x56] ss:$2 sm:$0xff] }
 0x1c5   :  { %v9280_v46 = vld [vmem:[#allocation7 + $0x78] sm:$0xff]  ;;  %v5654_v12 = vld [vmem:[%s10427_s2 + $0x88] sm:$0xff]  ;;  %v9292_v10 = vld [vmem:[#allocation7] sm:$0xff]  ;;  %6194 = vmatmul.mubr.msk.f32.vlgmr.msra.gmra.mrb[0].mxu1 %vm956_vm4, %v9203_v4 }
 0x1c6   :  { %v9288_v43 = vld [vmem:[#allocation7 + $0x58] sm:$0xff]  ;;  %1385 = vst.msk [vmem:[#allocation7 + $0x78] sm:$0xff] %vm956_vm4, %v1383_v44  ;;  %v2354_v7 = vld [vmem:[#allocation4 + $0x8] ss:$2 sm:$0xff]  ;;  %v9296_v17 = vld [vmem:[#allocation7 + $0x20] sm:$0xff]  ;;  %6610 = vmatpush3.bf16.msra.mxu1 %v9177_v37  ;;  %6196 = vmatprep.mubr.msk.f32.mxu1 %vm956_vm4, %v9215_v5 }
 0x1c7   :  { %v2188_v38 = vld [vmem:[#allocation4 + $0x3f] ss:$2 sm:$0xff]  ;;  %v1097_v50 = vld [vmem:[#allocation7 + $0x30] sm:$0xff]  ;;  %2357 = vst.msk [vmem:[#allocation7] sm:$0xff] %vm956_vm4, %v2354_v7  ;;  %2021 = vst.msk [vmem:[#allocation7 + $0x20] sm:$0xff] %vm956_vm4, %v2018_v47  ;;  %6612 = vmatprep.subr.bf16.mxu1 %v6611_v19  ;;  %v9314_v47 = vpack.c.bf16 %v5654_v12, %v5653_v13 }
 0x1c8   :  { %v1850_v18 = vld [vmem:[#allocation4 + $0x7d] ss:$2 sm:$0xff]  ;;  %2190 = vst.msk [vmem:[#allocation7 + $0x58] sm:$0xff] %vm956_vm4, %v2188_v38  ;;  %6162 = vmatprep.mubr.msk.f32.mxu0 %vm956_vm4, %v1097_v50  ;;  %1679 = vst.msk [vmem:[#allocation7 + $0x30] sm:$0xff] %vm956_vm4, %v1676_v41  ;;  %v1392_v44 = vld [vmem:[#allocation7 + $0x70] sm:$0xff] }
 0x1c9   :  { %v9294_v51 = vld [vmem:[#allocation7 + $0x8] sm:$0xff]  ;;  %v9305_v11 = vld [vmem:[#allocation7 + $0x10] sm:$0xff]  ;;  %1853 = vst.msk [vmem:[#allocation7 + $0x70] sm:$0xff] %vm956_vm4, %v1850_v18  ;;  %v9311_v41 = vld [vmem:[#allocation7 + $0x60] sm:$0xff]  ;;  %6197 = vmatmul.mubr.msk.f32.gmra.mrb[2].mxu1 %vm956_vm4, %v9235_v32 }
 0x1ca   :  { %2358 = vst.msk [vmem:[#allocation7 + $0x8] sm:$0xff] %vm956_vm4, %v2356_v16  ;;  %v2360_v8 = vld [vmem:[#allocation4 + $0x30] ss:$2 sm:$0xff]  ;;  %v2192_v38 = vld [vmem:[#allocation4 + $0x57] ss:$2 sm:$0xff]  ;;  %v9317_v48 = vld [vmem:[#allocation7 + $0x28] sm:$0xff]  ;;  %6199 = vmatprep.mubr.msk.f32.mxu1 %vm956_vm4, %v9254_v14  ;;  %6614 = vmatpush3.bf16.msra.mxu1 %v6611_v19 }
 0x1cb   :  { %v2020_v50 = vld [vmem:[#allocation4 + $0x66] ss:$2 sm:$0xff]  ;;  %2363 = vst.msk [vmem:[#allocation7 + $0x10] sm:$0xff] %vm956_vm4, %v2360_v8  ;;  %2195 = vst.msk [vmem:[#allocation7 + $0x60] sm:$0xff] %vm956_vm4, %v2192_v38  ;;  %v2194_v16 = vld [vmem:[#allocation4 + $0x67] ss:$2 sm:$0xff]  ;;  %6616 = vmatprep.subr.bf16.mxu1 %v9314_v47 }
 0x1cc   :  { %v1678_v4 = vld [vmem:[#allocation4 + $0x8c] ss:$2 sm:$0xff]  ;;  %v1852_v49 = vld [vmem:[#allocation4 + $0x8d] ss:$2 sm:$0xff]  ;;  %2022 = vst.msk [vmem:[#allocation7 + $0x28] sm:$0xff] %vm956_vm4, %v2020_v50  ;;  %v9329_v13 = vld [vmem:[#allocation7 + $0x40] sm:$0xff] }
 0x1cd   :  { %v2362_v7 = vld [vmem:[#allocation4 + $0x40] ss:$2 sm:$0xff]  ;;  %v1098_v37 = vld [vmem:[#allocation7 + $0x38] sm:$0xff]  ;;  %v2528_v12 = vld [vmem:[#allocation4 + $0x9] ss:$2 sm:$0xff]  ;;  %6200 = vmatmul.mubr.msk.f32.gmra.mrb[4].mxu1 %vm956_vm4, %v9274_v2 }
 0x1ce   :  { %v9319_v5 = vld [vmem:[#allocation7 + $0x18] sm:$0xff]  ;;  %6163 = vmatmul.mubr.msk.f32.gmra.mrb[22].mxu0 %vm956_vm4, %v1098_v37  ;;  %1680 = vst.msk [vmem:[#allocation7 + $0x38] sm:$0xff] %vm956_vm4, %v1678_v4  ;;  %v9326_v18 = vld [vmem:[#allocation7 + $0x68] sm:$0xff]  ;;  %2531 = vst.msk [vmem:[#allocation7 + $0x40] sm:$0xff] %vm956_vm4, %v2528_v12  ;;  %6202 = vmatprep.mubr.msk.f32.mxu1 %vm956_vm4, %v1392_v44 }
 0x1cf   :  { %2364 = vst.msk [vmem:[#allocation7 + $0x18] sm:$0xff] %vm956_vm4, %v2362_v7  ;;  %v1393_v8 = vld [vmem:[#allocation7 + $0x78] sm:$0xff]  ;;  %2196 = vst.msk [vmem:[#allocation7 + $0x68] sm:$0xff] %vm956_vm4, %v2194_v16  ;;  %v9335_v32 = vld [vmem:[#allocation7 + $0x48] sm:$0xff] }
 0x1d0   :  { %v2024_v38 = vld [vmem:[#allocation4 + $0x7e] ss:$2 sm:$0xff]  ;;  %v2530_v50 = vld [vmem:[#allocation4 + $0x19] ss:$2 sm:$0xff]  ;;  %1854 = vst.msk [vmem:[#allocation7 + $0x78] sm:$0xff] %vm956_vm4, %v1852_v49  ;;  %v9340_v7 = vld [vmem:[#allocation7 + $0x50] sm:$0xff] }
 0x1d1   :  { %v2366_v4 = vld [vmem:[#allocation4 + $0x58] ss:$2 sm:$0xff]  ;;  %2532 = vst.msk [vmem:[#allocation7 + $0x48] sm:$0xff] %vm956_vm4, %v2530_v50  ;;  %v2534_v14 = vld [vmem:[#allocation4 + $0x31] ss:$2 sm:$0xff]  ;;  %6203 = vmatmul.mubr.msk.f32.gmra.mrb[6].mxu1 %vm956_vm4, %v1393_v8 }
 0x1d2   :  { %v9342_v19 = vld [vmem:[#allocation7 + $0x58] sm:$0xff]  ;;  %v9344_v37 = vld [vmem:[#allocation7 + $0x30] sm:$0xff]  ;;  %v9346_v16 = vld [vmem:[#allocation7 + $0x20] sm:$0xff]  ;;  %2537 = vst.msk [vmem:[#allocation7 + $0x50] sm:$0xff] %vm956_vm4, %v2534_v14  ;;  %6213 = vmatprep.mubr.msk.f32.mxu1 %vm956_vm4, %v9156_v33 }
 0x1d3   :  { %v2536_v12 = vld [vmem:[#allocation4 + $0x41] ss:$2 sm:$0xff]  ;;  %2027 = vst.msk [vmem:[#allocation7 + $0x30] sm:$0xff] %vm956_vm4, %v2024_v38  ;;  %v9352_v49 = vld [vmem:[#allocation7 + $0x70] sm:$0xff]  ;;  %2369 = vst.msk [vmem:[#allocation7 + $0x20] sm:$0xff] %vm956_vm4, %v2366_v4 }
 0x1d4   :  { %v2198_v50 = vld [vmem:[#allocation4 + $0x7f] ss:$2 sm:$0xff]  ;;  %2538 = vst.msk [vmem:[#allocation7 + $0x58] sm:$0xff] %vm956_vm4, %v2536_v12  ;;  %v5655_v2 = vld [vmem:[%s10427_s2 + $0x90] sm:$0xff]  ;;  %v2372_v20 = vld [vmem:[#allocation4 + $0x80] ss:$2 sm:$0xff] }
 0x1d5   :  { %2201 = vst.msk [vmem:[#allocation7 + $0x70] sm:$0xff] %vm956_vm4, %v2198_v50  ;;  %v9358_v23 = vld [vmem:[#allocation7 + $0x60] sm:$0xff]  ;;  %v5656_v38 = vld [vmem:[%s10427_s2 + $0x98] sm:$0xff]  ;;  %v9367_v12 = vld [vmem:[#allocation7 + $0x28] sm:$0xff]  ;;  %6214 = vmatmul.mubr.msk.f32.vlgmr.msra.gmra.mrb[0].mxu1 %vm956_vm4, %v9174_v3 }
 0x1d6   :  { %v2540_v14 = vld [vmem:[#allocation4 + $0x59] ss:$2 sm:$0xff]  ;;  %v2026_v22 = vld [vmem:[#allocation4 + $0x8e] ss:$2 sm:$0xff]  ;;  %v2542_v55 = vld [vmem:[#allocation4 + $0x69] ss:$2 sm:$0xff]  ;;  %6618 = vmatpush3.bf16.msra.mxu1 %v9314_v47  ;;  %6216 = vmatprep.mubr.msk.f32.mxu1 %vm956_vm4, %v9190_v36 }
 0x1d7   :  { %2543 = vst.msk [vmem:[#allocation7 + $0x60] sm:$0xff] %vm956_vm4, %v2540_v14  ;;  %v1688_v4 = vld [vmem:[#allocation7 + $0x38] sm:$0xff]  ;;  %v2368_v44 = vld [vmem:[#allocation4 + $0x68] ss:$2 sm:$0xff]  ;;  %v6619_v14 = vpack.c.bf16 %v5656_v38, %v5655_v2  ;;  %v5665_v8 = vld [vmem:[%s10427_s2 + $0xa0] sm:$0xff] }
 0x1d8   :  { %2028 = vst.msk [vmem:[#allocation7 + $0x38] sm:$0xff] %vm956_vm4, %v2026_v22  ;;  %2370 = vst.msk [vmem:[#allocation7 + $0x28] sm:$0xff] %vm956_vm4, %v2368_v44  ;;  %v9372_v50 = vld [vmem:[#allocation7 + $0x68] sm:$0xff]  ;;  %v9376_v54 = vld [vmem:[#allocation7 + $0x78] sm:$0xff] }
 0x1d9   :  { %v2200_v21 = vld [vmem:[#allocation4 + $0x8f] ss:$2 sm:$0xff]  ;;  %2544 = vst.msk [vmem:[#allocation7 + $0x68] sm:$0xff] %vm956_vm4, %v2542_v55  ;;  %6620 = vmatprep.subr.bf16.mxu1 %v6619_v14  ;;  %v2374_v38 = vld [vmem:[#allocation4 + $0x90] ss:$2 sm:$0xff]  ;;  %6217 = vmatmul.mubr.msk.f32.gmra.mrb[2].mxu1 %vm956_vm4, %v9205_v42  ;;  %v5713_v47 = vld [vmem:[%s10427_s2 + $0x120] sm:$0xff] }
 0x1da   :  { %2202 = vst.msk [vmem:[#allocation7 + $0x78] sm:$0xff] %vm956_vm4, %v2200_v21  ;;  %v5666_v22 = vld [vmem:[%s10427_s2 + $0xa8] sm:$0xff]  ;;  %v9386_v44 = vld [vmem:[#allocation7 + $0x30] sm:$0xff]  ;;  %6219 = vmatprep.mubr.msk.f32.mxu1 %vm956_vm4, %v9217_v40  ;;  %6622 = vmatpush3.bf16.msra.mxu1 %v6619_v14  ;;  %v5668_v42 = vld [vmem:[%s10427_s2 + $0xb8] sm:$0xff] }
 0x1db   :  { %2375 = vst.msk [vmem:[#allocation7 + $0x30] sm:$0xff] %vm956_vm4, %v2372_v20  ;;  %v2546_v33 = vld [vmem:[#allocation4 + $0x81] ss:$2 sm:$0xff]  ;;  %v6623_v21 = vpack.c.bf16 %v5666_v22, %v5665_v8  ;;  %v2548_v3 = vld [vmem:[#allocation4 + $0x91] ss:$2 sm:$0xff] }
 0x1dc   :  { %v9391_v55 = vld [vmem:[#allocation7 + $0x70] sm:$0xff]  ;;  %v2551_v14 = vld [vmem:[#allocation7 + $0x40] sm:$0xff]  ;;  %v2552_v8 = vld [vmem:[#allocation7 + $0x48] sm:$0xff] }
 0x1dd   :  { %2549 = vst.msk [vmem:[#allocation7 + $0x70] sm:$0xff] %vm956_vm4, %v2546_v33  ;;  %6624 = vmatprep.subr.bf16.mxu1 %v6623_v21  ;;  %6220 = vmatmul.mubr.msk.f32.gmra.mrb[4].mxu1 %vm956_vm4, %v9233_v9  ;;  %v5667_v36 = vld [vmem:[%s10427_s2 + $0xb0] sm:$0xff]  ;;  %v5677_v9 = vld [vmem:[%s10427_s2 + $0xc0] sm:$0xff] }
 0x1de   :  { %6222 = vmatprep.mubr.msk.f32.mxu1 %vm956_vm4, %v9249_v0  ;;  %v6627_v40 = vpack.c.bf16 %v5668_v42, %v5667_v36  ;;  %v5678_v0 = vld [vmem:[%s10427_s2 + $0xc8] sm:$0xff]  ;;  %v2553_v22 = vld [vmem:[#allocation7 + $0x50] sm:$0xff]  ;;  %v7300_v42 = vld [vmem:[#allocation6] sm:$0xff] }
 0x1df   :  { %v9397_v2 = vld [vmem:[#allocation7 + $0x38] sm:$0xff]  ;;  %2735 = vst.msk [vmem:[#allocation5 + $0x8] sm:$0xff] %vm2733_vm5, %v7300_v42  ;;  %2736 = vst.msk [vmem:[#allocation5 + $0x10] sm:$0xff] %vm2733_vm5, %v7300_v42 }
 0x1e0   :  { %2376 = vst.msk [vmem:[#allocation7 + $0x38] sm:$0xff] %vm956_vm4, %v2374_v38  ;;  %v2556_v33 = vld [vmem:[#allocation7 + $0x68] sm:$0xff] }
 0x1e1   :  { %v9404_v20 = vld [vmem:[#allocation7 + $0x78] sm:$0xff]  ;;  %6223 = vmatmul.mubr.msk.f32.gmra.mrb[6].mxu1 %vm956_vm4, %v9280_v46  ;;  %v6631_v46 = vpack.c.bf16 %v5678_v0, %v5677_v9  ;;  %2734 = vst.msk [vmem:[#allocation5] sm:$0xff] %vm2733_vm5, %v7300_v42  ;;  %2737 = vst.msk [vmem:[#allocation5 + $0x18] sm:$0xff] %vm2733_vm5, %v7300_v42 }
 0x1e2   :  { %2550 = vst.msk [vmem:[#allocation7 + $0x78] sm:$0xff] %vm956_vm4, %v2548_v3  ;;  %6233 = vmatprep.mubr.msk.f32.mxu1 %vm956_vm4, %v9222_v35  ;;  %v5680_v35 = vld [vmem:[%s10427_s2 + $0xd8] sm:$0xff] }
 0x1e3   :  { %2738 = vst.msk [vmem:[#allocation5 + $0x20] sm:$0xff] %vm2733_vm5, %v7300_v42  ;;  %2739 = vst.msk [vmem:[#allocation5 + $0x28] sm:$0xff] %vm2733_vm5, %v7300_v42 }
 0x1e4   :  { %2740 = vst.msk [vmem:[#allocation5 + $0x30] sm:$0xff] %vm2733_vm5, %v7300_v42  ;;  %2741 = vst.msk [vmem:[#allocation5 + $0x38] sm:$0xff] %vm2733_vm5, %v7300_v42 }
 0x1e5   :  { %6234 = vmatmul.mubr.msk.f32.vlgmr.msra.gmra.mrb[0].mxu1 %vm956_vm4, %v9240_v6  ;;  %2742 = vst.msk [vmem:[#allocation5 + $0x40] sm:$0xff] %vm2733_vm5, %v7300_v42  ;;  %2743 = vst.msk [vmem:[#allocation5 + $0x48] sm:$0xff] %vm2733_vm5, %v7300_v42 }
 0x1e6   :  { %6626 = vmatpush3.bf16.msra.mxu1 %v6623_v21  ;;  %6236 = vmatprep.mubr.msk.f32.mxu1 %vm956_vm4, %v9243_v15  ;;  %v5679_v15 = vld [vmem:[%s10427_s2 + $0xd0] sm:$0xff]  ;;  %2744 = vst.msk [vmem:[#allocation5 + $0x50] sm:$0xff] %vm2733_vm5, %v7300_v42  ;;  %2745 = vst.msk [vmem:[#allocation5 + $0x58] sm:$0xff] %vm2733_vm5, %v7300_v42 }
 0x1e7   :  { %6628 = vmatprep.subr.bf16.mxu1 %v6627_v40  ;;  %v2557_v21 = vld [vmem:[#allocation7 + $0x70] sm:$0xff] }
 0x1e9   :  { %6237 = vmatmul.mubr.msk.f32.gmra.mrb[2].mxu1 %vm956_vm4, %v9267_v45  ;;  %v5689_v45 = vld [vmem:[%s10427_s2 + $0xe0] sm:$0xff] }
 0x1ea   :  { %6239 = vmatprep.mubr.msk.f32.mxu1 %vm956_vm4, %v9296_v17  ;;  %6630 = vmatpush3.bf16.msra.mxu1 %v6627_v40  ;;  %v6635_v17 = vpack.c.bf16 %v5680_v35, %v5679_v15  ;;  %v5733_v15 = vld [vmem:[%s10428_s3 + $0x80] sm:$0xff]  ;;  %v5734_v35 = vld [vmem:[%s10428_s3 + $0x88] sm:$0xff] }
 0x1eb   :  { %6632 = vmatprep.subr.bf16.mxu1 %v6631_v46 }
 0x1ed   :  { %6240 = vmatmul.mubr.msk.f32.gmra.mrb[4].mxu1 %vm956_vm4, %v9317_v48  ;;  %v5690_v48 = vld [vmem:[%s10427_s2 + $0xe8] sm:$0xff] }
 0x1ee   :  { %6242 = vmatprep.mubr.msk.f32.mxu1 %vm956_vm4, %v9344_v37  ;;  %v6639_v6 = vpack.c.bf16 %v5690_v48, %v5689_v45  ;;  %v2379_v37 = vld [vmem:[#allocation7 + $0x10] sm:$0xff]  ;;  %v6663_v45 = vpack.c.bf16 %v5734_v35, %v5733_v15  ;;  %v5736_v48 = vld [vmem:[%s10428_s3 + $0x98] sm:$0xff] }
 0x1f0   :  { %6664 = vmatprep.subr.bf16.mxu0 %v6663_v45 }
 0x1f1   :  { %6243 = vmatmul.mubr.msk.f32.gmra.mrb[6].mxu1 %vm956_vm4, %v1688_v4  ;;  %v2382_v4 = vld [vmem:[#allocation7 + $0x28] sm:$0xff]  ;;  %6666 = vmatpush3.bf16.msra.mxu0 %v6663_v45 }
 0x1f2   :  { %6253 = vmatprep.mubr.msk.f32.mxu1 %vm956_vm4, %v9224_v1  ;;  %v5691_v1 = vld [vmem:[%s10427_s2 + $0xf0] sm:$0xff] }
 0x1f5   :  { %6254 = vmatmul.mubr.msk.f32.vlgmr.msra.gmra.mrb[0].mxu1 %vm956_vm4, %v9252_v39  ;;  %v5692_v39 = vld [vmem:[%s10427_s2 + $0xf8] sm:$0xff] }
 0x1f6   :  { %6634 = vmatpush3.bf16.msra.mxu1 %v6631_v46  ;;  %6256 = vmatprep.mubr.msk.f32.mxu1 %vm956_vm4, %v9263_v34  ;;  %v6643_v34 = vpack.c.bf16 %v5692_v39, %v5691_v1  ;;  %v5737_v1 = vld [vmem:[%s10428_s3 + $0xa0] sm:$0xff]  ;;  %v5738_v39 = vld [vmem:[%s10428_s3 + $0xa8] sm:$0xff] }
 0x1f7   :  { %6636 = vmatprep.subr.bf16.mxu1 %v6635_v17 }
 0x1f9   :  { %6257 = vmatmul.mubr.msk.f32.gmra.mrb[2].mxu1 %vm956_vm4, %v9288_v43  ;;  %v5701_v43 = vld [vmem:[%s10427_s2 + $0x100] sm:$0xff] }
 0x1fa   :  { %6259 = vmatprep.mubr.msk.f32.mxu1 %vm956_vm4, %v9311_v41  ;;  %6638 = vmatpush3.bf16.msra.mxu1 %v6635_v17  ;;  %v5702_v41 = vld [vmem:[%s10427_s2 + $0x108] sm:$0xff]  ;;  %v5735_v17 = vld [vmem:[%s10428_s3 + $0x90] sm:$0xff] }
 0x1fb   :  { %6640 = vmatprep.subr.bf16.mxu1 %v6639_v6 }
 0x1fd   :  { %6260 = vmatmul.mubr.msk.f32.gmra.mrb[4].mxu1 %vm956_vm4, %v9326_v18 }
 0x1fe   :  { %6262 = vmatprep.mubr.msk.f32.mxu1 %vm956_vm4, %v9352_v49  ;;  %v2381_v49 = vld [vmem:[#allocation7 + $0x20] sm:$0xff] }
 0x201   :  { %6263 = vmatmul.mubr.msk.f32.gmra.mrb[6].mxu1 %vm956_vm4, %v9376_v54  ;;  %v6647_v54 = vpack.c.bf16 %v5702_v41, %v5701_v43  ;;  %v5739_v43 = vld [vmem:[%s10428_s3 + $0xb0] sm:$0xff]  ;;  %v5740_v41 = vld [vmem:[%s10428_s3 + $0xb8] sm:$0xff] }
 0x202   :  { %6273 = vmatprep.mubr.msk.f32.mxu1 %vm956_vm4, %v9292_v10  ;;  %v5704_v10 = vld [vmem:[%s10427_s2 + $0x118] sm:$0xff] }
 0x205   :  { %6274 = vmatmul.mubr.msk.f32.vlgmr.msra.gmra.mrb[0].mxu1 %vm956_vm4, %v9294_v51  ;;  %v5703_v51 = vld [vmem:[%s10427_s2 + $0x110] sm:$0xff] }
 0x206   :  { %6642 = vmatpush3.bf16.msra.mxu1 %v6639_v6  ;;  %6276 = vmatprep.mubr.msk.f32.mxu1 %vm956_vm4, %v9305_v11  ;;  %v6651_v11 = vpack.c.bf16 %v5704_v10, %v5703_v51  ;;  %v6667_v6 = vpack.c.bf16 %v5736_v48, %v5735_v17  ;;  %v2772_v51 = vld [vmem:[%s10428_s3] sm:$0xff]  ;;  %v2773_v10 = vld [vmem:[%s10428_s3 + $0x8] sm:$0xff] }
 0x207   :  { %6644 = vmatprep.subr.bf16.mxu1 %v6643_v34 }
 0x208   :  { %6668 = vmatprep.subr.bf16.mxu0 %v6667_v6 }
 0x209   :  { %6277 = vmatmul.mubr.msk.f32.gmra.mrb[2].mxu1 %vm956_vm4, %v9319_v5  ;;  %v5714_v5 = vld [vmem:[%s10427_s2 + $0x128] sm:$0xff]  ;;  %6670 = vmatpush3.bf16.msra.mxu0 %v6667_v6 }
 0x20a   :  { %6279 = vmatprep.mubr.msk.f32.mxu1 %vm956_vm4, %v9346_v16  ;;  %6646 = vmatpush3.bf16.msra.mxu1 %v6643_v34  ;;  %v6655_v18 = vpack.c.bf16 %v5714_v5, %v5713_v47  ;;  %v2380_v16 = vld [vmem:[#allocation7 + $0x18] sm:$0xff]  ;;  %v6671_v34 = vpack.c.bf16 %v5738_v39, %v5737_v1  ;;  %v993_v47 = vld [vmem:[%s10429_s4 + $0x1] ss:$0 sm:$0xff] }
 0x20b   :  { %6648 = vmatprep.subr.bf16.mxu1 %v6647_v54 }
 0x20c   :  { %6672 = vmatprep.subr.bf16.mxu0 %v6671_v34 }
 0x20d   :  { %6280 = vmatmul.mubr.msk.f32.gmra.mrb[4].mxu1 %vm956_vm4, %v9367_v12  ;;  %v2383_v12 = vld [vmem:[#allocation7 + $0x30] sm:$0xff]  ;;  %6674 = vmatpush3.bf16.msra.mxu0 %v6671_v34 }
 0x20e   :  { %6282 = vmatprep.mubr.msk.f32.mxu1 %vm956_vm4, %v9386_v44  ;;  %v2554_v44 = vld [vmem:[#allocation7 + $0x58] sm:$0xff] }
 0x211   :  { %6283 = vmatmul.mubr.msk.f32.gmra.mrb[6].mxu1 %vm956_vm4, %v9397_v2  ;;  %v2558_v2 = vld [vmem:[#allocation7 + $0x78] sm:$0xff] }
 0x212   :  { %6293 = vmatprep.mubr.msk.f32.mxu1 %vm956_vm4, %v9329_v13  ;;  %v5715_v13 = vld [vmem:[%s10427_s2 + $0x130] sm:$0xff] }
 0x215   :  { %6294 = vmatmul.mubr.msk.f32.vlgmr.msra.gmra.mrb[0].mxu1 %vm956_vm4, %v9335_v32  ;;  %v5716_v32 = vld [vmem:[%s10427_s2 + $0x138] sm:$0xff] }
 0x216   :  { %6650 = vmatpush3.bf16.msra.mxu1 %v6647_v54  ;;  %6296 = vmatprep.mubr.msk.f32.mxu1 %vm956_vm4, %v9340_v7  ;;  %v6659_v7 = vpack.c.bf16 %v5716_v32, %v5715_v13  ;;  %v6675_v54 = vpack.c.bf16 %v5740_v41, %v5739_v43 }
 0x217   :  { %6652 = vmatprep.subr.bf16.mxu1 %v6651_v11 }
 0x218   :  { %6676 = vmatprep.subr.bf16.mxu0 %v6675_v54 }
 0x219   :  { %6297 = vmatmul.mubr.msk.f32.gmra.mrb[2].mxu1 %vm956_vm4, %v9342_v19  ;;  %v2378_v19 = vld [vmem:[#allocation7 + $0x8] sm:$0xff]  ;;  %6678 = vmatpush3.bf16.msra.mxu0 %v6675_v54 }
 0x21a   :  { %6299 = vmatprep.mubr.msk.f32.mxu1 %vm956_vm4, %v9358_v23  ;;  %6654 = vmatpush3.bf16.msra.mxu1 %v6651_v11  ;;  %v2377_v23 = vld [vmem:[#allocation7] sm:$0xff]  ;;  %v9588_v11 = vpack.c.bf16 %v2773_v10, %v2772_v51 }
 0x21b   :  { %6656 = vmatprep.subr.bf16.mxu1 %v6655_v18 }
 0x21c   :  { %6680 = vmatprep.subr.bf16.mxu0 %v9588_v11 }
 0x21d   :  { %6300 = vmatmul.mubr.msk.f32.gmra.mrb[4].mxu1 %vm956_vm4, %v9372_v50  ;;  %v2384_v50 = vld [vmem:[#allocation7 + $0x38] sm:$0xff] }
 0x21e   :  { %6302 = vmatprep.mubr.msk.f32.mxu1 %vm956_vm4, %v9391_v55  ;;  %v2555_v55 = vld [vmem:[#allocation7 + $0x60] sm:$0xff] }
 0x221   :  { %6303 = vmatmul.mubr.msk.f32.gmra.mrb[6].mxu1 %vm956_vm4, %v9404_v20 }
 0x222   :  { %6313 = vmatprep.mubr.msk.f32.mxu1 %vm956_vm4, %v2377_v23 }
 0x225   :  { %6314 = vmatmul.mubr.msk.f32.vlgmr.msra.gmra.mrb[0].mxu1 %vm956_vm4, %v2378_v19 }
 0x226   :  { %6658 = vmatpush3.bf16.msra.mxu1 %v6655_v18  ;;  %6316 = vmatprep.mubr.msk.f32.mxu1 %vm956_vm4, %v2379_v37 }
 0x227   :  { %6660 = vmatprep.subr.bf16.mxu1 %v6659_v7 }
 0x229   :  { %6317 = vmatmul.mubr.msk.f32.gmra.mrb[2].mxu1 %vm956_vm4, %v2380_v16 }
 0x22a   :  { %6319 = vmatprep.mubr.msk.f32.mxu1 %vm956_vm4, %v2381_v49  ;;  %6662 = vmatpush3.bf16.msra.mxu1 %v6659_v7 }
 0x22d   :  { %6320 = vmatmul.mubr.msk.f32.gmra.mrb[4].mxu1 %vm956_vm4, %v2382_v4 }
 0x22e   :  { %6322 = vmatprep.mubr.msk.f32.mxu1 %vm956_vm4, %v2383_v12 }
 0x231   :  { %6323 = vmatmul.mubr.msk.f32.gmra.mrb[6].mxu1 %vm956_vm4, %v2384_v50 }
 0x232   :  { %6333 = vmatprep.mubr.msk.f32.mxu1 %vm956_vm4, %v2551_v14 }
 0x235   :  { %6334 = vmatmul.mubr.msk.f32.vlgmr.msra.gmra.mrb[0].mxu1 %vm956_vm4, %v2552_v8 }
 0x236   :  { %6336 = vmatprep.mubr.msk.f32.mxu1 %vm956_vm4, %v2553_v22 }
 0x239   :  { %6337 = vmatmul.mubr.msk.f32.gmra.mrb[2].mxu1 %vm956_vm4, %v2554_v44 }
 0x23a   :  { %6339 = vmatprep.mubr.msk.f32.mxu1 %vm956_vm4, %v2555_v55 }
 0x23d   :  { %6340 = vmatmul.mubr.msk.f32.gmra.mrb[4].mxu1 %vm956_vm4, %v2556_v33 }
 0x23e   :  { %6342 = vmatprep.mubr.msk.f32.mxu1 %vm956_vm4, %v2557_v21 }
 0x241   :  { %6343 = vmatmul.mubr.msk.f32.gmra.mrb[6].mxu1 %vm956_vm4, %v2558_v2 }
 0x27d   :  { %v6155_v38 = vpop.f32.mrb[16].mxu0 }
 0x27e   :  { %v1194_v20 = vpop.f32.mrb[17].mxu0 }
 0x286   :  { %v6158_v3 = vpop.f32.mrb[18].mxu0 }
 0x287   :  { %v1204_v36 = vpop.f32.mrb[19].mxu0 }
 0x294   :  { %v6161_v40 = vpop.f32.mrb[20].mxu0 }
 0x295   :  { %v1214_v9 = vpop.f32.mrb[21].mxu0 }
 0x2a1   :  { %v6164_v0 = vpop.f32.mrb[22].mxu0 }
 0x2a2   :  { %v1224_v46 = vpop.f32.mrb[23].mxu0 }
 0x308   :  { %v6335_v5 = vpop.f32.mrb[0].mxu1 }
 0x309   :  { %v7143_v18 = vadd.f32 %v6335_v5, %v6155_v38  ;;  %v2654_v13 = vpop.f32.mrb[1].mxu1 }
 0x30a   :  { %v7144_v32 = vadd.f32 %v2654_v13, %v1194_v20 }
 0x30b   :  { %v2710_v23 = vadd.f32 %v7143_v18, %v993_v47 }
 0x30c   :  { %v2709_v7 = vadd.f32 %v7144_v32, %v993_v47  ;;  %v6338_v19 = vpop.f32.mrb[2].mxu1 }
 0x30d   :  { %v2718_v37 = vmul.f32 0.2, %v2710_v23  ;;  %v7145_v16 = vadd.f32 %v6338_v19, %v6158_v3  ;;  %v2664_v49 = vpop.f32.mrb[3].mxu1 }
 0x30e   :  { %v2717_v4 = vmul.f32 0.2, %v2709_v7  ;;  %v7146_v12 = vadd.f32 %v2664_v49, %v1204_v36 }
 0x30f   :  { %v2726_v50 = vmax.f32 %v2710_v23, %v2718_v37  ;;  %v2712_v14 = vadd.f32 %v7145_v16, %v993_v47 }
 0x310   :  { %v2725_v8 = vmax.f32 %v2709_v7, %v2717_v4  ;;  %v2711_v22 = vadd.f32 %v7146_v12, %v993_v47  ;;  %v6341_v44 = vpop.f32.mrb[4].mxu1  ;;  %v2774_v12 = vld [vmem:[%s10428_s3 + $0x10] sm:$0xff] }
 0x311   :  { %2747 = vst.msk [vmem:[#allocation5 + $0xc] sm:$0xff] %vm2733_vm5, %v2726_v50  ;;  %v2720_v55 = vmul.f32 0.2, %v2712_v14  ;;  %v7147_v33 = vadd.f32 %v6341_v44, %v6161_v40  ;;  %v2674_v21 = vpop.f32.mrb[5].mxu1 }
 0x312   :  { %2746 = vst.msk [vmem:[#allocation5 + $0x4] sm:$0xff] %vm2733_vm5, %v2725_v8  ;;  %v2719_v2 = vmul.f32 0.2, %v2711_v22  ;;  %v7148_v38 = vadd.f32 %v2674_v21, %v1214_v9 }
 0x313   :  { %v2728_v20 = vmax.f32 %v2712_v14, %v2720_v55  ;;  %v2714_v42 = vadd.f32 %v7147_v33, %v993_v47  ;;  %v2775_v14 = vld [vmem:[%s10428_s3 + $0x18] sm:$0xff] }
 0x314   :  { %v2727_v3 = vmax.f32 %v2711_v22, %v2719_v2  ;;  %v2713_v15 = vadd.f32 %v7148_v38, %v993_v47  ;;  %v6344_v35 = vpop.f32.mrb[6].mxu1  ;;  %v2776_v38 = vld [vmem:[%s10428_s3 + $0x20] sm:$0xff] }
 0x315   :  { %2749 = vst.msk [vmem:[#allocation5 + $0x24] sm:$0xff] %vm2733_vm5, %v2728_v20  ;;  %v2722_v36 = vmul.f32 0.2, %v2714_v42  ;;  %v7149_v17 = vadd.f32 %v6344_v35, %v6164_v0  ;;  %v2684_v45 = vpop.f32.mrb[7].mxu1 }
 0x316   :  { %2748 = vst.msk [vmem:[#allocation5 + $0x1c] sm:$0xff] %vm2733_vm5, %v2727_v3  ;;  %v2721_v48 = vmul.f32 0.2, %v2713_v15  ;;  %v7150_v6 = vadd.f32 %v2684_v45, %v1224_v46  ;;  %v2777_v3 = vld [vmem:[%s10428_s3 + $0x28] sm:$0xff] }
 0x317   :  { %v2730_v40 = vmax.f32 %v2714_v42, %v2722_v36  ;;  %v2716_v1 = vadd.f32 %v7149_v17, %v993_v47  ;;  %v6683_v42 = vpack.c.bf16 %v2775_v14, %v2774_v12 }
 0x318   :  { %v2729_v39 = vmax.f32 %v2713_v15, %v2721_v48  ;;  %v2715_v34 = vadd.f32 %v7150_v6, %v993_v47 }
 0x319   :  { %2751 = vst.msk [vmem:[#allocation5 + $0x3c] sm:$0xff] %vm2733_vm5, %v2730_v40  ;;  %v2724_v9 = vmul.f32 0.2, %v2716_v1  ;;  %v2757_v43 = vld [vmem:[#allocation5] ss:$2 sm:$0xff]  ;;  %v2778_v40 = vld [vmem:[%s10428_s3 + $0x30] sm:$0xff] }
 0x31a   :  { %2750 = vst.msk [vmem:[#allocation5 + $0x34] sm:$0xff] %vm2733_vm5, %v2729_v39  ;;  %v2723_v41 = vmul.f32 0.2, %v2715_v34  ;;  %2758 = vst.msk [vmem:[#allocation7] sm:$0xff] %vm2733_vm5, %v2757_v43  ;;  %v2781_v54 = vld [vmem:[#allocation5 + $0x1] ss:$2 sm:$0xff] }
 0x31b   :  { %v2732_v0 = vmax.f32 %v2716_v1, %v2724_v9  ;;  %2782 = vst.msk [vmem:[#allocation7 + $0x40] sm:$0xff] %vm2733_vm5, %v2781_v54  ;;  %v2806_v5 = vld [vmem:[#allocation5 + $0x2] ss:$2 sm:$0xff]  ;;  %v3025_v32 = vld [vmem:[#allocation5 + $0x3] ss:$2 sm:$0xff]  ;;  %v6687_v1 = vpack.c.bf16 %v2777_v3, %v2776_v38  ;;  %v2779_v39 = vld [vmem:[%s10428_s3 + $0x38] sm:$0xff] }
 0x31c   :  { %v2731_v51 = vmax.f32 %v2715_v34, %v2723_v41  ;;  %v3244_v50 = vld [vmem:[#allocation5 + $0x4] ss:$2 sm:$0xff]  ;;  %v3370_v8 = vld [vmem:[#allocation5 + $0x5] ss:$2 sm:$0xff] }
 0x31d   :  { %2753 = vst.msk [vmem:[#allocation5 + $0x54] sm:$0xff] %vm2733_vm5, %v2732_v0  ;;  %v2760_v46 = vld [vmem:[#allocation5 + $0x18] ss:$2 sm:$0xff]  ;;  %v2784_v10 = vld [vmem:[#allocation5 + $0x19] ss:$2 sm:$0xff] }
 0x31e   :  { %2752 = vst.msk [vmem:[#allocation5 + $0x4c] sm:$0xff] %vm2733_vm5, %v2731_v51  ;;  %2761 = vst.msk [vmem:[#allocation7 + $0x8] sm:$0xff] %vm2733_vm5, %v2760_v46  ;;  %v2809_v19 = vld [vmem:[#allocation5 + $0x1a] ss:$2 sm:$0xff]  ;;  %v3028_v49 = vld [vmem:[#allocation5 + $0x1b] ss:$2 sm:$0xff] }
 0x31f   :  { %2785 = vst.msk [vmem:[#allocation7 + $0x48] sm:$0xff] %vm2733_vm5, %v2784_v10  ;;  %v3247_v20 = vld [vmem:[#allocation5 + $0x1c] ss:$2 sm:$0xff]  ;;  %v3373_v15 = vld [vmem:[#allocation5 + $0x1d] ss:$2 sm:$0xff]  ;;  %v6691_v10 = vpack.c.bf16 %v2779_v39, %v2778_v40 }
 0x320   :  { %v3496_v34 = vld [vmem:[#allocation5 + $0x6] ss:$2 sm:$0xff]  ;;  %v3622_v9 = vld [vmem:[#allocation5 + $0x7] ss:$2 sm:$0xff] }
 0x321   :  { %v9606_v47 = vld [vmem:[#allocation7] sm:$0xff]  ;;  %v2763_v18 = vld [vmem:[#allocation5 + $0x30] ss:$2 sm:$0xff]  ;;  %v2787_v23 = vld [vmem:[#allocation5 + $0x31] ss:$2 sm:$0xff] }
 0x322   :  { %2807 = vst.msk [vmem:[#allocation7] sm:$0xff] %vm2733_vm5, %v2806_v5  ;;  %2764 = vst.msk [vmem:[#allocation7 + $0x10] sm:$0xff] %vm2733_vm5, %v2763_v18  ;;  %v9610_v13 = vld [vmem:[#allocation7 + $0x40] sm:$0xff]  ;;  %v5750_v5 = vld [vmem:[%s10428_s3 + $0xc8] sm:$0xff] }
 0x323   :  { %3026 = vst.msk [vmem:[#allocation7 + $0x40] sm:$0xff] %vm2733_vm5, %v3025_v32  ;;  %2788 = vst.msk [vmem:[#allocation7 + $0x50] sm:$0xff] %vm2733_vm5, %v2787_v23  ;;  %v2812_v55 = vld [vmem:[#allocation5 + $0x32] ss:$2 sm:$0xff]  ;;  %v3031_v2 = vld [vmem:[#allocation5 + $0x33] ss:$2 sm:$0xff] }
 0x324   :  { %v3250_v41 = vld [vmem:[#allocation5 + $0x34] ss:$2 sm:$0xff]  ;;  %v3376_v0 = vld [vmem:[#allocation5 + $0x35] ss:$2 sm:$0xff] }
 0x325   :  { %v9614_v7 = vld [vmem:[#allocation7 + $0x8] sm:$0xff]  ;;  %v5749_v46 = vld [vmem:[%s10428_s3 + $0xc0] sm:$0xff] }
 0x326   :  { %v2766_v37 = vld [vmem:[#allocation5 + $0x48] ss:$2 sm:$0xff]  ;;  %2810 = vst.msk [vmem:[#allocation7 + $0x8] sm:$0xff] %vm2733_vm5, %v2809_v19  ;;  %v2790_v4 = vld [vmem:[#allocation5 + $0x49] ss:$2 sm:$0xff]  ;;  %v6695_v14 = vpack.c.bf16 %v5750_v5, %v5749_v46  ;;  %v5756_v46 = vld [vmem:[%s10428_s3 + $0xf8] sm:$0xff] }
 0x327   :  { %2767 = vst.msk [vmem:[#allocation7 + $0x18] sm:$0xff] %vm2733_vm5, %v2766_v37  ;;  %v9618_v16 = vld [vmem:[#allocation7 + $0x48] sm:$0xff]  ;;  %2791 = vst.msk [vmem:[#allocation7 + $0x58] sm:$0xff] %vm2733_vm5, %v2790_v4  ;;  %v3502_v38 = vld [vmem:[#allocation5 + $0x36] ss:$2 sm:$0xff] }
 0x328   :  { %3029 = vst.msk [vmem:[#allocation7 + $0x48] sm:$0xff] %vm2733_vm5, %v3028_v49  ;;  %v2815_v17 = vld [vmem:[#allocation5 + $0x4a] ss:$2 sm:$0xff]  ;;  %v3034_v6 = vld [vmem:[#allocation5 + $0x4b] ss:$2 sm:$0xff] }
 0x329   :  { %v2817_v22 = vld [vmem:[#allocation7] sm:$0xff]  ;;  %v9628_v44 = vld [vmem:[#allocation7 + $0x10] sm:$0xff] }
 0x32a   :  { %6361 = vmatprep.mubr.msk.f32.mxu0 %vm2733_vm5, %v2817_v22  ;;  %3245 = vst.msk [vmem:[#allocation7] sm:$0xff] %vm2733_vm5, %v3244_v50  ;;  %2813 = vst.msk [vmem:[#allocation7 + $0x10] sm:$0xff] %vm2733_vm5, %v2812_v55  ;;  %v9633_v33 = vld [vmem:[#allocation7 + $0x40] sm:$0xff]  ;;  %v9635_v21 = vld [vmem:[#allocation7 + $0x50] sm:$0xff] }
 0x32b   :  { %3371 = vst.msk [vmem:[#allocation7 + $0x40] sm:$0xff] %vm2733_vm5, %v3370_v8  ;;  %3032 = vst.msk [vmem:[#allocation7 + $0x50] sm:$0xff] %vm2733_vm5, %v3031_v2  ;;  %v3499_v18 = vld [vmem:[#allocation5 + $0x1e] ss:$2 sm:$0xff]  ;;  %v3625_v32 = vld [vmem:[#allocation5 + $0x1f] ss:$2 sm:$0xff] }
 0x32c   :  { %v3253_v19 = vld [vmem:[#allocation5 + $0x4c] ss:$2 sm:$0xff]  ;;  %v3379_v4 = vld [vmem:[#allocation5 + $0x4d] ss:$2 sm:$0xff] }
 0x32d   :  { %v2818_v35 = vld [vmem:[#allocation7 + $0x8] sm:$0xff]  ;;  %v5751_v50 = vld [vmem:[%s10428_s3 + $0xd0] sm:$0xff]  ;;  %v5752_v8 = vld [vmem:[%s10428_s3 + $0xd8] sm:$0xff] }
 0x32e   :  { %v9645_v36 = vld [vmem:[#allocation7 + $0x18] sm:$0xff]  ;;  %6362 = vmatmul.mubr.msk.f32.vlgmr.msra.gmra.mrb[24].mxu0 %vm2733_vm5, %v2818_v35  ;;  %3248 = vst.msk [vmem:[#allocation7 + $0x8] sm:$0xff] %vm2733_vm5, %v3247_v20  ;;  %v3748_v22 = vld [vmem:[#allocation5 + $0x8] ss:$2 sm:$0xff]  ;;  %v3874_v55 = vld [vmem:[#allocation5 + $0x9] ss:$2 sm:$0xff]  ;;  %v6699_v35 = vpack.c.bf16 %v5752_v8, %v5751_v50 }
 0x32f   :  { %2816 = vst.msk [vmem:[#allocation7 + $0x18] sm:$0xff] %vm2733_vm5, %v2815_v17  ;;  %v9650_v45 = vld [vmem:[#allocation7 + $0x48] sm:$0xff]  ;;  %v9652_v48 = vld [vmem:[#allocation7 + $0x58] sm:$0xff]  ;;  %6682 = vmatpush3.bf16.msra.mxu0 %v9588_v11  ;;  %v5727_v8 = vld [vmem:[%s10428_s3 + $0x50] sm:$0xff] }
 0x330   :  { %3374 = vst.msk [vmem:[#allocation7 + $0x48] sm:$0xff] %vm2733_vm5, %v3373_v15  ;;  %3035 = vst.msk [vmem:[#allocation7 + $0x58] sm:$0xff] %vm2733_vm5, %v3034_v6  ;;  %6684 = vmatprep.subr.bf16.mxu0 %v6683_v42  ;;  %v5753_v15 = vld [vmem:[%s10428_s3 + $0xe0] sm:$0xff]  ;;  %v5754_v17 = vld [vmem:[%s10428_s3 + $0xe8] sm:$0xff] }
 0x331   :  { %v2819_v43 = vld [vmem:[#allocation7 + $0x10] sm:$0xff]  ;;  %v9663_v54 = vld [vmem:[#allocation7] sm:$0xff] }
 0x332   :  { %6364 = vmatprep.mubr.msk.f32.mxu0 %vm2733_vm5, %v2819_v43  ;;  %3251 = vst.msk [vmem:[#allocation7 + $0x10] sm:$0xff] %vm2733_vm5, %v3250_v41  ;;  %v9667_v11 = vld [vmem:[#allocation7 + $0x50] sm:$0xff]  ;;  %3497 = vst.msk [vmem:[#allocation7] sm:$0xff] %vm2733_vm5, %v3496_v34  ;;  %v9670_v51 = vld [vmem:[#allocation7 + $0x40] sm:$0xff] }
 0x333   :  { %6686 = vmatpush3.bf16.msra.mxu0 %v6683_v42  ;;  %3377 = vst.msk [vmem:[#allocation7 + $0x50] sm:$0xff] %vm2733_vm5, %v3376_v0  ;;  %3623 = vst.msk [vmem:[#allocation7 + $0x40] sm:$0xff] %vm2733_vm5, %v3622_v9  ;;  %v3628_v42 = vld [vmem:[#allocation5 + $0x37] ss:$2 sm:$0xff]  ;;  %v3751_v6 = vld [vmem:[#allocation5 + $0x20] ss:$2 sm:$0xff]  ;;  %v6703_v0 = vpack.c.bf16 %v5754_v17, %v5753_v15 }
 0x334   :  { %6688 = vmatprep.subr.bf16.mxu0 %v6687_v1  ;;  %v3877_v40 = vld [vmem:[#allocation5 + $0x21] ss:$2 sm:$0xff]  ;;  %v3505_v39 = vld [vmem:[#allocation5 + $0x4e] ss:$2 sm:$0xff] }
 0x335   :  { %v9680_v37 = vld [vmem:[#allocation7 + $0x8] sm:$0xff]  ;;  %v3754_v5 = vld [vmem:[#allocation5 + $0x38] ss:$2 sm:$0xff] }
 0x336   :  { %v2820_v23 = vld [vmem:[#allocation7 + $0x18] sm:$0xff]  ;;  %3500 = vst.msk [vmem:[#allocation7 + $0x8] sm:$0xff] %vm2733_vm5, %v3499_v18 }
 0x337   :  { %6365 = vmatmul.mubr.msk.f32.gmra.mrb[26].mxu0 %vm2733_vm5, %v2820_v23  ;;  %3254 = vst.msk [vmem:[#allocation7 + $0x18] sm:$0xff] %vm2733_vm5, %v3253_v19  ;;  %v9684_v49 = vld [vmem:[#allocation7 + $0x58] sm:$0xff]  ;;  %v9687_v12 = vld [vmem:[#allocation7 + $0x48] sm:$0xff]  ;;  %v5725_v23 = vld [vmem:[%s10428_s3 + $0x40] sm:$0xff] }
 0x338   :  { %6690 = vmatpush3.bf16.msra.mxu0 %v6687_v1  ;;  %6383 = vmatprep.mubr.msk.f32.mxu0 %vm2733_vm5, %v9606_v47  ;;  %3380 = vst.msk [vmem:[#allocation7 + $0x58] sm:$0xff] %vm2733_vm5, %v3379_v4  ;;  %3626 = vst.msk [vmem:[#allocation7 + $0x48] sm:$0xff] %vm2733_vm5, %v3625_v32  ;;  %v3631_v43 = vld [vmem:[#allocation5 + $0x4f] ss:$2 sm:$0xff]  ;;  %v3757_v4 = vld [vmem:[#allocation5 + $0x50] ss:$2 sm:$0xff] }
 0x339   :  { %6692 = vmatprep.subr.bf16.mxu0 %v6691_v10  ;;  %v9699_v2 = vld [vmem:[#allocation7 + $0x10] sm:$0xff]  ;;  %v9701_v47 = vld [vmem:[#allocation7] sm:$0xff]  ;;  %v5732_v17 = vld [vmem:[%s10428_s3 + $0x78] sm:$0xff] }
 0x33a   :  { %3503 = vst.msk [vmem:[#allocation7 + $0x10] sm:$0xff] %vm2733_vm5, %v3502_v38  ;;  %v9704_v20 = vld [vmem:[#allocation7 + $0x50] sm:$0xff]  ;;  %3749 = vst.msk [vmem:[#allocation7] sm:$0xff] %vm2733_vm5, %v3748_v22  ;;  %v9707_v3 = vld [vmem:[#allocation7 + $0x40] sm:$0xff] }
 0x33b   :  { %3629 = vst.msk [vmem:[#allocation7 + $0x50] sm:$0xff] %vm2733_vm5, %v3628_v42  ;;  %3875 = vst.msk [vmem:[#allocation7 + $0x40] sm:$0xff] %vm2733_vm5, %v3874_v55  ;;  %v3880_v18 = vld [vmem:[#allocation5 + $0x39] ss:$2 sm:$0xff]  ;;  %v5730_v42 = vld [vmem:[%s10428_s3 + $0x68] sm:$0xff] }
 0x33c   :  { %6694 = vmatpush3.bf16.msra.mxu0 %v6691_v10  ;;  %v5728_v22 = vld [vmem:[%s10428_s3 + $0x58] sm:$0xff]  ;;  %v5729_v38 = vld [vmem:[%s10428_s3 + $0x60] sm:$0xff] }
 0x33d   :  { %6696 = vmatprep.subr.bf16.mxu0 %v6695_v14  ;;  %v9719_v34 = vld [vmem:[#allocation7 + $0x8] sm:$0xff]  ;;  %v6715_v55 = vpack.c.bf16 %v5728_v22, %v5727_v8  ;;  %v6719_v15 = vpack.c.bf16 %v5730_v42, %v5729_v38  ;;  %v5784_v8 = vld [vmem:[%s10428_s3 + $0x178] sm:$0xff]  ;;  %v5793_v42 = vld [vmem:[%s10428_s3 + $0x1a0] sm:$0xff] }
 0x33e   :  { %v9717_v1 = vld [vmem:[#allocation7 + $0x18] sm:$0xff]  ;;  %3752 = vst.msk [vmem:[#allocation7 + $0x8] sm:$0xff] %vm2733_vm5, %v3751_v6  ;;  %v5766_v6 = vld [vmem:[%s10428_s3 + $0x108] sm:$0xff] }
 0x33f   :  { %6384 = vmatmul.mubr.msk.f32.vlgmr.msra.gmra.mrb[24].mxu0 %vm2733_vm5, %v9614_v7  ;;  %3506 = vst.msk [vmem:[#allocation7 + $0x18] sm:$0xff] %vm2733_vm5, %v3505_v39  ;;  %v9724_v9 = vld [vmem:[#allocation7 + $0x58] sm:$0xff]  ;;  %v9727_v41 = vld [vmem:[#allocation7 + $0x48] sm:$0xff]  ;;  %v5755_v7 = vld [vmem:[%s10428_s3 + $0xf0] sm:$0xff] }
 0x340   :  { %6386 = vmatprep.mubr.msk.f32.mxu0 %vm2733_vm5, %v9628_v44  ;;  %6698 = vmatpush3.bf16.msra.mxu0 %v6695_v14  ;;  %3632 = vst.msk [vmem:[#allocation7 + $0x58] sm:$0xff] %vm2733_vm5, %v3631_v43  ;;  %3878 = vst.msk [vmem:[#allocation7 + $0x48] sm:$0xff] %vm2733_vm5, %v3877_v40  ;;  %v6707_v32 = vpack.c.bf16 %v5756_v46, %v5755_v7  ;;  %v5769_v43 = vld [vmem:[%s10428_s3 + $0x120] sm:$0xff]  ;;  %v5771_v46 = vld [vmem:[%s10428_s3 + $0x130] sm:$0xff] }
 0x341   :  { %6700 = vmatprep.subr.bf16.mxu0 %v6699_v35  ;;  %v9739_v10 = vld [vmem:[#allocation7 + $0x10] sm:$0xff]  ;;  %v5790_v22 = vld [vmem:[%s10428_s3 + $0x188] sm:$0xff] }
 0x342   :  { %3755 = vst.msk [vmem:[#allocation7 + $0x10] sm:$0xff] %vm2733_vm5, %v3754_v5  ;;  %v9744_v44 = vld [vmem:[#allocation7 + $0x50] sm:$0xff]  ;;  %v5772_v5 = vld [vmem:[%s10428_s3 + $0x138] sm:$0xff] }
 0x343   :  { %6387 = vmatmul.mubr.msk.f32.gmra.mrb[26].mxu0 %vm2733_vm5, %v9645_v36  ;;  %3881 = vst.msk [vmem:[#allocation7 + $0x50] sm:$0xff] %vm2733_vm5, %v3880_v18  ;;  %v5726_v36 = vld [vmem:[%s10428_s3 + $0x48] sm:$0xff] }
 0x344   :  { %6702 = vmatpush3.bf16.msra.mxu0 %v6699_v35  ;;  %6405 = vmatprep.mubr.msk.f32.mxu0 %vm2733_vm5, %v9633_v33  ;;  %v3883_v33 = vld [vmem:[#allocation5 + $0x51] ss:$2 sm:$0xff]  ;;  %v6711_v14 = vpack.c.bf16 %v5726_v36, %v5725_v23  ;;  %v5778_v18 = vld [vmem:[%s10428_s3 + $0x148] sm:$0xff]  ;;  %v5781_v36 = vld [vmem:[%s10428_s3 + $0x160] sm:$0xff] }
 0x345   :  { %6704 = vmatprep.subr.bf16.mxu0 %v6703_v0  ;;  %v5731_v35 = vld [vmem:[%s10428_s3 + $0x70] sm:$0xff] }
 0x346   :  { %v9755_v19 = vld [vmem:[#allocation7 + $0x18] sm:$0xff] }
 0x347   :  { %3758 = vst.msk [vmem:[#allocation7 + $0x18] sm:$0xff] %vm2733_vm5, %v3757_v4  ;;  %v9758_v50 = vld [vmem:[#allocation7 + $0x58] sm:$0xff]  ;;  %v5782_v4 = vld [vmem:[%s10428_s3 + $0x168] sm:$0xff] }
 0x348   :  { %6706 = vmatpush3.bf16.msra.mxu0 %v6703_v0  ;;  %3884 = vst.msk [vmem:[#allocation7 + $0x58] sm:$0xff] %vm2733_vm5, %v3883_v33  ;;  %v5770_v0 = vld [vmem:[%s10428_s3 + $0x128] sm:$0xff]  ;;  %v6751_v33 = vpack.c.bf16 %v5782_v4, %v5781_v36  ;;  %v5828_v4 = vld [vmem:[%s10428_s3 + $0x258] sm:$0xff] }
 0x349   :  { %6708 = vmatprep.subr.bf16.mxu0 %v6707_v32  ;;  %v6735_v7 = vpack.c.bf16 %v5770_v0, %v5769_v43  ;;  %v5807_v43 = vld [vmem:[%s10428_s3 + $0x1f0] sm:$0xff]  ;;  %v5808_v0 = vld [vmem:[%s10428_s3 + $0x1f8] sm:$0xff] }
 0x34c   :  { %6710 = vmatpush3.bf16.msra.mxu0 %v6707_v32 }
 0x34d   :  { %6712 = vmatprep.subr.bf16.mxu0 %v6711_v14 }
 0x34f   :  { %6406 = vmatmul.mubr.msk.f32.vlgmr.msra.gmra.mrb[24].mxu0 %vm2733_vm5, %v9650_v45  ;;  %v6723_v45 = vpack.c.bf16 %v5732_v17, %v5731_v35  ;;  %v5795_v17 = vld [vmem:[%s10428_s3 + $0x1b0] sm:$0xff] }
 0x350   :  { %6408 = vmatprep.mubr.msk.f32.mxu0 %vm2733_vm5, %v9667_v11  ;;  %6714 = vmatpush3.bf16.msra.mxu0 %v6711_v14  ;;  %v5765_v11 = vld [vmem:[%s10428_s3 + $0x100] sm:$0xff]  ;;  %v5783_v14 = vld [vmem:[%s10428_s3 + $0x170] sm:$0xff] }
 0x351   :  { %6716 = vmatprep.subr.bf16.mxu0 %v6715_v55  ;;  %v6727_v40 = vpack.c.bf16 %v5766_v6, %v5765_v11  ;;  %v5802_v11 = vld [vmem:[%s10428_s3 + $0x1c8] sm:$0xff] }
 0x353   :  { %6409 = vmatmul.mubr.msk.f32.gmra.mrb[26].mxu0 %vm2733_vm5, %v9684_v49  ;;  %v5767_v49 = vld [vmem:[%s10428_s3 + $0x110] sm:$0xff] }
 0x354   :  { %6718 = vmatpush3.bf16.msra.mxu0 %v6715_v55  ;;  %6427 = vmatprep.mubr.msk.f32.mxu0 %vm2733_vm5, %v9610_v13  ;;  %v5768_v13 = vld [vmem:[%s10428_s3 + $0x118] sm:$0xff] }
 0x355   :  { %6720 = vmatprep.subr.bf16.mxu0 %v6719_v15  ;;  %v6731_v39 = vpack.c.bf16 %v5768_v13, %v5767_v49  ;;  %v5805_v49 = vld [vmem:[%s10428_s3 + $0x1e0] sm:$0xff]  ;;  %v5806_v13 = vld [vmem:[%s10428_s3 + $0x1e8] sm:$0xff] }
 0x358   :  { %6722 = vmatpush3.bf16.msra.mxu0 %v6719_v15  ;;  %v5794_v15 = vld [vmem:[%s10428_s3 + $0x1a8] sm:$0xff] }
 0x359   :  { %6724 = vmatprep.subr.bf16.mxu0 %v6723_v45  ;;  %v6767_v35 = vpack.c.bf16 %v5794_v15, %v5793_v42  ;;  %v3886_v15 = vld [vmem:[#allocation7 + $0x48] sm:$0xff] }
 0x35c   :  { %6726 = vmatpush3.bf16.msra.mxu0 %v6723_v45  ;;  %v5796_v45 = vld [vmem:[%s10428_s3 + $0x1b8] sm:$0xff] }
 0x35d   :  { %6728 = vmatprep.subr.bf16.mxu0 %v6727_v40 }
 0x35f   :  { %6428 = vmatmul.mubr.msk.f32.vlgmr.msra.gmra.mrb[24].mxu0 %vm2733_vm5, %v9618_v16  ;;  %v6739_v16 = vpack.c.bf16 %v5772_v5, %v5771_v46 }
 0x360   :  { %6430 = vmatprep.mubr.msk.f32.mxu0 %vm2733_vm5, %v9635_v21  ;;  %6730 = vmatpush3.bf16.msra.mxu0 %v6727_v40  ;;  %v5777_v21 = vld [vmem:[%s10428_s3 + $0x140] sm:$0xff] }
 0x361   :  { %6732 = vmatprep.subr.bf16.mxu0 %v6731_v39  ;;  %v6743_v32 = vpack.c.bf16 %v5778_v18, %v5777_v21  ;;  %v5818_v21 = vld [vmem:[%s10428_s3 + $0x228] sm:$0xff] }
 0x363   :  { %6431 = vmatmul.mubr.msk.f32.gmra.mrb[26].mxu0 %vm2733_vm5, %v9652_v48  ;;  %v5779_v48 = vld [vmem:[%s10428_s3 + $0x150] sm:$0xff] }
 0x364   :  { %6734 = vmatpush3.bf16.msra.mxu0 %v6731_v39  ;;  %6449 = vmatprep.mubr.msk.f32.mxu0 %vm2733_vm5, %v9663_v54  ;;  %v5780_v54 = vld [vmem:[%s10428_s3 + $0x158] sm:$0xff]  ;;  %v6783_v39 = vpack.c.bf16 %v5806_v13, %v5805_v49 }
 0x365   :  { %6736 = vmatprep.subr.bf16.mxu0 %v6735_v7  ;;  %v6747_v23 = vpack.c.bf16 %v5780_v54, %v5779_v48  ;;  %v5820_v48 = vld [vmem:[%s10428_s3 + $0x238] sm:$0xff]  ;;  %v3759_v54 = vld [vmem:[#allocation7] sm:$0xff] }
 0x368   :  { %6738 = vmatpush3.bf16.msra.mxu0 %v6735_v7  ;;  %v5814_v7 = vld [vmem:[%s10428_s3 + $0x208] sm:$0xff] }
 0x369   :  { %6740 = vmatprep.subr.bf16.mxu0 %v6739_v16 }
 0x36c   :  { %6742 = vmatpush3.bf16.msra.mxu0 %v6739_v16  ;;  %v5817_v16 = vld [vmem:[%s10428_s3 + $0x220] sm:$0xff] }
 0x36d   :  { %6744 = vmatprep.subr.bf16.mxu0 %v6743_v32  ;;  %v6799_v18 = vpack.c.bf16 %v5818_v21, %v5817_v16 }
 0x36f   :  { %6450 = vmatmul.mubr.msk.f32.vlgmr.msra.gmra.mrb[24].mxu0 %vm2733_vm5, %v9680_v37  ;;  %v6755_v37 = vpack.c.bf16 %v5784_v8, %v5783_v14  ;;  %v3760_v14 = vld [vmem:[#allocation7 + $0x8] sm:$0xff]  ;;  %v5829_v8 = vld [vmem:[%s10428_s3 + $0x260] sm:$0xff] }
 0x370   :  { %6452 = vmatprep.mubr.msk.f32.mxu0 %vm2733_vm5, %v9699_v2  ;;  %6746 = vmatpush3.bf16.msra.mxu0 %v6743_v32  ;;  %v5789_v2 = vld [vmem:[%s10428_s3 + $0x180] sm:$0xff]  ;;  %v5819_v32 = vld [vmem:[%s10428_s3 + $0x230] sm:$0xff] }
 0x371   :  { %6748 = vmatprep.subr.bf16.mxu0 %v6747_v23  ;;  %v6759_v55 = vpack.c.bf16 %v5790_v22, %v5789_v2  ;;  %v3761_v2 = vld [vmem:[#allocation7 + $0x10] sm:$0xff] }
 0x373   :  { %6453 = vmatmul.mubr.msk.f32.gmra.mrb[26].mxu0 %vm2733_vm5, %v9717_v1  ;;  %v5791_v1 = vld [vmem:[%s10428_s3 + $0x190] sm:$0xff] }
 0x374   :  { %6750 = vmatpush3.bf16.msra.mxu0 %v6747_v23  ;;  %6471 = vmatprep.mubr.msk.f32.mxu0 %vm2733_vm5, %v9670_v51  ;;  %v5792_v51 = vld [vmem:[%s10428_s3 + $0x198] sm:$0xff]  ;;  %v5826_v23 = vld [vmem:[%s10428_s3 + $0x248] sm:$0xff] }
 0x375   :  { %6752 = vmatprep.subr.bf16.mxu0 %v6751_v33  ;;  %v6763_v38 = vpack.c.bf16 %v5792_v51, %v5791_v1  ;;  %v5831_v1 = vld [vmem:[%s10428_s3 + $0x270] sm:$0xff]  ;;  %v5832_v51 = vld [vmem:[%s10428_s3 + $0x278] sm:$0xff] }
 0x376   :  { %v6819_v42 = vpack.c.bf16 %v5832_v51, %v5831_v1 }
 0x378   :  { %6754 = vmatpush3.bf16.msra.mxu0 %v6751_v33 }
 0x379   :  { %6756 = vmatprep.subr.bf16.mxu0 %v6755_v37 }
 0x37c   :  { %6758 = vmatpush3.bf16.msra.mxu0 %v6755_v37  ;;  %v5830_v37 = vld [vmem:[%s10428_s3 + $0x268] sm:$0xff] }
 0x37d   :  { %6760 = vmatprep.subr.bf16.mxu0 %v6759_v55  ;;  %v6815_v22 = vpack.c.bf16 %v5830_v37, %v5829_v8 }
 0x37f   :  { %6472 = vmatmul.mubr.msk.f32.vlgmr.msra.gmra.mrb[24].mxu0 %vm2733_vm5, %v9687_v12  ;;  %v6771_v12 = vpack.c.bf16 %v5796_v45, %v5795_v17  ;;  %v3888_v17 = vld [vmem:[#allocation7 + $0x58] sm:$0xff]  ;;  %v2754_v45 = vld [vmem:[%s10429_s4 + $0x2] ss:$0 sm:$0xff] }
 0x380   :  { %6474 = vmatprep.mubr.msk.f32.mxu0 %vm2733_vm5, %v9704_v20  ;;  %6762 = vmatpush3.bf16.msra.mxu0 %v6759_v55  ;;  %v5801_v20 = vld [vmem:[%s10428_s3 + $0x1c0] sm:$0xff]  ;;  %v3762_v55 = vld [vmem:[#allocation7 + $0x18] sm:$0xff] }
 0x381   :  { %6764 = vmatprep.subr.bf16.mxu0 %v6763_v38  ;;  %v6775_v6 = vpack.c.bf16 %v5802_v11, %v5801_v20 }
 0x383   :  { %6475 = vmatmul.mubr.msk.f32.gmra.mrb[26].mxu0 %vm2733_vm5, %v9724_v9  ;;  %v5803_v9 = vld [vmem:[%s10428_s3 + $0x1d0] sm:$0xff] }
 0x384   :  { %6766 = vmatpush3.bf16.msra.mxu0 %v6763_v38  ;;  %6493 = vmatprep.mubr.msk.f32.mxu0 %vm2733_vm5, %v9701_v47  ;;  %v5804_v47 = vld [vmem:[%s10428_s3 + $0x1d8] sm:$0xff]  ;;  %v3885_v38 = vld [vmem:[#allocation7 + $0x40] sm:$0xff] }
 0x385   :  { %6768 = vmatprep.subr.bf16.mxu0 %v6767_v35  ;;  %v6779_v40 = vpack.c.bf16 %v5804_v47, %v5803_v9 }
 0x388   :  { %6770 = vmatpush3.bf16.msra.mxu0 %v6767_v35  ;;  %v3887_v35 = vld [vmem:[#allocation7 + $0x50] sm:$0xff] }
 0x389   :  { %6772 = vmatprep.subr.bf16.mxu0 %v6771_v12 }
 0x38c   :  { %6774 = vmatpush3.bf16.msra.mxu0 %v6771_v12 }
 0x38d   :  { %6776 = vmatprep.subr.bf16.mxu0 %v6775_v6 }
 0x38f   :  { %6494 = vmatmul.mubr.msk.f32.vlgmr.msra.gmra.mrb[24].mxu0 %vm2733_vm5, %v9719_v34  ;;  %v6787_v34 = vpack.c.bf16 %v5808_v0, %v5807_v43 }
 0x390   :  { %6496 = vmatprep.mubr.msk.f32.mxu0 %vm2733_vm5, %v9739_v10  ;;  %6778 = vmatpush3.bf16.msra.mxu0 %v6775_v6  ;;  %v5813_v10 = vld [vmem:[%s10428_s3 + $0x200] sm:$0xff] }
 0x391   :  { %6780 = vmatprep.subr.bf16.mxu0 %v6779_v40  ;;  %v6791_v46 = vpack.c.bf16 %v5814_v7, %v5813_v10 }
 0x393   :  { %6497 = vmatmul.mubr.msk.f32.gmra.mrb[26].mxu0 %vm2733_vm5, %v9755_v19  ;;  %v5815_v19 = vld [vmem:[%s10428_s3 + $0x210] sm:$0xff] }
 0x394   :  { %6782 = vmatpush3.bf16.msra.mxu0 %v6779_v40  ;;  %6515 = vmatprep.mubr.msk.f32.mxu0 %vm2733_vm5, %v9707_v3  ;;  %v5816_v3 = vld [vmem:[%s10428_s3 + $0x218] sm:$0xff] }
 0x395   :  { %6784 = vmatprep.subr.bf16.mxu0 %v6783_v39  ;;  %v6795_v5 = vpack.c.bf16 %v5816_v3, %v5815_v19 }
 0x398   :  { %6786 = vmatpush3.bf16.msra.mxu0 %v6783_v39 }
 0x399   :  { %6788 = vmatprep.subr.bf16.mxu0 %v6787_v34 }
 0x39c   :  { %6790 = vmatpush3.bf16.msra.mxu0 %v6787_v34 }
 0x39d   :  { %6792 = vmatprep.subr.bf16.mxu0 %v6791_v46 }
 0x39f   :  { %6516 = vmatmul.mubr.msk.f32.vlgmr.msra.gmra.mrb[24].mxu0 %vm2733_vm5, %v9727_v41  ;;  %v6803_v41 = vpack.c.bf16 %v5820_v48, %v5819_v32 }
 0x3a0   :  { %6518 = vmatprep.mubr.msk.f32.mxu0 %vm2733_vm5, %v9744_v44  ;;  %6794 = vmatpush3.bf16.msra.mxu0 %v6791_v46  ;;  %v5825_v44 = vld [vmem:[%s10428_s3 + $0x240] sm:$0xff] }
 0x3a1   :  { %6796 = vmatprep.subr.bf16.mxu0 %v6795_v5  ;;  %v6807_v36 = vpack.c.bf16 %v5826_v23, %v5825_v44 }
 0x3a3   :  { %6519 = vmatmul.mubr.msk.f32.gmra.mrb[26].mxu0 %vm2733_vm5, %v9758_v50  ;;  %v5827_v50 = vld [vmem:[%s10428_s3 + $0x250] sm:$0xff] }
 0x3a4   :  { %6798 = vmatpush3.bf16.msra.mxu0 %v6795_v5  ;;  %6537 = vmatprep.mubr.msk.f32.mxu0 %vm2733_vm5, %v3759_v54  ;;  %v6811_v33 = vpack.c.bf16 %v5828_v4, %v5827_v50 }
 0x3a5   :  { %6800 = vmatprep.subr.bf16.mxu0 %v6799_v18 }
 0x3a8   :  { %6802 = vmatpush3.bf16.msra.mxu0 %v6799_v18 }
 0x3a9   :  { %6804 = vmatprep.subr.bf16.mxu0 %v6803_v41 }
 0x3ac   :  { %6806 = vmatpush3.bf16.msra.mxu0 %v6803_v41 }
 0x3ad   :  { %6808 = vmatprep.subr.bf16.mxu0 %v6807_v36 }
 0x3af   :  { %6538 = vmatmul.mubr.msk.f32.vlgmr.msra.gmra.mrb[24].mxu0 %vm2733_vm5, %v3760_v14 }
 0x3b0   :  { %6540 = vmatprep.mubr.msk.f32.mxu0 %vm2733_vm5, %v3761_v2  ;;  %6810 = vmatpush3.bf16.msra.mxu0 %v6807_v36 }
 0x3b1   :  { %6812 = vmatprep.subr.bf16.mxu0 %v6811_v33 }
 0x3b3   :  { %6541 = vmatmul.mubr.msk.f32.gmra.mrb[26].mxu0 %vm2733_vm5, %v3762_v55  ;;  %v2755_v55 = vld [vmem:[%s10429_s4 + $0x3] ss:$0 sm:$0xff] }
 0x3b4   :  { %6814 = vmatpush3.bf16.msra.mxu0 %v6811_v33  ;;  %6559 = vmatprep.mubr.msk.f32.mxu0 %vm2733_vm5, %v3885_v38  ;;  %v2756_v38 = vld [vmem:[%s10429_s4 + $0x4] ss:$0 sm:$0xff] }
 0x3b5   :  { %6816 = vmatprep.subr.bf16.mxu0 %v6815_v22 }
 0x3b8   :  { %6818 = vmatpush3.bf16.msra.mxu0 %v6815_v22 }
 0x3b9   :  { %6820 = vmatprep.subr.bf16.mxu0 %v6819_v42 }
 0x3bc   :  { %6822 = vmatpush3.bf16.msra.mxu0 %v6819_v42 }
 0x3bf   :  { %6560 = vmatmul.mubr.msk.f32.vlgmr.msra.gmra.mrb[24].mxu0 %vm2733_vm5, %v3886_v15 }
 0x3c0   :  { %6562 = vmatprep.mubr.msk.f32.mxu0 %vm2733_vm5, %v3887_v35 }
 0x3c3   :  { %6563 = vmatmul.mubr.msk.f32.gmra.mrb[26].mxu0 %vm2733_vm5, %v3888_v17 }
 0x492   :  { %v6561_v12 = vpop.f32.mrb[24].mxu0 }
 0x493   :  { %v4004_v20 = vadd.f32 %v6561_v12, %v2754_v45  ;;  %v3976_v11 = vpop.f32.mrb[25].mxu0 }
 0x494   :  { %v4003_v6 = vadd.f32 %v3976_v11, %v2754_v45 }
 0x496   :  { %v4007_v9 = vadd.f32 %v4004_v20, %v4003_v6  ;;  %v6564_v47 = vpop.f32.mrb[26].mxu0 }
 0x497   :  { %v3986_v40 = vpop.f32.mrb[27].mxu0  ;;  %v4006_v13 = vadd.f32 %v6564_v47, %v2754_v45 }
 0x498   :  { %v4005_v49 = vadd.f32 %v3986_v40, %v2754_v45 }
 0x49a   :  { %v4008_v39 = vadd.f32 %v4007_v9, %v4005_v49 }
 0x49c   :  { %v4009_v43 = vadd.f32 %v4008_v39, %v4006_v13 }
 0x49e   :  { %v4010_v0 = vrot.slane %v4009_v43, 4 }
 0x4a0   :  { %v4011_v34 = vadd.f32 %v4010_v0, %v4009_v43 }
 0x4a2   :  { %v4012_v10 = vrot.slane %v4011_v34, 2 }
 0x4a4   :  { %v4013_v7 = vadd.f32 %v4012_v10, %v4011_v34 }
 0x4a6   :  { %v4014_v46 = vrot.slane %v4013_v7, 1 }
 0x4a8   :  { %v4015_v19 = vadd.f32 %v4014_v46, %v4013_v7 }
 0x4aa   :  { %v4017_v3 = vmul.f32 0.03125, %v4015_v19 }
 0x4ac   :  { %v4018_v5 = vsub.f32 %v4003_v6, %v4017_v3  ;;  %v4019_v16 = vsub.f32 %v4004_v20, %v4017_v3  ;;  %v4020_v21 = vsub.f32 %v4005_v49, %v4017_v3  ;;  %v4021_v18 = vsub.f32 %v4006_v13, %v4017_v3 }
 0x4ae   :  { %v4022_v32 = vmul.f32 %v4018_v5, %v4018_v5  ;;  %v4023_v48 = vmul.f32 %v4019_v16, %v4019_v16  ;;  %v4024_v54 = vmul.f32 %v4020_v21, %v4020_v21  ;;  %v4025_v44 = vmul.f32 %v4021_v18, %v4021_v18 }
 0x4b0   :  { %v4026_v41 = vadd.f32 %v4023_v48, %v4022_v32 }
 0x4b2   :  { %v4027_v23 = vadd.f32 %v4026_v41, %v4024_v54 }
 0x4b4   :  { %v4028_v36 = vadd.f32 %v4027_v23, %v4025_v44 }
 0x4b6   :  { %v4029_v50 = vrot.slane %v4028_v36, 4 }
 0x4b8   :  { %v4030_v4 = vadd.f32 %v4029_v50, %v4028_v36 }
 0x4ba   :  { %v4031_v33 = vrot.slane %v4030_v4, 2 }
 0x4bc   :  { %v4032_v14 = vadd.f32 %v4031_v33, %v4030_v4 }
 0x4be   :  { %v4033_v8 = vrot.slane %v4032_v14, 1 }
 0x4c0   :  { %v4034_v37 = vadd.f32 %v4033_v8, %v4032_v14 }
 0x4c2   :  { %v4035_v2 = vmul.f32 0.03125, %v4034_v37 }
 0x4c4   :  { %v4036_v22 = vadd.f32 1e-05, %v4035_v2 }
 0x4c6   :  { %7298 = vrsqrt.f32 %v4036_v22 }
 0x4d0   :  { %v7299_v1 = vpop.eup %7298 }
 0x4d1   :  { %v4038_v51 = vmul.f32 %v7299_v1, %v2755_v55 }
 0x4d3   :  { %v4039_v42 = vmul.f32 %v4038_v51, %v4003_v6  ;;  %v4040_v15 = vmul.f32 %v4038_v51, %v4004_v20  ;;  %v4041_v35 = vmul.f32 %v4038_v51, %v4005_v49  ;;  %v4042_v17 = vmul.f32 %v4038_v51, %v4006_v13 }
 0x4d4   :  { %v4043_v45 = vmul.f32 %v4038_v51, %v4017_v3  ;;  %v6823_v20 = vpack.c.bf16 %v7683_v62, %v7673_v60  ;;  %v6951_v6 = vpack.c.bf16 %v8003_v30, %v7993_v29 }
 0x4d6   :  { %v4044_v12 = vsub.f32 %v2756_v38, %v4043_v45 }
 0x4d8   :  { %v4045_v11 = vadd.f32 %v4044_v12, %v4039_v42  ;;  %v4046_v9 = vadd.f32 %v4044_v12, %v4040_v15  ;;  %v4047_v47 = vadd.f32 %v4044_v12, %v4041_v35  ;;  %v4048_v40 = vadd.f32 %v4044_v12, %v4042_v17 }
 0x4da   :  { %v4049_v39 = vmul.f32 0.2, %v4045_v11  ;;  %v4050_v43 = vmul.f32 0.2, %v4046_v9  ;;  %v4051_v0 = vmul.f32 0.2, %v4047_v47 }
 0x4db   :  { %v4052_v34 = vmul.f32 0.2, %v4048_v40 }
 0x4dc   :  { %v4053_v10 = vmax.f32 %v4045_v11, %v4049_v39  ;;  %v4054_v7 = vmax.f32 %v4046_v9, %v4050_v43  ;;  %v4055_v46 = vmax.f32 %v4047_v47, %v4051_v0 }
 0x4dd   :  { %v4056_v19 = vmax.f32 %v4048_v40, %v4052_v34 }
 0x4de   :  { %4065 = vst [vmem:[#allocation6 + $0x4] sm:$0xff] %v4053_v10  ;;  %4066 = vst [vmem:[#allocation6 + $0x14] sm:$0xff] %v4054_v7 }
 0x4df   :  { %4067 = vst [vmem:[#allocation6 + $0x24] sm:$0xff] %v4055_v46  ;;  %4068 = vst [vmem:[#allocation6 + $0x34] sm:$0xff] %v4056_v19 }
 0x4e0   :  { %7305 = dma.done.wait [#allocation3], 40960 }
 0x4e1   :  { %7306 = vsyncadd [#allocation3], 4294926336  ;;  %v6825_v49 = vpack.c.bf16 %v7678_v61, %v7668_v58  ;;  %v6953_v13 = vpack.c.bf16 %v7998_v26, %v7988_v31  ;;  %v10736_v3 = vmov 0.0   ;;  %v6827_v5 = vpack.c.bf16 %v7703_v57, %v7693_v56  ;;  %6824 = vmatprep.subr.bf16.mxu0 %v6823_v20  ;;  %6952 = vmatprep.subr.bf16.mxu1 %v6951_v6  ;;  %v10737_v31 = vld [vmem:[#allocation129_spill] sm:$0xff]  ;;  %v10738_v56 = vld [vmem:[#allocation131_spill] sm:$0xff] }
 0x4e2   :  { %4283 = vmatprep.mubr.f32.mxu0 %v10736_v3  ;;  %v6955_v16 = vpack.c.bf16 %v8023_v25, %v8013_v24  ;;  %4685 = vmatprep.mubr.f32.mxu1 %v10736_v3  ;;  %v6829_v29 = vpack.c.bf16 %v7698_v59, %v7688_v63  ;;  %v6957_v26 = vpack.c.bf16 %v8018_v27, %v8008_v28  ;;  %v10739_v25 = vld [vmem:[#allocation74_spill] sm:$0xff]  ;;  %v10740_v57 = vld [vmem:[#allocation75_spill] sm:$0xff]  ;;  %v10741_v60 = vld [vmem:[#allocation128_spill] sm:$0xff]  ;;  %vm5503_vm6 = vcmask 0  }
 0x4e3   :  { %6826 = vmatpush1.bf16.msra.mxu0 %v6825_v49  ;;  %6954 = vmatpush1.bf16.msra.mxu1 %v6953_v13  ;;  %v6831_v30 = vpack.c.bf16 %v7723_v53, %v7713_v52  ;;  %v6959_v24 = vpack.c.bf16 %v10738_v56, %v10737_v31  ;;  %v6833_v58 = vpack.c.bf16 %v10740_v57, %v10739_v25  ;;  %v10742_v61 = vld [vmem:[#allocation130_spill] sm:$0xff]  ;;  %v10743_v27 = vld [vmem:[#allocation77_spill] sm:$0xff]  ;;  %v10744_v28 = vld [vmem:[#allocation79_spill] sm:$0xff] }
 0x4e4   :  { %6828 = vmatprep.subr.bf16.mxu0 %v6827_v5  ;;  %6956 = vmatprep.subr.bf16.mxu1 %v6955_v16  ;;  %v6961_v62 = vpack.c.bf16 %v10742_v61, %v10741_v60  ;;  %v6835_v21 = vpack.c.bf16 %v10744_v28, %v10743_v27  ;;  %v10745_v18 = vld [vmem:[#allocation133_spill] sm:$0xff]  ;;  %v10746_v52 = vld [vmem:[#allocation135_spill] sm:$0xff]  ;;  %v10747_v32 = vld [vmem:[#allocation76_spill] sm:$0xff] }
 0x4e5   :  { %v4080_v59 = vld [vmem:[#allocation6] ss:$2 sm:$0xf]  ;;  %v4083_v63 = vld [vmem:[#allocation6 + $0x10] ss:$2 sm:$0xf]  ;;  %v6963_v53 = vpack.c.bf16 %v10746_v52, %v10745_v18 }
 0x4e6   :  { %4081 = vst [vmem:[#allocation7] sm:$0xf] %v4080_v59  ;;  %4084 = vst [vmem:[#allocation7 + $0x4] sm:$0xf] %v4083_v63  ;;  %v10748_v48 = vld [vmem:[#allocation78_spill] sm:$0xff]  ;;  %v10749_v41 = vld [vmem:[#allocation132_spill] sm:$0xff] }
 0x4e7   :  { %6830 = vmatpush1.bf16.msra.mxu0 %v6829_v29  ;;  %6958 = vmatpush1.bf16.msra.mxu1 %v6957_v26  ;;  %v6837_v54 = vpack.c.bf16 %v10748_v48, %v10747_v32  ;;  %v10750_v44 = vld [vmem:[#allocation134_spill] sm:$0xff]  ;;  %v4089_v50 = vld [vmem:[#allocation6 + $0x30] ss:$2 sm:$0xf]  ;;  %v10751_v4 = vld [vmem:[#allocation81_spill] sm:$0xff] }
 0x4e8   :  { %6832 = vmatprep.subr.bf16.mxu0 %v6831_v30  ;;  %6960 = vmatprep.subr.bf16.mxu1 %v6959_v24  ;;  %v6965_v23 = vpack.c.bf16 %v10750_v44, %v10749_v41  ;;  %v4086_v36 = vld [vmem:[#allocation6 + $0x20] ss:$2 sm:$0xf]  ;;  %v10752_v33 = vld [vmem:[#allocation83_spill] sm:$0xff]  ;;  %v10753_v8 = vld [vmem:[#allocation137_spill] sm:$0xff] }
 0x4e9   :  { %v6839_v14 = vpack.c.bf16 %v10752_v33, %v10751_v4  ;;  %v10754_v37 = vld [vmem:[#allocation139_spill] sm:$0xff]  ;;  %4087 = vst [vmem:[#allocation7 + $0x8] sm:$0xf] %v4086_v36  ;;  %4090 = vst [vmem:[#allocation7 + $0xc] sm:$0xf] %v4089_v50  ;;  %v10755_v1 = vld [vmem:[#allocation80_spill] sm:$0xff] }
 0x4ea   :  { %v6967_v2 = vpack.c.bf16 %v10754_v37, %v10753_v8  ;;  %v4173_v22 = vld [vmem:[#allocation6 + $0x2] ss:$2 sm:$0xf]  ;;  %v4176_v55 = vld [vmem:[#allocation6 + $0x12] ss:$2 sm:$0xf] }
 0x4eb   :  { %6834 = vmatpush1.bf16.msra.mxu0 %v6833_v58  ;;  %6962 = vmatpush1.bf16.msra.mxu1 %v6961_v62  ;;  %v10756_v51 = vld [vmem:[#allocation82_spill] sm:$0xff]  ;;  %v10757_v42 = vld [vmem:[#allocation136_spill] sm:$0xff]  ;;  %v10759_v12 = vld [vmem:[#allocation85_spill] sm:$0xff] }
 0x4ec   :  { %6836 = vmatprep.subr.bf16.mxu0 %v6835_v21  ;;  %6964 = vmatprep.subr.bf16.mxu1 %v6963_v53  ;;  %v6841_v38 = vpack.c.bf16 %v10756_v51, %v10755_v1  ;;  %v10758_v15 = vld [vmem:[#allocation138_spill] sm:$0xff]  ;;  %v10760_v11 = vld [vmem:[#allocation87_spill] sm:$0xff]  ;;  %v10761_v47 = vld [vmem:[#allocation141_spill] sm:$0xff] }
 0x4ed   :  { %v6969_v35 = vpack.c.bf16 %v10758_v15, %v10757_v42  ;;  %v10028_v17 = vld [vmem:[#allocation7] sm:$0xff]  ;;  %v6843_v9 = vpack.c.bf16 %v10760_v11, %v10759_v12  ;;  %v10762_v40 = vld [vmem:[#allocation143_spill] sm:$0xff]  ;;  %v4129_v43 = vld [vmem:[#allocation6 + $0x11] ss:$2 sm:$0xf] }
 0x4ee   :  { %v4126_v45 = vld [vmem:[#allocation6 + $0x1] ss:$2 sm:$0xf]  ;;  %v6971_v39 = vpack.c.bf16 %v10762_v40, %v10761_v47  ;;  %4174 = vst [vmem:[#allocation7] sm:$0xf] %v4173_v22  ;;  %v10763_v10 = vld [vmem:[#allocation84_spill] sm:$0xff] }
 0x4ef   :  { %6838 = vmatpush1.bf16.msra.mxu0 %v6837_v54  ;;  %6966 = vmatpush1.bf16.msra.mxu1 %v6965_v23  ;;  %4177 = vst [vmem:[#allocation7 + $0x4] sm:$0xf] %v4176_v55  ;;  %4127 = vst [vmem:[#allocation7 + $0x40] sm:$0xf] %v4126_v45  ;;  %v10764_v7 = vld [vmem:[#allocation86_spill] sm:$0xff]  ;;  %v10765_v19 = vld [vmem:[#allocation140_spill] sm:$0xff] }
 0x4f0   :  { %6840 = vmatprep.subr.bf16.mxu0 %v6839_v14  ;;  %6968 = vmatprep.subr.bf16.mxu1 %v6967_v2  ;;  %v4179_v0 = vld [vmem:[#allocation6 + $0x22] ss:$2 sm:$0xf]  ;;  %v4182_v34 = vld [vmem:[#allocation6 + $0x32] ss:$2 sm:$0xf]  ;;  %v6845_v46 = vpack.c.bf16 %v10764_v7, %v10763_v10 }
 0x4f1   :  { %4130 = vst [vmem:[#allocation7 + $0x44] sm:$0xf] %v4129_v43  ;;  %v10766_v20 = vld [vmem:[#allocation142_spill] sm:$0xff]  ;;  %v10038_v49 = vld [vmem:[#allocation7 + $0x8] sm:$0xff]  ;;  %v10767_v13 = vld [vmem:[#allocation89_spill] sm:$0xff] }
 0x4f2   :  { %v6973_v6 = vpack.c.bf16 %v10766_v20, %v10765_v19  ;;  %v10768_v5 = vld [vmem:[#allocation91_spill] sm:$0xff]  ;;  %v10769_v29 = vld [vmem:[#allocation145_spill] sm:$0xff]  ;;  %4180 = vst [vmem:[#allocation7 + $0x8] sm:$0xf] %v4179_v0  ;;  %4183 = vst [vmem:[#allocation7 + $0xc] sm:$0xf] %v4182_v34 }
 0x4f3   :  { %6842 = vmatpush1.bf16.msra.mxu0 %v6841_v38  ;;  %6970 = vmatpush1.bf16.msra.mxu1 %v6969_v35  ;;  %v6847_v16 = vpack.c.bf16 %v10768_v5, %v10767_v13  ;;  %v10770_v26 = vld [vmem:[#allocation147_spill] sm:$0xff]  ;;  %v4132_v31 = vld [vmem:[#allocation6 + $0x21] ss:$2 sm:$0xf]  ;;  %v10771_v60 = vld [vmem:[#allocation88_spill] sm:$0xff] }
 0x4f4   :  { %6844 = vmatprep.subr.bf16.mxu0 %v6843_v9  ;;  %6972 = vmatprep.subr.bf16.mxu1 %v6971_v39  ;;  %v6975_v30 = vpack.c.bf16 %v10770_v26, %v10769_v29  ;;  %v4135_v56 = vld [vmem:[#allocation6 + $0x31] ss:$2 sm:$0xf]  ;;  %v4575_v24 = vld [vmem:[#allocation6 + $0x4] ss:$2 sm:$0xf] }
 0x4f5   :  { %v4578_v25 = vld [vmem:[#allocation6 + $0x14] ss:$2 sm:$0xf]  ;;  %4133 = vst [vmem:[#allocation7 + $0x48] sm:$0xf] %v4132_v31  ;;  %v10772_v61 = vld [vmem:[#allocation90_spill] sm:$0xff] }
 0x4f6   :  { %4136 = vst [vmem:[#allocation7 + $0x4c] sm:$0xf] %v4135_v56  ;;  %v4374_v57 = vld [vmem:[#allocation6 + $0x3] ss:$2 sm:$0xf]  ;;  %v6849_v62 = vpack.c.bf16 %v10772_v61, %v10771_v60  ;;  %v10773_v59 = vld [vmem:[#allocation144_spill] sm:$0xff] }
 0x4f7   :  { %v4377_v58 = vld [vmem:[#allocation6 + $0x13] ss:$2 sm:$0xf]  ;;  %6846 = vmatpush1.bf16.msra.mxu0 %v6845_v46  ;;  %6974 = vmatpush1.bf16.msra.mxu1 %v6973_v6  ;;  %v10774_v63 = vld [vmem:[#allocation146_spill] sm:$0xff]  ;;  %v10776_v18 = vld [vmem:[#allocation95_spill] sm:$0xff] }
 0x4f8   :  { %v6977_v27 = vpack.c.bf16 %v10774_v63, %v10773_v59  ;;  %v4184_v28 = vld [vmem:[#allocation7] sm:$0xff]  ;;  %6848 = vmatprep.subr.bf16.mxu0 %v6847_v16  ;;  %6976 = vmatprep.subr.bf16.mxu1 %v6975_v30  ;;  %v10775_v21 = vld [vmem:[#allocation93_spill] sm:$0xff]  ;;  %v10778_v32 = vld [vmem:[#allocation151_spill] sm:$0xff] }
 0x4f9   :  { %v6851_v52 = vpack.c.bf16 %v10776_v18, %v10775_v21  ;;  %v10777_v53 = vld [vmem:[#allocation149_spill] sm:$0xff]  ;;  %4576 = vst [vmem:[#allocation7] sm:$0xf] %v4575_v24  ;;  %4579 = vst [vmem:[#allocation7 + $0x4] sm:$0xf] %v4578_v25  ;;  %v10052_v54 = vld [vmem:[#allocation7 + $0x40] sm:$0xff] }
 0x4fa   :  { %v6979_v48 = vpack.c.bf16 %v10778_v32, %v10777_v53  ;;  %v4581_v41 = vld [vmem:[#allocation6 + $0x24] ss:$2 sm:$0xf]  ;;  %v4584_v44 = vld [vmem:[#allocation6 + $0x34] ss:$2 sm:$0xf] }
 0x4fb   :  { %4375 = vst [vmem:[#allocation7 + $0x40] sm:$0xf] %v4374_v57  ;;  %4378 = vst [vmem:[#allocation7 + $0x44] sm:$0xf] %v4377_v58  ;;  %6850 = vmatpush1.bf16.msra.mxu0 %v6849_v62  ;;  %6978 = vmatpush1.bf16.msra.mxu1 %v6977_v27  ;;  %v10779_v50 = vld [vmem:[#allocation92_spill] sm:$0xff]  ;;  %v10780_v4 = vld [vmem:[#allocation94_spill] sm:$0xff] }
 0x4fc   :  { %v4380_v23 = vld [vmem:[#allocation6 + $0x23] ss:$2 sm:$0xf]  ;;  %v4383_v36 = vld [vmem:[#allocation6 + $0x33] ss:$2 sm:$0xf]  ;;  %v6853_v33 = vpack.c.bf16 %v10780_v4, %v10779_v50  ;;  %6852 = vmatprep.subr.bf16.mxu0 %v6851_v52  ;;  %6980 = vmatprep.subr.bf16.mxu1 %v6979_v48 }
 0x4fd   :  { %v10781_v14 = vld [vmem:[#allocation148_spill] sm:$0xff]  ;;  %v10782_v8 = vld [vmem:[#allocation150_spill] sm:$0xff]  ;;  %v4185_v2 = vld [vmem:[#allocation7 + $0x8] sm:$0xff] }
 0x4fe   :  { %v6981_v37 = vpack.c.bf16 %v10782_v8, %v10781_v14  ;;  %v10783_v22 = vld [vmem:[#allocation11_spill] sm:$0xff]  ;;  %v10784_v55 = vld [vmem:[#allocation13_spill] sm:$0xff]  ;;  %4582 = vst [vmem:[#allocation7 + $0x8] sm:$0xf] %v4581_v41  ;;  %4585 = vst [vmem:[#allocation7 + $0xc] sm:$0xf] %v4584_v44 }
 0x4ff   :  { %v6855_v1 = vpack.c.bf16 %v10784_v55, %v10783_v22  ;;  %v10785_v51 = vld [vmem:[#allocation153_spill] sm:$0xff]  ;;  %v10786_v38 = vld [vmem:[#allocation155_spill] sm:$0xff]  ;;  %6854 = vmatpush1.bf16.msra.mxu0 %v6853_v33  ;;  %v10787_v9 = vld [vmem:[#allocation10_spill] sm:$0xff] }
 0x500   :  { %v6983_v42 = vpack.c.bf16 %v10786_v38, %v10785_v51  ;;  %v10062_v15 = vld [vmem:[#allocation7 + $0x48] sm:$0xff]  ;;  %v4834_v45 = vld [vmem:[#allocation6 + $0x16] ss:$2 sm:$0xf]  ;;  %6982 = vmatpush1.bf16.msra.mxu1 %v6981_v37  ;;  %v4586_v39 = vld [vmem:[#allocation7] sm:$0xff] }
 0x501   :  { %v4831_v35 = vld [vmem:[#allocation6 + $0x6] ss:$2 sm:$0xf]  ;;  %4381 = vst [vmem:[#allocation7 + $0x48] sm:$0xf] %v4380_v23  ;;  %v10788_v47 = vld [vmem:[#allocation12_spill] sm:$0xff]  ;;  %6856 = vmatprep.subr.bf16.mxu0 %v6855_v1 }
 0x502   :  { %4384 = vst [vmem:[#allocation7 + $0x4c] sm:$0xf] %v4383_v36  ;;  %v4703_v12 = vld [vmem:[#allocation6 + $0x5] ss:$2 sm:$0xf]  ;;  %v6857_v40 = vpack.c.bf16 %v10788_v47, %v10787_v9  ;;  %v10789_v43 = vld [vmem:[#allocation152_spill] sm:$0xff]  ;;  %6984 = vmatprep.subr.bf16.mxu1 %v6983_v42  ;;  %4284 = vmatmul.mubr.f32.vlgmr.msra.gmra.mrb[28].mxu0 %v4184_v28 }
 0x503   :  { %v4706_v11 = vld [vmem:[#allocation6 + $0x15] ss:$2 sm:$0xf]  ;;  %v10790_v0 = vld [vmem:[#allocation154_spill] sm:$0xff]  ;;  %4832 = vst [vmem:[#allocation7] sm:$0xf] %v4831_v35  ;;  %4686 = vmatmul.mubr.f32.vlgmr.msra.gmra.mrb[8].mxu1 %v4586_v39  ;;  %4289 = vmatprep.mubr.f32.mxu0 %v10736_v3 }
 0x504   :  { %v6985_v34 = vpack.c.bf16 %v10790_v0, %v10789_v43  ;;  %4835 = vst [vmem:[#allocation7 + $0x4] sm:$0xf] %v4834_v45  ;;  %v10791_v10 = vld [vmem:[#allocation15_spill] sm:$0xff]  ;;  %v10792_v7 = vld [vmem:[#allocation17_spill] sm:$0xff]  ;;  %v10072_v13 = vld [vmem:[#allocation7 + $0x40] sm:$0xff]  ;;  %6858 = vmatpush1.bf16.msra.mxu0 %v6857_v40  ;;  %4691 = vmatprep.mubr.f32.mxu1 %v10736_v3 }
 0x505   :  { %v6859_v46 = vpack.c.bf16 %v10792_v7, %v10791_v10  ;;  %v10793_v19 = vld [vmem:[#allocation157_spill] sm:$0xff]  ;;  %v10794_v20 = vld [vmem:[#allocation159_spill] sm:$0xff]  ;;  %4704 = vst [vmem:[#allocation7 + $0x40] sm:$0xf] %v4703_v12  ;;  %4707 = vst [vmem:[#allocation7 + $0x44] sm:$0xf] %v4706_v11 }
 0x506   :  { %v6987_v6 = vpack.c.bf16 %v10794_v20, %v10793_v19  ;;  %v4837_v5 = vld [vmem:[#allocation6 + $0x26] ss:$2 sm:$0xf]  ;;  %v4840_v16 = vld [vmem:[#allocation6 + $0x36] ss:$2 sm:$0xf]  ;;  %6986 = vmatpush1.bf16.msra.mxu1 %v6985_v34  ;;  %4290 = vmatmul.mubr.f32.gmra.mrb[30].mxu0 %v4185_v2 }
 0x507   :  { %v4709_v29 = vld [vmem:[#allocation6 + $0x25] ss:$2 sm:$0xf]  ;;  %v4712_v26 = vld [vmem:[#allocation6 + $0x35] ss:$2 sm:$0xf]  ;;  %6860 = vmatprep.subr.bf16.mxu0 %v6859_v46  ;;  %4360 = vmatprep.mubr.f32.mxu0 %v10736_v3 }
 0x508   :  { %v10795_v30 = vld [vmem:[#allocation14_spill] sm:$0xff]  ;;  %v10796_v31 = vld [vmem:[#allocation16_spill] sm:$0xff]  ;;  %v4587_v58 = vld [vmem:[#allocation7 + $0x8] sm:$0xff]  ;;  %6988 = vmatprep.subr.bf16.mxu1 %v6987_v6 }
 0x509   :  { %v6861_v56 = vpack.c.bf16 %v10796_v31, %v10795_v30  ;;  %v10797_v24 = vld [vmem:[#allocation156_spill] sm:$0xff]  ;;  %v10798_v25 = vld [vmem:[#allocation158_spill] sm:$0xff]  ;;  %v10799_v60 = vld [vmem:[#allocation19_spill] sm:$0xff]  ;;  %4838 = vst [vmem:[#allocation7 + $0x8] sm:$0xf] %v4837_v5  ;;  %4692 = vmatmul.mubr.f32.gmra.mrb[10].mxu1 %v4587_v58 }
 0x50a   :  { %v6989_v57 = vpack.c.bf16 %v10798_v25, %v10797_v24  ;;  %v10800_v61 = vld [vmem:[#allocation21_spill] sm:$0xff]  ;;  %v10802_v63 = vld [vmem:[#allocation163_spill] sm:$0xff]  ;;  %4841 = vst [vmem:[#allocation7 + $0xc] sm:$0xf] %v4840_v16  ;;  %v10803_v32 = vld [vmem:[#allocation18_spill] sm:$0xff]  ;;  %4813 = vmatprep.mubr.f32.mxu1 %v10736_v3 }
 0x50b   :  { %v6863_v62 = vpack.c.bf16 %v10800_v61, %v10799_v60  ;;  %v10801_v59 = vld [vmem:[#allocation161_spill] sm:$0xff]  ;;  %v10082_v28 = vld [vmem:[#allocation7 + $0x48] sm:$0xff]  ;;  %6862 = vmatpush1.bf16.msra.mxu0 %v6861_v56  ;;  %v10804_v48 = vld [vmem:[#allocation20_spill] sm:$0xff] }
 0x50c   :  { %v6991_v27 = vpack.c.bf16 %v10802_v63, %v10801_v59  ;;  %4710 = vst [vmem:[#allocation7 + $0x48] sm:$0xf] %v4709_v29  ;;  %4713 = vst [vmem:[#allocation7 + $0x4c] sm:$0xf] %v4712_v26  ;;  %6990 = vmatpush1.bf16.msra.mxu1 %v6989_v57  ;;  %v6865_v41 = vpack.c.bf16 %v10804_v48, %v10803_v32  ;;  %v10805_v44 = vld [vmem:[#allocation160_spill] sm:$0xff]  ;;  %v10806_v23 = vld [vmem:[#allocation162_spill] sm:$0xff] }
 0x50d   :  { %v5087_v21 = vld [vmem:[#allocation6 + $0x8] ss:$2 sm:$0xf]  ;;  %v5090_v18 = vld [vmem:[#allocation6 + $0x18] ss:$2 sm:$0xf]  ;;  %v6993_v36 = vpack.c.bf16 %v10806_v23, %v10805_v44  ;;  %6864 = vmatprep.subr.bf16.mxu0 %v6863_v62 }
 0x50e   :  { %v4959_v52 = vld [vmem:[#allocation6 + $0x7] ss:$2 sm:$0xf]  ;;  %v4962_v53 = vld [vmem:[#allocation6 + $0x17] ss:$2 sm:$0xf]  ;;  %6992 = vmatprep.subr.bf16.mxu1 %v6991_v27 }
 0x50f   :  { %v10090_v50 = vld [vmem:[#allocation7] sm:$0xff]  ;;  %v10807_v4 = vld [vmem:[#allocation23_spill] sm:$0xff]  ;;  %v10808_v33 = vld [vmem:[#allocation25_spill] sm:$0xff]  ;;  %6866 = vmatpush1.bf16.msra.mxu0 %v6865_v41 }
 0x510   :  { %v6867_v14 = vpack.c.bf16 %v10808_v33, %v10807_v4  ;;  %v10809_v8 = vld [vmem:[#allocation165_spill] sm:$0xff]  ;;  %v10810_v37 = vld [vmem:[#allocation167_spill] sm:$0xff]  ;;  %v10096_v22 = vld [vmem:[#allocation7 + $0x40] sm:$0xff]  ;;  %5088 = vst [vmem:[#allocation7] sm:$0xf] %v5087_v21  ;;  %6994 = vmatpush1.bf16.msra.mxu1 %v6993_v36 }
 0x511   :  { %v6995_v2 = vpack.c.bf16 %v10810_v37, %v10809_v8  ;;  %5091 = vst [vmem:[#allocation7 + $0x4] sm:$0xf] %v5090_v18  ;;  %4960 = vst [vmem:[#allocation7 + $0x40] sm:$0xf] %v4959_v52  ;;  %v10811_v42 = vld [vmem:[#allocation22_spill] sm:$0xff]  ;;  %v10812_v35 = vld [vmem:[#allocation24_spill] sm:$0xff] }
 0x512   :  { %4963 = vst [vmem:[#allocation7 + $0x44] sm:$0xf] %v4962_v53  ;;  %v5093_v55 = vld [vmem:[#allocation6 + $0x28] ss:$2 sm:$0xf]  ;;  %v6869_v45 = vpack.c.bf16 %v10812_v35, %v10811_v42  ;;  %v10813_v12 = vld [vmem:[#allocation164_spill] sm:$0xff]  ;;  %6868 = vmatprep.subr.bf16.mxu0 %v6867_v14 }
 0x513   :  { %v5096_v1 = vld [vmem:[#allocation6 + $0x38] ss:$2 sm:$0xf]  ;;  %v4965_v51 = vld [vmem:[#allocation6 + $0x27] ss:$2 sm:$0xf]  ;;  %6996 = vmatprep.subr.bf16.mxu1 %v6995_v2 }
 0x514   :  { %v4968_v38 = vld [vmem:[#allocation6 + $0x37] ss:$2 sm:$0xf]  ;;  %v10814_v11 = vld [vmem:[#allocation166_spill] sm:$0xff]  ;;  %v10104_v47 = vld [vmem:[#allocation7 + $0x8] sm:$0xff]  ;;  %6870 = vmatpush1.bf16.msra.mxu0 %v6869_v45 }
 0x515   :  { %v6997_v9 = vpack.c.bf16 %v10814_v11, %v10813_v12  ;;  %v10815_v40 = vld [vmem:[#allocation27_spill] sm:$0xff]  ;;  %v10816_v39 = vld [vmem:[#allocation29_spill] sm:$0xff]  ;;  %5094 = vst [vmem:[#allocation7 + $0x8] sm:$0xf] %v5093_v55  ;;  %5097 = vst [vmem:[#allocation7 + $0xc] sm:$0xf] %v5096_v1 }
 0x516   :  { %v6871_v43 = vpack.c.bf16 %v10816_v39, %v10815_v40  ;;  %v10817_v0 = vld [vmem:[#allocation169_spill] sm:$0xff]  ;;  %v10818_v34 = vld [vmem:[#allocation171_spill] sm:$0xff]  ;;  %v10819_v20 = vld [vmem:[#allocation26_spill] sm:$0xff] }
 0x517   :  { %v6999_v10 = vpack.c.bf16 %v10818_v34, %v10817_v0  ;;  %v10110_v7 = vld [vmem:[#allocation7 + $0x48] sm:$0xff]  ;;  %v5218_v19 = vld [vmem:[#allocation6 + $0x19] ss:$2 sm:$0xf]  ;;  %6998 = vmatpush1.bf16.msra.mxu1 %v6997_v9  ;;  %v10820_v6 = vld [vmem:[#allocation28_spill] sm:$0xff] }
 0x518   :  { %4966 = vst [vmem:[#allocation7 + $0x48] sm:$0xf] %v4965_v51  ;;  %4969 = vst [vmem:[#allocation7 + $0x4c] sm:$0xf] %v4968_v38  ;;  %v6873_v5 = vpack.c.bf16 %v10820_v6, %v10819_v20  ;;  %v10821_v16 = vld [vmem:[#allocation168_spill] sm:$0xff]  ;;  %v10822_v29 = vld [vmem:[#allocation170_spill] sm:$0xff]  ;;  %6872 = vmatprep.subr.bf16.mxu0 %v6871_v43 }
 0x519   :  { %v5215_v46 = vld [vmem:[#allocation6 + $0x9] ss:$2 sm:$0xf]  ;;  %v7001_v26 = vpack.c.bf16 %v10822_v29, %v10821_v16  ;;  %7000 = vmatprep.subr.bf16.mxu1 %v6999_v10  ;;  %v10824_v31 = vld [vmem:[#allocation33_spill] sm:$0xff]  ;;  %v10120_v58 = vld [vmem:[#allocation7 + $0x40] sm:$0xff] }
 0x51a   :  { %v10823_v30 = vld [vmem:[#allocation31_spill] sm:$0xff]  ;;  %v10825_v24 = vld [vmem:[#allocation173_spill] sm:$0xff]  ;;  %5216 = vst [vmem:[#allocation7 + $0x40] sm:$0xf] %v5215_v46  ;;  %5219 = vst [vmem:[#allocation7 + $0x44] sm:$0xf] %v5218_v19  ;;  %6874 = vmatpush1.bf16.msra.mxu0 %v6873_v5 }
 0x51b   :  { %v6875_v56 = vpack.c.bf16 %v10824_v31, %v10823_v30  ;;  %v10826_v25 = vld [vmem:[#allocation175_spill] sm:$0xff]  ;;  %v5224_v61 = vld [vmem:[#allocation6 + $0x39] ss:$2 sm:$0xf]  ;;  %7002 = vmatpush1.bf16.msra.mxu1 %v7001_v26  ;;  %v10827_v62 = vld [vmem:[#allocation30_spill] sm:$0xff] }
 0x51c   :  { %v7003_v57 = vpack.c.bf16 %v10826_v25, %v10825_v24  ;;  %v5221_v60 = vld [vmem:[#allocation6 + $0x29] ss:$2 sm:$0xf]  ;;  %v10828_v59 = vld [vmem:[#allocation32_spill] sm:$0xff]  ;;  %v10830_v21 = vld [vmem:[#allocation174_spill] sm:$0xff] }
 0x51d   :  { %v6877_v63 = vpack.c.bf16 %v10828_v59, %v10827_v62  ;;  %v10829_v27 = vld [vmem:[#allocation172_spill] sm:$0xff]  ;;  %6876 = vmatprep.subr.bf16.mxu0 %v6875_v56  ;;  %v10831_v52 = vld [vmem:[#allocation35_spill] sm:$0xff]  ;;  %v10832_v53 = vld [vmem:[#allocation37_spill] sm:$0xff] }
 0x51e   :  { %v7005_v18 = vpack.c.bf16 %v10830_v21, %v10829_v27  ;;  %7004 = vmatprep.subr.bf16.mxu1 %v7003_v57  ;;  %v6879_v32 = vpack.c.bf16 %v10832_v53, %v10831_v52  ;;  %v10833_v48 = vld [vmem:[#allocation177_spill] sm:$0xff]  ;;  %v10834_v41 = vld [vmem:[#allocation179_spill] sm:$0xff]  ;;  %v10835_v36 = vld [vmem:[#allocation34_spill] sm:$0xff] }
 0x51f   :  { %v7007_v44 = vpack.c.bf16 %v10834_v41, %v10833_v48  ;;  %v10130_v23 = vld [vmem:[#allocation7 + $0x48] sm:$0xff]  ;;  %6878 = vmatpush1.bf16.msra.mxu0 %v6877_v63  ;;  %v10836_v4 = vld [vmem:[#allocation36_spill] sm:$0xff]  ;;  %v10838_v8 = vld [vmem:[#allocation178_spill] sm:$0xff] }
 0x520   :  { %5222 = vst [vmem:[#allocation7 + $0x48] sm:$0xf] %v5221_v60  ;;  %5225 = vst [vmem:[#allocation7 + $0x4c] sm:$0xf] %v5224_v61  ;;  %7006 = vmatpush1.bf16.msra.mxu1 %v7005_v18  ;;  %v6881_v33 = vpack.c.bf16 %v10836_v4, %v10835_v36  ;;  %v10837_v14 = vld [vmem:[#allocation176_spill] sm:$0xff]  ;;  %6880 = vmatprep.subr.bf16.mxu0 %v6879_v32  ;;  %v10839_v2 = vld [vmem:[#allocation39_spill] sm:$0xff] }
 0x521   :  { %v7009_v37 = vpack.c.bf16 %v10838_v8, %v10837_v14  ;;  %7008 = vmatprep.subr.bf16.mxu1 %v7007_v44  ;;  %v10840_v55 = vld [vmem:[#allocation41_spill] sm:$0xff]  ;;  %v10842_v38 = vld [vmem:[#allocation183_spill] sm:$0xff]  ;;  %v10843_v35 = vld [vmem:[#allocation38_spill] sm:$0xff] }
 0x522   :  { %v6883_v1 = vpack.c.bf16 %v10840_v55, %v10839_v2  ;;  %v10841_v51 = vld [vmem:[#allocation181_spill] sm:$0xff]  ;;  %v10844_v45 = vld [vmem:[#allocation40_spill] sm:$0xff]  ;;  %v10846_v9 = vld [vmem:[#allocation182_spill] sm:$0xff] }
 0x523   :  { %v7011_v42 = vpack.c.bf16 %v10842_v38, %v10841_v51  ;;  %6882 = vmatpush1.bf16.msra.mxu0 %v6881_v33  ;;  %v6885_v12 = vpack.c.bf16 %v10844_v45, %v10843_v35  ;;  %v10845_v11 = vld [vmem:[#allocation180_spill] sm:$0xff]  ;;  %v10847_v39 = vld [vmem:[#allocation97_spill] sm:$0xff]  ;;  %v10848_v43 = vld [vmem:[#allocation99_spill] sm:$0xff] }
 0x524   :  { %7010 = vmatpush1.bf16.msra.mxu1 %v7009_v37  ;;  %v7013_v40 = vpack.c.bf16 %v10846_v9, %v10845_v11  ;;  %6884 = vmatprep.subr.bf16.mxu0 %v6883_v1  ;;  %v6887_v0 = vpack.c.bf16 %v10848_v43, %v10847_v39  ;;  %v10849_v34 = vld [vmem:[#allocation185_spill] sm:$0xff]  ;;  %v10850_v10 = vld [vmem:[#allocation187_spill] sm:$0xff]  ;;  %v10851_v19 = vld [vmem:[#allocation96_spill] sm:$0xff] }
 0x525   :  { %7012 = vmatprep.subr.bf16.mxu1 %v7011_v42  ;;  %v7015_v46 = vpack.c.bf16 %v10850_v10, %v10849_v34  ;;  %v10852_v20 = vld [vmem:[#allocation98_spill] sm:$0xff]  ;;  %v10853_v5 = vld [vmem:[#allocation184_spill] sm:$0xff]  ;;  %v10855_v26 = vld [vmem:[#allocation101_spill] sm:$0xff] }
 0x526   :  { %v6889_v6 = vpack.c.bf16 %v10852_v20, %v10851_v19  ;;  %v10854_v16 = vld [vmem:[#allocation186_spill] sm:$0xff]  ;;  %v10856_v30 = vld [vmem:[#allocation103_spill] sm:$0xff]  ;;  %v10857_v56 = vld [vmem:[#allocation189_spill] sm:$0xff] }
 0x527   :  { %6886 = vmatpush1.bf16.msra.mxu0 %v6885_v12  ;;  %v7017_v29 = vpack.c.bf16 %v10854_v16, %v10853_v5  ;;  %v6891_v31 = vpack.c.bf16 %v10856_v30, %v10855_v26  ;;  %v10858_v24 = vld [vmem:[#allocation191_spill] sm:$0xff]  ;;  %v10859_v57 = vld [vmem:[#allocation100_spill] sm:$0xff]  ;;  %v10860_v60 = vld [vmem:[#allocation102_spill] sm:$0xff] }
 0x528   :  { %7014 = vmatpush1.bf16.msra.mxu1 %v7013_v40  ;;  %6888 = vmatprep.subr.bf16.mxu0 %v6887_v0  ;;  %v7019_v25 = vpack.c.bf16 %v10858_v24, %v10857_v56  ;;  %v6893_v61 = vpack.c.bf16 %v10860_v60, %v10859_v57  ;;  %v10861_v62 = vld [vmem:[#allocation188_spill] sm:$0xff]  ;;  %v10862_v59 = vld [vmem:[#allocation190_spill] sm:$0xff]  ;;  %v10863_v27 = vld [vmem:[#allocation105_spill] sm:$0xff] }
 0x529   :  { %7016 = vmatprep.subr.bf16.mxu1 %v7015_v46  ;;  %v7021_v63 = vpack.c.bf16 %v10862_v59, %v10861_v62  ;;  %v10864_v21 = vld [vmem:[#allocation107_spill] sm:$0xff]  ;;  %v10865_v52 = vld [vmem:[#allocation193_spill] sm:$0xff]  ;;  %v10869_v41 = vld [vmem:[#allocation192_spill] sm:$0xff] }
 0x52a   :  { %4361 = vmatmul.mubr.f32.vlgmr.msra.gmra.mrb[28].mxu0 %v10028_v17  ;;  %v6895_v18 = vpack.c.bf16 %v10864_v21, %v10863_v27  ;;  %v10866_v53 = vld [vmem:[#allocation195_spill] sm:$0xff]  ;;  %v10867_v17 = vld [vmem:[#allocation104_spill] sm:$0xff]  ;;  %v10870_v44 = vld [vmem:[#allocation194_spill] sm:$0xff] }
 0x52b   :  { %4814 = vmatmul.mubr.f32.vlgmr.msra.gmra.mrb[8].mxu1 %v10096_v22  ;;  %6890 = vmatpush1.bf16.msra.mxu0 %v6889_v6  ;;  %v7023_v32 = vpack.c.bf16 %v10866_v53, %v10865_v52  ;;  %v10868_v22 = vld [vmem:[#allocation106_spill] sm:$0xff]  ;;  %v7025_v36 = vpack.c.bf16 %v10870_v44, %v10869_v41  ;;  %v10871_v4 = vld [vmem:[#allocation109_spill] sm:$0xff]  ;;  %v10872_v33 = vld [vmem:[#allocation111_spill] sm:$0xff] }
 0x52c   :  { %7018 = vmatpush1.bf16.msra.mxu1 %v7017_v29  ;;  %6892 = vmatprep.subr.bf16.mxu0 %v6891_v31  ;;  %v6897_v48 = vpack.c.bf16 %v10868_v22, %v10867_v17  ;;  %v6899_v14 = vpack.c.bf16 %v10872_v33, %v10871_v4  ;;  %v10873_v8 = vld [vmem:[#allocation197_spill] sm:$0xff]  ;;  %v10874_v37 = vld [vmem:[#allocation199_spill] sm:$0xff]  ;;  %v10877_v1 = vld [vmem:[#allocation196_spill] sm:$0xff] }
 0x52d   :  { %7020 = vmatprep.subr.bf16.mxu1 %v7019_v25  ;;  %4366 = vmatprep.mubr.f32.mxu0 %v10736_v3  ;;  %v7027_v2 = vpack.c.bf16 %v10874_v37, %v10873_v8  ;;  %v10878_v51 = vld [vmem:[#allocation198_spill] sm:$0xff]  ;;  %v10879_v42 = vld [vmem:[#allocation113_spill] sm:$0xff]  ;;  %v10880_v35 = vld [vmem:[#allocation115_spill] sm:$0xff] }
 0x52e   :  { %4819 = vmatprep.mubr.f32.mxu1 %v10736_v3  ;;  %4367 = vmatmul.mubr.f32.gmra.mrb[30].mxu0 %v10038_v49  ;;  %v10875_v49 = vld [vmem:[#allocation108_spill] sm:$0xff]  ;;  %v7029_v38 = vpack.c.bf16 %v10878_v51, %v10877_v1  ;;  %v6903_v45 = vpack.c.bf16 %v10880_v35, %v10879_v42  ;;  %v10881_v12 = vld [vmem:[#allocation201_spill] sm:$0xff]  ;;  %v10882_v11 = vld [vmem:[#allocation203_spill] sm:$0xff] }
 0x52f   :  { %4820 = vmatmul.mubr.f32.gmra.mrb[10].mxu1 %v10110_v7  ;;  %6894 = vmatpush1.bf16.msra.mxu0 %v6893_v61  ;;  %v10876_v7 = vld [vmem:[#allocation110_spill] sm:$0xff]  ;;  %v7031_v9 = vpack.c.bf16 %v10882_v11, %v10881_v12  ;;  %v10883_v40 = vld [vmem:[#allocation112_spill] sm:$0xff]  ;;  %v10887_v46 = vld [vmem:[#allocation117_spill] sm:$0xff] }
 0x530   :  { %7022 = vmatpush1.bf16.msra.mxu1 %v7021_v63  ;;  %6896 = vmatprep.subr.bf16.mxu0 %v6895_v18  ;;  %v6901_v55 = vpack.c.bf16 %v10876_v7, %v10875_v49  ;;  %v10884_v39 = vld [vmem:[#allocation114_spill] sm:$0xff]  ;;  %v10885_v0 = vld [vmem:[#allocation200_spill] sm:$0xff]  ;;  %v10888_v19 = vld [vmem:[#allocation119_spill] sm:$0xff] }
 0x531   :  { %7024 = vmatprep.subr.bf16.mxu1 %v7023_v32  ;;  %4484 = vmatprep.mubr.f32.mxu0 %v10736_v3  ;;  %v6905_v43 = vpack.c.bf16 %v10884_v39, %v10883_v40  ;;  %v10886_v34 = vld [vmem:[#allocation202_spill] sm:$0xff]  ;;  %v6907_v20 = vpack.c.bf16 %v10888_v19, %v10887_v46  ;;  %v10889_v6 = vld [vmem:[#allocation205_spill] sm:$0xff]  ;;  %v10890_v5 = vld [vmem:[#allocation207_spill] sm:$0xff] }
 0x532   :  { %4941 = vmatprep.mubr.f32.mxu1 %v10736_v3  ;;  %v7033_v10 = vpack.c.bf16 %v10886_v34, %v10885_v0  ;;  %v7035_v16 = vpack.c.bf16 %v10890_v5, %v10889_v6  ;;  %v10891_v29 = vld [vmem:[#allocation116_spill] sm:$0xff]  ;;  %v10892_v26 = vld [vmem:[#allocation118_spill] sm:$0xff]  ;;  %v10895_v25 = vld [vmem:[#allocation121_spill] sm:$0xff] }
 0x533   :  { %6898 = vmatpush1.bf16.msra.mxu0 %v6897_v48  ;;  %v6909_v30 = vpack.c.bf16 %v10892_v26, %v10891_v29  ;;  %v10893_v31 = vld [vmem:[#allocation204_spill] sm:$0xff]  ;;  %v10894_v56 = vld [vmem:[#allocation206_spill] sm:$0xff]  ;;  %v10896_v57 = vld [vmem:[#allocation123_spill] sm:$0xff] }
 0x534   :  { %7026 = vmatpush1.bf16.msra.mxu1 %v7025_v36  ;;  %6900 = vmatprep.subr.bf16.mxu0 %v6899_v14  ;;  %v7037_v24 = vpack.c.bf16 %v10894_v56, %v10893_v31  ;;  %v6911_v60 = vpack.c.bf16 %v10896_v57, %v10895_v25  ;;  %v10897_v61 = vld [vmem:[#allocation209_spill] sm:$0xff]  ;;  %v10898_v62 = vld [vmem:[#allocation211_spill] sm:$0xff]  ;;  %v10899_v63 = vld [vmem:[#allocation120_spill] sm:$0xff] }
 0x535   :  { %7028 = vmatprep.subr.bf16.mxu1 %v7027_v2  ;;  %v7039_v59 = vpack.c.bf16 %v10898_v62, %v10897_v61  ;;  %v10900_v27 = vld [vmem:[#allocation122_spill] sm:$0xff]  ;;  %v10901_v18 = vld [vmem:[#allocation208_spill] sm:$0xff]  ;;  %v10903_v32 = vld [vmem:[#allocation125_spill] sm:$0xff] }
 0x536   :  { %v6913_v21 = vpack.c.bf16 %v10900_v27, %v10899_v63  ;;  %v10902_v52 = vld [vmem:[#allocation210_spill] sm:$0xff]  ;;  %v10904_v17 = vld [vmem:[#allocation127_spill] sm:$0xff]  ;;  %v10905_v48 = vld [vmem:[#allocation213_spill] sm:$0xff] }
 0x537   :  { %6902 = vmatpush1.bf16.msra.mxu0 %v6901_v55  ;;  %v7041_v53 = vpack.c.bf16 %v10902_v52, %v10901_v18  ;;  %v6915_v22 = vpack.c.bf16 %v10904_v17, %v10903_v32  ;;  %v10906_v41 = vld [vmem:[#allocation215_spill] sm:$0xff]  ;;  %v10907_v36 = vld [vmem:[#allocation124_spill] sm:$0xff]  ;;  %v10908_v4 = vld [vmem:[#allocation126_spill] sm:$0xff] }
 0x538   :  { %7030 = vmatpush1.bf16.msra.mxu1 %v7029_v38  ;;  %6904 = vmatprep.subr.bf16.mxu0 %v6903_v45  ;;  %v7043_v44 = vpack.c.bf16 %v10906_v41, %v10905_v48  ;;  %v6917_v33 = vpack.c.bf16 %v10908_v4, %v10907_v36  ;;  %v10909_v14 = vld [vmem:[#allocation212_spill] sm:$0xff]  ;;  %v10910_v8 = vld [vmem:[#allocation214_spill] sm:$0xff]  ;;  %v10911_v2 = vld [vmem:[#allocation43_spill] sm:$0xff] }
 0x539   :  { %7032 = vmatprep.subr.bf16.mxu1 %v7031_v9  ;;  %v7045_v37 = vpack.c.bf16 %v10910_v8, %v10909_v14  ;;  %v10912_v49 = vld [vmem:[#allocation45_spill] sm:$0xff]  ;;  %v10914_v1 = vld [vmem:[#allocation219_spill] sm:$0xff]  ;;  %v10915_v38 = vld [vmem:[#allocation42_spill] sm:$0xff] }
 0x53a   :  { %v6919_v7 = vpack.c.bf16 %v10912_v49, %v10911_v2  ;;  %v10913_v55 = vld [vmem:[#allocation217_spill] sm:$0xff]  ;;  %v10916_v42 = vld [vmem:[#allocation44_spill] sm:$0xff]  ;;  %v10918_v12 = vld [vmem:[#allocation218_spill] sm:$0xff] }
 0x53b   :  { %6906 = vmatpush1.bf16.msra.mxu0 %v6905_v43  ;;  %v7047_v51 = vpack.c.bf16 %v10914_v1, %v10913_v55  ;;  %v6921_v35 = vpack.c.bf16 %v10916_v42, %v10915_v38  ;;  %v10917_v45 = vld [vmem:[#allocation216_spill] sm:$0xff]  ;;  %v10919_v9 = vld [vmem:[#allocation47_spill] sm:$0xff]  ;;  %v10920_v40 = vld [vmem:[#allocation49_spill] sm:$0xff] }
 0x53c   :  { %7034 = vmatpush1.bf16.msra.mxu1 %v7033_v10  ;;  %6908 = vmatprep.subr.bf16.mxu0 %v6907_v20  ;;  %v7049_v11 = vpack.c.bf16 %v10918_v12, %v10917_v45  ;;  %v6923_v39 = vpack.c.bf16 %v10920_v40, %v10919_v9  ;;  %v10921_v43 = vld [vmem:[#allocation221_spill] sm:$0xff]  ;;  %v10922_v0 = vld [vmem:[#allocation223_spill] sm:$0xff]  ;;  %v10923_v10 = vld [vmem:[#allocation46_spill] sm:$0xff] }
 0x53d   :  { %7036 = vmatprep.subr.bf16.mxu1 %v7035_v16  ;;  %v7051_v34 = vpack.c.bf16 %v10922_v0, %v10921_v43  ;;  %v10924_v46 = vld [vmem:[#allocation48_spill] sm:$0xff]  ;;  %v10926_v6 = vld [vmem:[#allocation222_spill] sm:$0xff]  ;;  %v10927_v16 = vld [vmem:[#allocation51_spill] sm:$0xff] }
 0x53e   :  { %v6925_v19 = vpack.c.bf16 %v10924_v46, %v10923_v10  ;;  %v10925_v20 = vld [vmem:[#allocation220_spill] sm:$0xff]  ;;  %v10928_v29 = vld [vmem:[#allocation53_spill] sm:$0xff]  ;;  %v10930_v31 = vld [vmem:[#allocation227_spill] sm:$0xff] }
 0x53f   :  { %6910 = vmatpush1.bf16.msra.mxu0 %v6909_v30  ;;  %v7053_v5 = vpack.c.bf16 %v10926_v6, %v10925_v20  ;;  %v6927_v26 = vpack.c.bf16 %v10928_v29, %v10927_v16  ;;  %v10929_v30 = vld [vmem:[#allocation225_spill] sm:$0xff]  ;;  %v10933_v25 = vld [vmem:[#allocation224_spill] sm:$0xff]  ;;  %v10934_v57 = vld [vmem:[#allocation226_spill] sm:$0xff] }
 0x540   :  { %7038 = vmatpush1.bf16.msra.mxu1 %v7037_v24  ;;  %6912 = vmatprep.subr.bf16.mxu0 %v6911_v60  ;;  %v7055_v56 = vpack.c.bf16 %v10930_v31, %v10929_v30  ;;  %v7057_v60 = vpack.c.bf16 %v10934_v57, %v10933_v25  ;;  %v10935_v61 = vld [vmem:[#allocation55_spill] sm:$0xff]  ;;  %v10936_v62 = vld [vmem:[#allocation57_spill] sm:$0xff]  ;;  %v10941_v52 = vld [vmem:[#allocation228_spill] sm:$0xff] }
 0x541   :  { %7040 = vmatprep.subr.bf16.mxu1 %v7039_v59  ;;  %v6931_v59 = vpack.c.bf16 %v10936_v62, %v10935_v61  ;;  %v10937_v63 = vld [vmem:[#allocation229_spill] sm:$0xff]  ;;  %v10938_v27 = vld [vmem:[#allocation231_spill] sm:$0xff]  ;;  %v10947_v4 = vld [vmem:[#allocation58_spill] sm:$0xff] }
 0x542   :  { %v10943_v17 = vld [vmem:[#allocation59_spill] sm:$0xff]  ;;  %v10945_v41 = vld [vmem:[#allocation233_spill] sm:$0xff]  ;;  %v10949_v8 = vld [vmem:[#allocation232_spill] sm:$0xff] }
 0x543   :  { %6914 = vmatpush1.bf16.msra.mxu0 %v6913_v21  ;;  %v7059_v21 = vpack.c.bf16 %v10938_v27, %v10937_v63  ;;  %v10951_v49 = vld [vmem:[#allocation63_spill] sm:$0xff]  ;;  %v10953_v1 = vld [vmem:[#allocation237_spill] sm:$0xff]  ;;  %v10955_v42 = vld [vmem:[#allocation62_spill] sm:$0xff] }
 0x544   :  { %7042 = vmatpush1.bf16.msra.mxu1 %v7041_v53  ;;  %6916 = vmatprep.subr.bf16.mxu0 %v6915_v22  ;;  %v10942_v53 = vld [vmem:[#allocation230_spill] sm:$0xff]  ;;  %v10944_v22 = vld [vmem:[#allocation61_spill] sm:$0xff]  ;;  %v10957_v12 = vld [vmem:[#allocation236_spill] sm:$0xff] }
 0x545   :  { %7044 = vmatprep.subr.bf16.mxu1 %v7043_v44  ;;  %v7061_v32 = vpack.c.bf16 %v10942_v53, %v10941_v52  ;;  %v6935_v48 = vpack.c.bf16 %v10944_v22, %v10943_v17  ;;  %v10946_v44 = vld [vmem:[#allocation235_spill] sm:$0xff]  ;;  %v10961_v0 = vld [vmem:[#allocation241_spill] sm:$0xff]  ;;  %v10963_v46 = vld [vmem:[#allocation66_spill] sm:$0xff] }
 0x546   :  { %v7063_v36 = vpack.c.bf16 %v10946_v44, %v10945_v41  ;;  %v10959_v40 = vld [vmem:[#allocation67_spill] sm:$0xff]  ;;  %v10965_v6 = vld [vmem:[#allocation240_spill] sm:$0xff]  ;;  %v10969_v31 = vld [vmem:[#allocation245_spill] sm:$0xff] }
 0x547   :  { %6918 = vmatpush1.bf16.msra.mxu0 %v6917_v33  ;;  %v10948_v33 = vld [vmem:[#allocation60_spill] sm:$0xff]  ;;  %v10967_v29 = vld [vmem:[#allocation71_spill] sm:$0xff]  ;;  %v10975_v62 = vld [vmem:[#allocation249_spill] sm:$0xff] }
 0x548   :  { %7046 = vmatpush1.bf16.msra.mxu1 %v7045_v37  ;;  %6920 = vmatprep.subr.bf16.mxu0 %v6919_v7  ;;  %v6937_v14 = vpack.c.bf16 %v10948_v33, %v10947_v4  ;;  %v10950_v37 = vld [vmem:[#allocation234_spill] sm:$0xff]  ;;  %v10952_v7 = vld [vmem:[#allocation65_spill] sm:$0xff]  ;;  %v10973_v57 = vld [vmem:[#allocation244_spill] sm:$0xff] }
 0x549   :  { %7048 = vmatprep.subr.bf16.mxu1 %v7047_v51  ;;  %v7065_v2 = vpack.c.bf16 %v10950_v37, %v10949_v8  ;;  %v6939_v55 = vpack.c.bf16 %v10952_v7, %v10951_v49  ;;  %v10954_v51 = vld [vmem:[#allocation239_spill] sm:$0xff]  ;;  %v10977_v27 = vld [vmem:[#allocation248_spill] sm:$0xff]  ;;  %v10983_v22 = vld [vmem:[#allocation257_spill] sm:$0xff] }
 0x54a   :  { %4485 = vmatmul.mubr.f32.vlgmr.msra.gmra.mrb[28].mxu0 %v10072_v13  ;;  %v10931_v13 = vld [vmem:[#allocation50_spill] sm:$0xff]  ;;  %v7067_v38 = vpack.c.bf16 %v10954_v51, %v10953_v1  ;;  %v10981_v53 = vld [vmem:[#allocation252_spill] sm:$0xff]  ;;  %v10988_v4 = vld [vmem:[#allocation263_spill] sm:$0xff] }
 0x54b   :  { %4942 = vmatmul.mubr.f32.vlgmr.msra.gmra.mrb[8].mxu1 %v10090_v50  ;;  %6922 = vmatpush1.bf16.msra.mxu0 %v6921_v35  ;;  %v10932_v50 = vld [vmem:[#allocation52_spill] sm:$0xff]  ;;  %v10986_v44 = vld [vmem:[#allocation258_spill] sm:$0xff]  ;;  %v10992_v49 = vld [vmem:[#allocation267_spill] sm:$0xff] }
 0x54c   :  { %7050 = vmatpush1.bf16.msra.mxu1 %v7049_v11  ;;  %6924 = vmatprep.subr.bf16.mxu0 %v6923_v39  ;;  %v6929_v24 = vpack.c.bf16 %v10932_v50, %v10931_v13  ;;  %v10956_v35 = vld [vmem:[#allocation64_spill] sm:$0xff]  ;;  %v10958_v11 = vld [vmem:[#allocation238_spill] sm:$0xff]  ;;  %v10960_v39 = vld [vmem:[#allocation69_spill] sm:$0xff] }
 0x54d   :  { %7052 = vmatprep.subr.bf16.mxu1 %v7051_v34  ;;  %4490 = vmatprep.mubr.f32.mxu0 %v10736_v3  ;;  %v6941_v45 = vpack.c.bf16 %v10956_v35, %v10955_v42  ;;  %v7069_v9 = vpack.c.bf16 %v10958_v11, %v10957_v12  ;;  %v6943_v43 = vpack.c.bf16 %v10960_v39, %v10959_v40  ;;  %v10962_v34 = vld [vmem:[#allocation243_spill] sm:$0xff]  ;;  %v10971_v50 = vld [vmem:[#allocation70_spill] sm:$0xff]  ;;  %v10995_v1 = vld [vmem:[#allocation269_spill] sm:$0xff] }
 0x54e   :  { %4947 = vmatprep.mubr.f32.mxu1 %v10736_v3  ;;  %4491 = vmatmul.mubr.f32.gmra.mrb[30].mxu0 %v10082_v28  ;;  %v10939_v28 = vld [vmem:[#allocation54_spill] sm:$0xff]  ;;  %v7071_v10 = vpack.c.bf16 %v10962_v34, %v10961_v0  ;;  %v10996_v51 = vld [vmem:[#allocation271_spill] sm:$0xff]  ;;  %v10997_v42 = vld [vmem:[#allocation268_spill] sm:$0xff] }
 0x54f   :  { %4948 = vmatmul.mubr.f32.gmra.mrb[10].mxu1 %v10104_v47  ;;  %6926 = vmatpush1.bf16.msra.mxu0 %v6925_v19  ;;  %v10940_v47 = vld [vmem:[#allocation56_spill] sm:$0xff]  ;;  %v10990_v8 = vld [vmem:[#allocation262_spill] sm:$0xff]  ;;  %v10999_v12 = vld [vmem:[#allocation273_spill] sm:$0xff] }
 0x550   :  { %7054 = vmatpush1.bf16.msra.mxu1 %v7053_v5  ;;  %6928 = vmatprep.subr.bf16.mxu0 %v6927_v26  ;;  %v6933_v18 = vpack.c.bf16 %v10940_v47, %v10939_v28  ;;  %v10964_v19 = vld [vmem:[#allocation68_spill] sm:$0xff]  ;;  %v10966_v5 = vld [vmem:[#allocation242_spill] sm:$0xff]  ;;  %v10968_v26 = vld [vmem:[#allocation73_spill] sm:$0xff] }
 0x551   :  { %7056 = vmatprep.subr.bf16.mxu1 %v7055_v56  ;;  %4561 = vmatprep.mubr.f32.mxu0 %v10736_v3  ;;  %v6945_v20 = vpack.c.bf16 %v10964_v19, %v10963_v46  ;;  %v7073_v16 = vpack.c.bf16 %v10966_v5, %v10965_v6  ;;  %v6947_v30 = vpack.c.bf16 %v10968_v26, %v10967_v29  ;;  %v10970_v56 = vld [vmem:[#allocation247_spill] sm:$0xff]  ;;  %v10979_v47 = vld [vmem:[#allocation253_spill] sm:$0xff]  ;;  %v10994_v7 = vld [vmem:[#allocation266_spill] sm:$0xff] }
 0x552   :  { %5069 = vmatprep.mubr.f32.mxu1 %v10736_v3  ;;  %v7075_v13 = vpack.c.bf16 %v10970_v56, %v10969_v31  ;;  %v10998_v35 = vld [vmem:[#allocation270_spill] sm:$0xff]  ;;  %v11000_v11 = vld [vmem:[#allocation275_spill] sm:$0xff]  ;;  %v11001_v40 = vld [vmem:[#allocation272_spill] sm:$0xff] }
 0x553   :  { %6930 = vmatpush1.bf16.msra.mxu0 %v6929_v24  ;;  %v10972_v24 = vld [vmem:[#allocation72_spill] sm:$0xff]  ;;  %v11002_v39 = vld [vmem:[#allocation274_spill] sm:$0xff]  ;;  %v11003_v0 = vld [vmem:[#allocation277_spill] sm:$0xff] }
 0x554   :  { %7058 = vmatpush1.bf16.msra.mxu1 %v7057_v60  ;;  %6932 = vmatprep.subr.bf16.mxu0 %v6931_v59  ;;  %v6949_v25 = vpack.c.bf16 %v10972_v24, %v10971_v50  ;;  %v10974_v60 = vld [vmem:[#allocation246_spill] sm:$0xff]  ;;  %v10976_v59 = vld [vmem:[#allocation251_spill] sm:$0xff]  ;;  %v11005_v46 = vld [vmem:[#allocation276_spill] sm:$0xff] }
 0x555   :  { %7060 = vmatprep.subr.bf16.mxu1 %v7059_v21  ;;  %v7077_v61 = vpack.c.bf16 %v10974_v60, %v10973_v57  ;;  %v7079_v63 = vpack.c.bf16 %v10976_v59, %v10975_v62  ;;  %v10978_v21 = vld [vmem:[#allocation250_spill] sm:$0xff]  ;;  %v11004_v34 = vld [vmem:[#allocation279_spill] sm:$0xff]  ;;  %v11007_v6 = vld [vmem:[#allocation281_spill] sm:$0xff] }
 0x556   :  { %v7081_v28 = vpack.c.bf16 %v10978_v21, %v10977_v27  ;;  %v11006_v19 = vld [vmem:[#allocation278_spill] sm:$0xff]  ;;  %v11008_v5 = vld [vmem:[#allocation283_spill] sm:$0xff]  ;;  %v11009_v26 = vld [vmem:[#allocation280_spill] sm:$0xff] }
 0x557   :  { %6934 = vmatpush1.bf16.msra.mxu0 %v6933_v18  ;;  %v10980_v18 = vld [vmem:[#allocation255_spill] sm:$0xff]  ;;  %v5098_v29 = vld [vmem:[#allocation7] sm:$0xff]  ;;  %v11011_v56 = vld [vmem:[#allocation285_spill] sm:$0xff] }
 0x558   :  { %7062 = vmatpush1.bf16.msra.mxu1 %v7061_v32  ;;  %6936 = vmatprep.subr.bf16.mxu0 %v6935_v48  ;;  %v7083_v52 = vpack.c.bf16 %v10980_v18, %v10979_v47  ;;  %v10982_v32 = vld [vmem:[#allocation254_spill] sm:$0xff]  ;;  %v10984_v48 = vld [vmem:[#allocation259_spill] sm:$0xff]  ;;  %v11013_v24 = vld [vmem:[#allocation284_spill] sm:$0xff] }
 0x559   :  { %7064 = vmatprep.subr.bf16.mxu1 %v7063_v36  ;;  %v7085_v17 = vpack.c.bf16 %v10982_v32, %v10981_v53  ;;  %v7087_v41 = vpack.c.bf16 %v10984_v48, %v10983_v22  ;;  %v10987_v36 = vld [vmem:[#allocation261_spill] sm:$0xff]  ;;  %v5099_v60 = vld [vmem:[#allocation7 + $0x8] sm:$0xff]  ;;  %v11018_v27 = vld [vmem:[#allocation290_spill] sm:$0xff] }
 0x55a   :  { %v7091_v33 = vpack.c.bf16 %v10988_v4, %v10987_v36  ;;  %v11016_v62 = vld [vmem:[#allocation291_spill] sm:$0xff]  ;;  %v11022_v53 = vld [vmem:[#allocation294_spill] sm:$0xff] }
 0x55b   :  { %6938 = vmatpush1.bf16.msra.mxu0 %v6937_v14  ;;  %v10989_v14 = vld [vmem:[#allocation260_spill] sm:$0xff]  ;;  %v11020_v47 = vld [vmem:[#allocation295_spill] sm:$0xff] }
 0x55c   :  { %7066 = vmatpush1.bf16.msra.mxu1 %v7065_v2  ;;  %6940 = vmatprep.subr.bf16.mxu0 %v6939_v55  ;;  %v7093_v37 = vpack.c.bf16 %v10990_v8, %v10989_v14  ;;  %v10991_v2 = vld [vmem:[#allocation265_spill] sm:$0xff]  ;;  %v11024_v22 = vld [vmem:[#allocation299_spill] sm:$0xff]  ;;  %v11030_v14 = vld [vmem:[#allocation302_spill] sm:$0xff] }
 0x55d   :  { %7068 = vmatprep.subr.bf16.mxu1 %v7067_v38  ;;  %v7099_v38 = vpack.c.bf16 %v10996_v51, %v10995_v1  ;;  %v11028_v36 = vld [vmem:[#allocation303_spill] sm:$0xff] }
 0x55e   :  { %v11036_v1 = vld [vmem:[#allocation311_spill] sm:$0xff] }
 0x55f   :  { %6942 = vmatpush1.bf16.msra.mxu0 %v6941_v45  ;;  %v7101_v45 = vpack.c.bf16 %v10998_v35, %v10997_v42  ;;  %v11038_v42 = vld [vmem:[#allocation310_spill] sm:$0xff] }
 0x560   :  { %7070 = vmatpush1.bf16.msra.mxu1 %v7069_v9  ;;  %6944 = vmatprep.subr.bf16.mxu0 %v6943_v43  ;;  %v7103_v9 = vpack.c.bf16 %v11000_v11, %v10999_v12  ;;  %v7105_v43 = vpack.c.bf16 %v11002_v39, %v11001_v40  ;;  %v5227_v12 = vld [vmem:[#allocation7 + $0x48] sm:$0xff] }
 0x561   :  { %7072 = vmatprep.subr.bf16.mxu1 %v7071_v10  ;;  %v7107_v10 = vpack.c.bf16 %v11004_v34, %v11003_v0 }
 0x563   :  { %6946 = vmatpush1.bf16.msra.mxu0 %v6945_v20  ;;  %v7109_v20 = vpack.c.bf16 %v11006_v19, %v11005_v46 }
 0x564   :  { %7074 = vmatpush1.bf16.msra.mxu1 %v7073_v16  ;;  %6948 = vmatprep.subr.bf16.mxu0 %v6947_v30  ;;  %v7111_v16 = vpack.c.bf16 %v11008_v5, %v11007_v6  ;;  %v11010_v30 = vld [vmem:[#allocation282_spill] sm:$0xff] }
 0x565   :  { %7076 = vmatprep.subr.bf16.mxu1 %v7075_v13  ;;  %v7113_v31 = vpack.c.bf16 %v11010_v30, %v11009_v26  ;;  %v11012_v13 = vld [vmem:[#allocation287_spill] sm:$0xff] }
 0x566   :  { %v7115_v50 = vpack.c.bf16 %v11012_v13, %v11011_v56 }
 0x567   :  { %6950 = vmatpush1.bf16.msra.mxu0 %v6949_v25  ;;  %v11014_v25 = vld [vmem:[#allocation286_spill] sm:$0xff] }
 0x568   :  { %7078 = vmatpush1.bf16.msra.mxu1 %v7077_v61  ;;  %v7117_v57 = vpack.c.bf16 %v11014_v25, %v11013_v24  ;;  %v11015_v61 = vld [vmem:[#allocation289_spill] sm:$0xff] }
 0x569   :  { %7080 = vmatprep.subr.bf16.mxu1 %v7079_v63  ;;  %v7119_v59 = vpack.c.bf16 %v11016_v62, %v11015_v61  ;;  %v11017_v63 = vld [vmem:[#allocation288_spill] sm:$0xff] }
 0x56a   :  { %4562 = vmatmul.mubr.f32.vlgmr.msra.gmra.mrb[28].mxu0 %v10052_v54  ;;  %v10985_v54 = vld [vmem:[#allocation256_spill] sm:$0xff]  ;;  %v7121_v21 = vpack.c.bf16 %v11018_v27, %v11017_v63 }
 0x56b   :  { %5070 = vmatmul.mubr.f32.vlgmr.msra.gmra.mrb[8].mxu1 %v10120_v58  ;;  %4567 = vmatprep.mubr.f32.mxu0 %v10736_v3  ;;  %v7089_v58 = vpack.c.bf16 %v10986_v44, %v10985_v54  ;;  %v11026_v54 = vld [vmem:[#allocation298_spill] sm:$0xff] }
 0x56c   :  { %7082 = vmatpush1.bf16.msra.mxu1 %v7081_v28  ;;  %5075 = vmatprep.mubr.f32.mxu1 %v10736_v3  ;;  %v11019_v28 = vld [vmem:[#allocation293_spill] sm:$0xff] }
 0x56d   :  { %7084 = vmatprep.subr.bf16.mxu1 %v7083_v52  ;;  %v7123_v18 = vpack.c.bf16 %v11020_v47, %v11019_v28  ;;  %v11021_v52 = vld [vmem:[#allocation292_spill] sm:$0xff] }
 0x56e   :  { %4568 = vmatmul.mubr.f32.gmra.mrb[30].mxu0 %v10062_v15  ;;  %v7095_v15 = vpack.c.bf16 %v10992_v49, %v10991_v2  ;;  %v7125_v32 = vpack.c.bf16 %v11022_v53, %v11021_v52  ;;  %v11032_v2 = vld [vmem:[#allocation307_spill] sm:$0xff] }
 0x56f   :  { %5076 = vmatmul.mubr.f32.gmra.mrb[10].mxu1 %v10130_v23  ;;  %v10993_v23 = vld [vmem:[#allocation264_spill] sm:$0xff] }
 0x570   :  { %7086 = vmatpush1.bf16.msra.mxu1 %v7085_v17  ;;  %5197 = vmatprep.mubr.f32.mxu1 %v10736_v3  ;;  %v7097_v55 = vpack.c.bf16 %v10994_v7, %v10993_v23  ;;  %v11023_v17 = vld [vmem:[#allocation297_spill] sm:$0xff]  ;;  %v11034_v23 = vld [vmem:[#allocation306_spill] sm:$0xff] }
 0x571   :  { %7088 = vmatprep.subr.bf16.mxu1 %v7087_v41  ;;  %v7127_v48 = vpack.c.bf16 %v11024_v22, %v11023_v17  ;;  %v11025_v41 = vld [vmem:[#allocation296_spill] sm:$0xff] }
 0x572   :  { %v7129_v44 = vpack.c.bf16 %v11026_v54, %v11025_v41 }
 0x574   :  { %7090 = vmatpush1.bf16.msra.mxu1 %v7089_v58  ;;  %v11027_v58 = vld [vmem:[#allocation301_spill] sm:$0xff] }
 0x575   :  { %7092 = vmatprep.subr.bf16.mxu1 %v7091_v33  ;;  %v7131_v4 = vpack.c.bf16 %v11028_v36, %v11027_v58  ;;  %v11029_v33 = vld [vmem:[#allocation300_spill] sm:$0xff] }
 0x576   :  { %v7133_v8 = vpack.c.bf16 %v11030_v14, %v11029_v33 }
 0x578   :  { %7094 = vmatpush1.bf16.msra.mxu1 %v7093_v37  ;;  %v11031_v37 = vld [vmem:[#allocation305_spill] sm:$0xff] }
 0x579   :  { %7096 = vmatprep.subr.bf16.mxu1 %v7095_v15  ;;  %v7135_v49 = vpack.c.bf16 %v11032_v2, %v11031_v37  ;;  %v11033_v15 = vld [vmem:[#allocation304_spill] sm:$0xff] }
 0x57a   :  { %v7137_v7 = vpack.c.bf16 %v11034_v23, %v11033_v15 }
 0x57c   :  { %7098 = vmatpush1.bf16.msra.mxu1 %v7097_v55  ;;  %v11035_v55 = vld [vmem:[#allocation309_spill] sm:$0xff] }
 0x57d   :  { %7100 = vmatprep.subr.bf16.mxu1 %v7099_v38  ;;  %v7139_v51 = vpack.c.bf16 %v11036_v1, %v11035_v55  ;;  %v11037_v38 = vld [vmem:[#allocation308_spill] sm:$0xff] }
 0x57e   :  { %v7141_v35 = vpack.c.bf16 %v11038_v42, %v11037_v38 }
 0x580   :  { %7102 = vmatpush1.bf16.msra.mxu1 %v7101_v45  ;;  %v5226_v45 = vld [vmem:[#allocation7 + $0x40] sm:$0xff] }
 0x581   :  { %7104 = vmatprep.subr.bf16.mxu1 %v7103_v9 }
 0x584   :  { %7106 = vmatpush1.bf16.msra.mxu1 %v7105_v43  ;;  %v5347_v43 = vlaneseq }
 0x585   :  { %7108 = vmatprep.subr.bf16.mxu1 %v7107_v10  ;;  %v5837_v10 = vld [vmem:[%s10429_s4 + $0x5] ss:$8 sm:$0x3] }
 0x586   :  { %v10362_v0 = vshrl.u32 %v5347_v43, 7 }
 0x588   :  { %7110 = vmatpush1.bf16.msra.mxu1 %v7109_v20  ;;  %v10365_v34 = vsub.s32 0, %v10362_v0  ;;  %v10371_v19 = vsub.s32 1, %v10362_v0 }
 0x589   :  { %7112 = vmatprep.subr.bf16.mxu1 %v7111_v16 }
 0x58a   :  { %v5350_v5 = vrot.slane %v5837_v10, %v10365_v34  ;;  %v5354_v16 = vrot.slane %v5837_v10, %v10371_v19 }
 0x58b   :  { %5198 = vmatmul.mubr.f32.vlgmr.msra.gmra.mrb[8].mxu1 %v5098_v29 }
 0x58c   :  { %7114 = vmatpush1.bf16.msra.mxu1 %v7113_v31  ;;  %5203 = vmatprep.mubr.f32.mxu1 %v10736_v3 }
 0x58d   :  { %7116 = vmatprep.subr.bf16.mxu1 %v7115_v50 }
 0x58f   :  { %5204 = vmatmul.mubr.f32.gmra.mrb[10].mxu1 %v5099_v60 }
 0x590   :  { %7118 = vmatpush1.bf16.msra.mxu1 %v7117_v57  ;;  %5325 = vmatprep.mubr.f32.mxu1 %v10736_v3 }
 0x591   :  { %7120 = vmatprep.subr.bf16.mxu1 %v7119_v59 }
 0x594   :  { %7122 = vmatpush1.bf16.msra.mxu1 %v7121_v21 }
 0x595   :  { %7124 = vmatprep.subr.bf16.mxu1 %v7123_v18 }
 0x598   :  { %7126 = vmatpush1.bf16.msra.mxu1 %v7125_v32 }
 0x599   :  { %7128 = vmatprep.subr.bf16.mxu1 %v7127_v48 }
 0x59c   :  { %7130 = vmatpush1.bf16.msra.mxu1 %v7129_v44 }
 0x59d   :  { %7132 = vmatprep.subr.bf16.mxu1 %v7131_v4 }
 0x5a0   :  { %7134 = vmatpush1.bf16.msra.mxu1 %v7133_v8 }
 0x5a1   :  { %7136 = vmatprep.subr.bf16.mxu1 %v7135_v49 }
 0x5a4   :  { %7138 = vmatpush1.bf16.msra.mxu1 %v7137_v7 }
 0x5a5   :  { %7140 = vmatprep.subr.bf16.mxu1 %v7139_v51 }
 0x5a8   :  { %7142 = vmatpush1.bf16.msra.mxu1 %v7141_v35 }
 0x5ab   :  { %5326 = vmatmul.mubr.f32.vlgmr.msra.gmra.mrb[8].mxu1 %v5226_v45 }
 0x5ac   :  { %5331 = vmatprep.mubr.f32.mxu1 %v10736_v3 }
 0x5af   :  { %5332 = vmatmul.mubr.f32.gmra.mrb[10].mxu1 %v5227_v12 }
 0x63d   :  { %v4563_v11 = vpop.f32.mrb[28].mxu0 }
 0x63e   :  { %v4565_v9 = vpop.f32.mrb[29].mxu0 }
 0x641   :  { %v4569_v40 = vpop.f32.mrb[30].mxu0 }
 0x642   :  { %v4571_v39 = vpop.f32.mrb[31].mxu0 }
 0x67e   :  { %v5327_v46 = vpop.f32.mrb[8].mxu1 }
 0x67f   :  { %v7151_v3 = vadd.f32 %v5327_v46, %v4563_v11  ;;  %v5329_v20 = vpop.f32.mrb[9].mxu1 }
 0x680   :  { %v7152_v6 = vadd.f32 %v5329_v20, %v4565_v9  ;;  %v7309_v9 = vmov 1966171168  }
 0x681   :  { %v10375_v56 = vadd.f32 %v7151_v3, %v5350_v5 }
 0x682   :  { %v5333_v29 = vpop.f32.mrb[10].mxu1  ;;  %v10377_v50 = vadd.f32 %v7152_v6, %v5354_v16  ;;  %v5838_v6 = vld [vmem:[%s10429_s4 + $0x6] ss:$8 sm:$0x3] }
 0x683   :  { %v7153_v26 = vadd.f32 %v5333_v29, %v4569_v40  ;;  %v5335_v30 = vpop.f32.mrb[11].mxu1  ;;  %v5410_v40 = vunpack.c.l.s4 %v7309_v9 }
 0x684   :  { %v7154_v31 = vadd.f32 %v5335_v30, %v4571_v39 }
 0x685   :  { %v5359_v13 = vadd.f32 %v7153_v26, %v5350_v5  ;;  %v5411_v39 = vunpack.c.0.s8 %v5410_v40 }
 0x686   :  { %v5360_v24 = vadd.f32 %v7154_v31, %v5354_v16 }
 0x687   :  { %v5361_v25 = vadd.f32 %v5359_v13, %v10375_v56  ;;  %v5414_v10 = vsub.s32 %v5411_v39, %v10362_v0 }
 0x688   :  { %v5368_v57 = vadd.f32 %v5360_v24, %v10377_v50 }
 0x689   :  { %v5362_v60 = vrot.slane %v5361_v25, 4 }
 0x68a   :  { %v5369_v61 = vrot.slane %v5368_v57, 4 }
 0x68b   :  { %v5363_v62 = vadd.f32 %v5362_v60, %v5361_v25 }
 0x68c   :  { %v5370_v59 = vadd.f32 %v5369_v61, %v5368_v57 }
 0x68d   :  { %v5364_v63 = vrot.slane %v5363_v62, 2 }
 0x68e   :  { %v5371_v27 = vrot.slane %v5370_v59, 2 }
 0x68f   :  { %v5365_v21 = vadd.f32 %v5364_v63, %v5363_v62 }
 0x690   :  { %v5372_v28 = vadd.f32 %v5371_v27, %v5370_v59  ;;  %v5839_v59 = vld [vmem:[%s10429_s4 + $0x7] ss:$8 sm:$0x3] }
 0x691   :  { %v5366_v47 = vrot.slane %v5365_v21, 1 }
 0x692   :  { %v5373_v18 = vrot.slane %v5372_v28, 1 }
 0x693   :  { %v5367_v52 = vadd.f32 %v5366_v47, %v5365_v21 }
 0x694   :  { %v5374_v53 = vadd.f32 %v5373_v18, %v5372_v28 }
 0x695   :  { %v5376_v32 = vmul.f32 0.0625, %v5367_v52 }
 0x696   :  { %v5377_v17 = vmul.f32 0.0625, %v5374_v53 }
 0x697   :  { %v5378_v22 = vsub.f32 %v10375_v56, %v5376_v32  ;;  %v5380_v48 = vsub.f32 %v5359_v13, %v5376_v32 }
 0x698   :  { %v5379_v41 = vsub.f32 %v10377_v50, %v5377_v17  ;;  %v5381_v54 = vsub.f32 %v5360_v24, %v5377_v17 }
 0x699   :  { %v5382_v44 = vmul.f32 %v5378_v22, %v5378_v22  ;;  %v5384_v58 = vmul.f32 %v5380_v48, %v5380_v48 }
 0x69a   :  { %v5383_v36 = vmul.f32 %v5379_v41, %v5379_v41  ;;  %v5385_v4 = vmul.f32 %v5381_v54, %v5381_v54 }
 0x69b   :  { %v5386_v33 = vadd.f32 %v5384_v58, %v5382_v44 }
 0x69c   :  { %v5393_v14 = vadd.f32 %v5385_v4, %v5383_v36 }
 0x69d   :  { %v5387_v8 = vrot.slane %v5386_v33, 4 }
 0x69e   :  { %v5394_v37 = vrot.slane %v5393_v14, 4 }
 0x69f   :  { %v5388_v2 = vadd.f32 %v5387_v8, %v5386_v33 }
 0x6a0   :  { %v5395_v49 = vadd.f32 %v5394_v37, %v5393_v14 }
 0x6a1   :  { %v5389_v15 = vrot.slane %v5388_v2, 2 }
 0x6a2   :  { %v5396_v23 = vrot.slane %v5395_v49, 2 }
 0x6a3   :  { %v5390_v7 = vadd.f32 %v5389_v15, %v5388_v2 }
 0x6a4   :  { %v5397_v55 = vadd.f32 %v5396_v23, %v5395_v49 }
 0x6a5   :  { %v5391_v1 = vrot.slane %v5390_v7, 1 }
 0x6a6   :  { %v5398_v51 = vrot.slane %v5397_v55, 1 }
 0x6a7   :  { %v5392_v38 = vadd.f32 %v5391_v1, %v5390_v7 }
 0x6a8   :  { %v5399_v42 = vadd.f32 %v5398_v51, %v5397_v55 }
 0x6a9   :  { %v5400_v35 = vmul.f32 0.0625, %v5392_v38 }
 0x6aa   :  { %v5401_v45 = vmul.f32 0.0625, %v5399_v42 }
 0x6ab   :  { %v5402_v12 = vadd.f32 1e-05, %v5400_v35 }
 0x6ac   :  { %v5403_v11 = vadd.f32 1e-05, %v5401_v45 }
 0x6ad   :  { %7301 = vrsqrt.f32 %v5402_v12 }
 0x6ae   :  { %7303 = vrsqrt.f32 %v5403_v11 }
 0x6b7   :  { %v7302_v43 = vpop.eup %7301 }
 0x6b8   :  { %v7304_v46 = vpop.eup %7303 }
 0x6b9   :  { %v5408_v3 = vcombine.low %v7302_v43, %v7304_v46 }
 0x6bb   :  { %v5415_v20 = vrot.slane %v5408_v3, %v5414_v10 }
 0x6bd   :  { %v5422_v5 = vrot.slane %v5415_v20, %v5414_v10 }
 0x6bf   :  { %v5424_v16 = vmul.f32 %v5838_v6, %v5422_v5 }
 0x6c1   :  { %v5433_v29 = vrot.slane %v5424_v16, %v10371_v19  ;;  %v5429_v26 = vrot.slane %v5424_v16, %v10365_v34 }
 0x6c3   :  { %v5439_v30 = vmul.f32 %v5433_v29, %v5360_v24  ;;  %v5441_v31 = vmul.f32 %v5433_v29, %v5377_v17  ;;  %v5438_v25 = vmul.f32 %v5429_v26, %v5359_v13  ;;  %v5440_v57 = vmul.f32 %v5429_v26, %v5376_v32  ;;  %v5484_v13 = vld [vmem:[%s10429_s4 + $0x10] sm:$0xf] }
 0x6c4   :  { %v5436_v60 = vmul.f32 %v5429_v26, %v10375_v56  ;;  %v5437_v0 = vmul.f32 %v5433_v29, %v10377_v50  ;;  %v5485_v50 = vld [vmem:[%s10429_s4 + $0x18] sm:$0xf]  ;;  %v5507_v52 = vrot.slane %v5484_v13, 4 }
 0x6c5   :  { %v5444_v61 = vcombine.low %v5440_v57, %v5441_v31 }
 0x6c7   :  { %v5451_v62 = vrot.slane %v5444_v61, %v5414_v10 }
 0x6c9   :  { %v5458_v63 = vrot.slane %v5451_v62, %v5414_v10 }
 0x6cb   :  { %v5460_v27 = vsub.f32 %v5839_v59, %v5458_v63 }
 0x6cd   :  { %v5465_v21 = vrot.slane %v5460_v27, %v10365_v34  ;;  %v5469_v28 = vrot.slane %v5460_v27, %v10371_v19  ;;  %v5508_v34 = vrot.slane %v5485_v50, 4 }
 0x6cf   :  { %v5474_v24 = vadd.f32 %v5465_v21, %v5438_v25  ;;  %v5475_v56 = vadd.f32 %v5469_v28, %v5439_v30  ;;  %v5472_v47 = vadd.f32 %v5465_v21, %v5436_v60  ;;  %v5473_v18 = vadd.f32 %v5469_v28, %v5437_v0 }
 0x6d1   :  { %v5478_v53 = vmul.f32 0.2, %v5474_v24  ;;  %v5479_v32 = vmul.f32 0.2, %v5475_v56  ;;  %v5476_v17 = vmul.f32 0.2, %v5472_v47 }
 0x6d2   :  { %v5477_v22 = vmul.f32 0.2, %v5473_v18 }
 0x6d3   :  { %v5482_v48 = vmax.f32 %v5474_v24, %v5478_v53  ;;  %v5483_v19 = vmax.f32 %v5475_v56, %v5479_v32  ;;  %v5480_v41 = vmax.f32 %v5472_v47, %v5476_v17  ;;  %v5486_v47 = vld [vmem:[%s10429_s4 + $0x14] ss:$0 sm:$0xff] }
 0x6d4   :  { %v5481_v54 = vmax.f32 %v5473_v18, %v5477_v22 }
 0x6d5   :  { %v5534_v44 = vmul.f32 %v5484_v13, %v5482_v48  ;;  %v5535_v58 = vmul.f32 %v5485_v50, %v5483_v19  ;;  %v5487_v36 = vmul.f32 %v5484_v13, %v5480_v41  ;;  %v5551_v4 = vmul.f32 %v5507_v52, %v5482_v48 }
 0x6d6   :  { %v5488_v33 = vmul.f32 %v5485_v50, %v5481_v54  ;;  %v5552_v14 = vmul.f32 %v5508_v34, %v5483_v19  ;;  %v5511_v8 = vmul.f32 %v5507_v52, %v5480_v41  ;;  %v5512_v37 = vmul.f32 %v5508_v34, %v5481_v54 }
 0x6d7   :  { %v5536_v2 = vsel %vm775_vm1, %v5534_v44, 0.0  ;;  %v5537_v49 = vsel %vm775_vm1, %v5535_v58, 0.0  ;;  %v5489_v15 = vsel %vm775_vm1, %v5487_v36, 0.0  ;;  %v5555_v23 = vrot.slane %v5551_v4, 4 }
 0x6d8   :  { %v5538_v7 = vadd.f32 %v5537_v49, %v5536_v2  ;;  %v5490_v55 = vsel %vm775_vm1, %v5488_v33, 0.0  ;;  %v5556_v1 = vrot.slane %v5552_v14, 4  ;;  %v5515_v51 = vrot.slane %v5511_v8, 4 }
 0x6d9   :  { %v5491_v38 = vadd.f32 %v5490_v55, %v5489_v15  ;;  %v5559_v42 = vsel %vm775_vm1, %v5555_v23, 0.0  ;;  %v5516_v35 = vrot.slane %v5512_v37, 4 }
 0x6da   :  { %5539 = vadd.xlane.f32.xlu1 %v5538_v7  ;;  %v5560_v45 = vsel %vm775_vm1, %v5556_v1, 0.0  ;;  %v5519_v12 = vsel %vm775_vm1, %v5515_v51, 0.0 }
 0x6db   :  { %5492 = vadd.xlane.f32.xlu0 %v5491_v38  ;;  %v5561_v11 = vadd.f32 %v5560_v45, %v5559_v42  ;;  %v5520_v9 = vsel %vm775_vm1, %v5516_v35, 0.0 }
 0x6dc   :  { %v5521_v40 = vadd.f32 %v5520_v9, %v5519_v12 }
 0x6de   :  { %5562 = vadd.xlane.f32.xlu1 %v5561_v11 }
 0x6df   :  { %5522 = vadd.xlane.f32.xlu0 %v5521_v40 }
 0x767   :  { %v5540_v39 = vpop.xlane.xlu1 %5539 }
 0x768   :  { %v5541_v43 = vrot.slane %v5540_v39, 4  ;;  %v5493_v10 = vpop.xlane.xlu0 %5492 }
 0x769   :  { %v5494_v46 = vrot.slane %v5493_v10, 4 }
 0x76a   :  { %v5542_v3 = vadd.f32 %v5541_v43, %v5540_v39 }
 0x76b   :  { %v5495_v20 = vadd.f32 %v5494_v46, %v5493_v10  ;;  %v5563_v6 = vpop.xlane.xlu1 %5562 }
 0x76c   :  { %v5543_v5 = vrot.slane %v5542_v3, 2  ;;  %v5564_v16 = vrot.slane %v5563_v6, 4  ;;  %v5523_v29 = vpop.xlane.xlu0 %5522 }
 0x76d   :  { %v5496_v26 = vrot.slane %v5495_v20, 2  ;;  %v5524_v30 = vrot.slane %v5523_v29, 4 }
 0x76e   :  { %v5565_v31 = vadd.f32 %v5564_v16, %v5563_v6  ;;  %v5544_v0 = vadd.f32 %v5543_v5, %v5542_v3 }
 0x76f   :  { %v5525_v25 = vadd.f32 %v5524_v30, %v5523_v29  ;;  %v5497_v57 = vadd.f32 %v5496_v26, %v5495_v20 }
 0x770   :  { %v5566_v60 = vrot.slane %v5565_v31, 2  ;;  %v5545_v21 = vrot.slane %v5544_v0, 1 }
 0x771   :  { %v5526_v61 = vrot.slane %v5525_v25, 2  ;;  %v5498_v62 = vrot.slane %v5497_v57, 1 }
 0x772   :  { %v5567_v59 = vadd.f32 %v5566_v60, %v5565_v31  ;;  %v5546_v50 = vadd.f32 %v5545_v21, %v5544_v0 }
 0x773   :  { %v5527_v63 = vadd.f32 %v5526_v61, %v5525_v25  ;;  %v5499_v27 = vadd.f32 %v5498_v62, %v5497_v57 }
 0x774   :  { %v5568_v28 = vrot.slane %v5567_v59, 1 }
 0x775   :  { %7287 = vpush %v5499_v27  ;;  %v5528_v13 = vrot.slane %v5527_v63, 1 }
 0x776   :  { %v5569_v56 = vadd.f32 %v5568_v28, %v5567_v59 }
 0x777   :  { %v5529_v24 = vadd.f32 %v5528_v13, %v5527_v63 }
 0x779   :  { %7289 = vpush %v5529_v24 }
 0x77a   :  { %7291 = vpush %v5546_v50 }
 0x77b   :  { %7293 = vpush %v5569_v56 }
 0x7a6   :  { %s7288_s19 = spop %7287 }
 0x7a7   :  { %v5501_v18 = vstv %s7288_s19 }
 0x7a8   :  { %v5502_v52 = vadd.f32 %v5501_v18, %v5486_v47 }
 0x7aa   :  { %5504 = vst.msk [vmem:[%s10431_s6] sm:$0x1] %vm5503_vm6, %v5502_v52  ;;  %s7290_s21 = spop %7289 }
 0x7ab   :  { %v5531_v53 = vstv %s7290_s21  ;;  %s7292_s22 = spop %7291 }
 0x7ac   :  { %v5532_v32 = vadd.f32 %v5531_v53, %v5486_v47  ;;  %v5548_v17 = vstv %s7292_s22  ;;  %s7294_s23 = spop %7293 }
 0x7ad   :  { %v5549_v22 = vadd.f32 %v5548_v17, %v5486_v47  ;;  %v5571_v34 = vstv %s7294_s23 }
 0x7ae   :  { %5533 = vst.msk [vmem:[%s10431_s6 + $0x1] sm:$0x1] %vm5503_vm6, %v5532_v32  ;;  %v5572_v48 = vadd.f32 %v5571_v34, %v5486_v47 }
 0x7af   :  { %5550 = vst.msk [vmem:[%s10431_s6 + $0x2] sm:$0x1] %vm5503_vm6, %v5549_v22 }
 0x7b0   :  { %5573 = vst.msk [vmem:[%s10431_s6 + $0x3] sm:$0x1] %vm5503_vm6, %v5572_v48 }
 0x7b1   :  { %5578 = vsyncmov [#allocation3] }
 0x7b4   :  { %s5579_s3 = vpop.sfrf %5578 }
 0x7b5   :  { %p5840_p0 = scmp.ne.s32.totalorder %s5579_s3, 0 }
 0x7b7   :  { %5583 = shalt.err (%p5840_p0)  }

</bundles_post_ra>
